<compile_context>
chip_gen: v6e
topology: v6e:2x2x1
jax: 0.10.0
libtpu: 0.0.40
codegen_flags: <defaults>
</compile_context>

<pallas_src>
import functools

import jax
import jax.numpy as jnp
from jax.experimental import pallas as pl
from jax.experimental.pallas import tpu as pltpu


# ----------------------------------------------------------------------------
# Kernel A: conv1 + 16 recurrent blocks + conv4 + BN + residuals + PReLU
# ----------------------------------------------------------------------------
def _generator_core_kernel(alph_ref, p1_ref, w1_ref, b1_ref, mask_ref,
                           wblk_ref, bblk_ref, gblk_ref, beblk_ref,
                           w4_ref, g4_ref, be4_ref,
                           o_ref, pbuf, tbuf, x1buf,
                           *, n_blocks, mp, pad0, wp, eps, inv_m):
    i = pl.program_id(0)
    mask = mask_ref[...]                                   # (mp, 1) f32, 1.0 on interior pixels

    def prelu(v, a):
        return jnp.where(v >= 0.0, v, v * a)

    def conv3x3(src, rhs_fn):
        # 3x3 / pad=1 conv as 9 statically-shifted (mp,64)x(64,64) MXU matmuls on the
        # zero-halo'd padded buffer (no im2col).
        acc = None
        for ky in range(3):
            for kx in range(3):
                k = ky * 3 + kx
                s = pad0 + (ky - 1) * wp + (kx - 1)
                lhs = src[s:s + mp, :].astype(jnp.bfloat16)
                d = jnp.dot(lhs, rhs_fn(k), preferred_element_type=jnp.float32)
                acc = d if acc is None else acc + d
        return acc

    def batchnorm(acc, gamma, beta):
        # training-mode BatchNorm2d: biased batch stats over the N*H*W interior pixels
        am = acc * mask
        mean = jnp.sum(am, axis=0, keepdims=True) * inv_m
        cen = (acc - mean) * mask
        var = jnp.sum(cen * cen, axis=0, keepdims=True) * inv_m
        return cen * jax.lax.rsqrt(var + eps) * gamma + beta

    # ---- grid step 0: zero halo buffers and run conv_block_1 (4x4/s2 conv + PReLU) ----
    @pl.when(i == 0)
    def _():
        pbuf[...] = jnp.zeros_like(pbuf)
        tbuf[...] = jnp.zeros_like(tbuf)
        acc = jnp.dot(p1_ref[...], w1_ref[...], preferred_element_type=jnp.float32)
        h = prelu(acc + b1_ref[...], alph_ref[0]) * mask
        x1buf[...] = h                       # kept for the outer residual
        pbuf[pad0:pad0 + mp, :] = h

    # ---- every grid step: one Recurrent_block ------------------------------------------
    a_blk = alph_ref[2 + i]                  # shared PReLU alpha of this block
    resid = pbuf[pad0:pad0 + mp, :]          # block input (residual)

    acc_a = conv3x3(pbuf, lambda k: wblk_ref[0, 0, k * 64:(k + 1) * 64, :]) + bblk_ref[0, 0]
    h_a = prelu(batchnorm(acc_a, gblk_ref[0, 0], beblk_ref[0, 0]), a_blk) * mask
    tbuf[pad0:pad0 + mp, :] = h_a

    acc_b = conv3x3(tbuf, lambda k: wblk_ref[0, 1, k * 64:(k + 1) * 64, :]) + bblk_ref[0, 1]
    h_b = prelu(batchnorm(acc_b, gblk_ref[0, 1], beblk_ref[0, 1]), a_blk) * mask
    pbuf[pad0:pad0 + mp, :] = h_b + resid

    # ---- last step: conv_block_4 + BN, outer residual with conv_block_1 output,
    #      then the Upsample PReLU (scalar pointwise -> commutes with PixelShuffle) -------
    @pl.when(i == n_blocks - 1)
    def _():
        acc4 = conv3x3(pbuf, lambda k: w4_ref[k * 64:(k + 1) * 64, :])
        y4 = batchnorm(acc4, g4_ref[...], be4_ref[...])
        z = x1buf[...] + y4
        o_ref[...] = prelu(z, alph_ref[1]).astype(o_ref.dtype)


# ----------------------------------------------------------------------------
# Kernel B: conv_block_5 (16->3, 3x3) + Tanh, transposed product (lane-dense output)
# ----------------------------------------------------------------------------
def _conv5_tanh_kernel(pT_ref, w_ref, b_ref, o_ref):
    acc = jnp.dot(w_ref[...], pT_ref[...], preferred_element_type=jnp.float32)
    o_ref[...] = jnp.tanh(acc + b_ref[...])


# ----------------------------------------------------------------------------
# Parameters (deterministic init; shapes from Generator.__init__, downsample=True)
# ----------------------------------------------------------------------------
def init_params(key, n_blocks=16):
    keys = iter(jax.random.split(key, 8 + 4 * n_blocks))

    def rnd(shape, scale=0.05):
        return jax.random.normal(next(keys), shape, jnp.float32) * scale

    params = {
        "w1": rnd((64, 3, 4, 4)),                      # Conv2d(3,64,k=4,s=2,p=1,bias=True)
        "b1": rnd((64,)),
        "a1": jnp.full((1,), 0.25, jnp.float32),       # conv_block_1 PReLU
        "blocks": [],
        "w4": rnd((64, 64, 3, 3)),                     # Conv2d(64,64,3,1,1,bias=False)
        "g4": jnp.ones((64,), jnp.float32),
        "be4": jnp.zeros((64,), jnp.float32),
        "a_up": jnp.full((1,), 0.25, jnp.float32),     # Upsample PReLU
        "w5": rnd((3, 16, 3, 3)),                      # Conv2d(16,3,3,1,1,bias=True)
        "b5": rnd((3,)),
    }
    for _ in range(n_blocks):
        params["blocks"].append({
            "w1": rnd((64, 64, 3, 3)), "b1": rnd((64,)),
            "g1": jnp.ones((64,), jnp.float32), "be1": jnp.zeros((64,), jnp.float32),
            "w2": rnd((64, 64, 3, 3)), "b2": rnd((64,)),
            "g2": jnp.ones((64,), jnp.float32), "be2": jnp.zeros((64,), jnp.float32),
            "a": jnp.full((1,), 0.25, jnp.float32),    # shared PReLU inside the block
        })
    return params


def prepare_params(params):
    """Repack PyTorch-layout params into kernel-ready (bf16) stacked arrays. Called once,
    outside the jitted forward."""
    nb = len(params["blocks"])

    def conv3_w(w):  # (Cout, Cin, 3, 3) -> (9*Cin, Cout), rows ordered (ky, kx, cin)
        cout, cin = w.shape[0], w.shape[1]
        return jnp.transpose(w, (2, 3, 1, 0)).reshape(9 * cin, cout)

    w1m = params["w1"].reshape(64, 48).T               # rows (cin, kh, kw)
    w1m = jnp.pad(w1m, ((0, 16), (0, 0))).astype(jnp.bfloat16)   # K padded 48 -> 64

    wblk = jnp.stack([jnp.stack([conv3_w(b["w1"]), conv3_w(b["w2"])])
                      for b in params["blocks"]]).astype(jnp.bfloat16)
    bblk = jnp.stack([jnp.stack([b["b1"], b["b2"]]) for b in params["blocks"]]
                     ).reshape(nb, 2, 1, 64).astype(jnp.float32)
    gblk = jnp.stack([jnp.stack([b["g1"], b["g2"]]) for b in params["blocks"]]
                     ).reshape(nb, 2, 1, 64).astype(jnp.float32)
    beblk = jnp.stack([jnp.stack([b["be1"], b["be2"]]) for b in params["blocks"]]
                      ).reshape(nb, 2, 1, 64).astype(jnp.float32)

    alph = jnp.concatenate(
        [params["a1"].reshape(1), params["a_up"].reshape(1)]
        + [b["a"].reshape(1) for b in params["blocks"]]).astype(jnp.float32)

    w5m = jnp.pad(params["w5"].reshape(3, 144), ((0, 5), (0, 0))).astype(jnp.bfloat16)
    b5 = jnp.pad(params["b5"], (0, 5)).reshape(8, 1).astype(jnp.float32)

    return {
        "w1m": w1m, "b1": params["b1"].reshape(1, 64).astype(jnp.float32),
        "wblk": wblk, "bblk": bblk, "gblk": gblk, "beblk": beblk,
        "w4m": conv3_w(params["w4"]).astype(jnp.bfloat16),
        "g4": params["g4"].reshape(1, 64).astype(jnp.float32),
        "be4": params["be4"].reshape(1, 64).astype(jnp.float32),
        "alph": alph,
        "w5m": w5m, "b5": b5,
    }


# ----------------------------------------------------------------------------
# Generator forward (downsample=True)
# ----------------------------------------------------------------------------
def generator_forward(x, kp):
    N, _, H, W = x.shape
    nb = kp["wblk"].shape[0]
    oh, ow = H // 2, W // 2
    hp, wp = oh + 2, ow + 2
    mp = N * hp * wp                       # rows of the zero-halo'd feature map
    pad0 = ((wp + 1 + 7) // 8) * 8         # shift guard, rounded up for sublane alignment
    mpad = mp + 2 * pad0
    m_int = N * oh * ow                    # true pixel count for BN statistics

    # ---- conv_block_1 im2col (3 input channels only; K padded 48->64), laid out directly
    #      on the padded grid (halo rows get zero patches and are masked after the conv).
    xp = jnp.pad(x, ((0, 0), (0, 0), (1, 1), (1, 1)))
    cols = [xp[:, :, i:i + 2 * oh:2, j:j + 2 * ow:2] for i in range(4) for j in range(4)]
    p1 = jnp.stack(cols, 0).reshape(4, 4, N, 3, oh, ow)
    p1 = p1.transpose(2, 4, 5, 3, 0, 1).reshape(N, oh, ow, 48)
    p1 = jnp.pad(p1, ((0, 0), (1, 1), (1, 1), (0, 16)))
    p1 = p1.reshape(mp, 64).astype(jnp.bfloat16)

    mask = jnp.zeros((N, hp, wp, 1), jnp.float32).at[:, 1:-1, 1:-1, :].set(1.0).reshape(mp, 1)

    kern = functools.partial(
        _generator_core_kernel,
        n_blocks=nb, mp=mp, pad0=pad0, wp=wp, eps=1e-5, inv_m=1.0 / m_int)

    flops = 2 * mp * 64 * 64 + (2 * nb + 1) * 2 * mp * 576 * 64
    bytes_acc = (p1.size * 2 + kp["w1m"].size * 2 + kp["wblk"].size * 2 + kp["w4m"].size * 2
                 + (kp["b1"].size + kp["bblk"].size + kp["gblk"].size + kp["beblk"].size
                    + kp["g4"].size + kp["be4"].size + kp["alph"].size + mask.size) * 4
                 + mp * 64 * 2)

    rep2 = lambda i: (0, 0)
    core_out = pl.pallas_call(
        kern,
        out_shape=jax.ShapeDtypeStruct((mp, 64), jnp.bfloat16),
        grid=(nb,),
        in_specs=[
            pl.BlockSpec(memory_space=pltpu.MemorySpace.SMEM),        # PReLU alphas
            pl.BlockSpec((mp, 64), rep2),                             # conv1 patches
            pl.BlockSpec((64, 64), rep2),                             # conv1 weight (K padded)
            pl.BlockSpec((1, 64), rep2),                              # conv1 bias
            pl.BlockSpec((mp, 1), rep2),                              # interior mask
            pl.BlockSpec((1, 2, 576, 64), lambda i: (i, 0, 0, 0)),    # block conv weights
            pl.BlockSpec((1, 2, 1, 64), lambda i: (i, 0, 0, 0)),      # block conv biases
            pl.BlockSpec((1, 2, 1, 64), lambda i: (i, 0, 0, 0)),      # block BN gamma
            pl.BlockSpec((1, 2, 1, 64), lambda i: (i, 0, 0, 0)),      # block BN beta
            pl.BlockSpec((576, 64), rep2),                            # conv4 weight
            pl.BlockSpec((1, 64), rep2),                              # conv4 BN gamma
            pl.BlockSpec((1, 64), rep2),                              # conv4 BN beta
        ],
        out_specs=pl.BlockSpec((mp, 64), rep2),
        scratch_shapes=[
            pltpu.VMEM((mpad, 64), jnp.float32),    # padded feature map (and residual source)
            pltpu.VMEM((mpad, 64), jnp.float32),    # padded intra-block temp
            pltpu.VMEM((mp, 64), jnp.float32),      # conv_block_1 output (outer residual)
        ],
        compiler_params=pltpu.CompilerParams(
            dimension_semantics=("arbitrary",),
            vmem_limit_bytes=32 * 1024 * 1024),
        cost_estimate=pl.CostEstimate(flops=flops, transcendentals=(2 * nb + 1) * 64,
                                      bytes_accessed=bytes_acc),
    )(kp["alph"], p1, kp["w1m"], kp["b1"], mask,
      kp["wblk"], kp["bblk"], kp["gblk"], kp["beblk"],
      kp["w4m"], kp["g4"], kp["be4"])

    # ---- PixelShuffle(2) in NHWC (pure layout, JAX glue) --------------------------------
    feat = core_out.reshape(N, hp, wp, 64)[:, 1:-1, 1:-1, :]
    feat = feat.reshape(N, oh, ow, 16, 2, 2).transpose(0, 1, 4, 2, 5, 3)
    feat = feat.reshape(N, 2 * oh, 2 * ow, 16)

    # ---- conv_block_5 + Tanh: transposed patches so the lane dim is M2 (lane-dense) ----
    h2, w2 = 2 * oh, 2 * ow
    m2 = N * h2 * w2
    fp = jnp.pad(feat, ((0, 0), (1, 1), (1, 1), (0, 0)))
    slabs = [fp[:, ky:ky + h2, kx:kx + w2, :] for ky in range(3) for kx in range(3)]
    pT = jnp.stack(slabs, 0).reshape(3, 3, N, h2, w2, 16)
    pT = pT.transpose(5, 0, 1, 2, 3, 4).reshape(144, m2).astype(jnp.bfloat16)

    tn = 128 if m2 % 128 == 0 else m2
    out5 = pl.pallas_call(
        _conv5_tanh_kernel,
        out_shape=jax.ShapeDtypeStruct((8, m2), jnp.float32),
        grid=(m2 // tn,),
        in_specs=[pl.BlockSpec((144, tn), lambda j: (0, j)),
                  pl.BlockSpec((8, 144), lambda j: (0, 0)),
                  pl.BlockSpec((8, 1), lambda j: (0, 0))],
        out_specs=pl.BlockSpec((8, tn), lambda j: (0, j)),
        compiler_params=pltpu.CompilerParams(dimension_semantics=("parallel",)),
        cost_estimate=pl.CostEstimate(flops=2 * 8 * 144 * m2, transcendentals=8 * m2,
                                      bytes_accessed=144 * m2 * 2 + 8 * 144 * 2 + 32 + 8 * m2 * 4),
    )(pT, kp["w5m"], kp["b5"])

    return out5[:3].reshape(3, N, h2, w2).transpose(1, 0, 2, 3)   # NCHW


if __name__ == "__main__":
    key = jax.random.PRNGKey(0)
    k_in, k_par = jax.random.split(key)

    N, C, H, W = 2, 3, 16, 16                  # module requires 3 input channels, even H/W
    x = jax.random.normal(k_in, (N, C, H, W), jnp.float32)
    params = init_params(k_par, n_blocks=16)
    kparams = prepare_params(params)           # weight repacking hoisted out of the forward

    fwd = jax.jit(generator_forward)
    out = fwd(x, kparams)
    jax.block_until_ready(out)

    assert out.shape == (N, 3, H, W), out.shape    # downsample /2 then PixelShuffle x2
    assert bool(jnp.all(jnp.isfinite(out)))
    print("KERNEL_OK")
</pallas_src>

<mosaic_0001>
module attributes {stable_mosaic.version = 11 : i64} {
  func.func @_generator_core_kernel(%arg0: i32, %arg1: memref<18xf32, #tpu.memory_space<smem>>, %arg2: memref<200x64xbf16, #tpu.memory_space<vmem>>, %arg3: memref<64x64xbf16, #tpu.memory_space<vmem>>, %arg4: memref<1x64xf32, #tpu.memory_space<vmem>>, %arg5: memref<200x1xf32, #tpu.memory_space<vmem>>, %arg6: memref<1x2x576x64xbf16, #tpu.memory_space<vmem>>, %arg7: memref<1x2x1x64xf32, #tpu.memory_space<vmem>>, %arg8: memref<1x2x1x64xf32, #tpu.memory_space<vmem>>, %arg9: memref<1x2x1x64xf32, #tpu.memory_space<vmem>>, %arg10: memref<576x64xbf16, #tpu.memory_space<vmem>>, %arg11: memref<1x64xf32, #tpu.memory_space<vmem>>, %arg12: memref<1x64xf32, #tpu.memory_space<vmem>>, %arg13: memref<200x64xbf16, #tpu.memory_space<vmem>>, %arg14: memref<232x64xf32, #tpu.memory_space<vmem>>, %arg15: memref<232x64xf32, #tpu.memory_space<vmem>>, %arg16: memref<200x64xf32, #tpu.memory_space<vmem>>) attributes {dimension_semantics = [#tpu.dimension_semantics<arbitrary>], iteration_bounds = array<i64: 16>, scalar_prefetch = 0 : i64, scratch_operands = 3 : i64, tpu.core_type = #tpu.core_type<tc>, window_params = [{transform_indices = @transform_0, window_bounds = array<i64: 18>}, {pipeline_mode = #tpu.pipeline_mode<synchronous>, transform_indices = @transform_1, window_bounds = array<i64: 200, 64>}, {pipeline_mode = #tpu.pipeline_mode<synchronous>, transform_indices = @transform_2, window_bounds = array<i64: 64, 64>}, {pipeline_mode = #tpu.pipeline_mode<synchronous>, transform_indices = @transform_3, window_bounds = array<i64: 1, 64>}, {pipeline_mode = #tpu.pipeline_mode<synchronous>, transform_indices = @transform_4, window_bounds = array<i64: 200, 1>}, {transform_indices = @transform_5, window_bounds = array<i64: 1, 2, 576, 64>}, {transform_indices = @transform_6, window_bounds = array<i64: 1, 2, 1, 64>}, {transform_indices = @transform_7, window_bounds = array<i64: 1, 2, 1, 64>}, {transform_indices = @transform_8, window_bounds = array<i64: 1, 2, 1, 64>}, {pipeline_mode = #tpu.pipeline_mode<synchronous>, transform_indices = @transform_9, window_bounds = array<i64: 576, 64>}, {pipeline_mode = #tpu.pipeline_mode<synchronous>, transform_indices = @transform_10, window_bounds = array<i64: 1, 64>}, {pipeline_mode = #tpu.pipeline_mode<synchronous>, transform_indices = @transform_11, window_bounds = array<i64: 1, 64>}, {pipeline_mode = #tpu.pipeline_mode<synchronous>, transform_indices = @transform_12, window_bounds = array<i64: 200, 64>}]} {
    %c0 = arith.constant 0 : index
    %c0_0 = arith.constant 0 : index
    %0 = vector.load %arg5[%c0, %c0_0] : memref<200x1xf32, #tpu.memory_space<vmem>>, vector<200x1xf32>
    %c0_i32 = arith.constant 0 : i32
    %1 = arith.cmpi eq, %arg0, %c0_i32 : i32
    %2 = arith.extui %1 : i1 to i32
    %c0_i32_1 = arith.constant 0 : i32
    %3 = arith.cmpi ne, %2, %c0_i32_1 : i32
    scf.if %3 {
      %cst_152 = arith.constant 0.000000e+00 : f32
      %198 = vector.broadcast %cst_152 : f32 to vector<232x64xf32>
      %c0_153 = arith.constant 0 : index
      %c0_154 = arith.constant 0 : index
      %199 = vector.load %arg14[%c0_153, %c0_154] : memref<232x64xf32, #tpu.memory_space<vmem>>, vector<232x64xf32>
      tpu.vector_store %arg14[%c0_153, %c0_154], %198 {strides = array<i32>} : memref<232x64xf32, #tpu.memory_space<vmem>>, vector<232x64xf32>,
      %cst_155 = arith.constant 0.000000e+00 : f32
      %200 = vector.broadcast %cst_155 : f32 to vector<232x64xf32>
      %c0_156 = arith.constant 0 : index
      %c0_157 = arith.constant 0 : index
      %201 = vector.load %arg15[%c0_156, %c0_157] : memref<232x64xf32, #tpu.memory_space<vmem>>, vector<232x64xf32>
      tpu.vector_store %arg15[%c0_156, %c0_157], %200 {strides = array<i32>} : memref<232x64xf32, #tpu.memory_space<vmem>>, vector<232x64xf32>,
      %c0_158 = arith.constant 0 : index
      %c0_159 = arith.constant 0 : index
      %202 = vector.load %arg2[%c0_158, %c0_159] : memref<200x64xbf16, #tpu.memory_space<vmem>>, vector<200x64xbf16>
      %c0_160 = arith.constant 0 : index
      %c0_161 = arith.constant 0 : index
      %203 = vector.load %arg3[%c0_160, %c0_161] : memref<64x64xbf16, #tpu.memory_space<vmem>>, vector<64x64xbf16>
      %cst_162 = arith.constant dense<0.000000e+00> : vector<200x64xf32>
      %204 = tpu.matmul %202, %203, %cst_162 {dimension_numbers = #tpu.dot_dimension_numbers<[1], [0], [0], [1], [0, 0, 1, 1], [], []>} : vector<200x64xbf16>, vector<64x64xbf16>, vector<200x64xf32> -> vector<200x64xf32>
      %c0_163 = arith.constant 0 : index
      %c0_164 = arith.constant 0 : index
      %205 = vector.load %arg4[%c0_163, %c0_164] : memref<1x64xf32, #tpu.memory_space<vmem>>, vector<1x64xf32>
      %206 = vector.broadcast %205 : vector<1x64xf32> to vector<200x64xf32>
      %207 = arith.addf %204, %206 : vector<200x64xf32>
      %c0_165 = arith.constant 0 : index
      %208 = memref.load %arg1[%c0_165] : memref<18xf32, #tpu.memory_space<smem>>
      %cst_166 = arith.constant 0.000000e+00 : f32
      %209 = vector.broadcast %cst_166 : f32 to vector<200x64xf32>
      %210 = arith.cmpf oge, %207, %209 : vector<200x64xf32>
      %211 = vector.broadcast %208 : f32 to vector<200x64xf32>
      %212 = arith.mulf %207, %211 : vector<200x64xf32>
      %213 = arith.select %210, %207, %212 : vector<200x64xi1>, vector<200x64xf32>
      %214 = vector.broadcast %0 : vector<200x1xf32> to vector<200x64xf32>
      %215 = arith.mulf %213, %214 : vector<200x64xf32>
      %c0_167 = arith.constant 0 : index
      %c0_168 = arith.constant 0 : index
      %216 = vector.load %arg16[%c0_167, %c0_168] : memref<200x64xf32, #tpu.memory_space<vmem>>, vector<200x64xf32>
      tpu.vector_store %arg16[%c0_167, %c0_168], %215 {strides = array<i32>} : memref<200x64xf32, #tpu.memory_space<vmem>>, vector<200x64xf32>,
      %c16_169 = arith.constant 16 : index
      %c0_170 = arith.constant 0 : index
      %217 = vector.load %arg14[%c16_169, %c0_170] : memref<232x64xf32, #tpu.memory_space<vmem>>, vector<200x64xf32>
      tpu.vector_store %arg14[%c16_169, %c0_170], %215 {strides = array<i32>} : memref<232x64xf32, #tpu.memory_space<vmem>>, vector<200x64xf32>,
    } else {
    }
    %c2_i32 = arith.constant 2 : i32
    %4 = arith.addi %c2_i32, %arg0 : i32
    %5 = arith.index_cast %4 : i32 to index
    %6 = memref.load %arg1[%5] : memref<18xf32, #tpu.memory_space<smem>>
    %c16 = arith.constant 16 : index
    %c0_2 = arith.constant 0 : index
    %7 = vector.load %arg14[%c16, %c0_2] : memref<232x64xf32, #tpu.memory_space<vmem>>, vector<200x64xf32>
    %c5 = arith.constant 5 : index
    %c0_3 = arith.constant 0 : index
    %8 = vector.load %arg14[%c5, %c0_3] : memref<232x64xf32, #tpu.memory_space<vmem>>, vector<200x64xf32>
    %9 = arith.truncf %8 : vector<200x64xf32> to vector<200x64xbf16>
    %c0_4 = arith.constant 0 : index
    %c0_5 = arith.constant 0 : index
    %c0_6 = arith.constant 0 : index
    %c0_7 = arith.constant 0 : index
    %10 = vector.load %arg6[%c0_4, %c0_5, %c0_6, %c0_7] : memref<1x2x576x64xbf16, #tpu.memory_space<vmem>>, vector<1x1x64x64xbf16>
    %11 = vector.shape_cast %10 : vector<1x1x64x64xbf16> to vector<64x64xbf16>
    %cst = arith.constant dense<0.000000e+00> : vector<200x64xf32>
    %12 = tpu.matmul %9, %11, %cst {dimension_numbers = #tpu.dot_dimension_numbers<[1], [0], [0], [1], [0, 0, 1, 1], [], []>} : vector<200x64xbf16>, vector<64x64xbf16>, vector<200x64xf32> -> vector<200x64xf32>
    %c6 = arith.constant 6 : index
    %c0_8 = arith.constant 0 : index
    %13 = vector.load %arg14[%c6, %c0_8] : memref<232x64xf32, #tpu.memory_space<vmem>>, vector<200x64xf32>
    %14 = arith.truncf %13 : vector<200x64xf32> to vector<200x64xbf16>
    %c0_9 = arith.constant 0 : index
    %c0_10 = arith.constant 0 : index
    %c64 = arith.constant 64 : index
    %c0_11 = arith.constant 0 : index
    %15 = vector.load %arg6[%c0_9, %c0_10, %c64, %c0_11] : memref<1x2x576x64xbf16, #tpu.memory_space<vmem>>, vector<1x1x64x64xbf16>
    %16 = vector.shape_cast %15 : vector<1x1x64x64xbf16> to vector<64x64xbf16>
    %cst_12 = arith.constant dense<0.000000e+00> : vector<200x64xf32>
    %17 = tpu.matmul %14, %16, %cst_12 {dimension_numbers = #tpu.dot_dimension_numbers<[1], [0], [0], [1], [0, 0, 1, 1], [], []>} : vector<200x64xbf16>, vector<64x64xbf16>, vector<200x64xf32> -> vector<200x64xf32>
    %18 = arith.addf %12, %17 : vector<200x64xf32>
    %c7 = arith.constant 7 : index
    %c0_13 = arith.constant 0 : index
    %19 = vector.load %arg14[%c7, %c0_13] : memref<232x64xf32, #tpu.memory_space<vmem>>, vector<200x64xf32>
    %20 = arith.truncf %19 : vector<200x64xf32> to vector<200x64xbf16>
    %c0_14 = arith.constant 0 : index
    %c0_15 = arith.constant 0 : index
    %c128 = arith.constant 128 : index
    %c0_16 = arith.constant 0 : index
    %21 = vector.load %arg6[%c0_14, %c0_15, %c128, %c0_16] : memref<1x2x576x64xbf16, #tpu.memory_space<vmem>>, vector<1x1x64x64xbf16>
    %22 = vector.shape_cast %21 : vector<1x1x64x64xbf16> to vector<64x64xbf16>
    %cst_17 = arith.constant dense<0.000000e+00> : vector<200x64xf32>
    %23 = tpu.matmul %20, %22, %cst_17 {dimension_numbers = #tpu.dot_dimension_numbers<[1], [0], [0], [1], [0, 0, 1, 1], [], []>} : vector<200x64xbf16>, vector<64x64xbf16>, vector<200x64xf32> -> vector<200x64xf32>
    %24 = arith.addf %18, %23 : vector<200x64xf32>
    %c15 = arith.constant 15 : index
    %c0_18 = arith.constant 0 : index
    %25 = vector.load %arg14[%c15, %c0_18] : memref<232x64xf32, #tpu.memory_space<vmem>>, vector<200x64xf32>
    %26 = arith.truncf %25 : vector<200x64xf32> to vector<200x64xbf16>
    %c0_19 = arith.constant 0 : index
    %c0_20 = arith.constant 0 : index
    %c192 = arith.constant 192 : index
    %c0_21 = arith.constant 0 : index
    %27 = vector.load %arg6[%c0_19, %c0_20, %c192, %c0_21] : memref<1x2x576x64xbf16, #tpu.memory_space<vmem>>, vector<1x1x64x64xbf16>
    %28 = vector.shape_cast %27 : vector<1x1x64x64xbf16> to vector<64x64xbf16>
    %cst_22 = arith.constant dense<0.000000e+00> : vector<200x64xf32>
    %29 = tpu.matmul %26, %28, %cst_22 {dimension_numbers = #tpu.dot_dimension_numbers<[1], [0], [0], [1], [0, 0, 1, 1], [], []>} : vector<200x64xbf16>, vector<64x64xbf16>, vector<200x64xf32> -> vector<200x64xf32>
    %30 = arith.addf %24, %29 : vector<200x64xf32>
    %c16_23 = arith.constant 16 : index
    %c0_24 = arith.constant 0 : index
    %31 = vector.load %arg14[%c16_23, %c0_24] : memref<232x64xf32, #tpu.memory_space<vmem>>, vector<200x64xf32>
    %32 = arith.truncf %31 : vector<200x64xf32> to vector<200x64xbf16>
    %c0_25 = arith.constant 0 : index
    %c0_26 = arith.constant 0 : index
    %c256 = arith.constant 256 : index
    %c0_27 = arith.constant 0 : index
    %33 = vector.load %arg6[%c0_25, %c0_26, %c256, %c0_27] : memref<1x2x576x64xbf16, #tpu.memory_space<vmem>>, vector<1x1x64x64xbf16>
    %34 = vector.shape_cast %33 : vector<1x1x64x64xbf16> to vector<64x64xbf16>
    %cst_28 = arith.constant dense<0.000000e+00> : vector<200x64xf32>
    %35 = tpu.matmul %32, %34, %cst_28 {dimension_numbers = #tpu.dot_dimension_numbers<[1], [0], [0], [1], [0, 0, 1, 1], [], []>} : vector<200x64xbf16>, vector<64x64xbf16>, vector<200x64xf32> -> vector<200x64xf32>
    %36 = arith.addf %30, %35 : vector<200x64xf32>
    %c17 = arith.constant 17 : index
    %c0_29 = arith.constant 0 : index
    %37 = vector.load %arg14[%c17, %c0_29] : memref<232x64xf32, #tpu.memory_space<vmem>>, vector<200x64xf32>
    %38 = arith.truncf %37 : vector<200x64xf32> to vector<200x64xbf16>
    %c0_30 = arith.constant 0 : index
    %c0_31 = arith.constant 0 : index
    %c320 = arith.constant 320 : index
    %c0_32 = arith.constant 0 : index
    %39 = vector.load %arg6[%c0_30, %c0_31, %c320, %c0_32] : memref<1x2x576x64xbf16, #tpu.memory_space<vmem>>, vector<1x1x64x64xbf16>
    %40 = vector.shape_cast %39 : vector<1x1x64x64xbf16> to vector<64x64xbf16>
    %cst_33 = arith.constant dense<0.000000e+00> : vector<200x64xf32>
    %41 = tpu.matmul %38, %40, %cst_33 {dimension_numbers = #tpu.dot_dimension_numbers<[1], [0], [0], [1], [0, 0, 1, 1], [], []>} : vector<200x64xbf16>, vector<64x64xbf16>, vector<200x64xf32> -> vector<200x64xf32>
    %42 = arith.addf %36, %41 : vector<200x64xf32>
    %c25 = arith.constant 25 : index
    %c0_34 = arith.constant 0 : index
    %43 = vector.load %arg14[%c25, %c0_34] : memref<232x64xf32, #tpu.memory_space<vmem>>, vector<200x64xf32>
    %44 = arith.truncf %43 : vector<200x64xf32> to vector<200x64xbf16>
    %c0_35 = arith.constant 0 : index
    %c0_36 = arith.constant 0 : index
    %c384 = arith.constant 384 : index
    %c0_37 = arith.constant 0 : index
    %45 = vector.load %arg6[%c0_35, %c0_36, %c384, %c0_37] : memref<1x2x576x64xbf16, #tpu.memory_space<vmem>>, vector<1x1x64x64xbf16>
    %46 = vector.shape_cast %45 : vector<1x1x64x64xbf16> to vector<64x64xbf16>
    %cst_38 = arith.constant dense<0.000000e+00> : vector<200x64xf32>
    %47 = tpu.matmul %44, %46, %cst_38 {dimension_numbers = #tpu.dot_dimension_numbers<[1], [0], [0], [1], [0, 0, 1, 1], [], []>} : vector<200x64xbf16>, vector<64x64xbf16>, vector<200x64xf32> -> vector<200x64xf32>
    %48 = arith.addf %42, %47 : vector<200x64xf32>
    %c26 = arith.constant 26 : index
    %c0_39 = arith.constant 0 : index
    %49 = vector.load %arg14[%c26, %c0_39] : memref<232x64xf32, #tpu.memory_space<vmem>>, vector<200x64xf32>
    %50 = arith.truncf %49 : vector<200x64xf32> to vector<200x64xbf16>
    %c0_40 = arith.constant 0 : index
    %c0_41 = arith.constant 0 : index
    %c448 = arith.constant 448 : index
    %c0_42 = arith.constant 0 : index
    %51 = vector.load %arg6[%c0_40, %c0_41, %c448, %c0_42] : memref<1x2x576x64xbf16, #tpu.memory_space<vmem>>, vector<1x1x64x64xbf16>
    %52 = vector.shape_cast %51 : vector<1x1x64x64xbf16> to vector<64x64xbf16>
    %cst_43 = arith.constant dense<0.000000e+00> : vector<200x64xf32>
    %53 = tpu.matmul %50, %52, %cst_43 {dimension_numbers = #tpu.dot_dimension_numbers<[1], [0], [0], [1], [0, 0, 1, 1], [], []>} : vector<200x64xbf16>, vector<64x64xbf16>, vector<200x64xf32> -> vector<200x64xf32>
    %54 = arith.addf %48, %53 : vector<200x64xf32>
    %c27 = arith.constant 27 : index
    %c0_44 = arith.constant 0 : index
    %55 = vector.load %arg14[%c27, %c0_44] : memref<232x64xf32, #tpu.memory_space<vmem>>, vector<200x64xf32>
    %56 = arith.truncf %55 : vector<200x64xf32> to vector<200x64xbf16>
    %c0_45 = arith.constant 0 : index
    %c0_46 = arith.constant 0 : index
    %c512 = arith.constant 512 : index
    %c0_47 = arith.constant 0 : index
    %57 = vector.load %arg6[%c0_45, %c0_46, %c512, %c0_47] : memref<1x2x576x64xbf16, #tpu.memory_space<vmem>>, vector<1x1x64x64xbf16>
    %58 = vector.shape_cast %57 : vector<1x1x64x64xbf16> to vector<64x64xbf16>
    %cst_48 = arith.constant dense<0.000000e+00> : vector<200x64xf32>
    %59 = tpu.matmul %56, %58, %cst_48 {dimension_numbers = #tpu.dot_dimension_numbers<[1], [0], [0], [1], [0, 0, 1, 1], [], []>} : vector<200x64xbf16>, vector<64x64xbf16>, vector<200x64xf32> -> vector<200x64xf32>
    %60 = arith.addf %54, %59 : vector<200x64xf32>
    %c0_49 = arith.constant 0 : index
    %c0_50 = arith.constant 0 : index
    %c0_51 = arith.constant 0 : index
    %c0_52 = arith.constant 0 : index
    %61 = vector.load %arg7[%c0_49, %c0_50, %c0_51, %c0_52] : memref<1x2x1x64xf32, #tpu.memory_space<vmem>>, vector<1x1x1x64xf32>
    %62 = vector.shape_cast %61 : vector<1x1x1x64xf32> to vector<1x64xf32>
    %63 = vector.broadcast %62 : vector<1x64xf32> to vector<200x64xf32>
    %64 = arith.addf %60, %63 : vector<200x64xf32>
    %c0_53 = arith.constant 0 : index
    %c0_54 = arith.constant 0 : index
    %c0_55 = arith.constant 0 : index
    %c0_56 = arith.constant 0 : index
    %65 = vector.load %arg8[%c0_53, %c0_54, %c0_55, %c0_56] : memref<1x2x1x64xf32, #tpu.memory_space<vmem>>, vector<1x1x1x64xf32>
    %66 = vector.shape_cast %65 : vector<1x1x1x64xf32> to vector<1x64xf32>
    %c0_57 = arith.constant 0 : index
    %c0_58 = arith.constant 0 : index
    %c0_59 = arith.constant 0 : index
    %c0_60 = arith.constant 0 : index
    %67 = vector.load %arg9[%c0_57, %c0_58, %c0_59, %c0_60] : memref<1x2x1x64xf32, #tpu.memory_space<vmem>>, vector<1x1x1x64xf32>
    %68 = vector.shape_cast %67 : vector<1x1x1x64xf32> to vector<1x64xf32>
    %69 = vector.broadcast %0 : vector<200x1xf32> to vector<200x64xf32>
    %70 = arith.mulf %64, %69 : vector<200x64xf32>
    %cst_61 = arith.constant dense<0.000000e+00> : vector<64xf32>
    %71 = vector.multi_reduction <add>, %70, %cst_61 [0] : vector<200x64xf32> to vector<64xf32>
    %72 = vector.shape_cast %71 : vector<64xf32> to vector<1x64xf32>
    %cst_62 = arith.constant 7.812500e-03 : f32
    %73 = vector.broadcast %cst_62 : f32 to vector<1x64xf32>
    %74 = arith.mulf %72, %73 : vector<1x64xf32>
    %75 = vector.broadcast %74 : vector<1x64xf32> to vector<200x64xf32>
    %76 = arith.subf %64, %75 : vector<200x64xf32>
    %77 = vector.broadcast %0 : vector<200x1xf32> to vector<200x64xf32>
    %78 = arith.mulf %76, %77 : vector<200x64xf32>
    %79 = arith.mulf %78, %78 : vector<200x64xf32>
    %cst_63 = arith.constant dense<0.000000e+00> : vector<64xf32>
    %80 = vector.multi_reduction <add>, %79, %cst_63 [0] : vector<200x64xf32> to vector<64xf32>
    %81 = vector.shape_cast %80 : vector<64xf32> to vector<1x64xf32>
    %cst_64 = arith.constant 7.812500e-03 : f32
    %82 = vector.broadcast %cst_64 : f32 to vector<1x64xf32>
    %83 = arith.mulf %81, %82 : vector<1x64xf32>
    %cst_65 = arith.constant 9.99999974E-6 : f32
    %84 = vector.broadcast %cst_65 : f32 to vector<1x64xf32>
    %85 = arith.addf %83, %84 : vector<1x64xf32>
    %86 = math.rsqrt %85 : vector<1x64xf32>
    %87 = vector.broadcast %86 : vector<1x64xf32> to vector<200x64xf32>
    %88 = arith.mulf %78, %87 : vector<200x64xf32>
    %89 = vector.broadcast %66 : vector<1x64xf32> to vector<200x64xf32>
    %90 = arith.mulf %88, %89 : vector<200x64xf32>
    %91 = vector.broadcast %68 : vector<1x64xf32> to vector<200x64xf32>
    %92 = arith.addf %90, %91 : vector<200x64xf32>
    %cst_66 = arith.constant 0.000000e+00 : f32
    %93 = vector.broadcast %cst_66 : f32 to vector<200x64xf32>
    %94 = arith.cmpf oge, %92, %93 : vector<200x64xf32>
    %95 = vector.broadcast %6 : f32 to vector<200x64xf32>
    %96 = arith.mulf %92, %95 : vector<200x64xf32>
    %97 = arith.select %94, %92, %96 : vector<200x64xi1>, vector<200x64xf32>
    %98 = vector.broadcast %0 : vector<200x1xf32> to vector<200x64xf32>
    %99 = arith.mulf %97, %98 : vector<200x64xf32>
    %c16_67 = arith.constant 16 : index
    %c0_68 = arith.constant 0 : index
    %100 = vector.load %arg15[%c16_67, %c0_68] : memref<232x64xf32, #tpu.memory_space<vmem>>, vector<200x64xf32>
    tpu.vector_store %arg15[%c16_67, %c0_68], %99 {strides = array<i32>} : memref<232x64xf32, #tpu.memory_space<vmem>>, vector<200x64xf32>,
    %c5_69 = arith.constant 5 : index
    %c0_70 = arith.constant 0 : index
    %101 = vector.load %arg15[%c5_69, %c0_70] : memref<232x64xf32, #tpu.memory_space<vmem>>, vector<200x64xf32>
    %102 = arith.truncf %101 : vector<200x64xf32> to vector<200x64xbf16>
    %c0_71 = arith.constant 0 : index
    %c1 = arith.constant 1 : index
    %c0_72 = arith.constant 0 : index
    %c0_73 = arith.constant 0 : index
    %103 = vector.load %arg6[%c0_71, %c1, %c0_72, %c0_73] : memref<1x2x576x64xbf16, #tpu.memory_space<vmem>>, vector<1x1x64x64xbf16>
    %104 = vector.shape_cast %103 : vector<1x1x64x64xbf16> to vector<64x64xbf16>
    %cst_74 = arith.constant dense<0.000000e+00> : vector<200x64xf32>
    %105 = tpu.matmul %102, %104, %cst_74 {dimension_numbers = #tpu.dot_dimension_numbers<[1], [0], [0], [1], [0, 0, 1, 1], [], []>} : vector<200x64xbf16>, vector<64x64xbf16>, vector<200x64xf32> -> vector<200x64xf32>
    %c6_75 = arith.constant 6 : index
    %c0_76 = arith.constant 0 : index
    %106 = vector.load %arg15[%c6_75, %c0_76] : memref<232x64xf32, #tpu.memory_space<vmem>>, vector<200x64xf32>
    %107 = arith.truncf %106 : vector<200x64xf32> to vector<200x64xbf16>
    %c0_77 = arith.constant 0 : index
    %c1_78 = arith.constant 1 : index
    %c64_79 = arith.constant 64 : index
    %c0_80 = arith.constant 0 : index
    %108 = vector.load %arg6[%c0_77, %c1_78, %c64_79, %c0_80] : memref<1x2x576x64xbf16, #tpu.memory_space<vmem>>, vector<1x1x64x64xbf16>
    %109 = vector.shape_cast %108 : vector<1x1x64x64xbf16> to vector<64x64xbf16>
    %cst_81 = arith.constant dense<0.000000e+00> : vector<200x64xf32>
    %110 = tpu.matmul %107, %109, %cst_81 {dimension_numbers = #tpu.dot_dimension_numbers<[1], [0], [0], [1], [0, 0, 1, 1], [], []>} : vector<200x64xbf16>, vector<64x64xbf16>, vector<200x64xf32> -> vector<200x64xf32>
    %111 = arith.addf %105, %110 : vector<200x64xf32>
    %c7_82 = arith.constant 7 : index
    %c0_83 = arith.constant 0 : index
    %112 = vector.load %arg15[%c7_82, %c0_83] : memref<232x64xf32, #tpu.memory_space<vmem>>, vector<200x64xf32>
    %113 = arith.truncf %112 : vector<200x64xf32> to vector<200x64xbf16>
    %c0_84 = arith.constant 0 : index
    %c1_85 = arith.constant 1 : index
    %c128_86 = arith.constant 128 : index
    %c0_87 = arith.constant 0 : index
    %114 = vector.load %arg6[%c0_84, %c1_85, %c128_86, %c0_87] : memref<1x2x576x64xbf16, #tpu.memory_space<vmem>>, vector<1x1x64x64xbf16>
    %115 = vector.shape_cast %114 : vector<1x1x64x64xbf16> to vector<64x64xbf16>
    %cst_88 = arith.constant dense<0.000000e+00> : vector<200x64xf32>
    %116 = tpu.matmul %113, %115, %cst_88 {dimension_numbers = #tpu.dot_dimension_numbers<[1], [0], [0], [1], [0, 0, 1, 1], [], []>} : vector<200x64xbf16>, vector<64x64xbf16>, vector<200x64xf32> -> vector<200x64xf32>
    %117 = arith.addf %111, %116 : vector<200x64xf32>
    %c15_89 = arith.constant 15 : index
    %c0_90 = arith.constant 0 : index
    %118 = vector.load %arg15[%c15_89, %c0_90] : memref<232x64xf32, #tpu.memory_space<vmem>>, vector<200x64xf32>
    %119 = arith.truncf %118 : vector<200x64xf32> to vector<200x64xbf16>
    %c0_91 = arith.constant 0 : index
    %c1_92 = arith.constant 1 : index
    %c192_93 = arith.constant 192 : index
    %c0_94 = arith.constant 0 : index
    %120 = vector.load %arg6[%c0_91, %c1_92, %c192_93, %c0_94] : memref<1x2x576x64xbf16, #tpu.memory_space<vmem>>, vector<1x1x64x64xbf16>
    %121 = vector.shape_cast %120 : vector<1x1x64x64xbf16> to vector<64x64xbf16>
    %cst_95 = arith.constant dense<0.000000e+00> : vector<200x64xf32>
    %122 = tpu.matmul %119, %121, %cst_95 {dimension_numbers = #tpu.dot_dimension_numbers<[1], [0], [0], [1], [0, 0, 1, 1], [], []>} : vector<200x64xbf16>, vector<64x64xbf16>, vector<200x64xf32> -> vector<200x64xf32>
    %123 = arith.addf %117, %122 : vector<200x64xf32>
    %c16_96 = arith.constant 16 : index
    %c0_97 = arith.constant 0 : index
    %124 = vector.load %arg15[%c16_96, %c0_97] : memref<232x64xf32, #tpu.memory_space<vmem>>, vector<200x64xf32>
    %125 = arith.truncf %124 : vector<200x64xf32> to vector<200x64xbf16>
    %c0_98 = arith.constant 0 : index
    %c1_99 = arith.constant 1 : index
    %c256_100 = arith.constant 256 : index
    %c0_101 = arith.constant 0 : index
    %126 = vector.load %arg6[%c0_98, %c1_99, %c256_100, %c0_101] : memref<1x2x576x64xbf16, #tpu.memory_space<vmem>>, vector<1x1x64x64xbf16>
    %127 = vector.shape_cast %126 : vector<1x1x64x64xbf16> to vector<64x64xbf16>
    %cst_102 = arith.constant dense<0.000000e+00> : vector<200x64xf32>
    %128 = tpu.matmul %125, %127, %cst_102 {dimension_numbers = #tpu.dot_dimension_numbers<[1], [0], [0], [1], [0, 0, 1, 1], [], []>} : vector<200x64xbf16>, vector<64x64xbf16>, vector<200x64xf32> -> vector<200x64xf32>
    %129 = arith.addf %123, %128 : vector<200x64xf32>
    %c17_103 = arith.constant 17 : index
    %c0_104 = arith.constant 0 : index
    %130 = vector.load %arg15[%c17_103, %c0_104] : memref<232x64xf32, #tpu.memory_space<vmem>>, vector<200x64xf32>
    %131 = arith.truncf %130 : vector<200x64xf32> to vector<200x64xbf16>
    %c0_105 = arith.constant 0 : index
    %c1_106 = arith.constant 1 : index
    %c320_107 = arith.constant 320 : index
    %c0_108 = arith.constant 0 : index
    %132 = vector.load %arg6[%c0_105, %c1_106, %c320_107, %c0_108] : memref<1x2x576x64xbf16, #tpu.memory_space<vmem>>, vector<1x1x64x64xbf16>
    %133 = vector.shape_cast %132 : vector<1x1x64x64xbf16> to vector<64x64xbf16>
    %cst_109 = arith.constant dense<0.000000e+00> : vector<200x64xf32>
    %134 = tpu.matmul %131, %133, %cst_109 {dimension_numbers = #tpu.dot_dimension_numbers<[1], [0], [0], [1], [0, 0, 1, 1], [], []>} : vector<200x64xbf16>, vector<64x64xbf16>, vector<200x64xf32> -> vector<200x64xf32>
    %135 = arith.addf %129, %134 : vector<200x64xf32>
    %c25_110 = arith.constant 25 : index
    %c0_111 = arith.constant 0 : index
    %136 = vector.load %arg15[%c25_110, %c0_111] : memref<232x64xf32, #tpu.memory_space<vmem>>, vector<200x64xf32>
    %137 = arith.truncf %136 : vector<200x64xf32> to vector<200x64xbf16>
    %c0_112 = arith.constant 0 : index
    %c1_113 = arith.constant 1 : index
    %c384_114 = arith.constant 384 : index
    %c0_115 = arith.constant 0 : index
    %138 = vector.load %arg6[%c0_112, %c1_113, %c384_114, %c0_115] : memref<1x2x576x64xbf16, #tpu.memory_space<vmem>>, vector<1x1x64x64xbf16>
    %139 = vector.shape_cast %138 : vector<1x1x64x64xbf16> to vector<64x64xbf16>
    %cst_116 = arith.constant dense<0.000000e+00> : vector<200x64xf32>
    %140 = tpu.matmul %137, %139, %cst_116 {dimension_numbers = #tpu.dot_dimension_numbers<[1], [0], [0], [1], [0, 0, 1, 1], [], []>} : vector<200x64xbf16>, vector<64x64xbf16>, vector<200x64xf32> -> vector<200x64xf32>
    %141 = arith.addf %135, %140 : vector<200x64xf32>
    %c26_117 = arith.constant 26 : index
    %c0_118 = arith.constant 0 : index
    %142 = vector.load %arg15[%c26_117, %c0_118] : memref<232x64xf32, #tpu.memory_space<vmem>>, vector<200x64xf32>
    %143 = arith.truncf %142 : vector<200x64xf32> to vector<200x64xbf16>
    %c0_119 = arith.constant 0 : index
    %c1_120 = arith.constant 1 : index
    %c448_121 = arith.constant 448 : index
    %c0_122 = arith.constant 0 : index
    %144 = vector.load %arg6[%c0_119, %c1_120, %c448_121, %c0_122] : memref<1x2x576x64xbf16, #tpu.memory_space<vmem>>, vector<1x1x64x64xbf16>
    %145 = vector.shape_cast %144 : vector<1x1x64x64xbf16> to vector<64x64xbf16>
    %cst_123 = arith.constant dense<0.000000e+00> : vector<200x64xf32>
    %146 = tpu.matmul %143, %145, %cst_123 {dimension_numbers = #tpu.dot_dimension_numbers<[1], [0], [0], [1], [0, 0, 1, 1], [], []>} : vector<200x64xbf16>, vector<64x64xbf16>, vector<200x64xf32> -> vector<200x64xf32>
    %147 = arith.addf %141, %146 : vector<200x64xf32>
    %c27_124 = arith.constant 27 : index
    %c0_125 = arith.constant 0 : index
    %148 = vector.load %arg15[%c27_124, %c0_125] : memref<232x64xf32, #tpu.memory_space<vmem>>, vector<200x64xf32>
    %149 = arith.truncf %148 : vector<200x64xf32> to vector<200x64xbf16>
    %c0_126 = arith.constant 0 : index
    %c1_127 = arith.constant 1 : index
    %c512_128 = arith.constant 512 : index
    %c0_129 = arith.constant 0 : index
    %150 = vector.load %arg6[%c0_126, %c1_127, %c512_128, %c0_129] : memref<1x2x576x64xbf16, #tpu.memory_space<vmem>>, vector<1x1x64x64xbf16>
    %151 = vector.shape_cast %150 : vector<1x1x64x64xbf16> to vector<64x64xbf16>
    %cst_130 = arith.constant dense<0.000000e+00> : vector<200x64xf32>
    %152 = tpu.matmul %149, %151, %cst_130 {dimension_numbers = #tpu.dot_dimension_numbers<[1], [0], [0], [1], [0, 0, 1, 1], [], []>} : vector<200x64xbf16>, vector<64x64xbf16>, vector<200x64xf32> -> vector<200x64xf32>
    %153 = arith.addf %147, %152 : vector<200x64xf32>
    %c0_131 = arith.constant 0 : index
    %c1_132 = arith.constant 1 : index
    %c0_133 = arith.constant 0 : index
    %c0_134 = arith.constant 0 : index
    %154 = vector.load %arg7[%c0_131, %c1_132, %c0_133, %c0_134] : memref<1x2x1x64xf32, #tpu.memory_space<vmem>>, vector<1x1x1x64xf32>
    %155 = vector.shape_cast %154 : vector<1x1x1x64xf32> to vector<1x64xf32>
    %156 = vector.broadcast %155 : vector<1x64xf32> to vector<200x64xf32>
    %157 = arith.addf %153, %156 : vector<200x64xf32>
    %c0_135 = arith.constant 0 : index
    %c1_136 = arith.constant 1 : index
    %c0_137 = arith.constant 0 : index
    %c0_138 = arith.constant 0 : index
    %158 = vector.load %arg8[%c0_135, %c1_136, %c0_137, %c0_138] : memref<1x2x1x64xf32, #tpu.memory_space<vmem>>, vector<1x1x1x64xf32>
    %159 = vector.shape_cast %158 : vector<1x1x1x64xf32> to vector<1x64xf32>
    %c0_139 = arith.constant 0 : index
    %c1_140 = arith.constant 1 : index
    %c0_141 = arith.constant 0 : index
    %c0_142 = arith.constant 0 : index
    %160 = vector.load %arg9[%c0_139, %c1_140, %c0_141, %c0_142] : memref<1x2x1x64xf32, #tpu.memory_space<vmem>>, vector<1x1x1x64xf32>
    %161 = vector.shape_cast %160 : vector<1x1x1x64xf32> to vector<1x64xf32>
    %162 = vector.broadcast %0 : vector<200x1xf32> to vector<200x64xf32>
    %163 = arith.mulf %157, %162 : vector<200x64xf32>
    %cst_143 = arith.constant dense<0.000000e+00> : vector<64xf32>
    %164 = vector.multi_reduction <add>, %163, %cst_143 [0] : vector<200x64xf32> to vector<64xf32>
    %165 = vector.shape_cast %164 : vector<64xf32> to vector<1x64xf32>
    %cst_144 = arith.constant 7.812500e-03 : f32
    %166 = vector.broadcast %cst_144 : f32 to vector<1x64xf32>
    %167 = arith.mulf %165, %166 : vector<1x64xf32>
    %168 = vector.broadcast %167 : vector<1x64xf32> to vector<200x64xf32>
    %169 = arith.subf %157, %168 : vector<200x64xf32>
    %170 = vector.broadcast %0 : vector<200x1xf32> to vector<200x64xf32>
    %171 = arith.mulf %169, %170 : vector<200x64xf32>
    %172 = arith.mulf %171, %171 : vector<200x64xf32>
    %cst_145 = arith.constant dense<0.000000e+00> : vector<64xf32>
    %173 = vector.multi_reduction <add>, %172, %cst_145 [0] : vector<200x64xf32> to vector<64xf32>
    %174 = vector.shape_cast %173 : vector<64xf32> to vector<1x64xf32>
    %cst_146 = arith.constant 7.812500e-03 : f32
    %175 = vector.broadcast %cst_146 : f32 to vector<1x64xf32>
    %176 = arith.mulf %174, %175 : vector<1x64xf32>
    %cst_147 = arith.constant 9.99999974E-6 : f32
    %177 = vector.broadcast %cst_147 : f32 to vector<1x64xf32>
    %178 = arith.addf %176, %177 : vector<1x64xf32>
    %179 = math.rsqrt %178 : vector<1x64xf32>
    %180 = vector.broadcast %179 : vector<1x64xf32> to vector<200x64xf32>
    %181 = arith.mulf %171, %180 : vector<200x64xf32>
    %182 = vector.broadcast %159 : vector<1x64xf32> to vector<200x64xf32>
    %183 = arith.mulf %181, %182 : vector<200x64xf32>
    %184 = vector.broadcast %161 : vector<1x64xf32> to vector<200x64xf32>
    %185 = arith.addf %183, %184 : vector<200x64xf32>
    %cst_148 = arith.constant 0.000000e+00 : f32
    %186 = vector.broadcast %cst_148 : f32 to vector<200x64xf32>
    %187 = arith.cmpf oge, %185, %186 : vector<200x64xf32>
    %188 = vector.broadcast %6 : f32 to vector<200x64xf32>
    %189 = arith.mulf %185, %188 : vector<200x64xf32>
    %190 = arith.select %187, %185, %189 : vector<200x64xi1>, vector<200x64xf32>
    %191 = vector.broadcast %0 : vector<200x1xf32> to vector<200x64xf32>
    %192 = arith.mulf %190, %191 : vector<200x64xf32>
    %193 = arith.addf %192, %7 : vector<200x64xf32>
    %c16_149 = arith.constant 16 : index
    %c0_150 = arith.constant 0 : index
    %194 = vector.load %arg14[%c16_149, %c0_150] : memref<232x64xf32, #tpu.memory_space<vmem>>, vector<200x64xf32>
    tpu.vector_store %arg14[%c16_149, %c0_150], %193 {strides = array<i32>} : memref<232x64xf32, #tpu.memory_space<vmem>>, vector<200x64xf32>,
    %c15_i32 = arith.constant 15 : i32
    %195 = arith.cmpi eq, %arg0, %c15_i32 : i32
    %196 = arith.extui %195 : i1 to i32
    %c0_i32_151 = arith.constant 0 : i32
    %197 = arith.cmpi ne, %196, %c0_i32_151 : i32
    scf.if %197 {
      %c5_152 = arith.constant 5 : index
      %c0_153 = arith.constant 0 : index
      %198 = vector.load %arg14[%c5_152, %c0_153] : memref<232x64xf32, #tpu.memory_space<vmem>>, vector<200x64xf32>
      %199 = arith.truncf %198 : vector<200x64xf32> to vector<200x64xbf16>
      %c0_154 = arith.constant 0 : index
      %c0_155 = arith.constant 0 : index
      %200 = vector.load %arg10[%c0_154, %c0_155] : memref<576x64xbf16, #tpu.memory_space<vmem>>, vector<64x64xbf16>
      %cst_156 = arith.constant dense<0.000000e+00> : vector<200x64xf32>
      %201 = tpu.matmul %199, %200, %cst_156 {dimension_numbers = #tpu.dot_dimension_numbers<[1], [0], [0], [1], [0, 0, 1, 1], [], []>} : vector<200x64xbf16>, vector<64x64xbf16>, vector<200x64xf32> -> vector<200x64xf32>
      %c6_157 = arith.constant 6 : index
      %c0_158 = arith.constant 0 : index
      %202 = vector.load %arg14[%c6_157, %c0_158] : memref<232x64xf32, #tpu.memory_space<vmem>>, vector<200x64xf32>
      %203 = arith.truncf %202 : vector<200x64xf32> to vector<200x64xbf16>
      %c64_159 = arith.constant 64 : index
      %c0_160 = arith.constant 0 : index
      %204 = vector.load %arg10[%c64_159, %c0_160] : memref<576x64xbf16, #tpu.memory_space<vmem>>, vector<64x64xbf16>
      %cst_161 = arith.constant dense<0.000000e+00> : vector<200x64xf32>
      %205 = tpu.matmul %203, %204, %cst_161 {dimension_numbers = #tpu.dot_dimension_numbers<[1], [0], [0], [1], [0, 0, 1, 1], [], []>} : vector<200x64xbf16>, vector<64x64xbf16>, vector<200x64xf32> -> vector<200x64xf32>
      %206 = arith.addf %201, %205 : vector<200x64xf32>
      %c7_162 = arith.constant 7 : index
      %c0_163 = arith.constant 0 : index
      %207 = vector.load %arg14[%c7_162, %c0_163] : memref<232x64xf32, #tpu.memory_space<vmem>>, vector<200x64xf32>
      %208 = arith.truncf %207 : vector<200x64xf32> to vector<200x64xbf16>
      %c128_164 = arith.constant 128 : index
      %c0_165 = arith.constant 0 : index
      %209 = vector.load %arg10[%c128_164, %c0_165] : memref<576x64xbf16, #tpu.memory_space<vmem>>, vector<64x64xbf16>
      %cst_166 = arith.constant dense<0.000000e+00> : vector<200x64xf32>
      %210 = tpu.matmul %208, %209, %cst_166 {dimension_numbers = #tpu.dot_dimension_numbers<[1], [0], [0], [1], [0, 0, 1, 1], [], []>} : vector<200x64xbf16>, vector<64x64xbf16>, vector<200x64xf32> -> vector<200x64xf32>
      %211 = arith.addf %206, %210 : vector<200x64xf32>
      %c15_167 = arith.constant 15 : index
      %c0_168 = arith.constant 0 : index
      %212 = vector.load %arg14[%c15_167, %c0_168] : memref<232x64xf32, #tpu.memory_space<vmem>>, vector<200x64xf32>
      %213 = arith.truncf %212 : vector<200x64xf32> to vector<200x64xbf16>
      %c192_169 = arith.constant 192 : index
      %c0_170 = arith.constant 0 : index
      %214 = vector.load %arg10[%c192_169, %c0_170] : memref<576x64xbf16, #tpu.memory_space<vmem>>, vector<64x64xbf16>
      %cst_171 = arith.constant dense<0.000000e+00> : vector<200x64xf32>
      %215 = tpu.matmul %213, %214, %cst_171 {dimension_numbers = #tpu.dot_dimension_numbers<[1], [0], [0], [1], [0, 0, 1, 1], [], []>} : vector<200x64xbf16>, vector<64x64xbf16>, vector<200x64xf32> -> vector<200x64xf32>
      %216 = arith.addf %211, %215 : vector<200x64xf32>
      %c16_172 = arith.constant 16 : index
      %c0_173 = arith.constant 0 : index
      %217 = vector.load %arg14[%c16_172, %c0_173] : memref<232x64xf32, #tpu.memory_space<vmem>>, vector<200x64xf32>
      %218 = arith.truncf %217 : vector<200x64xf32> to vector<200x64xbf16>
      %c256_174 = arith.constant 256 : index
      %c0_175 = arith.constant 0 : index
      %219 = vector.load %arg10[%c256_174, %c0_175] : memref<576x64xbf16, #tpu.memory_space<vmem>>, vector<64x64xbf16>
      %cst_176 = arith.constant dense<0.000000e+00> : vector<200x64xf32>
      %220 = tpu.matmul %218, %219, %cst_176 {dimension_numbers = #tpu.dot_dimension_numbers<[1], [0], [0], [1], [0, 0, 1, 1], [], []>} : vector<200x64xbf16>, vector<64x64xbf16>, vector<200x64xf32> -> vector<200x64xf32>
      %221 = arith.addf %216, %220 : vector<200x64xf32>
      %c17_177 = arith.constant 17 : index
      %c0_178 = arith.constant 0 : index
      %222 = vector.load %arg14[%c17_177, %c0_178] : memref<232x64xf32, #tpu.memory_space<vmem>>, vector<200x64xf32>
      %223 = arith.truncf %222 : vector<200x64xf32> to vector<200x64xbf16>
      %c320_179 = arith.constant 320 : index
      %c0_180 = arith.constant 0 : index
      %224 = vector.load %arg10[%c320_179, %c0_180] : memref<576x64xbf16, #tpu.memory_space<vmem>>, vector<64x64xbf16>
      %cst_181 = arith.constant dense<0.000000e+00> : vector<200x64xf32>
      %225 = tpu.matmul %223, %224, %cst_181 {dimension_numbers = #tpu.dot_dimension_numbers<[1], [0], [0], [1], [0, 0, 1, 1], [], []>} : vector<200x64xbf16>, vector<64x64xbf16>, vector<200x64xf32> -> vector<200x64xf32>
      %226 = arith.addf %221, %225 : vector<200x64xf32>
      %c25_182 = arith.constant 25 : index
      %c0_183 = arith.constant 0 : index
      %227 = vector.load %arg14[%c25_182, %c0_183] : memref<232x64xf32, #tpu.memory_space<vmem>>, vector<200x64xf32>
      %228 = arith.truncf %227 : vector<200x64xf32> to vector<200x64xbf16>
      %c384_184 = arith.constant 384 : index
      %c0_185 = arith.constant 0 : index
      %229 = vector.load %arg10[%c384_184, %c0_185] : memref<576x64xbf16, #tpu.memory_space<vmem>>, vector<64x64xbf16>
      %cst_186 = arith.constant dense<0.000000e+00> : vector<200x64xf32>
      %230 = tpu.matmul %228, %229, %cst_186 {dimension_numbers = #tpu.dot_dimension_numbers<[1], [0], [0], [1], [0, 0, 1, 1], [], []>} : vector<200x64xbf16>, vector<64x64xbf16>, vector<200x64xf32> -> vector<200x64xf32>
      %231 = arith.addf %226, %230 : vector<200x64xf32>
      %c26_187 = arith.constant 26 : index
      %c0_188 = arith.constant 0 : index
      %232 = vector.load %arg14[%c26_187, %c0_188] : memref<232x64xf32, #tpu.memory_space<vmem>>, vector<200x64xf32>
      %233 = arith.truncf %232 : vector<200x64xf32> to vector<200x64xbf16>
      %c448_189 = arith.constant 448 : index
      %c0_190 = arith.constant 0 : index
      %234 = vector.load %arg10[%c448_189, %c0_190] : memref<576x64xbf16, #tpu.memory_space<vmem>>, vector<64x64xbf16>
      %cst_191 = arith.constant dense<0.000000e+00> : vector<200x64xf32>
      %235 = tpu.matmul %233, %234, %cst_191 {dimension_numbers = #tpu.dot_dimension_numbers<[1], [0], [0], [1], [0, 0, 1, 1], [], []>} : vector<200x64xbf16>, vector<64x64xbf16>, vector<200x64xf32> -> vector<200x64xf32>
      %236 = arith.addf %231, %235 : vector<200x64xf32>
      %c27_192 = arith.constant 27 : index
      %c0_193 = arith.constant 0 : index
      %237 = vector.load %arg14[%c27_192, %c0_193] : memref<232x64xf32, #tpu.memory_space<vmem>>, vector<200x64xf32>
      %238 = arith.truncf %237 : vector<200x64xf32> to vector<200x64xbf16>
      %c512_194 = arith.constant 512 : index
      %c0_195 = arith.constant 0 : index
      %239 = vector.load %arg10[%c512_194, %c0_195] : memref<576x64xbf16, #tpu.memory_space<vmem>>, vector<64x64xbf16>
      %cst_196 = arith.constant dense<0.000000e+00> : vector<200x64xf32>
      %240 = tpu.matmul %238, %239, %cst_196 {dimension_numbers = #tpu.dot_dimension_numbers<[1], [0], [0], [1], [0, 0, 1, 1], [], []>} : vector<200x64xbf16>, vector<64x64xbf16>, vector<200x64xf32> -> vector<200x64xf32>
      %241 = arith.addf %236, %240 : vector<200x64xf32>
      %c0_197 = arith.constant 0 : index
      %c0_198 = arith.constant 0 : index
      %242 = vector.load %arg11[%c0_197, %c0_198] : memref<1x64xf32, #tpu.memory_space<vmem>>, vector<1x64xf32>
      %c0_199 = arith.constant 0 : index
      %c0_200 = arith.constant 0 : index
      %243 = vector.load %arg12[%c0_199, %c0_200] : memref<1x64xf32, #tpu.memory_space<vmem>>, vector<1x64xf32>
      %244 = vector.broadcast %0 : vector<200x1xf32> to vector<200x64xf32>
      %245 = arith.mulf %241, %244 : vector<200x64xf32>
      %cst_201 = arith.constant dense<0.000000e+00> : vector<64xf32>
      %246 = vector.multi_reduction <add>, %245, %cst_201 [0] : vector<200x64xf32> to vector<64xf32>
      %247 = vector.shape_cast %246 : vector<64xf32> to vector<1x64xf32>
      %cst_202 = arith.constant 7.812500e-03 : f32
      %248 = vector.broadcast %cst_202 : f32 to vector<1x64xf32>
      %249 = arith.mulf %247, %248 : vector<1x64xf32>
      %250 = vector.broadcast %249 : vector<1x64xf32> to vector<200x64xf32>
      %251 = arith.subf %241, %250 : vector<200x64xf32>
      %252 = vector.broadcast %0 : vector<200x1xf32> to vector<200x64xf32>
      %253 = arith.mulf %251, %252 : vector<200x64xf32>
      %254 = arith.mulf %253, %253 : vector<200x64xf32>
      %cst_203 = arith.constant dense<0.000000e+00> : vector<64xf32>
      %255 = vector.multi_reduction <add>, %254, %cst_203 [0] : vector<200x64xf32> to vector<64xf32>
      %256 = vector.shape_cast %255 : vector<64xf32> to vector<1x64xf32>
      %cst_204 = arith.constant 7.812500e-03 : f32
      %257 = vector.broadcast %cst_204 : f32 to vector<1x64xf32>
      %258 = arith.mulf %256, %257 : vector<1x64xf32>
      %cst_205 = arith.constant 9.99999974E-6 : f32
      %259 = vector.broadcast %cst_205 : f32 to vector<1x64xf32>
      %260 = arith.addf %258, %259 : vector<1x64xf32>
      %261 = math.rsqrt %260 : vector<1x64xf32>
      %262 = vector.broadcast %261 : vector<1x64xf32> to vector<200x64xf32>
      %263 = arith.mulf %253, %262 : vector<200x64xf32>
      %264 = vector.broadcast %242 : vector<1x64xf32> to vector<200x64xf32>
      %265 = arith.mulf %263, %264 : vector<200x64xf32>
      %266 = vector.broadcast %243 : vector<1x64xf32> to vector<200x64xf32>
      %267 = arith.addf %265, %266 : vector<200x64xf32>
      %c0_206 = arith.constant 0 : index
      %c0_207 = arith.constant 0 : index
      %268 = vector.load %arg16[%c0_206, %c0_207] : memref<200x64xf32, #tpu.memory_space<vmem>>, vector<200x64xf32>
      %269 = arith.addf %268, %267 : vector<200x64xf32>
      %c1_208 = arith.constant 1 : index
      %270 = memref.load %arg1[%c1_208] : memref<18xf32, #tpu.memory_space<smem>>
      %cst_209 = arith.constant 0.000000e+00 : f32
      %271 = vector.broadcast %cst_209 : f32 to vector<200x64xf32>
      %272 = arith.cmpf oge, %269, %271 : vector<200x64xf32>
      %273 = vector.broadcast %270 : f32 to vector<200x64xf32>
      %274 = arith.mulf %269, %273 : vector<200x64xf32>
      %275 = arith.select %272, %269, %274 : vector<200x64xi1>, vector<200x64xf32>
      %276 = arith.truncf %275 : vector<200x64xf32> to vector<200x64xbf16>
      %c0_210 = arith.constant 0 : index
      %c0_211 = arith.constant 0 : index
      %277 = vector.load %arg13[%c0_210, %c0_211] : memref<200x64xbf16, #tpu.memory_space<vmem>>, vector<200x64xbf16>
      tpu.vector_store %arg13[%c0_210, %c0_211], %276 {strides = array<i32>} : memref<200x64xbf16, #tpu.memory_space<vmem>>, vector<200x64xbf16>,
    } else {
    }
    return
  }
  func.func @transform_0(%arg0: i32) -> i32 {
    %c0_i32 = arith.constant 0 : i32
    %c0_i32_0 = arith.constant 0 : i32
    return %c0_i32 : i32
  }
  func.func @transform_1(%arg0: i32) -> (i32, i32) {
    %c0_i32 = arith.constant 0 : i32
    %c0_i32_0 = arith.constant 0 : i32
    %c0_i32_1 = arith.constant 0 : i32
    return %c0_i32, %c0_i32_0 : i32, i32
  }
  func.func @transform_2(%arg0: i32) -> (i32, i32) {
    %c0_i32 = arith.constant 0 : i32
    %c0_i32_0 = arith.constant 0 : i32
    %c0_i32_1 = arith.constant 0 : i32
    return %c0_i32, %c0_i32_0 : i32, i32
  }
  func.func @transform_3(%arg0: i32) -> (i32, i32) {
    %c0_i32 = arith.constant 0 : i32
    %c0_i32_0 = arith.constant 0 : i32
    %c0_i32_1 = arith.constant 0 : i32
    return %c0_i32, %c0_i32_0 : i32, i32
  }
  func.func @transform_4(%arg0: i32) -> (i32, i32) {
    %c0_i32 = arith.constant 0 : i32
    %c0_i32_0 = arith.constant 0 : i32
    %c0_i32_1 = arith.constant 0 : i32
    return %c0_i32, %c0_i32_0 : i32, i32
  }
  func.func @transform_5(%arg0: i32) -> (i32, i32, i32, i32) {
    %c0_i32 = arith.constant 0 : i32
    %c0_i32_0 = arith.constant 0 : i32
    %c0_i32_1 = arith.constant 0 : i32
    %c0_i32_2 = arith.constant 0 : i32
    return %arg0, %c0_i32, %c0_i32_0, %c0_i32_1 : i32, i32, i32, i32
  }
  func.func @transform_6(%arg0: i32) -> (i32, i32, i32, i32) {
    %c0_i32 = arith.constant 0 : i32
    %c0_i32_0 = arith.constant 0 : i32
    %c0_i32_1 = arith.constant 0 : i32
    %c0_i32_2 = arith.constant 0 : i32
    return %arg0, %c0_i32, %c0_i32_0, %c0_i32_1 : i32, i32, i32, i32
  }
  func.func @transform_7(%arg0: i32) -> (i32, i32, i32, i32) {
    %c0_i32 = arith.constant 0 : i32
    %c0_i32_0 = arith.constant 0 : i32
    %c0_i32_1 = arith.constant 0 : i32
    %c0_i32_2 = arith.constant 0 : i32
    return %arg0, %c0_i32, %c0_i32_0, %c0_i32_1 : i32, i32, i32, i32
  }
  func.func @transform_8(%arg0: i32) -> (i32, i32, i32, i32) {
    %c0_i32 = arith.constant 0 : i32
    %c0_i32_0 = arith.constant 0 : i32
    %c0_i32_1 = arith.constant 0 : i32
    %c0_i32_2 = arith.constant 0 : i32
    return %arg0, %c0_i32, %c0_i32_0, %c0_i32_1 : i32, i32, i32, i32
  }
  func.func @transform_9(%arg0: i32) -> (i32, i32) {
    %c0_i32 = arith.constant 0 : i32
    %c0_i32_0 = arith.constant 0 : i32
    %c0_i32_1 = arith.constant 0 : i32
    return %c0_i32, %c0_i32_0 : i32, i32
  }
  func.func @transform_10(%arg0: i32) -> (i32, i32) {
    %c0_i32 = arith.constant 0 : i32
    %c0_i32_0 = arith.constant 0 : i32
    %c0_i32_1 = arith.constant 0 : i32
    return %c0_i32, %c0_i32_0 : i32, i32
  }
  func.func @transform_11(%arg0: i32) -> (i32, i32) {
    %c0_i32 = arith.constant 0 : i32
    %c0_i32_0 = arith.constant 0 : i32
    %c0_i32_1 = arith.constant 0 : i32
    return %c0_i32, %c0_i32_0 : i32, i32
  }
  func.func @transform_12(%arg0: i32) -> (i32, i32) {
    %c0_i32 = arith.constant 0 : i32
    %c0_i32_0 = arith.constant 0 : i32
    %c0_i32_1 = arith.constant 0 : i32
    return %c0_i32, %c0_i32_0 : i32, i32
  }
}

module attributes {stable_mosaic.version = 11 : i64} {
  func.func @_conv5_tanh_kernel(%arg0: i32, %arg1: memref<144x128xbf16, #tpu.memory_space<vmem>>, %arg2: memref<8x144xbf16, #tpu.memory_space<vmem>>, %arg3: memref<8x1xf32, #tpu.memory_space<vmem>>, %arg4: memref<8x128xf32, #tpu.memory_space<vmem>>) attributes {dimension_semantics = [#tpu.dimension_semantics<parallel>], iteration_bounds = array<i64: 4>, scalar_prefetch = 0 : i64, scratch_operands = 0 : i64, tpu.core_type = #tpu.core_type<tc>, window_params = [{transform_indices = @transform_0, window_bounds = array<i64: 144, 128>}, {pipeline_mode = #tpu.pipeline_mode<synchronous>, transform_indices = @transform_1, window_bounds = array<i64: 8, 144>}, {pipeline_mode = #tpu.pipeline_mode<synchronous>, transform_indices = @transform_2, window_bounds = array<i64: 8, 1>}, {transform_indices = @transform_3, window_bounds = array<i64: 8, 128>}]} {
    %c0 = arith.constant 0 : index
    %c0_0 = arith.constant 0 : index
    %0 = vector.load %arg2[%c0, %c0_0] : memref<8x144xbf16, #tpu.memory_space<vmem>>, vector<8x144xbf16>
    %c0_1 = arith.constant 0 : index
    %c0_2 = arith.constant 0 : index
    %1 = vector.load %arg1[%c0_1, %c0_2] : memref<144x128xbf16, #tpu.memory_space<vmem>>, vector<144x128xbf16>
    %cst = arith.constant dense<0.000000e+00> : vector<8x128xf32>
    %2 = tpu.matmul %0, %1, %cst {dimension_numbers = #tpu.dot_dimension_numbers<[1], [0], [0], [1], [0, 0, 1, 1], [], []>} : vector<8x144xbf16>, vector<144x128xbf16>, vector<8x128xf32> -> vector<8x128xf32>
    %c0_3 = arith.constant 0 : index
    %c0_4 = arith.constant 0 : index
    %3 = vector.load %arg3[%c0_3, %c0_4] : memref<8x1xf32, #tpu.memory_space<vmem>>, vector<8x1xf32>
    %4 = vector.broadcast %3 : vector<8x1xf32> to vector<8x128xf32>
    %5 = arith.addf %2, %4 : vector<8x128xf32>
    %6 = math.tanh %5 : vector<8x128xf32>
    %c0_5 = arith.constant 0 : index
    %c0_6 = arith.constant 0 : index
    %7 = vector.load %arg4[%c0_5, %c0_6] : memref<8x128xf32, #tpu.memory_space<vmem>>, vector<8x128xf32>
    tpu.vector_store %arg4[%c0_5, %c0_6], %6 {strides = array<i32>} : memref<8x128xf32, #tpu.memory_space<vmem>>, vector<8x128xf32>,
    return
  }
  func.func @transform_0(%arg0: i32) -> (i32, i32) {
    %c0_i32 = arith.constant 0 : i32
    %c0_i32_0 = arith.constant 0 : i32
    return %c0_i32, %arg0 : i32, i32
  }
  func.func @transform_1(%arg0: i32) -> (i32, i32) {
    %c0_i32 = arith.constant 0 : i32
    %c0_i32_0 = arith.constant 0 : i32
    %c0_i32_1 = arith.constant 0 : i32
    return %c0_i32, %c0_i32_0 : i32, i32
  }
  func.func @transform_2(%arg0: i32) -> (i32, i32) {
    %c0_i32 = arith.constant 0 : i32
    %c0_i32_0 = arith.constant 0 : i32
    %c0_i32_1 = arith.constant 0 : i32
    return %c0_i32, %c0_i32_0 : i32, i32
  }
  func.func @transform_3(%arg0: i32) -> (i32, i32) {
    %c0_i32 = arith.constant 0 : i32
    %c0_i32_0 = arith.constant 0 : i32
    return %c0_i32, %arg0 : i32, i32
  }
}

</mosaic_0001>

<bundles_post_ra>
// kernel: generator_forward.3
= control target key start
LH: loop header
LB: loop body
LE: loop exit
PB: predicated region body
PF: predicated region fallthrough
CT: control target
= control target key end

     0   :  { %s578_s12 = smov 0   ;;  %s580_s13 = smov 0   ;;  %s678_s0 = inlined_call_operand.vmem [shape: bf16[144,512], index: 0, kind: input, shape index: {}]   ;;  %s679_s1 = inlined_call_operand.vmem [shape: bf16[8,144], index: 1, kind: input, shape index: {}]   ;;  %s680_s2 = inlined_call_operand.vmem [shape: f32[8,1], index: 2, kind: input, shape index: {}]   ;;  %s681_s3 = inlined_call_operand.vmem [shape: f32[8,512], index: 3, kind: output, shape index: {}]  }
   0x1   :  { %s582_s14 = smov 0  }
   0x2 LB: > { %s471_s15 = sadd.s32 4294967295, %s555_s14   ;;  %s595_s16 = sadd.s32 1, %s555_s14   ;;  %s555_s14 = sphi %s582_s14, %s684_s14   ;;  %s551_s13 = sphi %s580_s13, %s683_s13   ;;  %s547_s12 = sphi %s578_s12, %s682_s12  }
   0x3   : > { %s17_s17 = ssub.s32 %s555_s14, %s595_s16  ;;  %s20_s18 = sadd.s32 1, %s551_s13 }
   0x4   : > { %p18_p0 = scmp.eq.s32.totalorder %s17_s17, 0  ;;  %p27_p1 = scmp.ne.s32.totalorder %s551_s13, %s547_s12 }
   0x5   : > { %p28_p2 = scmp.eq.s32.totalorder %s555_s14, 0  ;;  %p474_p4 = scmp.ge.s32.totalorder %s555_s14, 4 }
   0x6   : > { %s604_s19 = scalar_select %p18_p0, %s551_s13, %s20_s18  }
   0x7   : > { %p29_p3 = por %p28_p2, %p27_p1  ;;  %127 = sbr.rel (%p474_p4) target bundleno = 28 (0x1c), region = 24 }
   0xc   : > { %130 = sbr.rel (!%p29_p3) target bundleno = 28 (0x1c), region = 28  ;;  %s132_s20 = sand.u32 (%p29_p3), 1, %s551_s13  }
   0xd   : > { %s475_s21 = sshll.u32 (%p29_p3), %s555_s14, 2  ;;  %s492_s22 = smul.u32 (%p29_p3), 72, %s132_s20 }
   0xe   : > { %s612_s25 = scalar_lea.vmem (%p29_p3), %s678_s0, %s475_s21 }
   0xf   : > { %v153_v0 = vld [vmem:[%s612_s25] sm:$0xf] (%p29_p3)  ;;  %v155_v1 = vld [vmem:[%s612_s25 + $0x10] sm:$0xf] (%p29_p3)  ;;  %s619_s26 = scalar_lea.vmem (%p29_p3), [#allocation2], %s492_s22 }
  0x10   : > { %v157_v2 = vld [vmem:[%s612_s25 + $0x20] sm:$0xf] (%p29_p3)  ;;  %v159_v3 = vld [vmem:[%s612_s25 + $0x30] sm:$0xf] (%p29_p3)  ;;  %154 = vst [vmem:[%s619_s26] sm:$0xf] (%p29_p3), %v153_v0 }
  0x11   : > { %v161_v4 = vld [vmem:[%s612_s25 + $0x40] sm:$0xf]  ;;  %156 = vst [vmem:[%s619_s26 + $0x4] sm:$0xf] %v155_v1  ;;  %158 = vst [vmem:[%s619_s26 + $0x8] sm:$0xf] %v157_v2 }
  0x12   : > { %160 = vst [vmem:[%s619_s26 + $0xc] sm:$0xf] %v159_v3  ;;  %162 = vst [vmem:[%s619_s26 + $0x10] sm:$0xf] %v161_v4  ;;  %v163_v5 = vld [vmem:[%s612_s25 + $0x50] sm:$0xf] }
  0x13   : > { %v165_v6 = vld [vmem:[%s612_s25 + $0x60] sm:$0xf]  ;;  %v167_v7 = vld [vmem:[%s612_s25 + $0x70] sm:$0xf]  ;;  %164 = vst [vmem:[%s619_s26 + $0x14] sm:$0xf] %v163_v5 }
  0x14   : > { %166 = vst [vmem:[%s619_s26 + $0x18] sm:$0xf] %v165_v6  ;;  %168 = vst [vmem:[%s619_s26 + $0x1c] sm:$0xf] %v167_v7  ;;  %v169_v8 = vld [vmem:[%s612_s25 + $0x80] sm:$0xf] }
  0x15   : > { %v171_v9 = vld [vmem:[%s612_s25 + $0x90] sm:$0xf]  ;;  %v173_v10 = vld [vmem:[%s612_s25 + $0xa0] sm:$0xf]  ;;  %170 = vst [vmem:[%s619_s26 + $0x20] sm:$0xf] %v169_v8 }
  0x16   : > { %172 = vst [vmem:[%s619_s26 + $0x24] sm:$0xf] %v171_v9  ;;  %174 = vst [vmem:[%s619_s26 + $0x28] sm:$0xf] %v173_v10  ;;  %v175_v11 = vld [vmem:[%s612_s25 + $0xb0] sm:$0xf] }
  0x17   : > { %v177_v12 = vld [vmem:[%s612_s25 + $0xc0] sm:$0xf]  ;;  %v179_v13 = vld [vmem:[%s612_s25 + $0xd0] sm:$0xf]  ;;  %176 = vst [vmem:[%s619_s26 + $0x2c] sm:$0xf] %v175_v11 }
  0x18   : > { %178 = vst [vmem:[%s619_s26 + $0x30] sm:$0xf] %v177_v12  ;;  %180 = vst [vmem:[%s619_s26 + $0x34] sm:$0xf] %v179_v13  ;;  %v181_v14 = vld [vmem:[%s612_s25 + $0xe0] sm:$0xf] }
  0x19   : > { %v183_v15 = vld [vmem:[%s612_s25 + $0xf0] sm:$0xf]  ;;  %v185_v16 = vld [vmem:[%s612_s25 + $0x100] sm:$0xf]  ;;  %182 = vst [vmem:[%s619_s26 + $0x38] sm:$0xf] %v181_v14 }
  0x1a   : > { %184 = vst [vmem:[%s619_s26 + $0x3c] sm:$0xf] %v183_v15  ;;  %186 = vst [vmem:[%s619_s26 + $0x40] sm:$0xf] %v185_v16  ;;  %v187_v17 = vld [vmem:[%s612_s25 + $0x110] sm:$0xf] }
  0x1b   : > { %188 = vst [vmem:[%s619_s26 + $0x44] sm:$0xf] %v187_v17 }
  0x1c PF: > { %p476_p5 = scmp.ge.s32.totalorder %s555_s14, 1  ;;  %p247_p6 = scmp.lt.s32.totalorder %s555_s14, 5 }
  0x1e   : > { %p248_p7 = pnand %p476_p5, %p247_p6 }
  0x1f   : > { %s254_s27 = sand.u32 (!%p248_p7), 1, %s547_s12   ;;  %p276_p8 = scmp.lt.s32.totalorder (!%p248_p7), %s471_s15, 3 }
  0x20   : > { %251 = sbr.rel (%p248_p7) target bundleno = 285 (0x11d), region = 69 }
  0x21   : > { %s493_s5 = smul.u32 (!%p248_p7), 72, %s254_s27 }
  0x23   : > { %s256_s6 = scalar_lea.vmem (!%p248_p7), [#allocation2], %s493_s5 }
  0x25   : > { %v281_v18 = vld [vmem:[%s679_s1] sm:$0xff]  ;;  %vm366_vm0 = vcmask 130048   ;;  %v557_v20 = vmov 0   ;;  %v521_v23 = vld [vmem:[%s256_s6 + $0x30] sm:$0xff]   ;;  %v522_v24 = vld [vmem:[%s256_s6 + $0x28] sm:$0xff]   ;;  %s686_s15 = smov (!%p276_p8, %s471_s15), 3 }
  0x26   : > { %v300_v19 = vld [vmem:[%s680_s2] sm:$0xff]  ;;  %370 = vmatprep.subr.bf16.mxu0 %v557_v20  ;;  %v479_v21 = vcombine.high %v281_v18, %v281_v18  ;;  %519 = vset.pattern.permute.xlu0 %v557_v20  ;;  %v525_v27 = vld [vmem:[%s256_s6 + $0x10] sm:$0xff]   ;;  %v526_v28 = vld [vmem:[%s256_s6 + $0x8] sm:$0xff]   ;;  %v478_v31 = vcombine.low %v281_v18, %v281_v18  ;;  %s477_s7 = sshll.u32 %s686_s15, 3 }
  0x27   : > { %303 = vperm.xlu0 %519, %v300_v19   ;;  %v520_v22 = vld [vmem:[%s256_s6 + $0x38] sm:$0xff]   ;;  %v523_v25 = vld [vmem:[%s256_s6 + $0x20] sm:$0xff]   ;;  %s279_s10 = scalar_lea.vmem %s681_s3, %s477_s7 }
  0x28   : > { %489 = vmatprep.mubr.msk.bf16.mxu0 %vm366_vm0, %v479_v21  ;;  %371 = vmatpush1.bf16.msra.mxu0 %v520_v22  ;;  %v524_v26 = vld [vmem:[%s256_s6 + $0x18] sm:$0xff]   ;;  %v527_v29 = vld [vmem:[%s256_s6] sm:$0xff]  }
  0x29   : > { %372 = vmatprep.subr.bf16.mxu0 %v557_v20  ;;  %v528_v30 = vld [vmem:[%s256_s6 + $0x40] sm:$0xff]  }
  0x2c   : > { %373 = vmatpush1.bf16.msra.mxu0 %v521_v23 }
  0x2d   : > { %374 = vmatprep.subr.bf16.mxu0 %v557_v20 }
  0x30   : > { %375 = vmatpush1.bf16.msra.mxu0 %v522_v24 }
  0x31   : > { %376 = vmatprep.subr.bf16.mxu0 %v557_v20 }
  0x34   : > { %377 = vmatpush1.bf16.msra.mxu0 %v523_v25 }
  0x35   : > { %378 = vmatprep.subr.bf16.mxu0 %v557_v20 }
  0x38   : > { %379 = vmatpush1.bf16.msra.mxu0 %v524_v26 }
  0x39   : > { %380 = vmatprep.subr.bf16.mxu0 %v557_v20 }
  0x3c   : > { %381 = vmatpush1.bf16.msra.mxu0 %v525_v27 }
  0x3d   : > { %382 = vmatprep.subr.bf16.mxu0 %v557_v20 }
  0x40   : > { %383 = vmatpush1.bf16.msra.mxu0 %v526_v28 }
  0x41   : > { %384 = vmatprep.subr.bf16.mxu0 %v557_v20 }
  0x44   : > { %385 = vmatpush1.bf16.msra.mxu0 %v527_v29 }
  0x45   : > { %400 = vmatprep.subr.bf16.mxu0 %v557_v20 }
  0x48   : > { %401 = vmatpush2.bf16.msra.mxu0 %v528_v30 }
  0x4b   : > { %403 = vmatmul.mubr.bf16.vlgmr.msra.gmra.mxu0 %v478_v31 }
  0xa2   : > { %v304_v32 = vpop.permute.xlu0 %303 }
 0x10b   : > { %v404_v33 = vpop.f32.mrf.mxu0 }
 0x10c   : > { %v405_v34 = vadd.f32 %v404_v33, %v304_v32 }
 0x10d   : > { %v406_v35 = vpop.f32.mrf.mxu0 }
 0x10e   : > { %531 = vtanh.f32 %v405_v34 }
 0x10f   : > { %v407_v36 = vpop.f32.mrf.mxu0 }
 0x111   : > { %v408_v37 = vpop.f32.mrf.mxu0 }
 0x11b   : > { %v532_v38 = vpop.eup %531 }
 0x11c   : > { %411 = vst [vmem:[%s279_s10] sm:$0xff] %v532_v38 }
 0x11d PF: > { %p10_p9 = scmp.ge.s32.totalorder %s595_s16, 6   ;;  %s682_s12 = smov %s551_s13 }
 0x11e   : > { %s683_s13 = smov %s604_s19  ;;  %s684_s14 = smov %s595_s16 }
 0x11f   :  { %12 = sbr.rel (!%p10_p9) target bundleno = 2 (0x2), region = 108 }

// kernel: generator_forward.2
= control target key start
LH: loop header
LB: loop body
LE: loop exit
PB: predicated region body
PF: predicated region fallthrough
CT: control target
= control target key end

     0   :  { %17 = vsyncpa [#allocation6], 0  ;;  %s13086_s21 = smov 0   ;;  %s18242_s0 = inlined_call_operand.vmem [shape: f32[18], index: 0, kind: input, shape index: {}]   ;;  %s18243_s1 = inlined_call_operand.vmem [shape: bf16[200,64], index: 1, kind: input, shape index: {}]   ;;  %s18244_s2 = inlined_call_operand.vmem [shape: bf16[64,64], index: 2, kind: input, shape index: {}]   ;;  %s18245_s3 = inlined_call_operand.vmem [shape: f32[1,64], index: 3, kind: input, shape index: {}]   ;;  %s18246_s4 = inlined_call_operand.vmem [shape: f32[200,1], index: 4, kind: input, shape index: {}]   ;;  %s18247_s5 = inlined_call_operand.vmem [shape: bf16[16,2,576,64], index: 5, kind: input, shape index: {}]   ;;  %s18248_s6 = inlined_call_operand.vmem [shape: f32[16,2,1,64], index: 6, kind: input, shape index: {}]   ;;  %s18249_s7 = inlined_call_operand.vmem [shape: f32[16,2,1,64], index: 7, kind: input, shape index: {}]   ;;  %s18250_s8 = inlined_call_operand.vmem [shape: f32[16,2,1,64], index: 8, kind: input, shape index: {}]   ;;  %s18251_s9 = inlined_call_operand.vmem [shape: bf16[576,64], index: 9, kind: input, shape index: {}]   ;;  %s18252_s10 = inlined_call_operand.vmem [shape: f32[1,64], index: 10, kind: input, shape index: {}]   ;;  %s18253_s11 = inlined_call_operand.vmem [shape: f32[1,64], index: 11, kind: input, shape index: {}]   ;;  %s18254_s12 = inlined_call_operand.vmem [shape: bf16[200,64], index: 12, kind: output, shape index: {}]  }
   0x1 LB: > { %s13092_s22 = sadd.s32 4294967295, %s13010_s21   ;;  %p9988_p0 = scmp.ge.s32.totalorder %s13010_s21, 1  ;;  %s13010_s21 = sphi %s13086_s21, %s23_s21  }
   0x2   : > { %p321_p1 = scmp.lt.s32.totalorder %s13010_s21, 17  ;;  %s334_s25 = sshll.u32 %s18242_s0, 4  ;;  %s335_s25 = int_to_ptr.vmem [resolvable:$true] %s334_s25 }
   0x3   : > { %p12806_p4 = scmp.eq.s32.totalorder %s13092_s22, 0  ;;  %s12985_s27 = scalar_lea.vmem %s335_s25, 16 }
   0x4   : > { %p13100_p3 = pnand %p9988_p0, %p321_p1  ;;  %p12986_p7 = scmp.ne.s32.totalorder %s335_s25, %s12985_s27 }
   0x5   : > { %p12993_p11 = scmp.lt.s32.totalorder %s335_s25, %s335_s25  ;;  %p12994_p12 = scmp.lt.s32.totalorder %s12985_s27, %s12985_s27 }
   0x6   : > { %p12802_p5 = pneg %p13100_p3 }
   0x7   : > { %p12995_p13 = por %p12994_p12, %p12993_p11 }
   0x8   : > { %p12803_p6 = pnand %p12806_p4, %p12802_p5 }
   0xa   : > { %p12987_p8 = pneg %p12803_p6 }
   0xc   : > { %p12988_p9 = pnand %p12987_p8, %p12986_p7 }
   0xe   : > { %p12989_p10 = pneg %p12988_p9 }
  0x10   : > { %p12996_p2 = pnand %p12995_p13, %p12989_p10 }
  0x12   : > { %12999 = shalt.err (!%p12996_p2)
}
  0x13   : > { %s13012_s28 = smov [#allocation5]   ;;  %397 = sbr.rel (%p13100_p3) target bundleno = 2911 (0xb5f), region = 68 }
  0x14   : > { %12805 = dma.vmem_to_smem (!%p12803_p6), %s335_s25, 16, %s13012_s28, [#allocation6]  }
  0x18   : > { %13005 = dma.done.wait (%p12806_p4), [#allocation6], 16  }
  0x19   : > { %13007 = vsyncadd (%p12806_p4), [#allocation6], 4294967280 }
  0x1a   : > { %403 = sfence }
  0x1b   : > { %p447_p0 = scmp.lt.s32.totalorder %s13092_s22, 15  ;;  %v13119_v0 = vld [vmem:[%s18246_s4] sm:$0xff]  ;;  %v13124_v1 = vld [vmem:[%s18246_s4 + $0x8] sm:$0xff]  ;;  %v13129_v2 = vld [vmem:[%s18246_s4 + $0x10] sm:$0xff]  ;;  %p18391_p1 = scmp.ne.s32.totalorder %s13092_s22, 0 }
  0x1c   : > { %v13134_v3 = vld [vmem:[%s18246_s4 + $0x18] sm:$0xff]  ;;  %v13139_v4 = vld [vmem:[%s18246_s4 + $0x20] sm:$0xff]  ;;  %v13144_v5 = vld [vmem:[%s18246_s4 + $0x28] sm:$0xff]  ;;  %s855_s18 = sld [smem:[#allocation5]] (!%p18391_p1) }
  0x1d   : > { %s448_s25 = scalar_select %p447_p0, %s13092_s22, 15  ;;  %v13150_v6 = vld [vmem:[%s18246_s4 + $0x30] sm:$0xff]  ;;  %v13155_v7 = vld [vmem:[%s18246_s4 + $0x38] sm:$0xff]  ;;  %v13160_v8 = vld [vmem:[%s18246_s4 + $0x40] sm:$0xff] }
  0x1e   : > { %v13165_v9 = vld [vmem:[%s18246_s4 + $0x48] sm:$0xff]  ;;  %v13170_v10 = vld [vmem:[%s18246_s4 + $0x50] sm:$0xff]  ;;  %v13175_v11 = vld [vmem:[%s18246_s4 + $0x58] sm:$0xff] }
  0x1f   : > { %18375 = vst [vmem:[#allocation8_spill] sm:$0xff] %v13165_v9  ;;  %18376 = vst [vmem:[#allocation9_spill] sm:$0xff] %v13170_v10  ;;  %s12797_s20 = smul.u32 576, %s448_s25  ;;  %s9994_s23 = sshll.u32 %s448_s25, 1  ;;  %v13180_v12 = vld [vmem:[%s18246_s4 + $0x60] sm:$0xff]  ;;  %v13185_v13 = vld [vmem:[%s18246_s4 + $0x68] sm:$0xff] }
  0x20   : > { %18377 = vst [vmem:[#allocation10_spill] sm:$0xff] %v13175_v11  ;;  %18378 = vst [vmem:[#allocation11_spill] sm:$0xff] %v13180_v12  ;;  %v13190_v14 = vld [vmem:[%s18246_s4 + $0x70] sm:$0xff]  ;;  %s13195_s15 = scalar_lea.vmem %s18248_s6, %s9994_s23  ;;  %s13200_s17 = scalar_lea.vmem %s18249_s7, %s9994_s23  ;;  %v13205_v15 = vld [vmem:[%s18246_s4 + $0x78] sm:$0xff] }
  0x21   : > { %18379 = vst [vmem:[#allocation12_spill] sm:$0xff] %v13185_v13  ;;  %18380 = vst [vmem:[#allocation13_spill] sm:$0xff] %v13190_v14  ;;  %v13210_v16 = vld [vmem:[%s18246_s4 + $0x80] sm:$0xff]  ;;  %v13215_v17 = vld [vmem:[%s18246_s4 + $0x88] sm:$0xff]  ;;  %s13220_s13 = scalar_lea.vmem %s18247_s5, %s12797_s20  ;;  %s13225_s16 = scalar_lea.vmem %s18250_s8, %s9994_s23 }
  0x22   : > { %18381 = vst [vmem:[#allocation14_spill] sm:$0xff] %v13205_v15  ;;  %18382 = vst [vmem:[#allocation15_spill] sm:$0xff] %v13210_v16  ;;  %v13230_v18 = vld [vmem:[%s18246_s4 + $0x90] sm:$0xff]  ;;  %v13235_v19 = vld [vmem:[%s18246_s4 + $0x98] sm:$0xff]  ;;  %493 = sbr.rel (%p18391_p1) target bundleno = 309 (0x135), region = 76 }
  0x23   : > { %18383 = vst [vmem:[#allocation16_spill] sm:$0xff] %v13215_v17  ;;  %18384 = vst [vmem:[#allocation17_spill] sm:$0xff] %v13230_v18  ;;  %v13240_v20 = vld [vmem:[%s18246_s4 + $0xa0] sm:$0xff]  ;;  %v13245_v21 = vld [vmem:[%s18246_s4 + $0xa8] sm:$0xff] }
  0x24   : > { %18385 = vst [vmem:[#allocation18_spill] sm:$0xff] %v13235_v19  ;;  %18386 = vst [vmem:[#allocation19_spill] sm:$0xff] %v13240_v20  ;;  %v13250_v22 = vld [vmem:[%s18246_s4 + $0xb0] sm:$0xff]  ;;  %v13255_v23 = vld [vmem:[%s18246_s4 + $0xb8] sm:$0xff] }
  0x25   : > { %18387 = vst [vmem:[#allocation20_spill] sm:$0xff] %v13245_v21  ;;  %18388 = vst [vmem:[#allocation21_spill] sm:$0xff] %v13250_v22  ;;  %v13260_v24 = vld [vmem:[%s18246_s4 + $0xc0] sm:$0xff] }
  0x26   : > { %18389 = vst [vmem:[#allocation22_spill] sm:$0xff] %v13255_v23  ;;  %18390 = vst [vmem:[#allocation23_spill] sm:$0xff] %v13260_v24 }
  0x27   : > { %v12827_v25 = vld [vmem:[%s18244_s2 + $0x18] sm:$0xff]   ;;  %v13013_v26 = vmov 0.0   ;;  %v13272_v27 = vld [vmem:[%s18244_s2 + $0x10] sm:$0xff]   ;;  %vm494_vm0 = vcmask 523264   ;;  %vm13014_vm1 = vmmov 0   ;;  %v13015_v28 = vmov 0  }
  0x28   : > { %11101 = vmatprep.subr.bf16.mxu0 %v13013_v26  ;;  %12781 = vmatprep.subr.bf16.mxu1 %v13013_v26  ;;  %495 = vst.msk [vmem:[#allocation2] sm:$0xff] %vm494_vm0, %v13013_v26  ;;  %496 = vst.msk [vmem:[#allocation2 + $0x8] sm:$0xff] %vm494_vm0, %v13013_v26  ;;  %v12829_v29 = vld [vmem:[%s18244_s2 + $0x8] sm:$0xff]   ;;  %v12830_v30 = vld [vmem:[%s18244_s2] sm:$0xff]   ;;  %v13534_v59 = vstv %s855_s18 }
  0x29   : > { %11102 = vmatpush3.bf16.msra.mxu0 %v12827_v25  ;;  %12785 = vmatpush3.bf16.msra.mxu1 %v12827_v25  ;;  %522 = vst.msk [vmem:[#allocation2 + $0xd8] sm:$0xff] %vm494_vm0, %v13013_v26  ;;  %523 = vst.msk [vmem:[#allocation2 + $0xe0] sm:$0xff] %vm494_vm0, %v13013_v26  ;;  %v12831_v31 = vld [vmem:[%s18243_s1] sm:$0xff]   ;;  %v12832_v32 = vld [vmem:[%s18243_s1 + $0x38] sm:$0xff]  }
  0x2a   : > { %11103 = vmatprep.subr.bf16.mxu0 %v13013_v26  ;;  %12782 = vmatprep.subr.bf16.mxu1 %v13013_v26  ;;  %524 = vst.msk [vmem:[#allocation3] sm:$0xff] %vm494_vm0, %v13013_v26  ;;  %525 = vst.msk [vmem:[#allocation3 + $0x8] sm:$0xff] %vm494_vm0, %v13013_v26  ;;  %v12833_v33 = vld [vmem:[%s18243_s1 + $0x8] sm:$0xff]   ;;  %v12834_v34 = vld [vmem:[%s18243_s1 + $0x40] sm:$0xff]  }
  0x2b   : > { %526 = vst.msk [vmem:[#allocation3 + $0x10] sm:$0xff] %vm494_vm0, %v13013_v26  ;;  %527 = vst.msk [vmem:[#allocation3 + $0x18] sm:$0xff] %vm494_vm0, %v13013_v26  ;;  %11109 = vmatprep.mubr.msk.bf16.mxu0 %vm13014_vm1, %v13013_v26  ;;  %11137 = vmatprep.mubr.msk.bf16.mxu1 %vm13014_vm1, %v13013_v26  ;;  %v12835_v35 = vld [vmem:[%s18243_s1 + $0x10] sm:$0xff]   ;;  %v12836_v36 = vld [vmem:[%s18243_s1 + $0x48] sm:$0xff]  }
  0x2c   : > { %528 = vst.msk [vmem:[#allocation3 + $0x20] sm:$0xff] %vm494_vm0, %v13013_v26  ;;  %529 = vst.msk [vmem:[#allocation3 + $0x28] sm:$0xff] %vm494_vm0, %v13013_v26  ;;  %12825 = vset.pattern.permute.xlu0 %v13015_v28  ;;  %12826 = vset.pattern.permute.xlu1 %v13015_v28  ;;  %v12837_v37 = vld [vmem:[%s18243_s1 + $0x18] sm:$0xff]   ;;  %v12838_v38 = vld [vmem:[%s18243_s1 + $0x50] sm:$0xff]  }
  0x2d   : > { %530 = vst.msk [vmem:[#allocation3 + $0x30] sm:$0xff] %vm494_vm0, %v13013_v26  ;;  %531 = vst.msk [vmem:[#allocation3 + $0x38] sm:$0xff] %vm494_vm0, %v13013_v26  ;;  %11104 = vmatpush3.bf16.msra.mxu0 %v13272_v27  ;;  %12786 = vmatpush3.bf16.msra.mxu1 %v13272_v27  ;;  %v12839_v39 = vld [vmem:[%s18243_s1 + $0x20] sm:$0xff]   ;;  %v12840_v40 = vld [vmem:[%s18243_s1 + $0x58] sm:$0xff]  }
  0x2e   : > { %532 = vst.msk [vmem:[#allocation3 + $0x40] sm:$0xff] %vm494_vm0, %v13013_v26  ;;  %533 = vst.msk [vmem:[#allocation3 + $0x48] sm:$0xff] %vm494_vm0, %v13013_v26  ;;  %11105 = vmatprep.subr.bf16.mxu0 %v13013_v26  ;;  %12783 = vmatprep.subr.bf16.mxu1 %v13013_v26  ;;  %v12841_v41 = vld [vmem:[%s18243_s1 + $0x28] sm:$0xff]   ;;  %v12842_v42 = vld [vmem:[%s18243_s1 + $0x60] ss:$0 sps:$4 sm:$0xff]  }
  0x2f   : > { %534 = vst.msk [vmem:[#allocation3 + $0x50] sm:$0xff] %vm494_vm0, %v13013_v26  ;;  %535 = vst.msk [vmem:[#allocation3 + $0x58] sm:$0xff] %vm494_vm0, %v13013_v26  ;;  %934 = vperm.xlu0 %12825, %v13119_v0   ;;  %944 = vperm.xlu1 %12826, %v13129_v2   ;;  %v12843_v43 = vld [vmem:[%s18243_s1 + $0x30] sm:$0xff]   ;;  %v13530_v56 = vld [vmem:[%s18245_s3] ss:$0 sm:$0xff] }
  0x30   : > { %536 = vst.msk [vmem:[#allocation3 + $0x60] sm:$0xff] %vm494_vm0, %v13013_v26  ;;  %537 = vst.msk [vmem:[#allocation3 + $0x68] sm:$0xff] %vm494_vm0, %v13013_v26 }
  0x31   : > { %538 = vst.msk [vmem:[#allocation3 + $0x70] sm:$0xff] %vm494_vm0, %v13013_v26  ;;  %539 = vst.msk [vmem:[#allocation3 + $0x78] sm:$0xff] %vm494_vm0, %v13013_v26  ;;  %11106 = vmatpush3.bf16.msra.mxu0 %v12829_v29  ;;  %12787 = vmatpush3.bf16.msra.mxu1 %v12829_v29 }
  0x32   : > { %540 = vst.msk [vmem:[#allocation3 + $0x80] sm:$0xff] %vm494_vm0, %v13013_v26  ;;  %541 = vst.msk [vmem:[#allocation3 + $0x88] sm:$0xff] %vm494_vm0, %v13013_v26  ;;  %11107 = vmatprep.subr.bf16.mxu0 %v13013_v26  ;;  %12784 = vmatprep.subr.bf16.mxu1 %v13013_v26 }
  0x33   : > { %542 = vst.msk [vmem:[#allocation3 + $0x90] sm:$0xff] %vm494_vm0, %v13013_v26  ;;  %543 = vst.msk [vmem:[#allocation3 + $0x98] sm:$0xff] %vm494_vm0, %v13013_v26  ;;  %939 = vperm.xlu0 %12825, %v13124_v1   ;;  %949 = vperm.xlu1 %12826, %v13134_v3  }
  0x34   : > { %544 = vst.msk [vmem:[#allocation3 + $0xa0] sm:$0xff] %vm494_vm0, %v13013_v26  ;;  %545 = vst.msk [vmem:[#allocation3 + $0xa8] sm:$0xff] %vm494_vm0, %v13013_v26 }
  0x35   : > { %546 = vst.msk [vmem:[#allocation3 + $0xb0] sm:$0xff] %vm494_vm0, %v13013_v26  ;;  %547 = vst.msk [vmem:[#allocation3 + $0xb8] sm:$0xff] %vm494_vm0, %v13013_v26  ;;  %11108 = vmatpush3.bf16.msra.mxu0 %v12830_v30  ;;  %12788 = vmatpush3.bf16.msra.mxu1 %v12830_v30 }
  0x36   : > { %548 = vst.msk [vmem:[#allocation3 + $0xc0] sm:$0xff] %vm494_vm0, %v13013_v26  ;;  %549 = vst.msk [vmem:[#allocation3 + $0xc8] sm:$0xff] %vm494_vm0, %v13013_v26 }
  0x37   : > { %550 = vst.msk [vmem:[#allocation3 + $0xd0] sm:$0xff] %vm494_vm0, %v13013_v26  ;;  %551 = vst.msk [vmem:[#allocation3 + $0xd8] sm:$0xff] %vm494_vm0, %v13013_v26  ;;  %954 = vperm.xlu0 %12825, %v13139_v4   ;;  %959 = vperm.xlu1 %12826, %v13144_v5  }
  0x38   : > { %552 = vst.msk [vmem:[#allocation3 + $0xe0] sm:$0xff] %vm494_vm0, %v13013_v26  ;;  %497 = vst.msk [vmem:[#allocation2 + $0x10] sm:$0xff] %vm494_vm0, %v13013_v26  ;;  %11110 = vmatmul.mubr.msk.bf16.vlgmr.msra.gmra.mxu0 %vm494_vm0, %v12831_v31  ;;  %11138 = vmatmul.mubr.msk.bf16.vlgmr.msra.gmra.mxu1 %vm494_vm0, %v12832_v32 }
  0x39   : > { %498 = vst.msk [vmem:[#allocation2 + $0x18] sm:$0xff] %vm494_vm0, %v13013_v26  ;;  %499 = vst.msk [vmem:[#allocation2 + $0x20] sm:$0xff] %vm494_vm0, %v13013_v26  ;;  %11113 = vmatprep.mubr.msk.bf16.mxu0 %vm13014_vm1, %v13013_v26  ;;  %11141 = vmatprep.mubr.msk.bf16.mxu1 %vm13014_vm1, %v13013_v26 }
  0x3a   : > { %500 = vst.msk [vmem:[#allocation2 + $0x28] sm:$0xff] %vm494_vm0, %v13013_v26  ;;  %501 = vst.msk [vmem:[#allocation2 + $0x30] sm:$0xff] %vm494_vm0, %v13013_v26 }
  0x3b   : > { %502 = vst.msk [vmem:[#allocation2 + $0x38] sm:$0xff] %vm494_vm0, %v13013_v26  ;;  %503 = vst.msk [vmem:[#allocation2 + $0x40] sm:$0xff] %vm494_vm0, %v13013_v26  ;;  %964 = vperm.xlu0 %12825, %v13150_v6   ;;  %969 = vperm.xlu1 %12826, %v13155_v7  }
  0x3c   : > { %504 = vst.msk [vmem:[#allocation2 + $0x48] sm:$0xff] %vm494_vm0, %v13013_v26  ;;  %505 = vst.msk [vmem:[#allocation2 + $0x50] sm:$0xff] %vm494_vm0, %v13013_v26 }
  0x3d   : > { %506 = vst.msk [vmem:[#allocation2 + $0x58] sm:$0xff] %vm494_vm0, %v13013_v26  ;;  %507 = vst.msk [vmem:[#allocation2 + $0x60] sm:$0xff] %vm494_vm0, %v13013_v26 }
  0x3e   : > { %508 = vst.msk [vmem:[#allocation2 + $0x68] sm:$0xff] %vm494_vm0, %v13013_v26  ;;  %509 = vst.msk [vmem:[#allocation2 + $0x70] sm:$0xff] %vm494_vm0, %v13013_v26 }
  0x3f   : > { %510 = vst.msk [vmem:[#allocation2 + $0x78] sm:$0xff] %vm494_vm0, %v13013_v26  ;;  %511 = vst.msk [vmem:[#allocation2 + $0x80] sm:$0xff] %vm494_vm0, %v13013_v26  ;;  %974 = vperm.xlu0 %12825, %v13160_v8   ;;  %979 = vperm.xlu1 %12826, %v13165_v9  }
  0x40   : > { %512 = vst.msk [vmem:[#allocation2 + $0x88] sm:$0xff] %vm494_vm0, %v13013_v26  ;;  %513 = vst.msk [vmem:[#allocation2 + $0x90] sm:$0xff] %vm494_vm0, %v13013_v26  ;;  %11114 = vmatmul.mubr.msk.bf16.gmra.mxu0 %vm494_vm0, %v12833_v33  ;;  %11142 = vmatmul.mubr.msk.bf16.gmra.mxu1 %vm494_vm0, %v12834_v34 }
  0x41   : > { %514 = vst.msk [vmem:[#allocation2 + $0x98] sm:$0xff] %vm494_vm0, %v13013_v26  ;;  %515 = vst.msk [vmem:[#allocation2 + $0xa0] sm:$0xff] %vm494_vm0, %v13013_v26  ;;  %11117 = vmatprep.mubr.msk.bf16.mxu0 %vm13014_vm1, %v13013_v26  ;;  %11145 = vmatprep.mubr.msk.bf16.mxu1 %vm13014_vm1, %v13013_v26 }
  0x42   : > { %516 = vst.msk [vmem:[#allocation2 + $0xa8] sm:$0xff] %vm494_vm0, %v13013_v26  ;;  %517 = vst.msk [vmem:[#allocation2 + $0xb0] sm:$0xff] %vm494_vm0, %v13013_v26 }
  0x43   : > { %518 = vst.msk [vmem:[#allocation2 + $0xb8] sm:$0xff] %vm494_vm0, %v13013_v26  ;;  %519 = vst.msk [vmem:[#allocation2 + $0xc0] sm:$0xff] %vm494_vm0, %v13013_v26  ;;  %984 = vperm.xlu0 %12825, %v13170_v10   ;;  %989 = vperm.xlu1 %12826, %v13175_v11  }
  0x44   : > { %520 = vst.msk [vmem:[#allocation2 + $0xc8] sm:$0xff] %vm494_vm0, %v13013_v26  ;;  %521 = vst.msk [vmem:[#allocation2 + $0xd0] sm:$0xff] %vm494_vm0, %v13013_v26 }
  0x47   : > { %994 = vperm.xlu0 %12825, %v13180_v12   ;;  %999 = vperm.xlu1 %12826, %v13185_v13  }
  0x48   : > { %11118 = vmatmul.mubr.msk.bf16.gmra.mxu0 %vm494_vm0, %v12835_v35  ;;  %11146 = vmatmul.mubr.msk.bf16.gmra.mxu1 %vm494_vm0, %v12836_v36 }
  0x49   : > { %11121 = vmatprep.mubr.msk.bf16.mxu0 %vm13014_vm1, %v13013_v26  ;;  %11149 = vmatprep.mubr.msk.bf16.mxu1 %vm13014_vm1, %v13013_v26 }
  0x4b   : > { %1004 = vperm.xlu0 %12825, %v13190_v14   ;;  %1009 = vperm.xlu1 %12826, %v13205_v15  }
  0x4f   : > { %1014 = vperm.xlu0 %12825, %v13210_v16   ;;  %1019 = vperm.xlu1 %12826, %v13215_v17  }
  0x50   : > { %11122 = vmatmul.mubr.msk.bf16.gmra.mxu0 %vm494_vm0, %v12837_v37  ;;  %11150 = vmatmul.mubr.msk.bf16.gmra.mxu1 %vm494_vm0, %v12838_v38 }
  0x51   : > { %11125 = vmatprep.mubr.msk.bf16.mxu0 %vm13014_vm1, %v13013_v26  ;;  %11153 = vmatprep.mubr.msk.bf16.mxu1 %vm13014_vm1, %v13013_v26 }
  0x53   : > { %1024 = vperm.xlu0 %12825, %v13230_v18   ;;  %1029 = vperm.xlu1 %12826, %v13235_v19  }
  0x57   : > { %1034 = vperm.xlu0 %12825, %v13240_v20   ;;  %1039 = vperm.xlu1 %12826, %v13245_v21  }
  0x58   : > { %11126 = vmatmul.mubr.msk.bf16.gmra.mxu0 %vm494_vm0, %v12839_v39  ;;  %11154 = vmatmul.mubr.msk.bf16.gmra.mxu1 %vm494_vm0, %v12840_v40 }
  0x59   : > { %11129 = vmatprep.mubr.msk.bf16.mxu0 %vm13014_vm1, %v13013_v26  ;;  %11157 = vmatprep.mubr.msk.bf16.mxu1 %vm13014_vm1, %v13013_v26 }
  0x5b   : > { %1044 = vperm.xlu0 %12825, %v13250_v22   ;;  %1049 = vperm.xlu1 %12826, %v13255_v23  }
  0x5f   : > { %1054 = vperm.xlu0 %12825, %v13260_v24  }
  0x60   : > { %11130 = vmatmul.mubr.msk.bf16.gmra.mxu0 %vm494_vm0, %v12841_v41  ;;  %11158 = vmatmul.mubr.msk.bf16.gmra.mxu1 %vm494_vm0, %v12842_v42 }
  0x61   : > { %11133 = vmatprep.mubr.msk.bf16.mxu0 %vm13014_vm1, %v13013_v26 }
  0x68   : > { %11134 = vmatmul.mubr.msk.bf16.gmra.mxu0 %vm494_vm0, %v12843_v43 }
  0xaa   : > { %v935_v44 = vpop.permute.xlu0 %934  ;;  %v13507_v45 = vpop.permute.xlu1 %944 }
  0xae   : > { %v940_v46 = vpop.permute.xlu0 %939  ;;  %v13509_v47 = vpop.permute.xlu1 %949 }
  0xb2   : > { %v13511_v48 = vpop.permute.xlu0 %954  ;;  %v13513_v49 = vpop.permute.xlu1 %959 }
  0xb6   : > { %v13515_v50 = vpop.permute.xlu0 %964  ;;  %v13517_v51 = vpop.permute.xlu1 %969 }
  0xba   : > { %v13519_v52 = vpop.permute.xlu0 %974  ;;  %v13521_v53 = vpop.permute.xlu1 %979 }
  0xbe   : > { %v13523_v54 = vpop.permute.xlu0 %984  ;;  %v13525_v55 = vpop.permute.xlu1 %989 }
  0xc2   : > { %v13532_v57 = vpop.permute.xlu0 %994  ;;  %v13538_v26 = vpop.permute.xlu1 %999 }
  0xc6   : > { %v1005_v31 = vpop.permute.xlu0 %1004 }
  0xf8   : > { %v753_v58 = vpop.f32.mrf.mxu0  ;;  %v809_v60 = vpop.f32.mrf.mxu1 }
  0xf9   : > { %v754_v61 = vadd.f32 %v13530_v56, %v753_v58  ;;  %v810_v62 = vadd.f32 %v13530_v56, %v809_v60 }
  0xfa   : > { %v11111_v63 = vpop.f32.mrf.mxu0  ;;  %v11139_v25 = vpop.f32.mrf.mxu1 }
  0xfb   : > { %vm856_vm2 = vcmp.ge.f32.partialorder %v754_v61, 0.0  ;;  %v882_v27 = vmul.f32 %v13534_v59, %v754_v61  ;;  %vm870_vm3 = vcmp.ge.f32.partialorder %v810_v62, 0.0  ;;  %v896_v28 = vmul.f32 %v13534_v59, %v810_v62 }
  0xfc   : > { %v756_v29 = vpop.f32.mrf.mxu0  ;;  %v812_v30 = vpop.f32.mrf.mxu1 }
  0xfd   : > { %v907_v32 = vsel %vm856_vm2, %v754_v61, %v882_v27  ;;  %v921_v33 = vsel %vm870_vm3, %v810_v62, %v896_v28  ;;  %v757_v34 = vadd.f32 %v13530_v56, %v756_v29  ;;  %v813_v35 = vadd.f32 %v13530_v56, %v812_v30 }
  0xfe   : > { %v1057_v36 = vmul.f32 %v935_v44, %v907_v32  ;;  %v1071_v37 = vmul.f32 %v1005_v31, %v921_v33  ;;  %v11112_v38 = vpop.f32.mrf.mxu0  ;;  %v11140_v39 = vpop.f32.mrf.mxu1 }
  0xff   : > { %vm857_vm4 = vcmp.ge.f32.partialorder %v757_v34, 0.0  ;;  %v883_v40 = vmul.f32 %v13534_v59, %v757_v34  ;;  %vm871_vm5 = vcmp.ge.f32.partialorder %v813_v35, 0.0  ;;  %v897_v41 = vmul.f32 %v13534_v59, %v813_v35  ;;  %v1010_v44 = vpop.permute.xlu1 %1009 }
 0x100   : > { %1082 = vst.msk [vmem:[#allocation4] sm:$0xff] %vm494_vm0, %v1057_v36  ;;  %1107 = vst.msk [vmem:[#allocation2 + $0x10] sm:$0xff] %vm494_vm0, %v1057_v36  ;;  %v761_v42 = vpop.f32.mrf.mxu0  ;;  %v817_v43 = vpop.f32.mrf.mxu1 }
 0x101   : > { %1096 = vst.msk [vmem:[#allocation4 + $0x70] sm:$0xff] %vm494_vm0, %v1071_v37  ;;  %1121 = vst.msk [vmem:[#allocation2 + $0x80] sm:$0xff] %vm494_vm0, %v1071_v37  ;;  %v908_v58 = vsel %vm857_vm4, %v757_v34, %v883_v40  ;;  %v922_v60 = vsel %vm871_vm5, %v813_v35, %v897_v41  ;;  %v762_v61 = vadd.f32 %v13530_v56, %v761_v42 }
 0x102   : > { %v818_v62 = vadd.f32 %v13530_v56, %v817_v43  ;;  %v1058_v63 = vmul.f32 %v940_v46, %v908_v58  ;;  %v1072_v25 = vmul.f32 %v1010_v44, %v922_v60  ;;  %v11115_v27 = vpop.f32.mrf.mxu0  ;;  %v11143_v28 = vpop.f32.mrf.mxu1 }
 0x103   : > { %vm858_vm6 = vcmp.ge.f32.partialorder %v762_v61, 0.0  ;;  %v884_v29 = vmul.f32 %v13534_v59, %v762_v61  ;;  %v1015_v46 = vpop.permute.xlu0 %1014 }
 0x104   : > { %vm872_vm7 = vcmp.ge.f32.partialorder %v818_v62, 0.0  ;;  %v898_v30 = vmul.f32 %v13534_v59, %v818_v62  ;;  %1083 = vst.msk [vmem:[#allocation4 + $0x8] sm:$0xff] %vm494_vm0, %v1058_v63  ;;  %1108 = vst.msk [vmem:[#allocation2 + $0x18] sm:$0xff] %vm494_vm0, %v1058_v63  ;;  %v764_v31 = vpop.f32.mrf.mxu0  ;;  %v820_v32 = vpop.f32.mrf.mxu1 }
 0x105   : > { %1097 = vst.msk [vmem:[#allocation4 + $0x78] sm:$0xff] %vm494_vm0, %v1072_v25  ;;  %1122 = vst.msk [vmem:[#allocation2 + $0x88] sm:$0xff] %vm494_vm0, %v1072_v25  ;;  %v909_v33 = vsel %vm858_vm6, %v762_v61, %v884_v29  ;;  %v765_v35 = vadd.f32 %v13530_v56, %v764_v31  ;;  %v821_v36 = vadd.f32 %v13530_v56, %v820_v32 }
 0x106   : > { %v923_v34 = vsel %vm872_vm7, %v818_v62, %v898_v30  ;;  %v1059_v37 = vmul.f32 %v13507_v45, %v909_v33  ;;  %v11116_v39 = vpop.f32.mrf.mxu0  ;;  %v11144_v40 = vpop.f32.mrf.mxu1 }
 0x107   : > { %v1073_v38 = vmul.f32 %v1015_v46, %v923_v34  ;;  %vm859_vm8 = vcmp.ge.f32.partialorder %v765_v35, 0.0  ;;  %v885_v41 = vmul.f32 %v13534_v59, %v765_v35  ;;  %vm873_vm9 = vcmp.ge.f32.partialorder %v821_v36, 0.0  ;;  %v1020_v45 = vpop.permute.xlu1 %1019 }
 0x108   : > { %v899_v42 = vmul.f32 %v13534_v59, %v821_v36  ;;  %1084 = vst.msk [vmem:[#allocation4 + $0x10] sm:$0xff] %vm494_vm0, %v1059_v37  ;;  %1109 = vst.msk [vmem:[#allocation2 + $0x20] sm:$0xff] %vm494_vm0, %v1059_v37  ;;  %v769_v43 = vpop.f32.mrf.mxu0  ;;  %v825_v44 = vpop.f32.mrf.mxu1 }
 0x109   : > { %1098 = vst.msk [vmem:[#allocation4 + $0x80] sm:$0xff] %vm494_vm0, %v1073_v38  ;;  %1123 = vst.msk [vmem:[#allocation2 + $0x90] sm:$0xff] %vm494_vm0, %v1073_v38  ;;  %v910_v58 = vsel %vm859_vm8, %v765_v35, %v885_v41  ;;  %v770_v61 = vadd.f32 %v13530_v56, %v769_v43  ;;  %v826_v62 = vadd.f32 %v13530_v56, %v825_v44 }
 0x10a   : > { %v924_v60 = vsel %vm873_vm9, %v821_v36, %v899_v42  ;;  %v1060_v63 = vmul.f32 %v13509_v47, %v910_v58  ;;  %v11119_v27 = vpop.f32.mrf.mxu0  ;;  %v11147_v28 = vpop.f32.mrf.mxu1 }
 0x10b   : > { %v1074_v25 = vmul.f32 %v1020_v45, %v924_v60  ;;  %vm860_vm10 = vcmp.ge.f32.partialorder %v770_v61, 0.0  ;;  %v886_v29 = vmul.f32 %v13534_v59, %v770_v61  ;;  %vm874_vm11 = vcmp.ge.f32.partialorder %v826_v62, 0.0  ;;  %v1025_v47 = vpop.permute.xlu0 %1024 }
 0x10c   : > { %v900_v30 = vmul.f32 %v13534_v59, %v826_v62  ;;  %1085 = vst.msk [vmem:[#allocation4 + $0x18] sm:$0xff] %vm494_vm0, %v1060_v63  ;;  %1110 = vst.msk [vmem:[#allocation2 + $0x28] sm:$0xff] %vm494_vm0, %v1060_v63  ;;  %v772_v31 = vpop.f32.mrf.mxu0  ;;  %v828_v32 = vpop.f32.mrf.mxu1 }
 0x10d   : > { %1099 = vst.msk [vmem:[#allocation4 + $0x88] sm:$0xff] %vm494_vm0, %v1074_v25  ;;  %1124 = vst.msk [vmem:[#allocation2 + $0x98] sm:$0xff] %vm494_vm0, %v1074_v25  ;;  %v911_v46 = vsel %vm860_vm10, %v770_v61, %v886_v29  ;;  %v773_v34 = vadd.f32 %v13530_v56, %v772_v31  ;;  %v829_v35 = vadd.f32 %v13530_v56, %v828_v32 }
 0x10e   : > { %v925_v33 = vsel %vm874_vm11, %v826_v62, %v900_v30  ;;  %v1061_v36 = vmul.f32 %v13511_v48, %v911_v46  ;;  %v11120_v38 = vpop.f32.mrf.mxu0  ;;  %v11148_v39 = vpop.f32.mrf.mxu1 }
 0x10f   : > { %v1075_v37 = vmul.f32 %v1025_v47, %v925_v33  ;;  %vm861_vm12 = vcmp.ge.f32.partialorder %v773_v34, 0.0  ;;  %v887_v40 = vmul.f32 %v13534_v59, %v773_v34  ;;  %vm875_vm13 = vcmp.ge.f32.partialorder %v829_v35, 0.0  ;;  %v1030_v48 = vpop.permute.xlu1 %1029 }
 0x110   : > { %v901_v41 = vmul.f32 %v13534_v59, %v829_v35  ;;  %1086 = vst.msk [vmem:[#allocation4 + $0x20] sm:$0xff] %vm494_vm0, %v1061_v36  ;;  %1111 = vst.msk [vmem:[#allocation2 + $0x30] sm:$0xff] %vm494_vm0, %v1061_v36  ;;  %v777_v42 = vpop.f32.mrf.mxu0  ;;  %v833_v43 = vpop.f32.mrf.mxu1 }
 0x111   : > { %1100 = vst.msk [vmem:[#allocation4 + $0x90] sm:$0xff] %vm494_vm0, %v1075_v37  ;;  %1125 = vst.msk [vmem:[#allocation2 + $0xa0] sm:$0xff] %vm494_vm0, %v1075_v37  ;;  %v912_v44 = vsel %vm861_vm12, %v773_v34, %v887_v40  ;;  %v778_v58 = vadd.f32 %v13530_v56, %v777_v42  ;;  %v834_v60 = vadd.f32 %v13530_v56, %v833_v43 }
 0x112   : > { %v926_v45 = vsel %vm875_vm13, %v829_v35, %v901_v41  ;;  %v1062_v61 = vmul.f32 %v13513_v49, %v912_v44  ;;  %v11123_v63 = vpop.f32.mrf.mxu0  ;;  %v11151_v25 = vpop.f32.mrf.mxu1 }
 0x113   : > { %v1076_v62 = vmul.f32 %v1030_v48, %v926_v45  ;;  %vm862_vm14 = vcmp.ge.f32.partialorder %v778_v58, 0.0  ;;  %v888_v27 = vmul.f32 %v13534_v59, %v778_v58  ;;  %vm876_vm15 = vcmp.ge.f32.partialorder %v834_v60, 0.0  ;;  %v1035_v49 = vpop.permute.xlu0 %1034 }
 0x114   : > { %v902_v28 = vmul.f32 %v13534_v59, %v834_v60  ;;  %1087 = vst.msk [vmem:[#allocation4 + $0x28] sm:$0xff] %vm494_vm0, %v1062_v61  ;;  %1112 = vst.msk [vmem:[#allocation2 + $0x38] sm:$0xff] %vm494_vm0, %v1062_v61  ;;  %v780_v29 = vpop.f32.mrf.mxu0  ;;  %v836_v30 = vpop.f32.mrf.mxu1 }
 0x115   : > { %1101 = vst.msk [vmem:[#allocation4 + $0x98] sm:$0xff] %vm494_vm0, %v1076_v62  ;;  %1126 = vst.msk [vmem:[#allocation2 + $0xa8] sm:$0xff] %vm494_vm0, %v1076_v62  ;;  %v913_v31 = vsel %vm862_vm14, %v778_v58, %v888_v27  ;;  %v781_v47 = vadd.f32 %v13530_v56, %v780_v29  ;;  %v837_v46 = vadd.f32 %v13530_v56, %v836_v30 }
 0x116   : > { %v927_v32 = vsel %vm876_vm15, %v834_v60, %v902_v28  ;;  %v1063_v33 = vmul.f32 %v13515_v50, %v913_v31  ;;  %v11124_v35 = vpop.f32.mrf.mxu0  ;;  %v11152_v36 = vpop.f32.mrf.mxu1 }
 0x117   : > { %v1077_v34 = vmul.f32 %v1035_v49, %v927_v32  ;;  %vm863_vm1 = vcmp.ge.f32.partialorder %v781_v47, 0.0  ;;  %v889_v37 = vmul.f32 %v13534_v59, %v781_v47  ;;  %vm877_vm2 = vcmp.ge.f32.partialorder %v837_v46, 0.0  ;;  %v1040_v50 = vpop.permute.xlu1 %1039 }
 0x118   : > { %v903_v38 = vmul.f32 %v13534_v59, %v837_v46  ;;  %1088 = vst.msk [vmem:[#allocation4 + $0x30] sm:$0xff] %vm494_vm0, %v1063_v33  ;;  %1113 = vst.msk [vmem:[#allocation2 + $0x40] sm:$0xff] %vm494_vm0, %v1063_v33  ;;  %v785_v39 = vpop.f32.mrf.mxu0  ;;  %v841_v40 = vpop.f32.mrf.mxu1 }
 0x119   : > { %1102 = vst.msk [vmem:[#allocation4 + $0xa0] sm:$0xff] %vm494_vm0, %v1077_v34  ;;  %1127 = vst.msk [vmem:[#allocation2 + $0xb0] sm:$0xff] %vm494_vm0, %v1077_v34  ;;  %v914_v41 = vsel %vm863_vm1, %v781_v47, %v889_v37  ;;  %v786_v43 = vadd.f32 %v13530_v56, %v785_v39  ;;  %v842_v48 = vadd.f32 %v13530_v56, %v841_v40 }
 0x11a   : > { %v928_v42 = vsel %vm877_vm2, %v837_v46, %v903_v38  ;;  %v1064_v44 = vmul.f32 %v13517_v51, %v914_v41  ;;  %v11127_v58 = vpop.f32.mrf.mxu0  ;;  %v11155_v60 = vpop.f32.mrf.mxu1 }
 0x11b   : > { %v1078_v45 = vmul.f32 %v1040_v50, %v928_v42  ;;  %vm864_vm3 = vcmp.ge.f32.partialorder %v786_v43, 0.0  ;;  %v890_v61 = vmul.f32 %v13534_v59, %v786_v43  ;;  %vm878_vm4 = vcmp.ge.f32.partialorder %v842_v48, 0.0  ;;  %v1045_v51 = vpop.permute.xlu0 %1044 }
 0x11c   : > { %v904_v62 = vmul.f32 %v13534_v59, %v842_v48  ;;  %1089 = vst.msk [vmem:[#allocation4 + $0x38] sm:$0xff] %vm494_vm0, %v1064_v44  ;;  %1114 = vst.msk [vmem:[#allocation2 + $0x48] sm:$0xff] %vm494_vm0, %v1064_v44  ;;  %v788_v63 = vpop.f32.mrf.mxu0  ;;  %v844_v25 = vpop.f32.mrf.mxu1 }
 0x11d   : > { %1103 = vst.msk [vmem:[#allocation4 + $0xa8] sm:$0xff] %vm494_vm0, %v1078_v45  ;;  %1128 = vst.msk [vmem:[#allocation2 + $0xb8] sm:$0xff] %vm494_vm0, %v1078_v45  ;;  %v915_v27 = vsel %vm864_vm3, %v786_v43, %v890_v61  ;;  %v789_v29 = vadd.f32 %v13530_v56, %v788_v63  ;;  %v845_v30 = vadd.f32 %v13530_v56, %v844_v25 }
 0x11e   : > { %v929_v28 = vsel %vm878_vm4, %v842_v48, %v904_v62  ;;  %v1065_v49 = vmul.f32 %v13519_v52, %v915_v27  ;;  %v11128_v32 = vpop.f32.mrf.mxu0  ;;  %v11156_v47 = vpop.f32.mrf.mxu1 }
 0x11f   : > { %v1079_v31 = vmul.f32 %v1045_v51, %v929_v28  ;;  %vm865_vm5 = vcmp.ge.f32.partialorder %v789_v29, 0.0  ;;  %v891_v46 = vmul.f32 %v13534_v59, %v789_v29  ;;  %vm879_vm6 = vcmp.ge.f32.partialorder %v845_v30, 0.0  ;;  %v1050_v52 = vpop.permute.xlu1 %1049 }
 0x120   : > { %v905_v33 = vmul.f32 %v13534_v59, %v845_v30  ;;  %1090 = vst.msk [vmem:[#allocation4 + $0x40] sm:$0xff] %vm494_vm0, %v1065_v49  ;;  %1115 = vst.msk [vmem:[#allocation2 + $0x50] sm:$0xff] %vm494_vm0, %v1065_v49  ;;  %v793_v34 = vpop.f32.mrf.mxu0  ;;  %v849_v35 = vpop.f32.mrf.mxu1 }
 0x121   : > { %1104 = vst.msk [vmem:[#allocation4 + $0xb0] sm:$0xff] %vm494_vm0, %v1079_v31  ;;  %1129 = vst.msk [vmem:[#allocation2 + $0xc0] sm:$0xff] %vm494_vm0, %v1079_v31  ;;  %v916_v36 = vsel %vm865_vm5, %v789_v29, %v891_v46  ;;  %v794_v38 = vadd.f32 %v13530_v56, %v793_v34  ;;  %v850_v39 = vadd.f32 %v13530_v56, %v849_v35 }
 0x122   : > { %v930_v37 = vsel %vm879_vm6, %v845_v30, %v905_v33  ;;  %v1066_v40 = vmul.f32 %v13521_v53, %v916_v36  ;;  %v11131_v41 = vpop.f32.mrf.mxu0  ;;  %v11159_v42 = vpop.f32.mrf.mxu1 }
 0x123   : > { %v1080_v50 = vmul.f32 %v1050_v52, %v930_v37  ;;  %vm866_vm7 = vcmp.ge.f32.partialorder %v794_v38, 0.0  ;;  %v892_v43 = vmul.f32 %v13534_v59, %v794_v38  ;;  %vm880_vm8 = vcmp.ge.f32.partialorder %v850_v39, 0.0  ;;  %v1055_v53 = vpop.permute.xlu0 %1054 }
 0x124   : > { %v906_v48 = vmul.f32 %v13534_v59, %v850_v39  ;;  %1091 = vst.msk [vmem:[#allocation4 + $0x48] sm:$0xff] %vm494_vm0, %v1066_v40  ;;  %1116 = vst.msk [vmem:[#allocation2 + $0x58] sm:$0xff] %vm494_vm0, %v1066_v40  ;;  %v796_v44 = vpop.f32.mrf.mxu0  ;;  %v852_v45 = vpop.f32.mrf.mxu1 }
 0x125   : > { %1105 = vst.msk [vmem:[#allocation4 + $0xb8] sm:$0xff] %vm494_vm0, %v1080_v50  ;;  %1130 = vst.msk [vmem:[#allocation2 + $0xc8] sm:$0xff] %vm494_vm0, %v1080_v50  ;;  %v917_v58 = vsel %vm866_vm7, %v794_v38, %v892_v43  ;;  %v797_v61 = vadd.f32 %v13530_v56, %v796_v44 }
 0x126   : > { %v931_v60 = vsel %vm880_vm8, %v850_v39, %v906_v48  ;;  %v1067_v62 = vmul.f32 %v13523_v54, %v917_v58  ;;  %v11132_v25 = vpop.f32.mrf.mxu0  ;;  %v11160_v51 = vpop.f32.mrf.mxu1 }
 0x127   : > { %v1081_v63 = vmul.f32 %v1055_v53, %v931_v60  ;;  %vm867_vm9 = vcmp.ge.f32.partialorder %v797_v61, 0.0  ;;  %v893_v27 = vmul.f32 %v13534_v59, %v797_v61 }
 0x128   : > { %1092 = vst.msk [vmem:[#allocation4 + $0x50] sm:$0xff] %vm494_vm0, %v1067_v62  ;;  %1117 = vst.msk [vmem:[#allocation2 + $0x60] sm:$0xff] %vm494_vm0, %v1067_v62  ;;  %v801_v28 = vpop.f32.mrf.mxu0 }
 0x129   : > { %1106 = vst.msk [vmem:[#allocation4 + $0xc0] sm:$0xff] %vm494_vm0, %v1081_v63  ;;  %1131 = vst.msk [vmem:[#allocation2 + $0xd0] sm:$0xff] %vm494_vm0, %v1081_v63  ;;  %v918_v29 = vsel %vm867_vm9, %v797_v61, %v893_v27  ;;  %v802_v30 = vadd.f32 %v13530_v56, %v801_v28 }
 0x12a   : > { %v1068_v54 = vmul.f32 %v13525_v55, %v918_v29  ;;  %v11135_v49 = vpop.f32.mrf.mxu0 }
 0x12b   : > { %vm868_vm10 = vcmp.ge.f32.partialorder %v802_v30, 0.0  ;;  %v894_v31 = vmul.f32 %v13534_v59, %v802_v30 }
 0x12c   : > { %1093 = vst.msk [vmem:[#allocation4 + $0x58] sm:$0xff] %vm494_vm0, %v1068_v54  ;;  %1118 = vst.msk [vmem:[#allocation2 + $0x68] sm:$0xff] %vm494_vm0, %v1068_v54  ;;  %v804_v32 = vpop.f32.mrf.mxu0 }
 0x12d   : > { %v919_v47 = vsel %vm868_vm10, %v802_v30, %v894_v31  ;;  %v805_v46 = vadd.f32 %v13530_v56, %v804_v32 }
 0x12e   : > { %v1069_v33 = vmul.f32 %v13532_v57, %v919_v47  ;;  %v11136_v34 = vpop.f32.mrf.mxu0 }
 0x12f   : > { %vm869_vm11 = vcmp.ge.f32.partialorder %v805_v46, 0.0  ;;  %v895_v35 = vmul.f32 %v13534_v59, %v805_v46 }
 0x130   : > { %1094 = vst.msk [vmem:[#allocation4 + $0x60] sm:$0xff] %vm494_vm0, %v1069_v33  ;;  %1119 = vst.msk [vmem:[#allocation2 + $0x70] sm:$0xff] %vm494_vm0, %v1069_v33 }
 0x131   : > { %v920_v55 = vsel %vm869_vm11, %v805_v46, %v895_v35 }
 0x132   : > { %v1070_v52 = vmul.f32 %v13538_v26, %v920_v55 }
 0x134   : > { %1095 = vst.msk [vmem:[#allocation4 + $0x68] sm:$0xff] %vm494_vm0, %v1070_v52  ;;  %1120 = vst.msk [vmem:[#allocation2 + $0x78] sm:$0xff] %vm494_vm0, %v1070_v52 }
 0x135 PF: > { %v12846_v56 = vld [vmem:[%s13220_s13 + $0x38] sm:$0xff]   ;;  %v18275_v57 = vmov 0.0   ;;  %v12848_v26 = vld [vmem:[%s13220_s13 + $0x30] sm:$0xff]   ;;  %vm13017_vm12 = vmmov 0   ;;  %v12850_v37 = vld [vmem:[%s13220_s13 + $0x28] sm:$0xff]   ;;  %vm18365_vm0 = vcmask 523264  }
 0x136   : > { %11161 = vmatprep.subr.bf16.mxu0 %v18275_v57  ;;  %11221 = vmatprep.subr.bf16.mxu1 %v18275_v57  ;;  %v12847_v59 = vld [vmem:[%s13220_s13 + $0x18] sm:$0xff]   ;;  %v12849_v36 = vld [vmem:[%s13220_s13 + $0x10] sm:$0xff]   ;;  %v12851_v38 = vld [vmem:[%s13220_s13 + $0x8] sm:$0xff]   ;;  %s1132_s26 = sadd.s32 2, %s13092_s22  ;;  %p10416_p2 = scmp.ne.s32.totalorder %s13092_s22, 15 }
 0x137   : > { %11162 = vmatpush3.bf16.msra.mxu0 %v12846_v56  ;;  %11169 = vmatprep.mubr.msk.bf16.mxu0 %vm13017_vm12, %v18275_v57  ;;  %v12852_v39 = vld [vmem:[%s13220_s13 + $0x20] sm:$0xff]   ;;  %v1206_v50 = vld [vmem:[#allocation2 + $0xe] sm:$0xff]  ;;  %v12854_v45 = vld [vmem:[%s13220_s13 + $0x58] sm:$0xff]   ;;  %s1133_s27 = sld [smem:[#allocation5 + %s1132_s26]] }
 0x138   : > { %11222 = vmatpush3.bf16.msra.mxu1 %v12847_v59  ;;  %11163 = vmatprep.subr.bf16.mxu0 %v18275_v57  ;;  %v1205_v40 = vld [vmem:[#allocation2 + $0x6] sm:$0xff]  ;;  %v1207_v53 = vld [vmem:[#allocation2 + $0x16] sm:$0xff]  ;;  %v1208_v58 = vld [vmem:[#allocation2 + $0x1e] sm:$0xff]  ;;  %s10572_s22 = sld [smem:[#allocation5 + $0x1]] (!%p10416_p2) }
 0x139   : > { %11223 = vmatprep.subr.bf16.mxu1 %v18275_v57  ;;  %11229 = vmatprep.mubr.msk.bf16.mxu1 %vm13017_vm12, %v18275_v57  ;;  %v12853_v41 = vld [vmem:[%s13220_s13] sm:$0xff]   ;;  %v1160_v43 = vld [vmem:[#allocation2 + $0xd] sm:$0xff]  ;;  %v1230_v48 = vpack.c.bf16 %v1206_v50, %v1205_v40  ;;  %v1161_v60 = vld [vmem:[#allocation2 + $0x15] sm:$0xff]  ;;  %v1231_v63 = vpack.c.bf16 %v1208_v58, %v1207_v53 }
 0x13a   : > { %v1159_v42 = vld [vmem:[#allocation2 + $0x5] sm:$0xff]  ;;  %v12855_v61 = vld [vmem:[%s13220_s13 + $0x50] sm:$0xff]   ;;  %v1162_v62 = vld [vmem:[#allocation2 + $0x1d] sm:$0xff] }
 0x13b   : > { %11164 = vmatpush3.bf16.msra.mxu0 %v12848_v26  ;;  %v1184_v44 = vpack.c.bf16 %v1160_v43, %v1159_v42  ;;  %v1185_v25 = vpack.c.bf16 %v1162_v62, %v1161_v60  ;;  %v12856_v51 = vld [vmem:[%s13220_s13 + $0x48] sm:$0xff]   ;;  %v12857_v54 = vld [vmem:[%s13220_s13 + $0x40] sm:$0xff]   ;;  %v12858_v49 = vld [vmem:[%s13220_s13 + $0x78] sm:$0xff]  }
 0x13c   : > { %11224 = vmatpush3.bf16.msra.mxu1 %v12849_v36  ;;  %11165 = vmatprep.subr.bf16.mxu0 %v18275_v57  ;;  %v1209_v27 = vld [vmem:[#allocation2 + $0x26] sm:$0xff]  ;;  %v1210_v28 = vld [vmem:[#allocation2 + $0x2e] sm:$0xff]  ;;  %v1211_v46 = vld [vmem:[#allocation2 + $0x36] sm:$0xff] }
 0x13d   : > { %11225 = vmatprep.subr.bf16.mxu1 %v18275_v57  ;;  %v1163_v29 = vld [vmem:[#allocation2 + $0x25] sm:$0xff]  ;;  %v1164_v30 = vld [vmem:[#allocation2 + $0x2d] sm:$0xff]  ;;  %v1232_v31 = vpack.c.bf16 %v1210_v28, %v1209_v27  ;;  %v1165_v34 = vld [vmem:[#allocation2 + $0x35] sm:$0xff] }
 0x13e   : > { %v1186_v32 = vpack.c.bf16 %v1164_v30, %v1163_v29  ;;  %v12859_v47 = vld [vmem:[%s13220_s13 + $0x70] sm:$0xff]   ;;  %v1212_v33 = vld [vmem:[#allocation2 + $0x3e] sm:$0xff]  ;;  %v12860_v55 = vld [vmem:[%s13220_s13 + $0x68] sm:$0xff]  }
 0x13f   : > { %11166 = vmatpush3.bf16.msra.mxu0 %v12850_v37  ;;  %v1166_v35 = vld [vmem:[#allocation2 + $0x3d] sm:$0xff]  ;;  %v1233_v52 = vpack.c.bf16 %v1212_v33, %v1211_v46  ;;  %v1213_v26 = vld [vmem:[#allocation2 + $0x46] sm:$0xff]  ;;  %v1214_v36 = vld [vmem:[#allocation2 + $0x4e] sm:$0xff] }
 0x140   : > { %11226 = vmatpush3.bf16.msra.mxu1 %v12851_v38  ;;  %11167 = vmatprep.subr.bf16.mxu0 %v18275_v57  ;;  %v1187_v56 = vpack.c.bf16 %v1166_v35, %v1165_v34  ;;  %v12861_v59 = vld [vmem:[%s13220_s13 + $0x60] sm:$0xff]   ;;  %v1168_v38 = vld [vmem:[#allocation2 + $0x4d] sm:$0xff]  ;;  %v1215_v50 = vld [vmem:[#allocation2 + $0x56] sm:$0xff] }
 0x141   : > { %11227 = vmatprep.subr.bf16.mxu1 %v18275_v57  ;;  %v1167_v37 = vld [vmem:[#allocation2 + $0x45] sm:$0xff]  ;;  %v1169_v42 = vld [vmem:[#allocation2 + $0x55] sm:$0xff]  ;;  %v1170_v43 = vld [vmem:[#allocation2 + $0x5d] sm:$0xff] }
 0x142   : > { %v1188_v40 = vpack.c.bf16 %v1168_v38, %v1167_v37  ;;  %v1218_v53 = vld [vmem:[#allocation2 + $0x6e] sm:$0xff]  ;;  %v1171_v58 = vld [vmem:[#allocation2 + $0x65] sm:$0xff]  ;;  %v1174_v27 = vld [vmem:[#allocation2 + $0x7d] sm:$0xff] }
 0x143   : > { %11168 = vmatpush3.bf16.msra.mxu0 %v12852_v39  ;;  %v1234_v39 = vpack.c.bf16 %v1214_v36, %v1213_v26  ;;  %v1172_v60 = vld [vmem:[#allocation2 + $0x6d] sm:$0xff]  ;;  %v1223_v46 = vld [vmem:[#allocation2 + $0x96] sm:$0xff]  ;;  %v1224_v33 = vld [vmem:[#allocation2 + $0x9e] sm:$0xff] }
 0x144   : > { %11228 = vmatpush3.bf16.msra.mxu1 %v12853_v41  ;;  %11281 = vmatprep.subr.bf16.mxu0 %v18275_v57  ;;  %v1216_v41 = vld [vmem:[#allocation2 + $0x5e] sm:$0xff]  ;;  %v1190_v62 = vpack.c.bf16 %v1172_v60, %v1171_v58  ;;  %v1221_v30 = vld [vmem:[#allocation2 + $0x86] sm:$0xff]  ;;  %v1177_v34 = vld [vmem:[#allocation2 + $0x95] sm:$0xff] }
 0x145   : > { %11341 = vmatprep.subr.bf16.mxu1 %v18275_v57  ;;  %v1178_v35 = vld [vmem:[#allocation2 + $0x9d] sm:$0xff]  ;;  %v1179_v26 = vld [vmem:[#allocation2 + $0xa5] sm:$0xff]  ;;  %v1180_v36 = vld [vmem:[#allocation2 + $0xad] sm:$0xff] }
 0x146   : > { %11170 = vmatmul.mubr.msk.bf16.vlgmr.msra.gmra.mxu0 %vm18365_vm0, %v1230_v48  ;;  %v1235_v48 = vpack.c.bf16 %v1216_v41, %v1215_v50  ;;  %v1194_v38 = vpack.c.bf16 %v1180_v36, %v1179_v26  ;;  %v1181_v50 = vld [vmem:[#allocation2 + $0xb5] sm:$0xff]  ;;  %v1182_v41 = vld [vmem:[#allocation2 + $0xbd] sm:$0xff]  ;;  %v1650_v58 = vld [vmem:[#allocation2 + $0x7] sm:$0xff] }
 0x147   : > { %11230 = vmatmul.mubr.msk.bf16.vlgmr.msra.gmra.mxu1 %vm18365_vm0, %v1184_v44  ;;  %11282 = vmatpush3.bf16.msra.mxu0 %v12854_v45  ;;  %v1189_v44 = vpack.c.bf16 %v1170_v43, %v1169_v42  ;;  %v1217_v45 = vld [vmem:[#allocation2 + $0x66] sm:$0xff]  ;;  %v1195_v43 = vpack.c.bf16 %v1182_v41, %v1181_v50  ;;  %v1651_v60 = vld [vmem:[#allocation2 + $0xf] sm:$0xff]  ;;  %v1151_v18 = vld [vmem:[#allocation2 + $0x98] sm:$0xff] }
 0x148   : > { %11173 = vmatprep.mubr.msk.bf16.mxu0 %vm13017_vm12, %v18275_v57  ;;  %11233 = vmatprep.mubr.msk.bf16.mxu1 %vm13017_vm12, %v18275_v57  ;;  %v1659_v36 = vld [vmem:[#allocation2 + $0x4f] sm:$0xff]  ;;  %v1931_v50 = vld [vmem:[#allocation2 + $0x67] sm:$0xff]  ;;  %v1155_v10 = vld [vmem:[#allocation2 + $0xb8] sm:$0xff] }
 0x149   : > { %11283 = vmatprep.subr.bf16.mxu0 %v18275_v57  ;;  %11342 = vmatpush3.bf16.msra.mxu1 %v12858_v49  ;;  %v1175_v49 = vld [vmem:[#allocation2 + $0x85] sm:$0xff] }
 0x14a   : > { %11343 = vmatprep.subr.bf16.mxu1 %v18275_v57  ;;  %v1149_v22 = vld [vmem:[#allocation2 + $0x88] sm:$0xff] }
 0x14b   : > { %11284 = vmatpush3.bf16.msra.mxu0 %v12855_v61  ;;  %v1236_v61 = vpack.c.bf16 %v1218_v53, %v1217_v45  ;;  %v1153_v14 = vld [vmem:[#allocation2 + $0xa8] sm:$0xff] }
 0x14c   : > { %11285 = vmatprep.subr.bf16.mxu0 %v18275_v57 }
 0x14d   : > { %11344 = vmatpush3.bf16.msra.mxu1 %v12859_v47 }
 0x14e   : > { %11174 = vmatmul.mubr.msk.bf16.gmra.mxu0 %vm18365_vm0, %v1231_v63  ;;  %11345 = vmatprep.subr.bf16.mxu1 %v18275_v57  ;;  %v1219_v63 = vld [vmem:[#allocation2 + $0x76] sm:$0xff] }
 0x14f   : > { %11234 = vmatmul.mubr.msk.bf16.gmra.mxu1 %vm18365_vm0, %v1185_v25  ;;  %11177 = vmatprep.mubr.msk.bf16.mxu0 %vm13017_vm12, %v18275_v57  ;;  %v1220_v25 = vld [vmem:[#allocation2 + $0x7e] sm:$0xff] }
 0x150   : > { %11237 = vmatprep.mubr.msk.bf16.mxu1 %vm13017_vm12, %v18275_v57  ;;  %11286 = vmatpush3.bf16.msra.mxu0 %v12856_v51  ;;  %v1173_v51 = vld [vmem:[#allocation2 + $0x75] sm:$0xff]  ;;  %v1237_v28 = vpack.c.bf16 %v1220_v25, %v1219_v63 }
 0x151   : > { %11287 = vmatprep.subr.bf16.mxu0 %v18275_v57  ;;  %11346 = vmatpush3.bf16.msra.mxu1 %v12860_v55  ;;  %v1191_v29 = vpack.c.bf16 %v1174_v27, %v1173_v51  ;;  %v1239_v55 = vpack.c.bf16 %v1224_v33, %v1223_v46  ;;  %v12862_v63 = vld [vmem:[%s13220_s13 + $0x98] sm:$0xff]   ;;  %v12865_v33 = vld [vmem:[%s13220_s13 + $0x80] sm:$0xff]  }
 0x152   : > { %11347 = vmatprep.subr.bf16.mxu1 %v18275_v57  ;;  %v12866_v51 = vld [vmem:[%s13220_s13 + $0xb8] sm:$0xff]  }
 0x153   : > { %v1653_v27 = vld [vmem:[#allocation2 + $0x1f] sm:$0xff]  ;;  %v1925_v46 = vld [vmem:[#allocation2 + $0x37] sm:$0xff] }
 0x154   : > { %11288 = vmatpush3.bf16.msra.mxu0 %v12857_v54  ;;  %v1222_v54 = vld [vmem:[#allocation2 + $0x8e] sm:$0xff] }
 0x155   : > { %11401 = vmatprep.subr.bf16.mxu0 %v18275_v57  ;;  %11348 = vmatpush3.bf16.msra.mxu1 %v12861_v59  ;;  %v1226_v59 = vld [vmem:[#allocation2 + $0xae] sm:$0xff] }
 0x156   : > { %11178 = vmatmul.mubr.msk.bf16.gmra.mxu0 %vm18365_vm0, %v1232_v31  ;;  %11461 = vmatprep.subr.bf16.mxu1 %v18275_v57  ;;  %v1176_v31 = vld [vmem:[#allocation2 + $0x8d] sm:$0xff] }
 0x157   : > { %11238 = vmatmul.mubr.msk.bf16.gmra.mxu1 %vm18365_vm0, %v1186_v32  ;;  %11181 = vmatprep.mubr.msk.bf16.mxu0 %vm13017_vm12, %v18275_v57  ;;  %v1238_v32 = vpack.c.bf16 %v1222_v54, %v1221_v30  ;;  %v1192_v47 = vpack.c.bf16 %v1176_v31, %v1175_v49  ;;  %v12867_v30 = vld [vmem:[%s13220_s13 + $0xb0] sm:$0xff]   ;;  %v12864_v31 = vld [vmem:[%s13220_s13 + $0x88] sm:$0xff]  }
 0x158   : > { %11241 = vmatprep.mubr.msk.bf16.mxu1 %vm13017_vm12, %v18275_v57 }
 0x15e   : > { %11182 = vmatmul.mubr.msk.bf16.gmra.mxu0 %vm18365_vm0, %v1233_v52  ;;  %v1193_v52 = vpack.c.bf16 %v1178_v35, %v1177_v34  ;;  %v12869_v34 = vld [vmem:[%s13220_s13 + $0xa0] sm:$0xff]  }
 0x15f   : > { %11242 = vmatmul.mubr.msk.bf16.gmra.mxu1 %vm18365_vm0, %v1187_v56  ;;  %11185 = vmatprep.mubr.msk.bf16.mxu0 %vm13017_vm12, %v18275_v57  ;;  %v1225_v56 = vld [vmem:[#allocation2 + $0xa6] sm:$0xff] }
 0x160   : > { %11245 = vmatprep.mubr.msk.bf16.mxu1 %vm13017_vm12, %v18275_v57  ;;  %v1240_v37 = vpack.c.bf16 %v1226_v59, %v1225_v56  ;;  %v1927_v56 = vld [vmem:[#allocation2 + $0x47] sm:$0xff] }
 0x166   : > { %11186 = vmatmul.mubr.msk.bf16.gmra.mxu0 %vm18365_vm0, %v1234_v39  ;;  %v1227_v39 = vld [vmem:[#allocation2 + $0xb6] sm:$0xff] }
 0x167   : > { %11246 = vmatmul.mubr.msk.bf16.gmra.mxu1 %vm18365_vm0, %v1188_v40  ;;  %11189 = vmatprep.mubr.msk.bf16.mxu0 %vm13017_vm12, %v18275_v57  ;;  %v1228_v40 = vld [vmem:[#allocation2 + $0xbe] sm:$0xff] }
 0x168   : > { %11249 = vmatprep.mubr.msk.bf16.mxu1 %vm13017_vm12, %v18275_v57  ;;  %v1241_v42 = vpack.c.bf16 %v1228_v40, %v1227_v39  ;;  %v1661_v40 = vld [vmem:[#allocation2 + $0x5f] sm:$0xff] }
 0x16e   : > { %11190 = vmatmul.mubr.msk.bf16.gmra.mxu0 %vm18365_vm0, %v1235_v48  ;;  %v1229_v48 = vld [vmem:[#allocation2 + $0xc6] sm:$0xff] }
 0x16f   : > { %11250 = vmatmul.mubr.msk.bf16.gmra.mxu1 %vm18365_vm0, %v1189_v44  ;;  %11193 = vmatprep.mubr.msk.bf16.mxu0 %vm13017_vm12, %v18275_v57  ;;  %v1183_v44 = vld [vmem:[#allocation2 + $0xc5] sm:$0xff]  ;;  %v1242_v45 = vpack.c.bf16 %v1229_v48, %v1229_v48  ;;  %v1933_v48 = vld [vmem:[#allocation2 + $0x77] sm:$0xff] }
 0x170   : > { %11253 = vmatprep.mubr.msk.bf16.mxu1 %vm13017_vm12, %v18275_v57  ;;  %v1196_v53 = vpack.c.bf16 %v1183_v44, %v1183_v44 }
 0x176   : > { %11194 = vmatmul.mubr.msk.bf16.gmra.mxu0 %vm18365_vm0, %v1236_v61  ;;  %v1921_v61 = vld [vmem:[#allocation2 + $0x17] sm:$0xff] }
 0x177   : > { %11254 = vmatmul.mubr.msk.bf16.gmra.mxu1 %vm18365_vm0, %v1190_v62  ;;  %11197 = vmatprep.mubr.msk.bf16.mxu0 %vm13017_vm12, %v18275_v57  ;;  %v1675_v62 = vpack.c.bf16 %v1651_v60, %v1650_v58  ;;  %v1945_v25 = vpack.c.bf16 %v1921_v61, %v1651_v60  ;;  %v1676_v54 = vpack.c.bf16 %v1653_v27, %v1921_v61  ;;  %v1935_v58 = vld [vmem:[#allocation2 + $0x87] sm:$0xff] }
 0x178   : > { %11257 = vmatprep.mubr.msk.bf16.mxu1 %vm13017_vm12, %v18275_v57 }
 0x17e   : > { %11198 = vmatmul.mubr.msk.bf16.gmra.mxu0 %vm18365_vm0, %v1237_v28  ;;  %v12863_v28 = vld [vmem:[%s13220_s13 + $0x90] sm:$0xff]  }
 0x17f   : > { %11258 = vmatmul.mubr.msk.bf16.gmra.mxu1 %vm18365_vm0, %v1191_v29  ;;  %11201 = vmatprep.mubr.msk.bf16.mxu0 %vm13017_vm12, %v18275_v57  ;;  %v1923_v29 = vld [vmem:[#allocation2 + $0x27] sm:$0xff] }
 0x180   : > { %11261 = vmatprep.mubr.msk.bf16.mxu1 %vm13017_vm12, %v18275_v57  ;;  %v1946_v49 = vpack.c.bf16 %v1923_v29, %v1653_v27  ;;  %v1669_v27 = vld [vmem:[#allocation2 + $0x9f] sm:$0xff] }
 0x186   : > { %11202 = vmatmul.mubr.msk.bf16.gmra.mxu0 %vm18365_vm0, %v1238_v32  ;;  %v12868_v32 = vld [vmem:[%s13220_s13 + $0xa8] sm:$0xff]  }
 0x187   : > { %11262 = vmatmul.mubr.msk.bf16.gmra.mxu1 %vm18365_vm0, %v1192_v47  ;;  %11205 = vmatprep.mubr.msk.bf16.mxu0 %vm13017_vm12, %v18275_v57  ;;  %v1655_v47 = vld [vmem:[#allocation2 + $0x2f] sm:$0xff] }
 0x188   : > { %11265 = vmatprep.mubr.msk.bf16.mxu1 %vm13017_vm12, %v18275_v57  ;;  %v1677_v35 = vpack.c.bf16 %v1655_v47, %v1923_v29 }
 0x18e   : > { %11206 = vmatmul.mubr.msk.bf16.gmra.mxu0 %vm18365_vm0, %v1239_v55  ;;  %v1947_v55 = vpack.c.bf16 %v1925_v46, %v1655_v47  ;;  %v1673_v47 = vld [vmem:[#allocation2 + $0xbf] sm:$0xff] }
 0x18f   : > { %11266 = vmatmul.mubr.msk.bf16.gmra.mxu1 %vm18365_vm0, %v1193_v52  ;;  %11209 = vmatprep.mubr.msk.bf16.mxu0 %vm13017_vm12, %v18275_v57  ;;  %v1657_v52 = vld [vmem:[#allocation2 + $0x3f] sm:$0xff] }
 0x190   : > { %11269 = vmatprep.mubr.msk.bf16.mxu1 %vm13017_vm12, %v18275_v57  ;;  %v1678_v59 = vpack.c.bf16 %v1657_v52, %v1925_v46  ;;  %v1948_v26 = vpack.c.bf16 %v1927_v56, %v1657_v52  ;;  %v1943_v46 = vld [vmem:[#allocation2 + $0xc7] sm:$0xff] }
 0x196   : > { %11210 = vmatmul.mubr.msk.bf16.gmra.mxu0 %vm18365_vm0, %v1240_v37  ;;  %v1929_v37 = vld [vmem:[#allocation2 + $0x57] sm:$0xff] }
 0x197   : > { %11270 = vmatmul.mubr.msk.bf16.gmra.mxu1 %vm18365_vm0, %v1194_v38  ;;  %11213 = vmatprep.mubr.msk.bf16.mxu0 %vm13017_vm12, %v18275_v57  ;;  %v1679_v38 = vpack.c.bf16 %v1659_v36, %v1927_v56  ;;  %v1949_v39 = vpack.c.bf16 %v1929_v37, %v1659_v36  ;;  %v1680_v41 = vpack.c.bf16 %v1661_v40, %v1929_v37 }
 0x198   : > { %11273 = vmatprep.mubr.msk.bf16.mxu1 %vm13017_vm12, %v18275_v57  ;;  %v1687_v37 = vpack.c.bf16 %v1943_v46, %v1943_v46 }
 0x19e   : > { %11214 = vmatmul.mubr.msk.bf16.gmra.mxu0 %vm18365_vm0, %v1241_v42  ;;  %v1950_v42 = vpack.c.bf16 %v1931_v50, %v1661_v40 }
 0x19f   : > { %11274 = vmatmul.mubr.msk.bf16.gmra.mxu1 %vm18365_vm0, %v1195_v43  ;;  %11217 = vmatprep.mubr.msk.bf16.mxu0 %vm13017_vm12, %v18275_v57  ;;  %v1663_v43 = vld [vmem:[#allocation2 + $0x6f] sm:$0xff] }
 0x1a0   : > { %11277 = vmatprep.mubr.msk.bf16.mxu1 %vm13017_vm12, %v18275_v57  ;;  %v1681_v44 = vpack.c.bf16 %v1663_v43, %v1931_v50 }
 0x1a6   : > { %11218 = vmatmul.mubr.msk.bf16.gmra.mxu0 %vm18365_vm0, %v1242_v45  ;;  %v1951_v45 = vpack.c.bf16 %v1933_v48, %v1663_v43 }
 0x1a7   : > { %11278 = vmatmul.mubr.msk.bf16.gmra.mxu1 %vm18365_vm0, %v1196_v53  ;;  %11289 = vmatprep.mubr.msk.bf16.mxu0 %vm13017_vm12, %v18275_v57  ;;  %v1665_v53 = vld [vmem:[#allocation2 + $0x7f] sm:$0xff] }
 0x1a8   : > { %11349 = vmatprep.mubr.msk.bf16.mxu1 %vm13017_vm12, %v18275_v57  ;;  %v1682_v60 = vpack.c.bf16 %v1665_v53, %v1933_v48  ;;  %v1952_v61 = vpack.c.bf16 %v1935_v58, %v1665_v53  ;;  %v1134_v48 = vld [vmem:[#allocation2 + $0x10] sm:$0xff] }
 0x1ae   : > { %11290 = vmatmul.mubr.msk.bf16.vlgmr.msra.gmra.mxu0 %vm18365_vm0, %v1675_v62  ;;  %v1667_v62 = vld [vmem:[#allocation2 + $0x8f] sm:$0xff] }
 0x1af   : > { %11402 = vmatpush3.bf16.msra.mxu0 %v12862_v63  ;;  %11350 = vmatmul.mubr.msk.bf16.vlgmr.msra.gmra.mxu1 %vm18365_vm0, %v1945_v25  ;;  %v1937_v63 = vld [vmem:[#allocation2 + $0x97] sm:$0xff]  ;;  %v1683_v25 = vpack.c.bf16 %v1667_v62, %v1935_v58 }
 0x1b0   : > { %11293 = vmatprep.mubr.msk.bf16.mxu0 %vm13017_vm12, %v18275_v57  ;;  %11353 = vmatprep.mubr.msk.bf16.mxu1 %vm13017_vm12, %v18275_v57  ;;  %v1684_v29 = vpack.c.bf16 %v1669_v27, %v1937_v63  ;;  %v2435_v58 = vld [vmem:[#allocation2 + $0x11] sm:$0xff] }
 0x1b1   : > { %11403 = vmatprep.subr.bf16.mxu0 %v18275_v57  ;;  %11462 = vmatpush3.bf16.msra.mxu1 %v12866_v51  ;;  %v1953_v51 = vpack.c.bf16 %v1937_v63, %v1667_v62 }
 0x1b2   : > { %11463 = vmatprep.subr.bf16.mxu1 %v18275_v57 }
 0x1b3   : > { %11404 = vmatpush3.bf16.msra.mxu0 %v12863_v28  ;;  %v1939_v28 = vld [vmem:[#allocation2 + $0xa7] sm:$0xff] }
 0x1b4   : > { %11405 = vmatprep.subr.bf16.mxu0 %v18275_v57 }
 0x1b5   : > { %11464 = vmatpush3.bf16.msra.mxu1 %v12867_v30  ;;  %v1954_v30 = vpack.c.bf16 %v1939_v28, %v1669_v27 }
 0x1b6   : > { %11294 = vmatmul.mubr.msk.bf16.gmra.mxu0 %vm18365_vm0, %v1676_v54  ;;  %11465 = vmatprep.subr.bf16.mxu1 %v18275_v57  ;;  %v1671_v54 = vld [vmem:[#allocation2 + $0xaf] sm:$0xff] }
 0x1b7   : > { %11354 = vmatmul.mubr.msk.bf16.gmra.mxu1 %vm18365_vm0, %v1946_v49  ;;  %11297 = vmatprep.mubr.msk.bf16.mxu0 %vm13017_vm12, %v18275_v57  ;;  %v1941_v49 = vld [vmem:[#allocation2 + $0xb7] sm:$0xff] }
 0x1b8   : > { %11357 = vmatprep.mubr.msk.bf16.mxu1 %vm13017_vm12, %v18275_v57  ;;  %11406 = vmatpush3.bf16.msra.mxu0 %v12864_v31  ;;  %v1685_v31 = vpack.c.bf16 %v1671_v54, %v1939_v28 }
 0x1b9   : > { %11407 = vmatprep.subr.bf16.mxu0 %v18275_v57  ;;  %11466 = vmatpush3.bf16.msra.mxu1 %v12868_v32  ;;  %v1955_v32 = vpack.c.bf16 %v1941_v49, %v1671_v54  ;;  %v12874_v54 = vld [vmem:[%s13220_s13 + $0xf8] sm:$0xff]  }
 0x1ba   : > { %11467 = vmatprep.subr.bf16.mxu1 %v18275_v57 }
 0x1bc   : > { %11408 = vmatpush3.bf16.msra.mxu0 %v12865_v33  ;;  %v1686_v33 = vpack.c.bf16 %v1673_v47, %v1941_v49 }
 0x1bd   : > { %11468 = vmatpush3.bf16.msra.mxu1 %v12869_v34  ;;  %11521 = vmatprep.subr.bf16.mxu0 %v18275_v57  ;;  %v1956_v34 = vpack.c.bf16 %v1943_v46, %v1673_v47  ;;  %v1137_v47 = vld [vmem:[#allocation2 + $0x28] sm:$0xff]  ;;  %v12871_v46 = vld [vmem:[%s13220_s13 + $0xd0] sm:$0xff]  }
 0x1be   : > { %11298 = vmatmul.mubr.msk.bf16.gmra.mxu0 %vm18365_vm0, %v1677_v35  ;;  %11581 = vmatprep.subr.bf16.mxu1 %v18275_v57 }
 0x1bf   : > { %11358 = vmatmul.mubr.msk.bf16.gmra.mxu1 %vm18365_vm0, %v1947_v55  ;;  %11301 = vmatprep.mubr.msk.bf16.mxu0 %vm13017_vm12, %v18275_v57 }
 0x1c0   : > { %11361 = vmatprep.mubr.msk.bf16.mxu1 %vm13017_vm12, %v18275_v57 }
 0x1c6   : > { %11302 = vmatmul.mubr.msk.bf16.gmra.mxu0 %vm18365_vm0, %v1678_v59  ;;  %v1944_v59 = vld [vmem:[#allocation2 + $0xcf] sm:$0xff] }
 0x1c7   : > { %11362 = vmatmul.mubr.msk.bf16.gmra.mxu1 %vm18365_vm0, %v1948_v26  ;;  %11305 = vmatprep.mubr.msk.bf16.mxu0 %vm13017_vm12, %v18275_v57 }
 0x1c8   : > { %11365 = vmatprep.mubr.msk.bf16.mxu1 %vm13017_vm12, %v18275_v57 }
 0x1ce   : > { %11306 = vmatmul.mubr.msk.bf16.gmra.mxu0 %vm18365_vm0, %v1679_v38 }
 0x1cf   : > { %11366 = vmatmul.mubr.msk.bf16.gmra.mxu1 %vm18365_vm0, %v1949_v39  ;;  %11309 = vmatprep.mubr.msk.bf16.mxu0 %vm13017_vm12, %v18275_v57  ;;  %v1957_v39 = vpack.c.bf16 %v1944_v59, %v1944_v59  ;;  %v12875_v59 = vld [vmem:[%s13220_s13 + $0xf0] sm:$0xff]  }
 0x1d0   : > { %11369 = vmatprep.mubr.msk.bf16.mxu1 %vm13017_vm12, %v18275_v57 }
 0x1d6   : > { %11310 = vmatmul.mubr.msk.bf16.gmra.mxu0 %vm18365_vm0, %v1680_v41 }
 0x1d7   : > { %11370 = vmatmul.mubr.msk.bf16.gmra.mxu1 %vm18365_vm0, %v1950_v42  ;;  %11313 = vmatprep.mubr.msk.bf16.mxu0 %vm13017_vm12, %v18275_v57 }
 0x1d8   : > { %11373 = vmatprep.mubr.msk.bf16.mxu1 %vm13017_vm12, %v18275_v57 }
 0x1de   : > { %11314 = vmatmul.mubr.msk.bf16.gmra.mxu0 %vm18365_vm0, %v1681_v44  ;;  %v1135_v44 = vld [vmem:[#allocation2 + $0x18] sm:$0xff] }
 0x1df   : > { %11374 = vmatmul.mubr.msk.bf16.gmra.mxu1 %vm18365_vm0, %v1951_v45  ;;  %11317 = vmatprep.mubr.msk.bf16.mxu0 %vm13017_vm12, %v18275_v57  ;;  %v2190_v63 = vpack.c.bf16 %v1135_v44, %v1134_v48 }
 0x1e0   : > { %11377 = vmatprep.mubr.msk.bf16.mxu1 %vm13017_vm12, %v18275_v57 }
 0x1e6   : > { %11318 = vmatmul.mubr.msk.bf16.gmra.mxu0 %vm18365_vm0, %v1682_v60  ;;  %v13866_v60 = vld [vmem:[#allocation2 + $0x19] sm:$0xff] }
 0x1e7   : > { %11378 = vmatmul.mubr.msk.bf16.gmra.mxu1 %vm18365_vm0, %v1952_v61  ;;  %11321 = vmatprep.mubr.msk.bf16.mxu0 %vm13017_vm12, %v18275_v57  ;;  %v2460_v27 = vpack.c.bf16 %v13866_v60, %v2435_v58  ;;  %v1139_v58 = vld [vmem:[#allocation2 + $0x38] sm:$0xff] }
 0x1e8   : > { %11381 = vmatprep.mubr.msk.bf16.mxu1 %vm13017_vm12, %v18275_v57 }
 0x1ee   : > { %11322 = vmatmul.mubr.msk.bf16.gmra.mxu0 %vm18365_vm0, %v1683_v25 }
 0x1ef   : > { %11382 = vmatmul.mubr.msk.bf16.gmra.mxu1 %vm18365_vm0, %v1953_v51  ;;  %11325 = vmatprep.mubr.msk.bf16.mxu0 %vm13017_vm12, %v18275_v57  ;;  %v12870_v51 = vld [vmem:[%s13220_s13 + $0xd8] sm:$0xff]  }
 0x1f0   : > { %11385 = vmatprep.mubr.msk.bf16.mxu1 %vm13017_vm12, %v18275_v57 }
 0x1f6   : > { %11326 = vmatmul.mubr.msk.bf16.gmra.mxu0 %vm18365_vm0, %v1684_v29 }
 0x1f7   : > { %11386 = vmatmul.mubr.msk.bf16.gmra.mxu1 %vm18365_vm0, %v1954_v30  ;;  %11329 = vmatprep.mubr.msk.bf16.mxu0 %vm13017_vm12, %v18275_v57 }
 0x1f8   : > { %11389 = vmatprep.mubr.msk.bf16.mxu1 %vm13017_vm12, %v18275_v57 }
 0x1fe   : > { %11330 = vmatmul.mubr.msk.bf16.gmra.mxu0 %vm18365_vm0, %v1685_v31 }
 0x1ff   : > { %11390 = vmatmul.mubr.msk.bf16.gmra.mxu1 %vm18365_vm0, %v1955_v32  ;;  %11333 = vmatprep.mubr.msk.bf16.mxu0 %vm13017_vm12, %v18275_v57  ;;  %v1136_v32 = vld [vmem:[#allocation2 + $0x20] sm:$0xff] }
 0x200   : > { %11393 = vmatprep.mubr.msk.bf16.mxu1 %vm13017_vm12, %v18275_v57 }
 0x206   : > { %v1349_v35 = vpop.f32.mrf.mxu0  ;;  %11334 = vmatmul.mubr.msk.bf16.gmra.mxu0 %vm18365_vm0, %v1686_v33 }
 0x207   : > { %v1548_v55 = vpop.f32.mrf.mxu1  ;;  %11394 = vmatmul.mubr.msk.bf16.gmra.mxu1 %vm18365_vm0, %v1956_v34  ;;  %11337 = vmatprep.mubr.msk.bf16.mxu0 %vm13017_vm12, %v18275_v57 }
 0x208   : > { %v13852_v52 = vadd.f32 %v1548_v55, %v1349_v35  ;;  %v11171_v56 = vpop.f32.mrf.mxu0  ;;  %11397 = vmatprep.mubr.msk.bf16.mxu1 %vm13017_vm12, %v18275_v57  ;;  %v13882_v35 = vld [vmem:[#allocation2 + $0x21] sm:$0xff]  ;;  %v13884_v55 = vld [vmem:[#allocation2 + $0x29] sm:$0xff] }
 0x209   : > { %v11231_v26 = vpop.f32.mrf.mxu1 }
 0x20a   : > { %v1352_v36 = vpop.f32.mrf.mxu0 }
 0x20b   : > { %v1551_v38 = vpop.f32.mrf.mxu1 }
 0x20c   : > { %v13856_v40 = vadd.f32 %v1551_v38, %v1352_v36  ;;  %v11172_v50 = vpop.f32.mrf.mxu0  ;;  %v2191_v36 = vpack.c.bf16 %v1137_v47, %v1136_v32  ;;  %v2461_v38 = vpack.c.bf16 %v13884_v55, %v13882_v35 }
 0x20d   : > { %v11232_v41 = vpop.f32.mrf.mxu1 }
 0x20e   : > { %v1357_v42 = vpop.f32.mrf.mxu0  ;;  %11338 = vmatmul.mubr.msk.bf16.gmra.mxu0 %vm18365_vm0, %v1687_v37  ;;  %v12872_v41 = vld [vmem:[%s13220_s13 + $0xc8] sm:$0xff]  }
 0x20f   : > { %v1556_v43 = vpop.f32.mrf.mxu1  ;;  %11398 = vmatmul.mubr.msk.bf16.gmra.mxu1 %vm18365_vm0, %v1957_v39  ;;  %11409 = vmatprep.mubr.msk.bf16.mxu0 %vm13017_vm12, %v18275_v57 }
 0x210   : > { %v13862_v45 = vadd.f32 %v1556_v43, %v1357_v42  ;;  %v11175_v53 = vpop.f32.mrf.mxu0  ;;  %11469 = vmatprep.mubr.msk.bf16.mxu1 %vm13017_vm12, %v18275_v57  ;;  %v12876_v43 = vld [vmem:[%s13220_s13 + $0xe8] sm:$0xff]  }
 0x211   : > { %v11235_v61 = vpop.f32.mrf.mxu1  ;;  %v1138_v53 = vld [vmem:[#allocation2 + $0x30] sm:$0xff] }
 0x212   : > { %v1360_v62 = vpop.f32.mrf.mxu0 }
 0x213   : > { %v1559_v25 = vpop.f32.mrf.mxu1 }
 0x214   : > { %v13870_v28 = vadd.f32 %v1559_v25, %v1360_v62  ;;  %v11176_v29 = vpop.f32.mrf.mxu0  ;;  %v13907_v25 = vld [vmem:[#allocation2 + $0x39] sm:$0xff] }
 0x215   : > { %v11236_v30 = vpop.f32.mrf.mxu1  ;;  %v12877_v29 = vld [vmem:[%s13220_s13 + $0xe0] sm:$0xff]  }
 0x216   : > { %v1365_v49 = vpop.f32.mrf.mxu0  ;;  %11410 = vmatmul.mubr.msk.bf16.vlgmr.msra.gmra.mxu0 %vm18365_vm0, %v2190_v63  ;;  %v13905_v63 = vld [vmem:[#allocation2 + $0x31] sm:$0xff] }
 0x217   : > { %v1564_v31 = vpop.f32.mrf.mxu1  ;;  %11522 = vmatpush3.bf16.msra.mxu0 %v12870_v51  ;;  %11470 = vmatmul.mubr.msk.bf16.vlgmr.msra.gmra.mxu1 %vm18365_vm0, %v2460_v27  ;;  %v12873_v51 = vld [vmem:[%s13220_s13 + $0xc0] sm:$0xff]  }
 0x218   : > { %v13876_v33 = vadd.f32 %v1564_v31, %v1365_v49  ;;  %v11179_v34 = vpop.f32.mrf.mxu0  ;;  %11413 = vmatprep.mubr.msk.bf16.mxu0 %vm13017_vm12, %v18275_v57  ;;  %11473 = vmatprep.mubr.msk.bf16.mxu1 %vm13017_vm12, %v18275_v57  ;;  %v2462_v31 = vpack.c.bf16 %v13907_v25, %v13905_v63 }
 0x219   : > { %v11239_v56 = vpop.f32.mrf.mxu1  ;;  %11523 = vmatprep.subr.bf16.mxu0 %v18275_v57  ;;  %11582 = vmatpush3.bf16.msra.mxu1 %v12874_v54  ;;  %v2192_v54 = vpack.c.bf16 %v1139_v58, %v1138_v53 }
 0x21a   : > { %v1368_v26 = vpop.f32.mrf.mxu0  ;;  %11583 = vmatprep.subr.bf16.mxu1 %v18275_v57 }
 0x21b   : > { %v1567_v37 = vpop.f32.mrf.mxu1  ;;  %11524 = vmatpush3.bf16.msra.mxu0 %v12871_v46 }
 0x21c   : > { %v13891_v39 = vadd.f32 %v1567_v37, %v1368_v26  ;;  %v11180_v50 = vpop.f32.mrf.mxu0  ;;  %11525 = vmatprep.subr.bf16.mxu0 %v18275_v57  ;;  %v1141_v26 = vld [vmem:[#allocation2 + $0x48] sm:$0xff] }
 0x21d   : > { %v11240_v42 = vpop.f32.mrf.mxu1  ;;  %11584 = vmatpush3.bf16.msra.mxu1 %v12875_v59  ;;  %v1140_v59 = vld [vmem:[#allocation2 + $0x40] sm:$0xff]  ;;  %v13929_v50 = vld [vmem:[#allocation2 + $0x49] sm:$0xff] }
 0x21e   : > { %v1373_v48 = vpop.f32.mrf.mxu0  ;;  %11414 = vmatmul.mubr.msk.bf16.gmra.mxu0 %vm18365_vm0, %v2191_v36  ;;  %11585 = vmatprep.subr.bf16.mxu1 %v18275_v57 }
 0x21f   : > { %v1572_v44 = vpop.f32.mrf.mxu1  ;;  %11474 = vmatmul.mubr.msk.bf16.gmra.mxu1 %vm18365_vm0, %v2461_v38  ;;  %11417 = vmatprep.mubr.msk.bf16.mxu0 %vm13017_vm12, %v18275_v57  ;;  %v13927_v38 = vld [vmem:[#allocation2 + $0x41] sm:$0xff] }
 0x220   : > { %v13901_v61 = vadd.f32 %v1572_v44, %v1373_v48  ;;  %v11183_v62 = vpop.f32.mrf.mxu0  ;;  %11477 = vmatprep.mubr.msk.bf16.mxu1 %vm13017_vm12, %v18275_v57  ;;  %11526 = vmatpush3.bf16.msra.mxu0 %v12872_v41  ;;  %v2463_v44 = vpack.c.bf16 %v13929_v50, %v13927_v38 }
 0x221   : > { %v11243_v27 = vpop.f32.mrf.mxu1  ;;  %11527 = vmatprep.subr.bf16.mxu0 %v18275_v57  ;;  %11586 = vmatpush3.bf16.msra.mxu1 %v12876_v43  ;;  %v2193_v43 = vpack.c.bf16 %v1141_v26, %v1140_v59 }
 0x222   : > { %v1376_v30 = vpop.f32.mrf.mxu0  ;;  %11587 = vmatprep.subr.bf16.mxu1 %v18275_v57 }
 0x223   : > { %v1575_v49 = vpop.f32.mrf.mxu1 }
 0x224   : > { %v13915_v32 = vadd.f32 %v1575_v49, %v1376_v30  ;;  %v11184_v47 = vpop.f32.mrf.mxu0  ;;  %11528 = vmatpush3.bf16.msra.mxu0 %v12873_v51  ;;  %v1143_v30 = vld [vmem:[#allocation2 + $0x58] sm:$0xff] }
 0x225   : > { %v11244_v46 = vpop.f32.mrf.mxu1  ;;  %11588 = vmatpush3.bf16.msra.mxu1 %v12877_v29  ;;  %11641 = vmatprep.subr.bf16.mxu0 %v18275_v57  ;;  %v1142_v29 = vld [vmem:[#allocation2 + $0x50] sm:$0xff]  ;;  %v13945_v47 = vld [vmem:[#allocation2 + $0x59] sm:$0xff] }
 0x226   : > { %v1381_v34 = vpop.f32.mrf.mxu0  ;;  %11418 = vmatmul.mubr.msk.bf16.gmra.mxu0 %vm18365_vm0, %v2192_v54  ;;  %11701 = vmatprep.subr.bf16.mxu1 %v18275_v57 }
 0x227   : > { %v1580_v56 = vpop.f32.mrf.mxu1  ;;  %11478 = vmatmul.mubr.msk.bf16.gmra.mxu1 %vm18365_vm0, %v2462_v31  ;;  %11421 = vmatprep.mubr.msk.bf16.mxu0 %vm13017_vm12, %v18275_v57  ;;  %v13943_v31 = vld [vmem:[#allocation2 + $0x51] sm:$0xff] }
 0x228   : > { %v13923_v36 = vadd.f32 %v1580_v56, %v1381_v34  ;;  %v11187_v37 = vpop.f32.mrf.mxu0  ;;  %11481 = vmatprep.mubr.msk.bf16.mxu1 %vm13017_vm12, %v18275_v57  ;;  %v2194_v56 = vpack.c.bf16 %v1143_v30, %v1142_v29  ;;  %v2464_v26 = vpack.c.bf16 %v13945_v47, %v13943_v31  ;;  %v13961_v29 = vld [vmem:[#allocation2 + $0x69] sm:$0xff] }
 0x229   : > { %v11247_v41 = vpop.f32.mrf.mxu1 }
 0x22a   : > { %v1384_v42 = vpop.f32.mrf.mxu0 }
 0x22b   : > { %v1583_v48 = vpop.f32.mrf.mxu1 }
 0x22c   : > { %v13933_v53 = vadd.f32 %v1583_v48, %v1384_v42  ;;  %v11188_v58 = vpop.f32.mrf.mxu0 }
 0x22d   : > { %v11248_v62 = vpop.f32.mrf.mxu1  ;;  %v1145_v58 = vld [vmem:[#allocation2 + $0x68] sm:$0xff] }
 0x22e   : > { %v1389_v51 = vpop.f32.mrf.mxu0  ;;  %11422 = vmatmul.mubr.msk.bf16.gmra.mxu0 %vm18365_vm0, %v2193_v43 }
 0x22f   : > { %v1588_v27 = vpop.f32.mrf.mxu1  ;;  %11482 = vmatmul.mubr.msk.bf16.gmra.mxu1 %vm18365_vm0, %v2463_v44  ;;  %11425 = vmatprep.mubr.msk.bf16.mxu0 %vm13017_vm12, %v18275_v57  ;;  %v1144_v44 = vld [vmem:[#allocation2 + $0x60] sm:$0xff] }
 0x230   : > { %v13939_v54 = vadd.f32 %v1588_v27, %v1389_v51  ;;  %v11191_v49 = vpop.f32.mrf.mxu0  ;;  %11485 = vmatprep.mubr.msk.bf16.mxu1 %vm13017_vm12, %v18275_v57  ;;  %v13959_v27 = vld [vmem:[#allocation2 + $0x61] sm:$0xff] }
 0x231   : > { %v11251_v46 = vpop.f32.mrf.mxu1 }
 0x232   : > { %v1392_v34 = vpop.f32.mrf.mxu0  ;;  %v2195_v46 = vpack.c.bf16 %v1145_v58, %v1144_v44 }
 0x233   : > { %v1591_v59 = vpop.f32.mrf.mxu1 }
 0x234   : > { %v13949_v37 = vadd.f32 %v1591_v59, %v1392_v34  ;;  %v11192_v41 = vpop.f32.mrf.mxu0 }
 0x235   : > { %v11252_v42 = vpop.f32.mrf.mxu1 }
 0x236   : > { %v1397_v43 = vpop.f32.mrf.mxu0  ;;  %11426 = vmatmul.mubr.msk.bf16.gmra.mxu0 %vm18365_vm0, %v2194_v56  ;;  %v2465_v56 = vpack.c.bf16 %v13961_v29, %v13959_v27 }
 0x237   : > { %v1596_v48 = vpop.f32.mrf.mxu1  ;;  %11486 = vmatmul.mubr.msk.bf16.gmra.mxu1 %vm18365_vm0, %v2464_v26  ;;  %11429 = vmatprep.mubr.msk.bf16.mxu0 %vm13017_vm12, %v18275_v57 }
 0x238   : > { %v13955_v62 = vadd.f32 %v1596_v48, %v1397_v43  ;;  %v11195_v51 = vpop.f32.mrf.mxu0  ;;  %11489 = vmatprep.mubr.msk.bf16.mxu1 %vm13017_vm12, %v18275_v57  ;;  %v1146_v48 = vld [vmem:[#allocation2 + $0x70] sm:$0xff] }
 0x239   : > { %v11255_v30 = vpop.f32.mrf.mxu1  ;;  %v1147_v51 = vld [vmem:[#allocation2 + $0x78] sm:$0xff] }
 0x23a   : > { %v1400_v49 = vpop.f32.mrf.mxu0  ;;  %v13975_v30 = vld [vmem:[#allocation2 + $0x71] sm:$0xff] }
 0x23b   : > { %v1599_v34 = vpop.f32.mrf.mxu1 }
 0x23c   : > { %v13965_v59 = vadd.f32 %v1599_v34, %v1400_v49  ;;  %v11196_v26 = vpop.f32.mrf.mxu0  ;;  %v13977_v49 = vld [vmem:[#allocation2 + $0x79] sm:$0xff] }
 0x23d   : > { %v11256_v41 = vpop.f32.mrf.mxu1  ;;  %v2196_v26 = vpack.c.bf16 %v1147_v51, %v1146_v48 }
 0x23e   : > { %v1405_v42 = vpop.f32.mrf.mxu0  ;;  %11430 = vmatmul.mubr.msk.bf16.gmra.mxu0 %vm18365_vm0, %v2195_v46 }
 0x23f   : > { %v1604_v43 = vpop.f32.mrf.mxu1  ;;  %11490 = vmatmul.mubr.msk.bf16.gmra.mxu1 %vm18365_vm0, %v2465_v56  ;;  %11433 = vmatprep.mubr.msk.bf16.mxu0 %vm13017_vm12, %v18275_v57  ;;  %v2466_v56 = vpack.c.bf16 %v13977_v49, %v13975_v30 }
 0x240   : > { %v13971_v44 = vadd.f32 %v1604_v43, %v1405_v42  ;;  %v11199_v58 = vpop.f32.mrf.mxu0  ;;  %11493 = vmatprep.mubr.msk.bf16.mxu1 %vm13017_vm12, %v18275_v57 }
 0x241   : > { %v11259_v34 = vpop.f32.mrf.mxu1 }
 0x242   : > { %v1408_v46 = vpop.f32.mrf.mxu0  ;;  %v1148_v34 = vld [vmem:[#allocation2 + $0x80] sm:$0xff] }
 0x243   : > { %v1607_v41 = vpop.f32.mrf.mxu1 }
 0x244   : > { %v13981_v24 = vadd.f32 %v1607_v41, %v1408_v46  ;;  %v11200_v23 = vpop.f32.mrf.mxu0  ;;  %v13991_v46 = vld [vmem:[#allocation2 + $0x81] sm:$0xff] }
 0x245   : > { %v11260_v42 = vpop.f32.mrf.mxu1  ;;  %v13993_v23 = vld [vmem:[#allocation2 + $0x89] sm:$0xff] }
 0x246   : > { %v1413_v43 = vpop.f32.mrf.mxu0  ;;  %11434 = vmatmul.mubr.msk.bf16.gmra.mxu0 %vm18365_vm0, %v2196_v26  ;;  %v2197_v42 = vpack.c.bf16 %v1149_v22, %v1148_v34 }
 0x247   : > { %v1612_v58 = vpop.f32.mrf.mxu1  ;;  %11494 = vmatmul.mubr.msk.bf16.gmra.mxu1 %vm18365_vm0, %v2466_v56  ;;  %11437 = vmatprep.mubr.msk.bf16.mxu0 %vm13017_vm12, %v18275_v57  ;;  %v2467_v56 = vpack.c.bf16 %v13993_v23, %v13991_v46 }
 0x248   : > { %v13987_v48 = vadd.f32 %v1612_v58, %v1413_v43  ;;  %v11203_v51 = vpop.f32.mrf.mxu0  ;;  %11497 = vmatprep.mubr.msk.bf16.mxu1 %vm13017_vm12, %v18275_v57 }
 0x249   : > { %v11263_v41 = vpop.f32.mrf.mxu1 }
 0x24a   : > { %v1416_v26 = vpop.f32.mrf.mxu0  ;;  %v1150_v41 = vld [vmem:[#allocation2 + $0x90] sm:$0xff] }
 0x24b   : > { %v1615_v21 = vpop.f32.mrf.mxu1 }
 0x24c   : > { %v13997_v20 = vadd.f32 %v1615_v21, %v1416_v26  ;;  %v11204_v19 = vpop.f32.mrf.mxu0  ;;  %v14007_v21 = vld [vmem:[#allocation2 + $0x91] sm:$0xff] }
 0x24d   : > { %v11264_v43 = vpop.f32.mrf.mxu1  ;;  %v14009_v19 = vld [vmem:[#allocation2 + $0x99] sm:$0xff] }
 0x24e   : > { %v1421_v58 = vpop.f32.mrf.mxu0  ;;  %11438 = vmatmul.mubr.msk.bf16.gmra.mxu0 %vm18365_vm0, %v2197_v42  ;;  %v2198_v43 = vpack.c.bf16 %v1151_v18, %v1150_v41 }
 0x24f   : > { %v1620_v51 = vpop.f32.mrf.mxu1  ;;  %11498 = vmatmul.mubr.msk.bf16.gmra.mxu1 %vm18365_vm0, %v2467_v56  ;;  %11441 = vmatprep.mubr.msk.bf16.mxu0 %vm13017_vm12, %v18275_v57  ;;  %v2468_v56 = vpack.c.bf16 %v14009_v19, %v14007_v21 }
 0x250   : > { %v14003_v22 = vadd.f32 %v1620_v51, %v1421_v58  ;;  %v11207_v34 = vpop.f32.mrf.mxu0  ;;  %11501 = vmatprep.mubr.msk.bf16.mxu1 %vm13017_vm12, %v18275_v57 }
 0x251   : > { %v11267_v26 = vpop.f32.mrf.mxu1 }
 0x252   : > { %v1424_v42 = vpop.f32.mrf.mxu0  ;;  %v1152_v26 = vld [vmem:[#allocation2 + $0xa0] sm:$0xff] }
 0x253   : > { %v1623_v17 = vpop.f32.mrf.mxu1 }
 0x254   : > { %v14013_v16 = vadd.f32 %v1623_v17, %v1424_v42  ;;  %v11208_v15 = vpop.f32.mrf.mxu0  ;;  %v14023_v17 = vld [vmem:[#allocation2 + $0xa1] sm:$0xff] }
 0x255   : > { %v11268_v58 = vpop.f32.mrf.mxu1  ;;  %v14025_v15 = vld [vmem:[#allocation2 + $0xa9] sm:$0xff] }
 0x256   : > { %v1429_v51 = vpop.f32.mrf.mxu0  ;;  %11442 = vmatmul.mubr.msk.bf16.gmra.mxu0 %vm18365_vm0, %v2198_v43  ;;  %18393 = vst [vmem:[#allocation25_spill] sm:$0xff] %v14025_v15  ;;  %v2199_v58 = vpack.c.bf16 %v1153_v14, %v1152_v26 }
 0x257   : > { %v1628_v34 = vpop.f32.mrf.mxu1  ;;  %11502 = vmatmul.mubr.msk.bf16.gmra.mxu1 %vm18365_vm0, %v2468_v56  ;;  %11445 = vmatprep.mubr.msk.bf16.mxu0 %vm13017_vm12, %v18275_v57  ;;  %v2469_v56 = vpack.c.bf16 %v14025_v15, %v14023_v17 }
 0x258   : > { %v14019_v18 = vadd.f32 %v1628_v34, %v1429_v51  ;;  %v11211_v41 = vpop.f32.mrf.mxu0  ;;  %11505 = vmatprep.mubr.msk.bf16.mxu1 %vm13017_vm12, %v18275_v57 }
 0x259   : > { %v11271_v42 = vpop.f32.mrf.mxu1 }
 0x25a   : > { %18392 = vst [vmem:[#allocation24_spill] sm:$0xff] %v14019_v18  ;;  %v1432_v43 = vpop.f32.mrf.mxu0  ;;  %v1154_v42 = vld [vmem:[#allocation2 + $0xb0] sm:$0xff] }
 0x25b   : > { %v1631_v13 = vpop.f32.mrf.mxu1 }
 0x25c   : > { %v14029_v12 = vadd.f32 %v1631_v13, %v1432_v43  ;;  %v11212_v11 = vpop.f32.mrf.mxu0  ;;  %v14039_v13 = vld [vmem:[#allocation2 + $0xb1] sm:$0xff] }
 0x25d   : > { %v11272_v51 = vpop.f32.mrf.mxu1  ;;  %18396 = vst [vmem:[#allocation28_spill] sm:$0xff] %v14039_v13  ;;  %v14041_v11 = vld [vmem:[#allocation2 + $0xb9] sm:$0xff] }
 0x25e   : > { %18394 = vst [vmem:[#allocation26_spill] sm:$0xff] %v14029_v12  ;;  %v1437_v34 = vpop.f32.mrf.mxu0  ;;  %11446 = vmatmul.mubr.msk.bf16.gmra.mxu0 %vm18365_vm0, %v2199_v58  ;;  %18397 = vst [vmem:[#allocation29_spill] sm:$0xff] %v14041_v11  ;;  %v2200_v51 = vpack.c.bf16 %v1155_v10, %v1154_v42 }
 0x25f   : > { %v1636_v41 = vpop.f32.mrf.mxu1  ;;  %11506 = vmatmul.mubr.msk.bf16.gmra.mxu1 %vm18365_vm0, %v2469_v56  ;;  %11449 = vmatprep.mubr.msk.bf16.mxu0 %vm13017_vm12, %v18275_v57  ;;  %v2470_v56 = vpack.c.bf16 %v14041_v11, %v14039_v13 }
 0x260   : > { %v14035_v14 = vadd.f32 %v1636_v41, %v1437_v34  ;;  %v11215_v26 = vpop.f32.mrf.mxu0  ;;  %11509 = vmatprep.mubr.msk.bf16.mxu1 %vm13017_vm12, %v18275_v57 }
 0x261   : > { %v11275_v43 = vpop.f32.mrf.mxu1 }
 0x262   : > { %18395 = vst [vmem:[#allocation27_spill] sm:$0xff] %v14035_v14  ;;  %v1440_v58 = vpop.f32.mrf.mxu0  ;;  %v1156_v43 = vld [vmem:[#allocation2 + $0xc0] sm:$0xff]  ;;  %v1157_v14 = vld [vmem:[#allocation2 + $0xc8] sm:$0xff] }
 0x263   : > { %v1639_v12 = vpop.f32.mrf.mxu1 }
 0x264   : > { %v14045_v15 = vadd.f32 %v1639_v12, %v1440_v58  ;;  %v11216_v9 = vpop.f32.mrf.mxu0  ;;  %v14055_v12 = vld [vmem:[#allocation2 + $0xc1] sm:$0xff] }
 0x265   : > { %v11276_v34 = vpop.f32.mrf.mxu1  ;;  %v14057_v9 = vld [vmem:[#allocation2 + $0xc9] sm:$0xff] }
 0x266   : > { %18398 = vst [vmem:[#allocation30_spill] sm:$0xff] %v14045_v15  ;;  %v1445_v41 = vpop.f32.mrf.mxu0  ;;  %11450 = vmatmul.mubr.msk.bf16.gmra.mxu0 %vm18365_vm0, %v2200_v51  ;;  %18399 = vst [vmem:[#allocation31_spill] sm:$0xff] %v14057_v9  ;;  %v2201_v34 = vpack.c.bf16 %v1157_v14, %v1156_v43 }
 0x267   : > { %v1644_v26 = vpop.f32.mrf.mxu1  ;;  %11510 = vmatmul.mubr.msk.bf16.gmra.mxu1 %vm18365_vm0, %v2470_v56  ;;  %11453 = vmatprep.mubr.msk.bf16.mxu0 %vm13017_vm12, %v18275_v57  ;;  %v2471_v56 = vpack.c.bf16 %v14057_v9, %v14055_v12 }
 0x268   : > { %v14051_v10 = vadd.f32 %v1644_v26, %v1445_v41  ;;  %v11219_v42 = vpop.f32.mrf.mxu0  ;;  %11513 = vmatprep.mubr.msk.bf16.mxu1 %vm13017_vm12, %v18275_v57 }
 0x269   : > { %v11279_v58 = vpop.f32.mrf.mxu1  ;;  %v1158_v42 = vld [vmem:[#allocation2 + $0xd0] sm:$0xff] }
 0x26a   : > { %v1448_v51 = vpop.f32.mrf.mxu0  ;;  %v2202_v43 = vpack.c.bf16 %v1158_v42, %v1158_v42  ;;  %v2975_v42 = vld [vmem:[#allocation2 + $0x1a] sm:$0xff] }
 0x26b   : > { %v1647_v15 = vpop.f32.mrf.mxu1 }
 0x26c   : > { %v11220_v11 = vpop.f32.mrf.mxu0  ;;  %v14068_v15 = vld [vmem:[#allocation2 + $0xd1] sm:$0xff] }
 0x26d   : > { %v11280_v13 = vpop.f32.mrf.mxu1  ;;  %v2472_v51 = vpack.c.bf16 %v14068_v15, %v14068_v15 }
 0x26e   : > { %v1793_v18 = vpop.f32.mrf.mxu0  ;;  %11454 = vmatmul.mubr.msk.bf16.gmra.mxu0 %vm18365_vm0, %v2201_v34 }
 0x26f   : > { %v1895_v41 = vadd.f32 %v1793_v18, %v13852_v52  ;;  %v2063_v26 = vpop.f32.mrf.mxu1  ;;  %11514 = vmatmul.mubr.msk.bf16.gmra.mxu1 %vm18365_vm0, %v2471_v56  ;;  %11457 = vmatprep.mubr.msk.bf16.mxu0 %vm13017_vm12, %v18275_v57 }
 0x270   : > { %v11291_v58 = vpop.f32.mrf.mxu0  ;;  %11517 = vmatprep.mubr.msk.bf16.mxu1 %vm13017_vm12, %v18275_v57 }
 0x271   : > { %v14070_v14 = vadd.f32 %v2063_v26, %v1895_v41  ;;  %v11351_v13 = vpop.f32.mrf.mxu1 }
 0x272   : > { %v1796_v11 = vpop.f32.mrf.mxu0  ;;  %v2976_v13 = vld [vmem:[#allocation2 + $0x22] sm:$0xff] }
 0x273   : > { %v1896_v52 = vadd.f32 %v1796_v11, %v13856_v40  ;;  %v2066_v18 = vpop.f32.mrf.mxu1 }
 0x274   : > { %v11292_v34 = vpop.f32.mrf.mxu0 }
 0x275   : > { %v14075_v56 = vadd.f32 %v2066_v18, %v1896_v52  ;;  %v11352_v58 = vpop.f32.mrf.mxu1  ;;  %v3000_v34 = vpack.c.bf16 %v2976_v13, %v2975_v42 }
 0x276   : > { %v1801_v9 = vpop.f32.mrf.mxu0  ;;  %11458 = vmatmul.mubr.msk.bf16.gmra.mxu0 %vm18365_vm0, %v2202_v43 }
 0x277   : > { %18400 = vst [vmem:[#allocation32_spill] sm:$0xff] %v14075_v56  ;;  %v1897_v41 = vadd.f32 %v1801_v9, %v13862_v45  ;;  %v2071_v26 = vpop.f32.mrf.mxu1  ;;  %11518 = vmatmul.mubr.msk.bf16.gmra.mxu1 %vm18365_vm0, %v2472_v51  ;;  %11529 = vmatprep.mubr.msk.bf16.mxu0 %vm13017_vm12, %v18275_v57  ;;  %v2730_v45 = vpack.c.bf16 %v13882_v35, %v13866_v60  ;;  %v12878_v51 = vld [vmem:[%s13220_s13 + $0x118] sm:$0xff]   ;;  %v18401_v35 = vmov 0.0  }
 0x278   : > { %v11295_v40 = vpop.f32.mrf.mxu0  ;;  %11589 = vmatprep.mubr.msk.bf16.mxu1 %vm13017_vm12, %v18275_v57 }
 0x279   : > { %v14084_v11 = vadd.f32 %v2071_v26, %v1897_v41  ;;  %v11355_v52 = vpop.f32.mrf.mxu1 }
 0x27a   : > { %v1804_v18 = vpop.f32.mrf.mxu0  ;;  %v12879_v52 = vld [vmem:[%s13220_s13 + $0x110] sm:$0xff]  }
 0x27b   : > { %v1898_v9 = vadd.f32 %v1804_v18, %v13870_v28  ;;  %v2074_v43 = vpop.f32.mrf.mxu1  ;;  %v2977_v28 = vld [vmem:[#allocation2 + $0x2a] sm:$0xff] }
 0x27c   : > { %v11296_v58 = vpop.f32.mrf.mxu0 }
 0x27d   : > { %v14090_v40 = vadd.f32 %v2074_v43, %v1898_v9  ;;  %v11356_v56 = vpop.f32.mrf.mxu1 }
 0x27e   : > { %v1809_v57 = vpop.f32.mrf.mxu0  ;;  %11530 = vmatmul.mubr.msk.bf16.vlgmr.msra.gmra.mxu0 %vm18365_vm0, %v2730_v45  ;;  %v2978_v56 = vld [vmem:[#allocation2 + $0x32] sm:$0xff] }
 0x27f   : > { %v1899_v41 = vadd.f32 %v1809_v57, %v13876_v33  ;;  %11642 = vmatpush3.bf16.msra.mxu0 %v12878_v51  ;;  %v2079_v26 = vpop.f32.mrf.mxu1  ;;  %11590 = vmatmul.mubr.msk.bf16.vlgmr.msra.gmra.mxu1 %vm18365_vm0, %v3000_v34  ;;  %v2731_v33 = vpack.c.bf16 %v13905_v63, %v13884_v55  ;;  %v3001_v9 = vpack.c.bf16 %v2978_v56, %v2977_v28  ;;  %v12880_v51 = vld [vmem:[%s13220_s13 + $0x108] sm:$0xff]  }
 0x280   : > { %v11299_v60 = vpop.f32.mrf.mxu0  ;;  %11533 = vmatprep.mubr.msk.bf16.mxu0 %vm13017_vm12, %v18401_v35  ;;  %11593 = vmatprep.mubr.msk.bf16.mxu1 %vm13017_vm12, %v18401_v35  ;;  %v2980_v63 = vld [vmem:[#allocation2 + $0x42] sm:$0xff] }
 0x281   : > { %v14100_v42 = vadd.f32 %v2079_v26, %v1899_v41  ;;  %v11359_v13 = vpop.f32.mrf.mxu1  ;;  %11643 = vmatprep.subr.bf16.mxu0 %v18401_v35 }
 0x282   : > { %v1812_v57 = vpop.f32.mrf.mxu0  ;;  %v2732_v13 = vpack.c.bf16 %v13927_v38, %v13907_v25  ;;  %v2982_v38 = vld [vmem:[#allocation2 + $0x52] sm:$0xff] }
 0x283   : > { %v1900_v18 = vadd.f32 %v1812_v57, %v13891_v39  ;;  %v2082_v45 = vpop.f32.mrf.mxu1  ;;  %11644 = vmatpush3.bf16.msra.mxu0 %v12879_v52  ;;  %v2979_v39 = vld [vmem:[#allocation2 + $0x3a] sm:$0xff] }
 0x284   : > { %v11300_v43 = vpop.f32.mrf.mxu0  ;;  %11645 = vmatprep.subr.bf16.mxu0 %v18401_v35  ;;  %v12881_v52 = vld [vmem:[%s13220_s13 + $0x100] sm:$0xff]  }
 0x285   : > { %v14108_v34 = vadd.f32 %v2082_v45, %v1900_v18  ;;  %v11360_v58 = vpop.f32.mrf.mxu1  ;;  %v3002_v18 = vpack.c.bf16 %v2980_v63, %v2979_v39  ;;  %v2733_v39 = vpack.c.bf16 %v13943_v31, %v13929_v50  ;;  %v2984_v31 = vld [vmem:[#allocation2 + $0x62] sm:$0xff] }
 0x286   : > { %v1817_v41 = vpop.f32.mrf.mxu0  ;;  %11534 = vmatmul.mubr.msk.bf16.gmra.mxu0 %vm18365_vm0, %v2731_v33 }
 0x287   : > { %v1901_v26 = vadd.f32 %v1817_v41, %v13901_v61  ;;  %v2087_v60 = vpop.f32.mrf.mxu1  ;;  %11594 = vmatmul.mubr.msk.bf16.gmra.mxu1 %vm18365_vm0, %v3001_v9  ;;  %11537 = vmatprep.mubr.msk.bf16.mxu0 %vm13017_vm12, %v18401_v35 }
 0x288   : > { %v11303_v55 = vpop.f32.mrf.mxu0  ;;  %11597 = vmatprep.mubr.msk.bf16.mxu1 %vm13017_vm12, %v18401_v35  ;;  %11646 = vmatpush3.bf16.msra.mxu0 %v12880_v51 }
 0x289   : > { %v14118_v28 = vadd.f32 %v2087_v60, %v1901_v26  ;;  %v11363_v56 = vpop.f32.mrf.mxu1  ;;  %11647 = vmatprep.subr.bf16.mxu0 %v18401_v35 }
 0x28a   : > { %v1820_v61 = vpop.f32.mrf.mxu0 }
 0x28b   : > { %v1902_v57 = vadd.f32 %v1820_v61, %v13915_v32  ;;  %v2090_v33 = vpop.f32.mrf.mxu1  ;;  %v2981_v32 = vld [vmem:[#allocation2 + $0x4a] sm:$0xff] }
 0x28c   : > { %v11304_v45 = vpop.f32.mrf.mxu0  ;;  %11648 = vmatpush3.bf16.msra.mxu0 %v12881_v52  ;;  %v3003_v52 = vpack.c.bf16 %v2982_v38, %v2981_v32 }
 0x28d   : > { %v14124_v9 = vadd.f32 %v2090_v33, %v1902_v57  ;;  %v11364_v43 = vpop.f32.mrf.mxu1  ;;  %11761 = vmatprep.subr.bf16.mxu0 %v18401_v35 }
 0x28e   : > { %v1825_v51 = vpop.f32.mrf.mxu0  ;;  %11538 = vmatmul.mubr.msk.bf16.gmra.mxu0 %vm18365_vm0, %v2732_v13 }
 0x28f   : > { %v1903_v58 = vadd.f32 %v1825_v51, %v13923_v36  ;;  %v2095_v41 = vpop.f32.mrf.mxu1  ;;  %11598 = vmatmul.mubr.msk.bf16.gmra.mxu1 %vm18365_vm0, %v3002_v18  ;;  %11541 = vmatprep.mubr.msk.bf16.mxu0 %vm13017_vm12, %v18401_v35 }
 0x290   : > { %v11307_v25 = vpop.f32.mrf.mxu0  ;;  %11601 = vmatprep.mubr.msk.bf16.mxu1 %vm13017_vm12, %v18401_v35 }
 0x291   : > { %v14134_v26 = vadd.f32 %v2095_v41, %v1903_v58  ;;  %v11367_v60 = vpop.f32.mrf.mxu1  ;;  %v2734_v58 = vpack.c.bf16 %v13959_v27, %v13945_v47  ;;  %v2986_v27 = vld [vmem:[#allocation2 + $0x72] sm:$0xff] }
 0x292   : > { %v1828_v55 = vpop.f32.mrf.mxu0 }
 0x293   : > { %v1904_v36 = vadd.f32 %v1828_v55, %v13933_v53  ;;  %v2098_v63 = vpop.f32.mrf.mxu1  ;;  %v2983_v53 = vld [vmem:[#allocation2 + $0x5a] sm:$0xff] }
 0x294   : > { %v11308_v56 = vpop.f32.mrf.mxu0  ;;  %v3004_v25 = vpack.c.bf16 %v2984_v31, %v2983_v53 }
 0x295   : > { %v14139_v61 = vadd.f32 %v2098_v63, %v1904_v36  ;;  %v11368_v13 = vpop.f32.mrf.mxu1 }
 0x296   : > { %v1833_v57 = vpop.f32.mrf.mxu0  ;;  %11542 = vmatmul.mubr.msk.bf16.gmra.mxu0 %vm18365_vm0, %v2733_v39  ;;  %v2735_v13 = vpack.c.bf16 %v13975_v30, %v13961_v29  ;;  %v2988_v30 = vld [vmem:[#allocation2 + $0x82] sm:$0xff] }
 0x297   : > { %v1905_v33 = vadd.f32 %v1833_v57, %v13939_v54  ;;  %v2103_v18 = vpop.f32.mrf.mxu1  ;;  %11602 = vmatmul.mubr.msk.bf16.gmra.mxu1 %vm18365_vm0, %v3003_v52  ;;  %11545 = vmatprep.mubr.msk.bf16.mxu0 %vm13017_vm12, %v18401_v35 }
 0x298   : > { %v11311_v50 = vpop.f32.mrf.mxu0  ;;  %11605 = vmatprep.mubr.msk.bf16.mxu1 %vm13017_vm12, %v18401_v35 }
 0x299   : > { %v14148_v45 = vadd.f32 %v2103_v18, %v1905_v33  ;;  %v11371_v43 = vpop.f32.mrf.mxu1 }
 0x29a   : > { %v1836_v51 = vpop.f32.mrf.mxu0 }
 0x29b   : > { %v1906_v54 = vadd.f32 %v1836_v51, %v13949_v37  ;;  %v2106_v41 = vpop.f32.mrf.mxu1  ;;  %v2985_v37 = vld [vmem:[#allocation2 + $0x6a] sm:$0xff] }
 0x29c   : > { %v11312_v32 = vpop.f32.mrf.mxu0  ;;  %v3005_v33 = vpack.c.bf16 %v2986_v27, %v2985_v37 }
 0x29d   : > { %v14153_v38 = vadd.f32 %v2106_v41, %v1906_v54  ;;  %v11372_v60 = vpop.f32.mrf.mxu1 }
 0x29e   : > { %v1841_v55 = vpop.f32.mrf.mxu0  ;;  %11546 = vmatmul.mubr.msk.bf16.gmra.mxu0 %vm18365_vm0, %v2734_v58 }
 0x29f   : > { %v1907_v39 = vadd.f32 %v1841_v55, %v13955_v62  ;;  %v2111_v36 = vpop.f32.mrf.mxu1  ;;  %11606 = vmatmul.mubr.msk.bf16.gmra.mxu1 %vm18365_vm0, %v3004_v25  ;;  %11549 = vmatprep.mubr.msk.bf16.mxu0 %vm13017_vm12, %v18401_v35  ;;  %v2736_v25 = vpack.c.bf16 %v13991_v46, %v13977_v49  ;;  %v2989_v49 = vld [vmem:[#allocation2 + $0x8a] sm:$0xff]  ;;  %v2990_v46 = vld [vmem:[#allocation2 + $0x92] sm:$0xff] }
 0x2a0   : > { %v11315_v47 = vpop.f32.mrf.mxu0  ;;  %11609 = vmatprep.mubr.msk.bf16.mxu1 %vm13017_vm12, %v18401_v35 }
 0x2a1   : > { %v14162_v63 = vadd.f32 %v2111_v36, %v1907_v39  ;;  %v11375_v52 = vpop.f32.mrf.mxu1  ;;  %v13018_v47 = vmov 0  }
 0x2a2   : > { %v1844_v56 = vpop.f32.mrf.mxu0  ;;  %12844 = vset.pattern.permute.xlu0 %v13018_v47  ;;  %12845 = vset.pattern.permute.xlu1 %v13018_v47  ;;  %v18405_v47 = vld [vmem:[#allocation28_spill] sm:$0xff] }
 0x2a3   : > { %v1908_v62 = vadd.f32 %v1844_v56, %v13965_v59  ;;  %v2114_v57 = vpop.f32.mrf.mxu1  ;;  %v2987_v59 = vld [vmem:[#allocation2 + $0x7a] sm:$0xff]  ;;  %3551 = vperm.xlu0 %12844, %v13119_v0   ;;  %3561 = vperm.xlu1 %12845, %v13129_v2  }
 0x2a4   : > { %v11316_v18 = vpop.f32.mrf.mxu0  ;;  %v3006_v60 = vpack.c.bf16 %v2988_v30, %v2987_v59 }
 0x2a5   : > { %v14167_v50 = vadd.f32 %v2114_v57, %v1908_v62  ;;  %v11376_v53 = vpop.f32.mrf.mxu1 }
 0x2a6   : > { %v1849_v31 = vpop.f32.mrf.mxu0  ;;  %11550 = vmatmul.mubr.msk.bf16.gmra.mxu0 %vm18365_vm0, %v2735_v13 }
 0x2a7   : > { %v1909_v43 = vadd.f32 %v1849_v31, %v13971_v44  ;;  %v2119_v51 = vpop.f32.mrf.mxu1  ;;  %11610 = vmatmul.mubr.msk.bf16.gmra.mxu1 %vm18365_vm0, %v3005_v33  ;;  %11553 = vmatprep.mubr.msk.bf16.mxu0 %vm13017_vm12, %v18401_v35  ;;  %v3007_v33 = vpack.c.bf16 %v2990_v46, %v2989_v49 }
 0x2a8   : > { %v11319_v29 = vpop.f32.mrf.mxu0  ;;  %11613 = vmatprep.mubr.msk.bf16.mxu1 %vm13017_vm12, %v18401_v35  ;;  %3556 = vperm.xlu0 %12844, %v13124_v1  }
 0x2a9   : > { %v14176_v58 = vadd.f32 %v2119_v51, %v1909_v43  ;;  %v11379_v54 = vpop.f32.mrf.mxu1  ;;  %3566 = vperm.xlu1 %12845, %v13134_v3   ;;  %v2991_v3 = vld [vmem:[#allocation2 + $0x9a] sm:$0xff] }
 0x2aa   : > { %v1852_v41 = vpop.f32.mrf.mxu0 }
 0x2ab   : > { %v1910_v44 = vadd.f32 %v1852_v41, %v13981_v24  ;;  %v2122_v32 = vpop.f32.mrf.mxu1 }
 0x2ac   : > { %v11320_v55 = vpop.f32.mrf.mxu0  ;;  %3571 = vperm.xlu0 %12844, %v13139_v4  }
 0x2ad   : > { %v14181_v39 = vadd.f32 %v2122_v32, %v1910_v44  ;;  %v11380_v36 = vpop.f32.mrf.mxu1  ;;  %3576 = vperm.xlu1 %12845, %v13144_v5   ;;  %v18402_v44 = vld [vmem:[#allocation24_spill] sm:$0xff] }
 0x2ae   : > { %v1857_v37 = vpop.f32.mrf.mxu0  ;;  %11554 = vmatmul.mubr.msk.bf16.gmra.mxu0 %vm18365_vm0, %v2736_v25  ;;  %v18404_v36 = vld [vmem:[#allocation25_spill] sm:$0xff] }
 0x2af   : > { %v1911_v27 = vadd.f32 %v1857_v37, %v13987_v48  ;;  %v2127_v52 = vpop.f32.mrf.mxu1  ;;  %11614 = vmatmul.mubr.msk.bf16.gmra.mxu1 %vm18365_vm0, %v3006_v60  ;;  %11557 = vmatprep.mubr.msk.bf16.mxu0 %vm13017_vm12, %v18401_v35  ;;  %v2737_v48 = vpack.c.bf16 %v14007_v21, %v13993_v23  ;;  %v2739_v37 = vpack.c.bf16 %v18405_v47, %v18404_v36  ;;  %v2998_v36 = vld [vmem:[#allocation2 + $0xd2] sm:$0xff] }
 0x2b0   : > { %v11323_v24 = vpop.f32.mrf.mxu0  ;;  %11617 = vmatprep.mubr.msk.bf16.mxu1 %vm13017_vm12, %v18401_v35  ;;  %3581 = vperm.xlu0 %12844, %v13150_v6   ;;  %v18417_v47 = vld [vmem:[#allocation16_spill] sm:$0xff] }
 0x2b1   : > { %v14192_v56 = vadd.f32 %v2127_v52, %v1911_v27  ;;  %v11383_v13 = vpop.f32.mrf.mxu1  ;;  %3586 = vperm.xlu1 %12845, %v13155_v7   ;;  %v2993_v7 = vld [vmem:[#allocation2 + $0xaa] sm:$0xff]  ;;  %v18406_v27 = vld [vmem:[#allocation9_spill] sm:$0xff] }
 0x2b2   : > { %v1860_v0 = vpop.f32.mrf.mxu0  ;;  %v18407_v52 = vld [vmem:[#allocation26_spill] sm:$0xff] }
 0x2b3   : > { %v1912_v62 = vadd.f32 %v1860_v0, %v13997_v20  ;;  %v2130_v57 = vpop.f32.mrf.mxu1  ;;  %v2992_v20 = vld [vmem:[#allocation2 + $0xa2] sm:$0xff] }
 0x2b4   : > { %v11324_v18 = vpop.f32.mrf.mxu0  ;;  %v3008_v30 = vpack.c.bf16 %v2992_v20, %v2991_v3  ;;  %3591 = vperm.xlu0 %12844, %v13160_v8   ;;  %v18408_v0 = vld [vmem:[#allocation10_spill] sm:$0xff]  ;;  %v18411_v3 = vld [vmem:[#allocation12_spill] sm:$0xff] }
 0x2b5   : > { %v14199_v53 = vadd.f32 %v2130_v57, %v1912_v62  ;;  %v11384_v31 = vpop.f32.mrf.mxu1  ;;  %v18410_v18 = vld [vmem:[#allocation27_spill] sm:$0xff] }
 0x2b6   : > { %v1865_v2 = vpop.f32.mrf.mxu0  ;;  %11558 = vmatmul.mubr.msk.bf16.gmra.mxu0 %vm18365_vm0, %v2737_v48 }
 0x2b7   : > { %v1913_v43 = vadd.f32 %v1865_v2, %v14003_v22  ;;  %v2135_v23 = vpop.f32.mrf.mxu1  ;;  %11618 = vmatmul.mubr.msk.bf16.gmra.mxu1 %vm18365_vm0, %v3007_v33  ;;  %11561 = vmatprep.mubr.msk.bf16.mxu0 %vm13017_vm12, %v18401_v35  ;;  %v2738_v22 = vpack.c.bf16 %v14023_v17, %v14009_v19  ;;  %v18403_v17 = vld [vmem:[#allocation8_spill] sm:$0xff]  ;;  %v18409_v33 = vld [vmem:[#allocation11_spill] sm:$0xff] }
 0x2b8   : > { %v11327_v1 = vpop.f32.mrf.mxu0  ;;  %11621 = vmatprep.mubr.msk.bf16.mxu1 %vm13017_vm12, %v18401_v35  ;;  %3596 = vperm.xlu1 %12845, %v18403_v17  }
 0x2b9   : > { %v14210_v21 = vadd.f32 %v2135_v23, %v1913_v43  ;;  %v11387_v51 = vpop.f32.mrf.mxu1  ;;  %3601 = vperm.xlu0 %12844, %v18406_v27   ;;  %v2995_v23 = vld [vmem:[#allocation2 + $0xba] sm:$0xff]  ;;  %v2996_v1 = vld [vmem:[#allocation2 + $0xc2] sm:$0xff] }
 0x2ba   : > { %v1868_v4 = vpop.f32.mrf.mxu0 }
 0x2bb   : > { %v1914_v29 = vadd.f32 %v1868_v4, %v14013_v16  ;;  %v2138_v59 = vpop.f32.mrf.mxu1  ;;  %v2994_v16 = vld [vmem:[#allocation2 + $0xb2] sm:$0xff] }
 0x2bc   : > { %v11328_v54 = vpop.f32.mrf.mxu0  ;;  %v3009_v46 = vpack.c.bf16 %v2994_v16, %v2993_v7  ;;  %3606 = vperm.xlu1 %12845, %v18408_v0   ;;  %v18416_v16 = vld [vmem:[#allocation15_spill] sm:$0xff] }
 0x2bd   : > { %v14217_v41 = vadd.f32 %v2138_v59, %v1914_v29  ;;  %v11388_v25 = vpop.f32.mrf.mxu1  ;;  %3611 = vperm.xlu0 %12844, %v18409_v33   ;;  %v18413_v59 = vld [vmem:[#allocation13_spill] sm:$0xff] }
 0x2be   : > { %v1873_v5 = vpop.f32.mrf.mxu0  ;;  %11562 = vmatmul.mubr.msk.bf16.gmra.mxu0 %vm18365_vm0, %v2738_v22  ;;  %v18412_v22 = vld [vmem:[#allocation29_spill] sm:$0xff] }
 0x2bf   : > { %v1915_v32 = vadd.f32 %v1873_v5, %v18402_v44  ;;  %v2143_v19 = vpop.f32.mrf.mxu1  ;;  %11622 = vmatmul.mubr.msk.bf16.gmra.mxu1 %vm18365_vm0, %v3008_v30  ;;  %11565 = vmatprep.mubr.msk.bf16.mxu0 %vm13017_vm12, %v18401_v35  ;;  %v2740_v29 = vpack.c.bf16 %v14055_v12, %v18412_v22  ;;  %v18414_v30 = vld [vmem:[#allocation30_spill] sm:$0xff]  ;;  %v3010_v5 = vpack.c.bf16 %v2996_v1, %v2995_v23  ;;  %v2999_v23 = vld [vmem:[#allocation2 + $0xda] sm:$0xff] }
 0x2c0   : > { %v11331_v6 = vpop.f32.mrf.mxu0  ;;  %11625 = vmatprep.mubr.msk.bf16.mxu1 %vm13017_vm12, %v18401_v35  ;;  %3616 = vperm.xlu1 %12845, %v18411_v3   ;;  %v18422_v1 = vld [vmem:[#allocation20_spill] sm:$0xff] }
 0x2c1   : > { %v14228_v60 = vadd.f32 %v2143_v19, %v1915_v32  ;;  %v11391_v55 = vpop.f32.mrf.mxu1  ;;  %3621 = vperm.xlu0 %12844, %v18413_v59   ;;  %v18415_v32 = vld [vmem:[#allocation14_spill] sm:$0xff] }
 0x2c2   : > { %v1876_v8 = vpop.f32.mrf.mxu0 }
 0x2c3   : > { %v1916_v24 = vadd.f32 %v1876_v8, %v18407_v52  ;;  %v2146_v49 = vpop.f32.mrf.mxu1  ;;  %v2997_v8 = vld [vmem:[#allocation2 + $0xca] sm:$0xff] }
 0x2c4   : > { %v11332_v13 = vpop.f32.mrf.mxu0  ;;  %3626 = vperm.xlu1 %12845, %v18415_v32  }
 0x2c5   : > { %v14235_v48 = vadd.f32 %v2146_v49, %v1916_v24  ;;  %v11392_v62 = vpop.f32.mrf.mxu1  ;;  %3631 = vperm.xlu0 %12844, %v18416_v16   ;;  %v18418_v24 = vld [vmem:[#allocation31_spill] sm:$0xff]  ;;  %v18419_v49 = vld [vmem:[#allocation17_spill] sm:$0xff]  ;;  %v3011_v13 = vpack.c.bf16 %v2998_v36, %v2997_v8 }
 0x2c6   : > { %v1881_v57 = vpop.f32.mrf.mxu0  ;;  %11566 = vmatmul.mubr.msk.bf16.gmra.mxu0 %vm18365_vm0, %v2739_v37  ;;  %v18420_v62 = vld [vmem:[#allocation18_spill] sm:$0xff] }
 0x2c7   : > { %v1917_v31 = vadd.f32 %v1881_v57, %v18410_v18  ;;  %v2151_v2 = vpop.f32.mrf.mxu1  ;;  %11626 = vmatmul.mubr.msk.bf16.gmra.mxu1 %vm18365_vm0, %v3009_v46  ;;  %11569 = vmatprep.mubr.msk.bf16.mxu0 %vm13017_vm12, %v18401_v35  ;;  %v18421_v18 = vld [vmem:[#allocation19_spill] sm:$0xff] }
 0x2c8   : > { %v11335_v43 = vpop.f32.mrf.mxu0  ;;  %11629 = vmatprep.mubr.msk.bf16.mxu1 %vm13017_vm12, %v18401_v35  ;;  %3636 = vperm.xlu1 %12845, %v18417_v47  }
 0x2c9   : > { %v14246_v20 = vadd.f32 %v2151_v2, %v1917_v31  ;;  %v11395_v51 = vpop.f32.mrf.mxu1  ;;  %3641 = vperm.xlu0 %12844, %v18419_v49  }
 0x2ca   : > { %v1884_v4 = vpop.f32.mrf.mxu0 }
 0x2cb   : > { %v1918_v54 = vadd.f32 %v1884_v4, %v18414_v30  ;;  %v2154_v25 = vpop.f32.mrf.mxu1 }
 0x2cc   : > { %v11336_v44 = vpop.f32.mrf.mxu0  ;;  %3646 = vperm.xlu1 %12845, %v18420_v62  }
 0x2cd   : > { %v14253_v19 = vadd.f32 %v2154_v25, %v1918_v54  ;;  %v11396_v6 = vpop.f32.mrf.mxu1  ;;  %3651 = vperm.xlu0 %12844, %v18421_v18   ;;  %v3012_v54 = vpack.c.bf16 %v2999_v23, %v2999_v23 }
 0x2ce   : > { %v1889_v7 = vpop.f32.mrf.mxu0  ;;  %11570 = vmatmul.mubr.msk.bf16.gmra.mxu0 %vm18365_vm0, %v2740_v29  ;;  %v18424_v29 = vld [vmem:[#allocation32_spill] sm:$0xff] }
 0x2cf   : > { %v1919_v17 = vadd.f32 %v1889_v7, %v14051_v10  ;;  %v2159_v12 = vpop.f32.mrf.mxu1  ;;  %11630 = vmatmul.mubr.msk.bf16.gmra.mxu1 %vm18365_vm0, %v3010_v5  ;;  %11573 = vmatprep.mubr.msk.bf16.mxu0 %vm13017_vm12, %v18401_v35  ;;  %v2741_v10 = vpack.c.bf16 %v14068_v15, %v18418_v24  ;;  %v2729_v15 = vld [vmem:[#allocation2 + $0xd9] sm:$0xff]  ;;  %v18425_v5 = vld [vmem:[#allocation22_spill] sm:$0xff]  ;;  %v18426_v7 = vld [vmem:[#allocation23_spill] sm:$0xff] }
 0x2d0   : > { %v11339_v55 = vpop.f32.mrf.mxu0  ;;  %11633 = vmatprep.mubr.msk.bf16.mxu1 %vm13017_vm12, %v18401_v35  ;;  %3656 = vperm.xlu1 %12845, %v18422_v1   ;;  %v2742_v22 = vpack.c.bf16 %v2729_v15, %v2729_v15 }
 0x2d1   : > { %v14264_v37 = vadd.f32 %v2159_v12, %v1919_v17  ;;  %v11399_v27 = vpop.f32.mrf.mxu1  ;;  %v3245_v12 = vld [vmem:[#allocation2 + $0x1b] sm:$0xff]  ;;  %v3246_v55 = vld [vmem:[#allocation2 + $0x23] sm:$0xff] }
 0x2d2   : > { %v1892_v52 = vpop.f32.mrf.mxu0 }
 0x2d3   : > { %v2162_v46 = vpop.f32.mrf.mxu1  ;;  %v3270_v52 = vpack.c.bf16 %v3246_v55, %v3245_v12 }
 0x2d4   : > { %v11340_v0 = vpop.f32.mrf.mxu0  ;;  %3666 = vperm.xlu1 %12845, %v18425_v5  }
 0x2d5   : > { %v11400_v57 = vpop.f32.mrf.mxu1 }
 0x2d6   : > { %v2308_v33 = vpop.f32.mrf.mxu0  ;;  %11574 = vmatmul.mubr.msk.bf16.gmra.mxu0 %vm18365_vm0, %v2741_v10  ;;  %v3247_v57 = vld [vmem:[#allocation2 + $0x2b] sm:$0xff] }
 0x2d7   : > { %v2410_v31 = vadd.f32 %v2308_v33, %v14070_v14  ;;  %v2578_v2 = vpop.f32.mrf.mxu1  ;;  %11634 = vmatmul.mubr.msk.bf16.gmra.mxu1 %vm18365_vm0, %v3011_v13  ;;  %11577 = vmatprep.mubr.msk.bf16.mxu0 %vm13017_vm12, %v18401_v35  ;;  %v18423_v14 = vld [vmem:[#allocation21_spill] sm:$0xff]  ;;  %v3248_v33 = vld [vmem:[#allocation2 + $0x33] sm:$0xff] }
 0x2d8   : > { %v11411_v43 = vpop.f32.mrf.mxu0  ;;  %11637 = vmatprep.mubr.msk.bf16.mxu1 %vm13017_vm12, %v18401_v35  ;;  %3661 = vperm.xlu0 %12844, %v18423_v14   ;;  %v3271_v15 = vpack.c.bf16 %v3248_v33, %v3247_v57 }
 0x2d9   : > { %v14279_v3 = vadd.f32 %v2578_v2, %v2410_v31  ;;  %v11471_v51 = vpop.f32.mrf.mxu1 }
 0x2da   : > { %v2311_v4 = vpop.f32.mrf.mxu0 }
 0x2db   : > { %v2411_v59 = vadd.f32 %v2311_v4, %v18424_v29  ;;  %v2581_v30 = vpop.f32.mrf.mxu1  ;;  %v3249_v29 = vld [vmem:[#allocation2 + $0x3b] sm:$0xff] }
 0x2dc   : > { %v11412_v25 = vpop.f32.mrf.mxu0  ;;  %3671 = vperm.xlu0 %12844, %v18426_v7  }
 0x2dd   : > { %v14284_v44 = vadd.f32 %v2581_v30, %v2411_v59  ;;  %v11472_v32 = vpop.f32.mrf.mxu1  ;;  %v3250_v59 = vld [vmem:[#allocation2 + $0x43] sm:$0xff] }
 0x2de   : > { %v2316_v6 = vpop.f32.mrf.mxu0  ;;  %11578 = vmatmul.mubr.msk.bf16.gmra.mxu0 %vm18365_vm0, %v2742_v22  ;;  %v3272_v5 = vpack.c.bf16 %v3250_v59, %v3249_v29 }
 0x2df   : > { %v2412_v16 = vadd.f32 %v2316_v6, %v14084_v11  ;;  %v2586_v17 = vpop.f32.mrf.mxu1  ;;  %11638 = vmatmul.mubr.msk.bf16.gmra.mxu1 %vm18365_vm0, %v3012_v54  ;;  %11649 = vmatprep.mubr.msk.bf16.mxu0 %vm13017_vm12, %v18401_v35 }
 0x2e0   : > { %v11415_v8 = vpop.f32.mrf.mxu0  ;;  %11709 = vmatprep.mubr.msk.bf16.mxu1 %vm13017_vm12, %v18401_v35 }
 0x2e1   : > { %v14294_v36 = vadd.f32 %v2586_v17, %v2412_v16  ;;  %v11475_v47 = vpop.f32.mrf.mxu1  ;;  %v3251_v8 = vld [vmem:[#allocation2 + $0x4b] sm:$0xff] }
 0x2e2   : > { %v2319_v27 = vpop.f32.mrf.mxu0  ;;  %v3252_v47 = vld [vmem:[#allocation2 + $0x53] sm:$0xff] }
 0x2e3   : > { %v2413_v24 = vadd.f32 %v2319_v27, %v14090_v40  ;;  %v2589_v11 = vpop.f32.mrf.mxu1 }
 0x2e4   : > { %v11416_v10 = vpop.f32.mrf.mxu0 }
 0x2e5   : > { %v14297_v49 = vadd.f32 %v2589_v11, %v2413_v24  ;;  %v11476_v46 = vpop.f32.mrf.mxu1  ;;  %v3273_v11 = vpack.c.bf16 %v3252_v47, %v3251_v8 }
 0x2e6   : > { %v2324_v13 = vpop.f32.mrf.mxu0  ;;  %11650 = vmatmul.mubr.msk.bf16.vlgmr.msra.gmra.mxu0 %vm18365_vm0, %v3270_v52 }
 0x2e7   : > { %v2414_v0 = vadd.f32 %v2324_v13, %v14100_v42  ;;  %v2594_v62 = vpop.f32.mrf.mxu1  ;;  %11653 = vmatprep.mubr.msk.bf16.mxu0 %vm13017_vm12, %v18401_v35 }
 0x2e8   : > { %v11419_v18 = vpop.f32.mrf.mxu0 }
 0x2e9   : > { %v14303_v31 = vadd.f32 %v2594_v62, %v2414_v0  ;;  %v11479_v40 = vpop.f32.mrf.mxu1  ;;  %v3253_v18 = vld [vmem:[#allocation2 + $0x5b] sm:$0xff] }
 0x2ea   : > { %v2327_v2 = vpop.f32.mrf.mxu0  ;;  %v3254_v40 = vld [vmem:[#allocation2 + $0x63] sm:$0xff] }
 0x2eb   : > { %v2415_v43 = vadd.f32 %v2327_v2, %v14108_v34  ;;  %v2597_v23 = vpop.f32.mrf.mxu1 }
 0x2ec   : > { %v11420_v1 = vpop.f32.mrf.mxu0 }
 0x2ed   : > { %v14306_v51 = vadd.f32 %v2597_v23, %v2415_v43  ;;  %v11480_v4 = vpop.f32.mrf.mxu1  ;;  %v3274_v23 = vpack.c.bf16 %v3254_v40, %v3253_v18 }
 0x2ee   : > { %v2332_v42 = vpop.f32.mrf.mxu0  ;;  %11654 = vmatmul.mubr.msk.bf16.gmra.mxu0 %vm18365_vm0, %v3271_v15 }
 0x2ef   : > { %v2416_v22 = vadd.f32 %v2332_v42, %v14118_v28  ;;  %v2602_v14 = vpop.f32.mrf.mxu1  ;;  %11657 = vmatprep.mubr.msk.bf16.mxu0 %vm13017_vm12, %v18401_v35 }
 0x2f0   : > { %v11423_v30 = vpop.f32.mrf.mxu0 }
 0x2f1   : > { %v14312_v54 = vadd.f32 %v2602_v14, %v2416_v22  ;;  %v11483_v34 = vpop.f32.mrf.mxu1  ;;  %v3255_v30 = vld [vmem:[#allocation2 + $0x6b] sm:$0xff] }
 0x2f2   : > { %v2335_v25 = vpop.f32.mrf.mxu0  ;;  %v3256_v34 = vld [vmem:[#allocation2 + $0x73] sm:$0xff] }
 0x2f3   : > { %v2417_v32 = vadd.f32 %v2335_v25, %v14124_v9  ;;  %v2605_v6 = vpop.f32.mrf.mxu1 }
 0x2f4   : > { %v11424_v7 = vpop.f32.mrf.mxu0 }
 0x2f5   : > { %v14315_v16 = vadd.f32 %v2605_v6, %v2417_v32  ;;  %v11484_v17 = vpop.f32.mrf.mxu1  ;;  %v3275_v6 = vpack.c.bf16 %v3256_v34, %v3255_v30 }
 0x2f6   : > { %v2340_v28 = vpop.f32.mrf.mxu0  ;;  %11658 = vmatmul.mubr.msk.bf16.gmra.mxu0 %vm18365_vm0, %v3272_v5 }
 0x2f7   : > { %v2418_v12 = vadd.f32 %v2340_v28, %v14134_v26  ;;  %v2610_v55 = vpop.f32.mrf.mxu1  ;;  %11661 = vmatprep.mubr.msk.bf16.mxu0 %vm13017_vm12, %v18401_v35 }
 0x2f8   : > { %v11427_v27 = vpop.f32.mrf.mxu0 }
 0x2f9   : > { %v14321_v52 = vadd.f32 %v2610_v55, %v2418_v12  ;;  %v11487_v9 = vpop.f32.mrf.mxu1  ;;  %v3257_v27 = vld [vmem:[#allocation2 + $0x7b] sm:$0xff] }
 0x2fa   : > { %v2343_v24 = vpop.f32.mrf.mxu0  ;;  %v3258_v9 = vld [vmem:[#allocation2 + $0x83] sm:$0xff] }
 0x2fb   : > { %v2419_v10 = vadd.f32 %v2343_v24, %v14139_v61  ;;  %v2613_v46 = vpop.f32.mrf.mxu1 }
 0x2fc   : > { %v11428_v13 = vpop.f32.mrf.mxu0 }
 0x2fd   : > { %v14324_v0 = vadd.f32 %v2613_v46, %v2419_v10  ;;  %v11488_v62 = vpop.f32.mrf.mxu1  ;;  %v3276_v46 = vpack.c.bf16 %v3258_v9, %v3257_v27 }
 0x2fe   : > { %v2348_v26 = vpop.f32.mrf.mxu0  ;;  %11662 = vmatmul.mubr.msk.bf16.gmra.mxu0 %vm18365_vm0, %v3273_v11 }
 0x2ff   : > { %v2420_v57 = vadd.f32 %v2348_v26, %v14148_v45  ;;  %v2618_v33 = vpop.f32.mrf.mxu1  ;;  %11665 = vmatprep.mubr.msk.bf16.mxu0 %vm13017_vm12, %v18401_v35 }
 0x300   : > { %v11431_v2 = vpop.f32.mrf.mxu0 }
 0x301   : > { %v14330_v15 = vadd.f32 %v2618_v33, %v2420_v57  ;;  %v11491_v61 = vpop.f32.mrf.mxu1  ;;  %v3259_v2 = vld [vmem:[#allocation2 + $0x8b] sm:$0xff] }
 0x302   : > { %v2351_v43 = vpop.f32.mrf.mxu0  ;;  %v3260_v61 = vld [vmem:[#allocation2 + $0x93] sm:$0xff] }
 0x303   : > { %v2421_v1 = vadd.f32 %v2351_v43, %v14153_v38  ;;  %v2621_v4 = vpop.f32.mrf.mxu1 }
 0x304   : > { %v11432_v42 = vpop.f32.mrf.mxu0 }
 0x305   : > { %v14333_v22 = vadd.f32 %v2621_v4, %v2421_v1  ;;  %v11492_v14 = vpop.f32.mrf.mxu1  ;;  %v3277_v4 = vpack.c.bf16 %v3260_v61, %v3259_v2 }
 0x306   : > { %v2356_v45 = vpop.f32.mrf.mxu0  ;;  %11666 = vmatmul.mubr.msk.bf16.gmra.mxu0 %vm18365_vm0, %v3274_v23 }
 0x307   : > { %v2422_v29 = vadd.f32 %v2356_v45, %v14162_v63  ;;  %v2626_v59 = vpop.f32.mrf.mxu1  ;;  %11669 = vmatprep.mubr.msk.bf16.mxu0 %vm13017_vm12, %v18401_v35 }
 0x308   : > { %v11435_v25 = vpop.f32.mrf.mxu0 }
 0x309   : > { %v14339_v5 = vadd.f32 %v2626_v59, %v2422_v29  ;;  %v11495_v38 = vpop.f32.mrf.mxu1  ;;  %v3261_v25 = vld [vmem:[#allocation2 + $0x9b] sm:$0xff] }
 0x30a   : > { %v2359_v32 = vpop.f32.mrf.mxu0  ;;  %v3262_v38 = vld [vmem:[#allocation2 + $0xa3] sm:$0xff] }
 0x30b   : > { %v2423_v7 = vadd.f32 %v2359_v32, %v14167_v50  ;;  %v2629_v17 = vpop.f32.mrf.mxu1 }
 0x30c   : > { %v11436_v28 = vpop.f32.mrf.mxu0 }
 0x30d   : > { %v14342_v12 = vadd.f32 %v2629_v17, %v2423_v7  ;;  %v11496_v55 = vpop.f32.mrf.mxu1  ;;  %v3278_v17 = vpack.c.bf16 %v3262_v38, %v3261_v25 }
 0x30e   : > { %v2364_v63 = vpop.f32.mrf.mxu0  ;;  %11670 = vmatmul.mubr.msk.bf16.gmra.mxu0 %vm18365_vm0, %v3275_v6 }
 0x30f   : > { %v2424_v8 = vadd.f32 %v2364_v63, %v14176_v58  ;;  %v2634_v47 = vpop.f32.mrf.mxu1  ;;  %11673 = vmatprep.mubr.msk.bf16.mxu0 %vm13017_vm12, %v18401_v35 }
 0x310   : > { %v11439_v24 = vpop.f32.mrf.mxu0 }
 0x311   : > { %v14348_v11 = vadd.f32 %v2634_v47, %v2424_v8  ;;  %v11499_v50 = vpop.f32.mrf.mxu1  ;;  %v3263_v24 = vld [vmem:[#allocation2 + $0xab] sm:$0xff] }
 0x312   : > { %v2367_v10 = vpop.f32.mrf.mxu0  ;;  %v3264_v50 = vld [vmem:[#allocation2 + $0xb3] sm:$0xff] }
 0x313   : > { %v2425_v13 = vadd.f32 %v2367_v10, %v14181_v39  ;;  %v2637_v62 = vpop.f32.mrf.mxu1 }
 0x314   : > { %v11440_v26 = vpop.f32.mrf.mxu0 }
 0x315   : > { %v14351_v57 = vadd.f32 %v2637_v62, %v2425_v13  ;;  %v11500_v33 = vpop.f32.mrf.mxu1  ;;  %v3279_v62 = vpack.c.bf16 %v3264_v50, %v3263_v24  ;;  %v3269_v24 = vld [vmem:[#allocation2 + $0xdb] sm:$0xff] }
 0x316   : > { %v2372_v58 = vpop.f32.mrf.mxu0  ;;  %11674 = vmatmul.mubr.msk.bf16.gmra.mxu0 %vm18365_vm0, %v3276_v46 }
 0x317   : > { %v2426_v18 = vadd.f32 %v2372_v58, %v14192_v56  ;;  %v2642_v40 = vpop.f32.mrf.mxu1  ;;  %11677 = vmatprep.mubr.msk.bf16.mxu0 %vm13017_vm12, %v18401_v35 }
 0x318   : > { %v11443_v43 = vpop.f32.mrf.mxu0 }
 0x319   : > { %v14357_v23 = vadd.f32 %v2642_v40, %v2426_v18  ;;  %v11503_v39 = vpop.f32.mrf.mxu1  ;;  %v3265_v43 = vld [vmem:[#allocation2 + $0xbb] sm:$0xff] }
 0x31a   : > { %v2375_v1 = vpop.f32.mrf.mxu0  ;;  %v3266_v39 = vld [vmem:[#allocation2 + $0xc3] sm:$0xff] }
 0x31b   : > { %v2427_v42 = vadd.f32 %v2375_v1, %v14199_v53  ;;  %v2645_v14 = vpop.f32.mrf.mxu1 }
 0x31c   : > { %v11444_v45 = vpop.f32.mrf.mxu0 }
 0x31d   : > { %v14360_v29 = vadd.f32 %v2645_v14, %v2427_v42  ;;  %v11504_v59 = vpop.f32.mrf.mxu1  ;;  %v3280_v14 = vpack.c.bf16 %v3266_v39, %v3265_v43 }
 0x31e   : > { %v2380_v56 = vpop.f32.mrf.mxu0  ;;  %11678 = vmatmul.mubr.msk.bf16.gmra.mxu0 %vm18365_vm0, %v3277_v4 }
 0x31f   : > { %v2428_v30 = vadd.f32 %v2380_v56, %v14210_v21  ;;  %v2650_v34 = vpop.f32.mrf.mxu1  ;;  %11681 = vmatprep.mubr.msk.bf16.mxu0 %vm13017_vm12, %v18401_v35 }
 0x320   : > { %v11447_v32 = vpop.f32.mrf.mxu0 }
 0x321   : > { %v14366_v6 = vadd.f32 %v2650_v34, %v2428_v30  ;;  %v11507_v53 = vpop.f32.mrf.mxu1  ;;  %v3267_v32 = vld [vmem:[#allocation2 + $0xcb] sm:$0xff] }
 0x322   : > { %v2383_v7 = vpop.f32.mrf.mxu0  ;;  %v3268_v53 = vld [vmem:[#allocation2 + $0xd3] sm:$0xff] }
 0x323   : > { %v2429_v28 = vadd.f32 %v2383_v7, %v14217_v41  ;;  %v2653_v55 = vpop.f32.mrf.mxu1 }
 0x324   : > { %v11448_v63 = vpop.f32.mrf.mxu0 }
 0x325   : > { %v14369_v8 = vadd.f32 %v2653_v55, %v2429_v28  ;;  %v11508_v47 = vpop.f32.mrf.mxu1  ;;  %v3281_v55 = vpack.c.bf16 %v3268_v53, %v3267_v32 }
 0x326   : > { %v2388_v21 = vpop.f32.mrf.mxu0  ;;  %11682 = vmatmul.mubr.msk.bf16.gmra.mxu0 %vm18365_vm0, %v3278_v17 }
 0x327   : > { %v2430_v27 = vadd.f32 %v2388_v21, %v14228_v60  ;;  %v2658_v9 = vpop.f32.mrf.mxu1  ;;  %11685 = vmatprep.mubr.msk.bf16.mxu0 %vm13017_vm12, %v18401_v35 }
 0x328   : > { %v11451_v10 = vpop.f32.mrf.mxu0 }
 0x329   : > { %v14375_v46 = vadd.f32 %v2658_v9, %v2430_v27  ;;  %v11511_v41 = vpop.f32.mrf.mxu1 }
 0x32a   : > { %v2391_v13 = vpop.f32.mrf.mxu0 }
 0x32b   : > { %v2431_v26 = vadd.f32 %v2391_v13, %v14235_v48  ;;  %v2661_v33 = vpop.f32.mrf.mxu1 }
 0x32c   : > { %v11452_v58 = vpop.f32.mrf.mxu0 }
 0x32d   : > { %v14378_v18 = vadd.f32 %v2661_v33, %v2431_v26  ;;  %v11512_v40 = vpop.f32.mrf.mxu1 }
 0x32e   : > { %v2396_v60 = vpop.f32.mrf.mxu0  ;;  %11686 = vmatmul.mubr.msk.bf16.gmra.mxu0 %vm18365_vm0, %v3279_v62  ;;  %v3282_v62 = vpack.c.bf16 %v3269_v24, %v3269_v24 }
 0x32f   : > { %v2432_v2 = vadd.f32 %v2396_v60, %v14246_v20  ;;  %v2666_v61 = vpop.f32.mrf.mxu1  ;;  %11689 = vmatprep.mubr.msk.bf16.mxu0 %vm13017_vm12, %v18401_v35 }
 0x330   : > { %v11455_v1 = vpop.f32.mrf.mxu0 }
 0x331   : > { %v14384_v4 = vadd.f32 %v2666_v61, %v2432_v2  ;;  %v11515_v48 = vpop.f32.mrf.mxu1 }
 0x332   : > { %v2399_v42 = vpop.f32.mrf.mxu0 }
 0x333   : > { %v2433_v45 = vadd.f32 %v2399_v42, %v14253_v19  ;;  %v2669_v59 = vpop.f32.mrf.mxu1 }
 0x334   : > { %v11456_v56 = vpop.f32.mrf.mxu0 }
 0x335   : > { %v14387_v30 = vadd.f32 %v2669_v59, %v2433_v45  ;;  %v11516_v34 = vpop.f32.mrf.mxu1 }
 0x336   : > { %v2404_v20 = vpop.f32.mrf.mxu0  ;;  %11690 = vmatmul.mubr.msk.bf16.gmra.mxu0 %vm18365_vm0, %v3280_v14 }
 0x337   : > { %v2434_v25 = vadd.f32 %v2404_v20, %v14264_v37  ;;  %v2674_v38 = vpop.f32.mrf.mxu1  ;;  %11693 = vmatprep.mubr.msk.bf16.mxu0 %vm13017_vm12, %v18401_v35 }
 0x338   : > { %v11459_v7 = vpop.f32.mrf.mxu0 }
 0x339   : > { %v14393_v17 = vadd.f32 %v2674_v38, %v2434_v25  ;;  %v11519_v19 = vpop.f32.mrf.mxu1 }
 0x33a   : > { %v2407_v28 = vpop.f32.mrf.mxu0 }
 0x33b   : > { %v2677_v63 = vpop.f32.mrf.mxu1 }
 0x33c   : > { %v11460_v47 = vpop.f32.mrf.mxu0 }
 0x33d   : > { %v11520_v21 = vpop.f32.mrf.mxu1 }
 0x33e   : > { %v2848_v27 = vpop.f32.mrf.mxu0  ;;  %11694 = vmatmul.mubr.msk.bf16.gmra.mxu0 %vm18365_vm0, %v3281_v55 }
 0x33f   : > { %v2950_v37 = vadd.f32 %v2848_v27, %v14279_v3  ;;  %v3118_v9 = vpop.f32.mrf.mxu1  ;;  %11697 = vmatprep.mubr.msk.bf16.mxu0 %vm13017_vm12, %v18401_v35 }
 0x340   : > { %v11531_v50 = vpop.f32.mrf.mxu0 }
 0x341   : > { %v14399_v10 = vadd.f32 %v3118_v9, %v2950_v37  ;;  %v11591_v41 = vpop.f32.mrf.mxu1 }
 0x342   : > { %v2851_v13 = vpop.f32.mrf.mxu0 }
 0x343   : > { %v2951_v26 = vadd.f32 %v2851_v13, %v14284_v44  ;;  %v3121_v33 = vpop.f32.mrf.mxu1 }
 0x344   : > { %v11532_v58 = vpop.f32.mrf.mxu0 }
 0x345   : > { %v14402_v40 = vadd.f32 %v3121_v33, %v2951_v26  ;;  %v11592_v60 = vpop.f32.mrf.mxu1 }
 0x346   : > { %v2856_v2 = vpop.f32.mrf.mxu0  ;;  %11698 = vmatmul.mubr.msk.bf16.gmra.mxu0 %vm18365_vm0, %v3282_v62 }
 0x347   : > { %v2952_v3 = vadd.f32 %v2856_v2, %v14294_v36  ;;  %v3126_v61 = vpop.f32.mrf.mxu1  ;;  %11769 = vmatprep.mubr.msk.bf16.mxu0 %vm13017_vm12, %v18401_v35 }
 0x348   : > { %v11535_v43 = vpop.f32.mrf.mxu0 }
 0x349   : > { %v14408_v39 = vadd.f32 %v3126_v61, %v2952_v3  ;;  %v11595_v1 = vpop.f32.mrf.mxu1 }
 0x34a   : > { %v2859_v48 = vpop.f32.mrf.mxu0 }
 0x34b   : > { %v2953_v44 = vadd.f32 %v2859_v48, %v14297_v49  ;;  %v3129_v42 = vpop.f32.mrf.mxu1 }
 0x34c   : > { %v11536_v14 = vpop.f32.mrf.mxu0 }
 0x34d   : > { %v14411_v45 = vadd.f32 %v3129_v42, %v2953_v44  ;;  %v11596_v59 = vpop.f32.mrf.mxu1 }
 0x34e   : > { %v2864_v56 = vpop.f32.mrf.mxu0 }
 0x34f   : > { %v2954_v34 = vadd.f32 %v2864_v56, %v14303_v31  ;;  %v3134_v36 = vpop.f32.mrf.mxu1 }
 0x350   : > { %v11539_v20 = vpop.f32.mrf.mxu0 }
 0x351   : > { %v14414_v25 = vadd.f32 %v3134_v36, %v2954_v34  ;;  %v11599_v38 = vpop.f32.mrf.mxu1 }
 0x352   : > { %v2867_v32 = vpop.f32.mrf.mxu0 }
 0x353   : > { %v2955_v53 = vadd.f32 %v2867_v32, %v14306_v51  ;;  %v3137_v7 = vpop.f32.mrf.mxu1 }
 0x354   : > { %v11540_v19 = vpop.f32.mrf.mxu0 }
 0x355   : > { %v14417_v28 = vadd.f32 %v3137_v7, %v2955_v53  ;;  %v11600_v49 = vpop.f32.mrf.mxu1 }
 0x356   : > { %v2872_v55 = vpop.f32.mrf.mxu0 }
 0x357   : > { %v2956_v63 = vadd.f32 %v2872_v55, %v14312_v54  ;;  %v3142_v47 = vpop.f32.mrf.mxu1 }
 0x358   : > { %v11543_v21 = vpop.f32.mrf.mxu0 }
 0x359   : > { %v14420_v27 = vadd.f32 %v3142_v47, %v2956_v63  ;;  %v11603_v31 = vpop.f32.mrf.mxu1 }
 0x35a   : > { %v2875_v37 = vpop.f32.mrf.mxu0 }
 0x35b   : > { %v2957_v9 = vadd.f32 %v2875_v37, %v14315_v16  ;;  %v3145_v24 = vpop.f32.mrf.mxu1 }
 0x35c   : > { %v11544_v50 = vpop.f32.mrf.mxu0 }
 0x35d   : > { %v14423_v41 = vadd.f32 %v3145_v24, %v2957_v9  ;;  %v11604_v51 = vpop.f32.mrf.mxu1 }
 0x35e   : > { %v2880_v13 = vpop.f32.mrf.mxu0 }
 0x35f   : > { %v2958_v62 = vadd.f32 %v2880_v13, %v14321_v52  ;;  %v3150_v26 = vpop.f32.mrf.mxu1 }
 0x360   : > { %v11547_v33 = vpop.f32.mrf.mxu0 }
 0x361   : > { %v14426_v58 = vadd.f32 %v3150_v26, %v2958_v62  ;;  %v11607_v54 = vpop.f32.mrf.mxu1 }
 0x362   : > { %v2883_v60 = vpop.f32.mrf.mxu0 }
 0x363   : > { %v2959_v2 = vadd.f32 %v2883_v60, %v14324_v0  ;;  %v3153_v3 = vpop.f32.mrf.mxu1 }
 0x364   : > { %v11548_v61 = vpop.f32.mrf.mxu0 }
 0x365   : > { %v14429_v43 = vadd.f32 %v3153_v3, %v2959_v2  ;;  %v11608_v16 = vpop.f32.mrf.mxu1 }
 0x366   : > { %v2888_v1 = vpop.f32.mrf.mxu0 }
 0x367   : > { %v2960_v48 = vadd.f32 %v2888_v1, %v14330_v15  ;;  %v3158_v44 = vpop.f32.mrf.mxu1 }
 0x368   : > { %v11551_v42 = vpop.f32.mrf.mxu0 }
 0x369   : > { %v14432_v14 = vadd.f32 %v3158_v44, %v2960_v48  ;;  %v11611_v52 = vpop.f32.mrf.mxu1 }
 0x36a   : > { %v2891_v59 = vpop.f32.mrf.mxu0 }
 0x36b   : > { %v2961_v56 = vadd.f32 %v2891_v59, %v14333_v22  ;;  %v3161_v34 = vpop.f32.mrf.mxu1 }
 0x36c   : > { %v11552_v36 = vpop.f32.mrf.mxu0 }
 0x36d   : > { %v14435_v20 = vadd.f32 %v3161_v34, %v2961_v56  ;;  %v11612_v0 = vpop.f32.mrf.mxu1 }
 0x36e   : > { %v2896_v38 = vpop.f32.mrf.mxu0 }
 0x36f   : > { %v2962_v32 = vadd.f32 %v2896_v38, %v14339_v5  ;;  %v3166_v53 = vpop.f32.mrf.mxu1 }
 0x370   : > { %v11555_v7 = vpop.f32.mrf.mxu0 }
 0x371   : > { %v14438_v19 = vadd.f32 %v3166_v53, %v2962_v32  ;;  %v11615_v15 = vpop.f32.mrf.mxu1 }
 0x372   : > { %v2899_v49 = vpop.f32.mrf.mxu0 }
 0x373   : > { %v2963_v55 = vadd.f32 %v2899_v49, %v14342_v12  ;;  %v3169_v63 = vpop.f32.mrf.mxu1 }
 0x374   : > { %v11556_v47 = vpop.f32.mrf.mxu0 }
 0x375   : > { %v14441_v21 = vadd.f32 %v3169_v63, %v2963_v55  ;;  %v11616_v22 = vpop.f32.mrf.mxu1 }
 0x376   : > { %v2904_v31 = vpop.f32.mrf.mxu0 }
 0x377   : > { %v2964_v37 = vadd.f32 %v2904_v31, %v14348_v11  ;;  %v3174_v9 = vpop.f32.mrf.mxu1 }
 0x378   : > { %v11559_v24 = vpop.f32.mrf.mxu0 }
 0x379   : > { %v14444_v50 = vadd.f32 %v3174_v9, %v2964_v37  ;;  %v11619_v5 = vpop.f32.mrf.mxu1 }
 0x37a   : > { %v2907_v51 = vpop.f32.mrf.mxu0 }
 0x37b   : > { %v2965_v13 = vadd.f32 %v2907_v51, %v14351_v57  ;;  %v3177_v62 = vpop.f32.mrf.mxu1 }
 0x37c   : > { %v11560_v26 = vpop.f32.mrf.mxu0 }
 0x37d   : > { %v14447_v33 = vadd.f32 %v3177_v62, %v2965_v13  ;;  %v11620_v12 = vpop.f32.mrf.mxu1 }
 0x37e   : > { %v2912_v54 = vpop.f32.mrf.mxu0 }
 0x37f   : > { %v2966_v60 = vadd.f32 %v2912_v54, %v14357_v23  ;;  %v3182_v2 = vpop.f32.mrf.mxu1 }
 0x380   : > { %v11563_v3 = vpop.f32.mrf.mxu0 }
 0x381   : > { %v14450_v61 = vadd.f32 %v3182_v2, %v2966_v60  ;;  %v11623_v11 = vpop.f32.mrf.mxu1 }
 0x382   : > { %v2915_v16 = vpop.f32.mrf.mxu0 }
 0x383   : > { %v2967_v1 = vadd.f32 %v2915_v16, %v14360_v29  ;;  %v3185_v48 = vpop.f32.mrf.mxu1 }
 0x384   : > { %v11564_v44 = vpop.f32.mrf.mxu0 }
 0x385   : > { %v14453_v42 = vadd.f32 %v3185_v48, %v2967_v1  ;;  %v11624_v57 = vpop.f32.mrf.mxu1 }
 0x386   : > { %v2920_v52 = vpop.f32.mrf.mxu0 }
 0x387   : > { %v2968_v59 = vadd.f32 %v2920_v52, %v14366_v6  ;;  %v3190_v56 = vpop.f32.mrf.mxu1 }
 0x388   : > { %v11567_v34 = vpop.f32.mrf.mxu0 }
 0x389   : > { %v14456_v36 = vadd.f32 %v3190_v56, %v2968_v59  ;;  %v11627_v23 = vpop.f32.mrf.mxu1 }
 0x38a   : > { %v2923_v0 = vpop.f32.mrf.mxu0 }
 0x38b   : > { %v2969_v38 = vadd.f32 %v2923_v0, %v14369_v8  ;;  %v3193_v32 = vpop.f32.mrf.mxu1 }
 0x38c   : > { %v11568_v53 = vpop.f32.mrf.mxu0 }
 0x38d   : > { %v14459_v7 = vadd.f32 %v3193_v32, %v2969_v38  ;;  %v11628_v29 = vpop.f32.mrf.mxu1 }
 0x38e   : > { %v2928_v15 = vpop.f32.mrf.mxu0 }
 0x38f   : > { %v2970_v49 = vadd.f32 %v2928_v15, %v14375_v46  ;;  %v3198_v55 = vpop.f32.mrf.mxu1 }
 0x390   : > { %v11571_v63 = vpop.f32.mrf.mxu0 }
 0x391   : > { %v14462_v47 = vadd.f32 %v3198_v55, %v2970_v49  ;;  %v11631_v6 = vpop.f32.mrf.mxu1 }
 0x392   : > { %v2931_v22 = vpop.f32.mrf.mxu0 }
 0x393   : > { %v2971_v31 = vadd.f32 %v2931_v22, %v14378_v18  ;;  %v3201_v37 = vpop.f32.mrf.mxu1  ;;  %v14481_v22 = vpop.permute.xlu0 %3551 }
 0x394   : > { %v11572_v9 = vpop.f32.mrf.mxu0  ;;  %18427 = vst [vmem:[#allocation24_spill] sm:$0xff] %v14481_v22 }
 0x395   : > { %v14465_v24 = vadd.f32 %v3201_v37, %v2971_v31  ;;  %v11632_v8 = vpop.f32.mrf.mxu1  ;;  %v14483_v31 = vpop.permute.xlu1 %3561 }
 0x396   : > { %v2936_v5 = vpop.f32.mrf.mxu0  ;;  %18428 = vst [vmem:[#allocation8_spill] sm:$0xff] %v14483_v31 }
 0x397   : > { %v2972_v51 = vadd.f32 %v2936_v5, %v14384_v4  ;;  %v3206_v13 = vpop.f32.mrf.mxu1  ;;  %v14486_v8 = vpop.permute.xlu0 %3556 }
 0x398   : > { %v11575_v62 = vpop.f32.mrf.mxu0  ;;  %18429 = vst [vmem:[#allocation25_spill] sm:$0xff] %v14486_v8 }
 0x399   : > { %v14468_v26 = vadd.f32 %v3206_v13, %v2972_v51  ;;  %v11635_v46 = vpop.f32.mrf.mxu1  ;;  %v14488_v5 = vpop.permute.xlu1 %3566 }
 0x39a   : > { %v2939_v12 = vpop.f32.mrf.mxu0  ;;  %18430 = vst [vmem:[#allocation28_spill] sm:$0xff] %v14488_v5 }
 0x39b   : > { %v2973_v54 = vadd.f32 %v2939_v12, %v14387_v30  ;;  %v3209_v60 = vpop.f32.mrf.mxu1  ;;  %v14499_v46 = vpop.permute.xlu0 %3571 }
 0x39c   : > { %v11576_v2 = vpop.f32.mrf.mxu0  ;;  %18431 = vst [vmem:[#allocation9_spill] sm:$0xff] %v14499_v46 }
 0x39d   : > { %v14471_v3 = vadd.f32 %v3209_v60, %v2973_v54  ;;  %v11636_v18 = vpop.f32.mrf.mxu1  ;;  %v14504_v54 = vpop.permute.xlu1 %3576 }
 0x39e   : > { %v2944_v11 = vpop.f32.mrf.mxu0  ;;  %18432 = vst [vmem:[#allocation26_spill] sm:$0xff] %v14504_v54 }
 0x39f   : > { %v2974_v16 = vadd.f32 %v2944_v11, %v14393_v17  ;;  %v3214_v1 = vpop.f32.mrf.mxu1 }
 0x3a0   : > { %v11579_v48 = vpop.f32.mrf.mxu0 }
 0x3a1   : > { %v14474_v44 = vadd.f32 %v3214_v1, %v2974_v16  ;;  %v11639_v4 = vpop.f32.mrf.mxu1 }
 0x3a2   : > { %v2947_v57 = vpop.f32.mrf.mxu0 }
 0x3a3   : > { %v3217_v52 = vpop.f32.mrf.mxu1  ;;  %v14519_v57 = vpop.permute.xlu0 %3581 }
 0x3a4   : > { %v11580_v59 = vpop.f32.mrf.mxu0  ;;  %18433 = vst [vmem:[#allocation10_spill] sm:$0xff] %v14519_v57 }
 0x3a5   : > { %v11640_v56 = vpop.f32.mrf.mxu1 }
 0x3a6   : > { %v3388_v34 = vpop.f32.mrf.mxu0 }
 0x3a7   : > { %v3490_v30 = vadd.f32 %v3388_v34, %v14399_v10 }
 0x3a8   : > { %v11651_v23 = vpop.f32.mrf.mxu0 }
 0x3aa   : > { %v3391_v0 = vpop.f32.mrf.mxu0 }
 0x3ab   : > { %v3491_v38 = vadd.f32 %v3391_v0, %v14402_v40  ;;  %v14529_v0 = vpop.permute.xlu1 %3586 }
 0x3ac   : > { %v11652_v32 = vpop.f32.mrf.mxu0  ;;  %18434 = vst [vmem:[#allocation11_spill] sm:$0xff] %v14529_v0 }
 0x3ae   : > { %v3396_v53 = vpop.f32.mrf.mxu0 }
 0x3af   : > { %v3492_v17 = vadd.f32 %v3396_v53, %v14408_v39 }
 0x3b0   : > { %v11655_v29 = vpop.f32.mrf.mxu0 }
 0x3b2   : > { %v3399_v15 = vpop.f32.mrf.mxu0 }
 0x3b3   : > { %v3493_v49 = vadd.f32 %v3399_v15, %v14411_v45  ;;  %v14491_v45 = vld [vmem:[%s13195_s15] ss:$0 sm:$0xff] }
 0x3b4   : > { %v11656_v55 = vpop.f32.mrf.mxu0  ;;  %v14497_v62 = vadd.f32 %v14491_v45, %v3490_v30 }
 0x3b5   : > { %v14509_v18 = vadd.f32 %v14491_v45, %v3493_v49 }
 0x3b6   : > { %v3404_v63 = vpop.f32.mrf.mxu0  ;;  %v3674_v11 = vmul.f32 %v14481_v22, %v14497_v62 }
 0x3b7   : > { %v3494_v6 = vadd.f32 %v3404_v63, %v14414_v25  ;;  %v14494_v25 = vadd.f32 %v14491_v45, %v3491_v38  ;;  %v3677_v56 = vmul.f32 %v14488_v5, %v14509_v18 }
 0x3b8   : > { %v11659_v10 = vpop.f32.mrf.mxu0  ;;  %v3699_v23 = vsel %vm18365_vm0, %v3674_v11, 0.0 }
 0x3b9   : > { %v3675_v2 = vmul.f32 %v14486_v8, %v14494_v25  ;;  %v14516_v48 = vadd.f32 %v14491_v45, %v3494_v6  ;;  %v3704_v49 = vsel %vm18365_vm0, %v3677_v56, 0.0  ;;  %v14545_v10 = vpop.permute.xlu0 %3591 }
 0x3ba   : > { %v3407_v37 = vpop.f32.mrf.mxu0  ;;  %18435 = vst [vmem:[#allocation27_spill] sm:$0xff] %v14545_v10 }
 0x3bb   : > { %v3495_v40 = vadd.f32 %v3407_v37, %v14417_v28  ;;  %v14502_v28 = vadd.f32 %v14491_v45, %v3492_v17  ;;  %v3700_v59 = vsel %vm18365_vm0, %v3675_v2, 0.0 }
 0x3bc   : > { %v11660_v9 = vpop.f32.mrf.mxu0  ;;  %v3701_v29 = vadd.f32 %v3700_v59, %v3699_v23 }
 0x3bd   : > { %v3676_v1 = vmul.f32 %v14483_v31, %v14502_v28  ;;  %v14525_v34 = vadd.f32 %v14491_v45, %v3495_v40  ;;  %v14569_v56 = vpop.permute.xlu0 %3601 }
 0x3be   : > { %v3412_v39 = vpop.f32.mrf.mxu0  ;;  %18437 = vst [vmem:[#allocation29_spill] sm:$0xff] %v14569_v56 }
 0x3bf   : > { %v3496_v4 = vadd.f32 %v3412_v39, %v14420_v27  ;;  %v3678_v27 = vmul.f32 %v14499_v46, %v14516_v48  ;;  %v3702_v32 = vsel %vm18365_vm0, %v3676_v1, 0.0 }
 0x3c0   : > { %v11663_v51 = vpop.f32.mrf.mxu0  ;;  %v3703_v6 = vadd.f32 %v3702_v32, %v3701_v29 }
 0x3c1   : > { %v14535_v53 = vadd.f32 %v14491_v45, %v3496_v4  ;;  %v3706_v40 = vsel %vm18365_vm0, %v3678_v27, 0.0 }
 0x3c2   : > { %v3415_v13 = vpop.f32.mrf.mxu0  ;;  %v3705_v51 = vadd.f32 %v3704_v49, %v3703_v6 }
 0x3c3   : > { %v3497_v30 = vadd.f32 %v3415_v13, %v14423_v41  ;;  %v3679_v41 = vmul.f32 %v14504_v54, %v14525_v34  ;;  %v14554_v13 = vpop.permute.xlu1 %3596 }
 0x3c4   : > { %v11664_v12 = vpop.f32.mrf.mxu0  ;;  %18436 = vst [vmem:[#allocation12_spill] sm:$0xff] %v14554_v13 }
 0x3c5   : > { %v14542_v55 = vadd.f32 %v14491_v45, %v3497_v30 }
 0x3c6   : > { %v3420_v60 = vpop.f32.mrf.mxu0 }
 0x3c7   : > { %v3498_v17 = vadd.f32 %v3420_v60, %v14426_v58  ;;  %v3680_v58 = vmul.f32 %v14519_v57, %v14535_v53  ;;  %v3681_v60 = vmul.f32 %v14529_v0, %v14542_v55 }
 0x3c8   : > { %v11667_v16 = vpop.f32.mrf.mxu0 }
 0x3c9   : > { %v14551_v9 = vadd.f32 %v14491_v45, %v3498_v17  ;;  %v3707_v16 = vadd.f32 %v3706_v40, %v3705_v51  ;;  %v3710_v4 = vsel %vm18365_vm0, %v3680_v58, 0.0  ;;  %v3712_v23 = vsel %vm18365_vm0, %v3681_v60, 0.0  ;;  %v14578_v17 = vpop.permute.xlu1 %3606  ;;  %v14590_v58 = vpop.permute.xlu0 %3611 }
 0x3ca   : > { %v3423_v52 = vpop.f32.mrf.mxu0  ;;  %18438 = vst [vmem:[#allocation13_spill] sm:$0xff] %v14578_v17  ;;  %18439 = vst [vmem:[#allocation30_spill] sm:$0xff] %v14590_v58 }
 0x3cb   : > { %v3499_v63 = vadd.f32 %v3423_v52, %v14429_v43  ;;  %v3708_v43 = vsel %vm18365_vm0, %v3679_v41, 0.0 }
 0x3cc   : > { %v11668_v38 = vpop.f32.mrf.mxu0  ;;  %v3709_v59 = vadd.f32 %v3708_v43, %v3707_v16 }
 0x3cd   : > { %v14560_v2 = vadd.f32 %v14491_v45, %v3499_v63 }
 0x3ce   : > { %v3428_v15 = vpop.f32.mrf.mxu0  ;;  %v3711_v32 = vadd.f32 %v3710_v4, %v3709_v59 }
 0x3cf   : > { %v3500_v39 = vadd.f32 %v3428_v15, %v14432_v14  ;;  %v3682_v14 = vmul.f32 %v14545_v10, %v14551_v9  ;;  %v3683_v38 = vmul.f32 %v14554_v13, %v14560_v2 }
 0x3d0   : > { %v11671_v37 = vpop.f32.mrf.mxu0  ;;  %v3713_v63 = vadd.f32 %v3712_v23, %v3711_v32 }
 0x3d1   : > { %v14567_v52 = vadd.f32 %v14491_v45, %v3500_v39  ;;  %v3714_v15 = vsel %vm18365_vm0, %v3682_v14, 0.0  ;;  %v3716_v37 = vsel %vm18365_vm0, %v3683_v38, 0.0 }
 0x3d2   : > { %v3431_v12 = vpop.f32.mrf.mxu0  ;;  %v3715_v39 = vadd.f32 %v3714_v15, %v3713_v63 }
 0x3d3   : > { %v3501_v11 = vadd.f32 %v3431_v12, %v14435_v20  ;;  %v3684_v49 = vmul.f32 %v14569_v56, %v14567_v52 }
 0x3d4   : > { %v11672_v1 = vpop.f32.mrf.mxu0  ;;  %v3717_v16 = vadd.f32 %v3716_v37, %v3715_v39 }
 0x3d5   : > { %v14575_v20 = vadd.f32 %v14491_v45, %v3501_v11  ;;  %v3718_v12 = vsel %vm18365_vm0, %v3684_v49, 0.0  ;;  %v14598_v11 = vpop.permute.xlu1 %3616 }
 0x3d6   : > { %v3436_v30 = vpop.f32.mrf.mxu0  ;;  %18440 = vst [vmem:[#allocation14_spill] sm:$0xff] %v14598_v11  ;;  %v3719_v59 = vadd.f32 %v3718_v12, %v3717_v16 }
 0x3d7   : > { %v3502_v27 = vadd.f32 %v3436_v30, %v14438_v19  ;;  %v3685_v40 = vmul.f32 %v14578_v17, %v14575_v20 }
 0x3d8   : > { %v11675_v29 = vpop.f32.mrf.mxu0 }
 0x3d9   : > { %v14584_v41 = vadd.f32 %v14491_v45, %v3502_v27  ;;  %v3720_v4 = vsel %vm18365_vm0, %v3685_v40, 0.0  ;;  %v14608_v27 = vpop.permute.xlu0 %3621 }
 0x3da   : > { %v3439_v6 = vpop.f32.mrf.mxu0  ;;  %18441 = vst [vmem:[#allocation15_spill] sm:$0xff] %v14608_v27  ;;  %v3721_v32 = vadd.f32 %v3720_v4, %v3719_v59 }
 0x3db   : > { %v3503_v19 = vadd.f32 %v3439_v6, %v14441_v21  ;;  %v3686_v43 = vmul.f32 %v14590_v58, %v14584_v41 }
 0x3dc   : > { %v11676_v51 = vpop.f32.mrf.mxu0 }
 0x3dd   : > { %v14596_v60 = vadd.f32 %v14491_v45, %v3503_v19  ;;  %v3722_v23 = vsel %vm18365_vm0, %v3686_v43, 0.0  ;;  %v14618_v19 = vpop.permute.xlu1 %3626 }
 0x3de   : > { %v3444_v1 = vpop.f32.mrf.mxu0  ;;  %v3723_v6 = vadd.f32 %v3722_v23, %v3721_v32  ;;  %18442 = vst [vmem:[#allocation16_spill] sm:$0xff] %v14618_v19 }
 0x3df   : > { %v3687_v21 = vmul.f32 %v14598_v11, %v14596_v60  ;;  %v3504_v14 = vadd.f32 %v3444_v1, %v14444_v50 }
 0x3e0   : > { %v11679_v30 = vpop.f32.mrf.mxu0 }
 0x3e1   : > { %v14606_v38 = vadd.f32 %v14491_v45, %v3504_v14  ;;  %v3724_v15 = vsel %vm18365_vm0, %v3687_v21, 0.0  ;;  %v14627_v21 = vpop.permute.xlu0 %3631 }
 0x3e2   : > { %v3447_v29 = vpop.f32.mrf.mxu0  ;;  %v3725_v39 = vadd.f32 %v3724_v15, %v3723_v6  ;;  %18443 = vst [vmem:[#allocation31_spill] sm:$0xff] %v14627_v21  ;;  %v14636_v15 = vpop.permute.xlu1 %3636 }
 0x3e3   : > { %v3688_v49 = vmul.f32 %v14608_v27, %v14606_v38  ;;  %v3505_v63 = vadd.f32 %v3447_v29, %v14447_v33  ;;  %18444 = vst [vmem:[#allocation17_spill] sm:$0xff] %v14636_v15 }
 0x3e4   : > { %v11680_v50 = vpop.f32.mrf.mxu0 }
 0x3e5   : > { %v3726_v37 = vsel %vm18365_vm0, %v3688_v49, 0.0  ;;  %v14616_v40 = vadd.f32 %v14491_v45, %v3505_v63 }
 0x3e6   : > { %v3452_v51 = vpop.f32.mrf.mxu0  ;;  %v3727_v16 = vadd.f32 %v3726_v37, %v3725_v39 }
 0x3e7   : > { %v3689_v12 = vmul.f32 %v14618_v19, %v14616_v40  ;;  %v3506_v43 = vadd.f32 %v3452_v51, %v14450_v61  ;;  %v14645_v51 = vpop.permute.xlu0 %3641 }
 0x3e8   : > { %v11683_v1 = vpop.f32.mrf.mxu0  ;;  %18445 = vst [vmem:[#allocation18_spill] sm:$0xff] %v14645_v51 }
 0x3e9   : > { %v3728_v33 = vsel %vm18365_vm0, %v3689_v12, 0.0  ;;  %v14625_v4 = vadd.f32 %v14491_v45, %v3506_v43 }
 0x3ea   : > { %v3729_v14 = vadd.f32 %v3728_v33, %v3727_v16  ;;  %v3455_v59 = vpop.f32.mrf.mxu0 }
 0x3eb   : > { %v3690_v30 = vmul.f32 %v14627_v21, %v14625_v4  ;;  %v3507_v23 = vadd.f32 %v3455_v59, %v14453_v42  ;;  %v14654_v59 = vpop.permute.xlu1 %3646 }
 0x3ec   : > { %v11684_v32 = vpop.f32.mrf.mxu0  ;;  %18446 = vst [vmem:[#allocation19_spill] sm:$0xff] %v14654_v59 }
 0x3ed   : > { %v3730_v29 = vsel %vm18365_vm0, %v3690_v30, 0.0  ;;  %v14634_v61 = vadd.f32 %v14491_v45, %v3507_v23 }
 0x3ee   : > { %v3731_v49 = vadd.f32 %v3730_v29, %v3729_v14  ;;  %v3460_v63 = vpop.f32.mrf.mxu0 }
 0x3ef   : > { %v3691_v6 = vmul.f32 %v14636_v15, %v14634_v61  ;;  %v3508_v50 = vadd.f32 %v3460_v63, %v14456_v36 }
 0x3f0   : > { %v11687_v37 = vpop.f32.mrf.mxu0 }
 0x3f1   : > { %v3732_v39 = vsel %vm18365_vm0, %v3691_v6, 0.0  ;;  %v14643_v42 = vadd.f32 %v14491_v45, %v3508_v50  ;;  %v14663_v6 = vpop.permute.xlu0 %3651 }
 0x3f2   : > { %v3733_v12 = vadd.f32 %v3732_v39, %v3731_v49  ;;  %v3463_v43 = vpop.f32.mrf.mxu0  ;;  %18447 = vst [vmem:[#allocation20_spill] sm:$0xff] %v14663_v6 }
 0x3f3   : > { %v3692_v16 = vmul.f32 %v14645_v51, %v14643_v42  ;;  %v3509_v1 = vadd.f32 %v3463_v43, %v14459_v7 }
 0x3f4   : > { %v11688_v33 = vpop.f32.mrf.mxu0 }
 0x3f5   : > { %v3734_v14 = vsel %vm18365_vm0, %v3692_v16, 0.0  ;;  %v14652_v36 = vadd.f32 %v14491_v45, %v3509_v1  ;;  %v14672_v1 = vpop.permute.xlu1 %3656 }
 0x3f6   : > { %v3735_v30 = vadd.f32 %v3734_v14, %v3733_v12  ;;  %v3468_v23 = vpop.f32.mrf.mxu0  ;;  %18448 = vst [vmem:[#allocation21_spill] sm:$0xff] %v14672_v1 }
 0x3f7   : > { %v3693_v32 = vmul.f32 %v14654_v59, %v14652_v36  ;;  %v3510_v29 = vadd.f32 %v3468_v23, %v14462_v47 }
 0x3f8   : > { %v11691_v49 = vpop.f32.mrf.mxu0 }
 0x3f9   : > { %v3736_v63 = vsel %vm18365_vm0, %v3693_v32, 0.0  ;;  %v14661_v7 = vadd.f32 %v14491_v45, %v3510_v29  ;;  %v14681_v49 = vpop.permute.xlu0 %3661 }
 0x3fa   : > { %v3737_v50 = vadd.f32 %v3736_v63, %v3735_v30  ;;  %v3471_v37 = vpop.f32.mrf.mxu0  ;;  %18449 = vst [vmem:[#allocation32_spill] sm:$0xff] %v14681_v49 }
 0x3fb   : > { %v3694_v39 = vmul.f32 %v14663_v6, %v14661_v7  ;;  %v3511_v12 = vadd.f32 %v3471_v37, %v14465_v24 }
 0x3fc   : > { %v11692_v43 = vpop.f32.mrf.mxu0 }
 0x3fd   : > { %v3738_v16 = vsel %vm18365_vm0, %v3694_v39, 0.0  ;;  %v14670_v47 = vadd.f32 %v14491_v45, %v3511_v12 }
 0x3fe   : > { %v3739_v33 = vadd.f32 %v3738_v16, %v3737_v50  ;;  %v3476_v14 = vpop.f32.mrf.mxu0  ;;  %v14690_v16 = vpop.permute.xlu1 %3666 }
 0x3ff   : > { %v3695_v23 = vmul.f32 %v14672_v1, %v14670_v47  ;;  %v3512_v30 = vadd.f32 %v3476_v14, %v14468_v26  ;;  %18450 = vst [vmem:[#allocation22_spill] sm:$0xff] %v14690_v16 }
 0x400   : > { %v11695_v32 = vpop.f32.mrf.mxu0 }
 0x401   : > { %v3740_v29 = vsel %vm18365_vm0, %v3695_v23, 0.0  ;;  %v14679_v24 = vadd.f32 %v14491_v45, %v3512_v30 }
 0x402   : > { %v3741_v63 = vadd.f32 %v3740_v29, %v3739_v33  ;;  %v3479_v37 = vpop.f32.mrf.mxu0 }
 0x403   : > { %v3696_v39 = vmul.f32 %v14681_v49, %v14679_v24  ;;  %v3513_v50 = vadd.f32 %v3479_v37, %v14471_v3  ;;  %v14699_v37 = vpop.permute.xlu0 %3671 }
 0x404   : > { %v11696_v12 = vpop.f32.mrf.mxu0  ;;  %18451 = vst [vmem:[#allocation23_spill] sm:$0xff] %v14699_v37 }
 0x405   : > { %v3742_v43 = vsel %vm18365_vm0, %v3696_v39, 0.0  ;;  %v14688_v26 = vadd.f32 %v14491_v45, %v3513_v50 }
 0x406   : > { %v3743_v14 = vadd.f32 %v3742_v43, %v3741_v63  ;;  %v3484_v23 = vpop.f32.mrf.mxu0 }
 0x407   : > { %v3697_v33 = vmul.f32 %v14690_v16, %v14688_v26  ;;  %v3514_v30 = vadd.f32 %v3484_v23, %v14474_v44 }
 0x408   : > { %v11699_v32 = vpop.f32.mrf.mxu0 }
 0x409   : > { %v3744_v3 = vsel %vm18365_vm0, %v3697_v33, 0.0  ;;  %v14697_v29 = vadd.f32 %v14491_v45, %v3514_v30  ;;  %v12882_v33 = vld [vmem:[%s13220_s13 + $0x158] sm:$0xff]   ;;  %v12883_v30 = vld [vmem:[%s13220_s13 + $0x150] sm:$0xff]  }
 0x40a   : > { %v3745_v39 = vadd.f32 %v3744_v3, %v3743_v14  ;;  %v3487_v50 = vpop.f32.mrf.mxu0  ;;  %v12886_v32 = vld [vmem:[%s13220_s13 + $0x138] sm:$0xff]   ;;  %11702 = vmatpush3.bf16.msra.mxu1 %v12882_v33  ;;  %v12887_v3 = vld [vmem:[%s13220_s13 + $0x130] sm:$0xff]  }
 0x40b   : > { %v3698_v63 = vmul.f32 %v14699_v37, %v14697_v29  ;;  %11762 = vmatpush3.bf16.msra.mxu0 %v12886_v32  ;;  %11703 = vmatprep.subr.bf16.mxu1 %v18401_v35 }
 0x40c   : > { %v11700_v12 = vpop.f32.mrf.mxu0  ;;  %11763 = vmatprep.subr.bf16.mxu0 %v18401_v35 }
 0x40d   : > { %v3746_v43 = vsel %vm18365_vm0, %v3698_v63, 0.0  ;;  %v12888_v63 = vld [vmem:[%s13220_s13 + $0x128] sm:$0xff]  }
 0x40e   : > { %v3747_v16 = vadd.f32 %v3746_v43, %v3745_v39  ;;  %11704 = vmatpush3.bf16.msra.mxu1 %v12883_v30  ;;  %v12884_v39 = vld [vmem:[%s13220_s13 + $0x148] sm:$0xff]   ;;  %v12885_v43 = vld [vmem:[%s13220_s13 + $0x140] sm:$0xff]  }
 0x40f   : > { %11764 = vmatpush3.bf16.msra.mxu0 %v12887_v3  ;;  %11705 = vmatprep.subr.bf16.mxu1 %v18401_v35 }
 0x410   : > { %v3748_v44 = vrot.slane %v3747_v16, 4  ;;  %11765 = vmatprep.subr.bf16.mxu0 %v18401_v35 }
 0x412   : > { %v3749_v23 = vadd.f32 %v3748_v44, %v3747_v16  ;;  %11706 = vmatpush3.bf16.msra.mxu1 %v12884_v39  ;;  %v12889_v44 = vld [vmem:[%s13220_s13 + $0x120] sm:$0xff]  }
 0x413   : > { %11766 = vmatpush3.bf16.msra.mxu0 %v12888_v63  ;;  %11707 = vmatprep.subr.bf16.mxu1 %v18401_v35 }
 0x414   : > { %v3750_v45 = vrot.slane %v3749_v23, 2  ;;  %11767 = vmatprep.subr.bf16.mxu0 %v18401_v35 }
 0x416   : > { %v3751_v14 = vadd.f32 %v3750_v45, %v3749_v23  ;;  %11708 = vmatpush3.bf16.msra.mxu1 %v12885_v43 }
 0x417   : > { %11768 = vmatpush3.bf16.msra.mxu0 %v12889_v44  ;;  %11821 = vmatprep.subr.bf16.mxu1 %v18401_v35 }
 0x418   : > { %v3752_v50 = vrot.slane %v3751_v14, 1  ;;  %11881 = vmatprep.subr.bf16.mxu0 %v18401_v35 }
 0x41a   : > { %v3753_v16 = vadd.f32 %v3752_v50, %v3751_v14 }
 0x41c   : > { %v14714_v12 = vmul.f32 0.0078125, %v3753_v16 }
 0x41e   : > { %v3755_v63 = vsub.f32 %v14497_v62, %v14714_v12  ;;  %v3756_v44 = vsub.f32 %v14494_v25, %v14714_v12  ;;  %v3757_v50 = vsub.f32 %v14502_v28, %v14714_v12  ;;  %v3758_v39 = vsub.f32 %v14509_v18, %v14714_v12 }
 0x41f   : > { %v3759_v62 = vsub.f32 %v14516_v48, %v14714_v12  ;;  %v3760_v28 = vsub.f32 %v14525_v34, %v14714_v12  ;;  %v3762_v34 = vsub.f32 %v14542_v55, %v14714_v12 }
 0x420   : > { %v14751_v16 = vmul.f32 %v3755_v63, %v14481_v22  ;;  %v14756_v3 = vmul.f32 %v3756_v44, %v14486_v8  ;;  %v14761_v43 = vmul.f32 %v3757_v50, %v14483_v31  ;;  %v14768_v63 = vmul.f32 %v3758_v39, %v14488_v5 }
 0x421   : > { %v3761_v44 = vsub.f32 %v14535_v53, %v14714_v12  ;;  %v14775_v48 = vmul.f32 %v3759_v62, %v14499_v46  ;;  %v14783_v39 = vmul.f32 %v3760_v28, %v14504_v54  ;;  %v3763_v62 = vsub.f32 %v14551_v9, %v14714_v12 }
 0x422   : > { %v3805_v25 = vmul.f32 %v14751_v16, %v14751_v16  ;;  %v3806_v18 = vmul.f32 %v14756_v3, %v14756_v3  ;;  %v3807_v50 = vmul.f32 %v14761_v43, %v14761_v43  ;;  %v3808_v14 = vmul.f32 %v14768_v63, %v14768_v63 }
 0x423   : > { %v14791_v32 = vmul.f32 %v3761_v44, %v14519_v57  ;;  %v3764_v28 = vsub.f32 %v14560_v2, %v14714_v12  ;;  %v14799_v23 = vmul.f32 %v3762_v34, %v14529_v0  ;;  %v14807_v44 = vmul.f32 %v3763_v62, %v14545_v10 }
 0x424   : > { %v3830_v30 = vsel %vm18365_vm0, %v3805_v25, 0.0  ;;  %v3831_v45 = vsel %vm18365_vm0, %v3806_v18, 0.0  ;;  %v3809_v25 = vmul.f32 %v14775_v48, %v14775_v48  ;;  %v3833_v55 = vsel %vm18365_vm0, %v3807_v50, 0.0 }
 0x425   : > { %v3832_v53 = vadd.f32 %v3831_v45, %v3830_v30  ;;  %v3810_v45 = vmul.f32 %v14783_v39, %v14783_v39  ;;  %v3835_v9 = vsel %vm18365_vm0, %v3808_v14, 0.0  ;;  %v3765_v18 = vsub.f32 %v14567_v52, %v14714_v12 }
 0x426   : > { %v3811_v50 = vmul.f32 %v14791_v32, %v14791_v32  ;;  %v3837_v2 = vsel %vm18365_vm0, %v3809_v25, 0.0  ;;  %v3766_v34 = vsub.f32 %v14575_v20, %v14714_v12  ;;  %v3767_v62 = vsub.f32 %v14584_v41, %v14714_v12 }
 0x427   : > { %v3834_v33 = vadd.f32 %v3833_v55, %v3832_v53  ;;  %v14815_v55 = vmul.f32 %v3764_v28, %v14554_v13  ;;  %v3839_v52 = vsel %vm18365_vm0, %v3810_v45, 0.0  ;;  %v3813_v25 = vmul.f32 %v14807_v44, %v14807_v44 }
 0x428   : > { %v3841_v20 = vsel %vm18365_vm0, %v3811_v50, 0.0  ;;  %v3768_v28 = vsub.f32 %v14596_v60, %v14714_v12 }
 0x429   : > { %v3836_v30 = vadd.f32 %v3835_v9, %v3834_v33  ;;  %v3812_v33 = vmul.f32 %v14799_v23, %v14799_v23  ;;  %v14823_v9 = vmul.f32 %v3765_v18, %v14569_v56  ;;  %v3814_v45 = vmul.f32 %v14815_v55, %v14815_v55 }
 0x42a   : > { %v14837_v18 = vmul.f32 %v3767_v62, %v14590_v58  ;;  %v3845_v50 = vsel %vm18365_vm0, %v3813_v25, 0.0  ;;  %v14843_v60 = vmul.f32 %v3768_v28, %v14598_v11  ;;  %v18453_v28 = vsub.f32 %v14616_v40, %v14714_v12 }
 0x42b   : > { %v3838_v53 = vadd.f32 %v3837_v2, %v3836_v30  ;;  %v14831_v2 = vmul.f32 %v3766_v34, %v14578_v17  ;;  %v3843_v41 = vsel %vm18365_vm0, %v3812_v33, 0.0  ;;  %v18452_v33 = vsub.f32 %v14606_v38, %v14714_v12 }
 0x42d   : > { %v3840_v14 = vadd.f32 %v3839_v52, %v3838_v53  ;;  %v3815_v52 = vmul.f32 %v14823_v9, %v14823_v9  ;;  %v3816_v34 = vmul.f32 %v14831_v2, %v14831_v2  ;;  %v14852_v62 = vmul.f32 %v18452_v33, %v14608_v27 }
 0x42e   : > { %v18455_v33 = vsub.f32 %v14634_v61, %v14714_v12 }
 0x42f   : > { %v3842_v30 = vadd.f32 %v3841_v20, %v3840_v14  ;;  %v3847_v20 = vsel %vm18365_vm0, %v3814_v45, 0.0  ;;  %v3849_v25 = vsel %vm18365_vm0, %v3815_v52, 0.0  ;;  %v3818_v45 = vmul.f32 %v14843_v60, %v14843_v60 }
 0x431   : > { %v3844_v53 = vadd.f32 %v3843_v41, %v3842_v30  ;;  %v3817_v30 = vmul.f32 %v14837_v18, %v14837_v18 }
 0x433   : > { %v3846_v14 = vadd.f32 %v3845_v50, %v3844_v53  ;;  %v14861_v53 = vmul.f32 %v18453_v28, %v14618_v19  ;;  %v3851_v50 = vsel %vm18365_vm0, %v3816_v34, 0.0  ;;  %v3853_v52 = vsel %vm18365_vm0, %v3817_v30, 0.0 }
 0x434   : > { %v18456_v28 = vsub.f32 %v14643_v42, %v14714_v12  ;;  %v18458_v42 = vsub.f32 %v14661_v7, %v14714_v12  ;;  %v18460_v7 = vsub.f32 %v14679_v24, %v14714_v12 }
 0x435   : > { %v3848_v35 = vadd.f32 %v3847_v20, %v3846_v14  ;;  %v18454_v14 = vsub.f32 %v14625_v4, %v14714_v12  ;;  %v3820_v34 = vmul.f32 %v14861_v53, %v14861_v53 }
 0x437   : > { %v3850_v41 = vadd.f32 %v3849_v25, %v3848_v35  ;;  %v14870_v20 = vmul.f32 %v18454_v14, %v14627_v21  ;;  %v3819_v35 = vmul.f32 %v14852_v62, %v14852_v62  ;;  %v14879_v25 = vmul.f32 %v18455_v33, %v14636_v15 }
 0x438   : > { %v18457_v14 = vsub.f32 %v14652_v36, %v14714_v12  ;;  %v18459_v36 = vsub.f32 %v14670_v47, %v14714_v12 }
 0x439   : > { %v3852_v38 = vadd.f32 %v3851_v50, %v3850_v41  ;;  %v3855_v41 = vsel %vm18365_vm0, %v3818_v45, 0.0  ;;  %v14888_v50 = vmul.f32 %v18456_v28, %v14645_v51  ;;  %v3821_v30 = vmul.f32 %v14870_v20, %v14870_v20 }
 0x43a   : > { %v3822_v45 = vmul.f32 %v14879_v25, %v14879_v25 }
 0x43b   : > { %v3854_v40 = vadd.f32 %v3853_v52, %v3852_v38  ;;  %v3857_v38 = vsel %vm18365_vm0, %v3819_v35, 0.0  ;;  %v3799_v52 = vmul.f32 %v18457_v14, %v14654_v59  ;;  %v3823_v35 = vmul.f32 %v14888_v50, %v14888_v50 }
 0x43d   : > { %v3856_v4 = vadd.f32 %v3855_v41, %v3854_v40  ;;  %v3859_v40 = vsel %vm18365_vm0, %v3820_v34, 0.0  ;;  %v3800_v41 = vmul.f32 %v18458_v42, %v14663_v6  ;;  %v3824_v14 = vmul.f32 %v3799_v52, %v3799_v52 }
 0x43e   : > { %v3863_v34 = vsel %vm18365_vm0, %v3822_v45, 0.0  ;;  %v3865_v27 = vsel %vm18365_vm0, %v3823_v35, 0.0  ;;  %v18463_v45 = vsub.f32 %v14697_v29, %v14714_v12 }
 0x43f   : > { %v3858_v61 = vadd.f32 %v3857_v38, %v3856_v4  ;;  %v3861_v4 = vsel %vm18365_vm0, %v3821_v30, 0.0  ;;  %v3801_v38 = vmul.f32 %v18459_v36, %v14672_v1  ;;  %v3825_v42 = vmul.f32 %v3800_v41, %v3800_v41  ;;  %v18461_v30 = vld [vmem:[#allocation22_spill] sm:$0xff] }
 0x440   : > { %v3867_v36 = vsel %vm18365_vm0, %v3824_v14, 0.0 }
 0x441   : > { %v3860_v33 = vadd.f32 %v3859_v40, %v3858_v61  ;;  %v3802_v40 = vmul.f32 %v18460_v7, %v14681_v49  ;;  %v3826_v47 = vmul.f32 %v3801_v38, %v3801_v38 }
 0x443   : > { %v3862_v28 = vadd.f32 %v3861_v4, %v3860_v33  ;;  %v18462_v33 = vsub.f32 %v14688_v26, %v14714_v12  ;;  %v3827_v24 = vmul.f32 %v3802_v40, %v3802_v40 }
 0x445   : > { %v3864_v61 = vadd.f32 %v3863_v34, %v3862_v28  ;;  %v3803_v4 = vmul.f32 %v18462_v33, %v18461_v30  ;;  %v3804_v28 = vmul.f32 %v18463_v45, %v14699_v37  ;;  %v3869_v34 = vsel %vm18365_vm0, %v3825_v42, 0.0 }
 0x446   : > { %v3873_v26 = vsel %vm18365_vm0, %v3827_v24, 0.0 }
 0x447   : > { %v3866_v11 = vadd.f32 %v3865_v27, %v3864_v61  ;;  %v3828_v35 = vmul.f32 %v3803_v4, %v3803_v4  ;;  %v3871_v27 = vsel %vm18365_vm0, %v3826_v47, 0.0  ;;  %v3829_v17 = vmul.f32 %v3804_v28, %v3804_v28 }
 0x449   : > { %v3868_v58 = vadd.f32 %v3867_v36, %v3866_v11  ;;  %v3875_v11 = vsel %vm18365_vm0, %v3828_v35, 0.0  ;;  %v3877_v36 = vsel %vm18365_vm0, %v3829_v17, 0.0 }
 0x44b   : > { %v3870_v7 = vadd.f32 %v3869_v34, %v3868_v58 }
 0x44d   : > { %v3872_v61 = vadd.f32 %v3871_v27, %v3870_v7  ;;  %v14946_v27 = vstv %s1133_s27 }
 0x44e   : > { %18464 = vst [vmem:[#allocation33_spill] sm:$0xff] %v14946_v27 }
 0x44f   : > { %v3874_v33 = vadd.f32 %v3873_v26, %v3872_v61 }
 0x451   : > { %v3876_v14 = vadd.f32 %v3875_v11, %v3874_v33 }
 0x453   : > { %v3878_v29 = vadd.f32 %v3877_v36, %v3876_v14 }
 0x455   : > { %v3879_v12 = vrot.slane %v3878_v29, 4 }
 0x457   : > { %v3880_v45 = vadd.f32 %v3879_v12, %v3878_v29 }
 0x459   : > { %v3881_v56 = vrot.slane %v3880_v45, 2 }
 0x45b   : > { %v3882_v42 = vadd.f32 %v3881_v56, %v3880_v45 }
 0x45d   : > { %v3883_v58 = vrot.slane %v3882_v42, 1 }
 0x45f   : > { %v3884_v34 = vadd.f32 %v3883_v58, %v3882_v42 }
 0x461   : > { %v3885_v47 = vmul.f32 0.0078125, %v3884_v34 }
 0x463   : > { %v3886_v7 = vadd.f32 1e-05, %v3885_v47 }
 0x465   : > { %12918 = vrsqrt.f32 %v3886_v7 }
 0x472   : > { %v14932_v24 = vpop.eup %12918 }
 0x473   : > { %v14936_v35 = vmul.f32 %v14932_v24, %v14751_v16  ;;  %v14940_v17 = vmul.f32 %v14932_v24, %v14791_v32  ;;  %v14944_v56 = vmul.f32 %v14932_v24, %v14799_v23  ;;  %v3896_v61 = vmul.f32 %v14932_v24, %v14807_v44  ;;  %v14957_v32 = vld [vmem:[%s13200_s17] ss:$0 sm:$0xff] }
 0x474   : > { %v3897_v26 = vmul.f32 %v14932_v24, %v14815_v55  ;;  %v3898_v16 = vmul.f32 %v14932_v24, %v14823_v9  ;;  %v3900_v33 = vmul.f32 %v14932_v24, %v14837_v18  ;;  %v3901_v23 = vmul.f32 %v14932_v24, %v14843_v60 }
 0x475   : > { %v3902_v11 = vmul.f32 %v14932_v24, %v14852_v62  ;;  %v3903_v44 = vmul.f32 %v14932_v24, %v14861_v53  ;;  %v3904_v55 = vmul.f32 %v14932_v24, %v14870_v20  ;;  %v3905_v9 = vmul.f32 %v14932_v24, %v14879_v25 }
 0x476   : > { %v3906_v18 = vmul.f32 %v14932_v24, %v14888_v50  ;;  %v3907_v14 = vmul.f32 %v14932_v24, %v3799_v52  ;;  %v3908_v60 = vmul.f32 %v14932_v24, %v3800_v41  ;;  %v3909_v36 = vmul.f32 %v14932_v24, %v3801_v38  ;;  %v14987_v41 = vld [vmem:[%s13225_s16] ss:$0 sm:$0xff] }
 0x477   : > { %v3910_v62 = vmul.f32 %v14932_v24, %v3802_v40  ;;  %v3911_v29 = vmul.f32 %v14932_v24, %v3803_v4  ;;  %v3912_v53 = vmul.f32 %v14932_v24, %v3804_v28  ;;  %v3899_v20 = vmul.f32 %v14932_v24, %v14831_v2 }
 0x478   : > { %v14980_v25 = vmul.f32 %v14957_v32, %v3896_v61  ;;  %v14983_v50 = vmul.f32 %v14957_v32, %v3897_v26  ;;  %v3929_v52 = vmul.f32 %v14957_v32, %v3898_v16  ;;  %v3931_v38 = vmul.f32 %v14957_v32, %v3900_v33 }
 0x479   : > { %v3932_v40 = vmul.f32 %v14957_v32, %v3901_v23  ;;  %v3933_v4 = vmul.f32 %v14957_v32, %v3902_v11  ;;  %v3934_v28 = vmul.f32 %v14957_v32, %v3903_v44  ;;  %v3935_v2 = vmul.f32 %v14957_v32, %v3904_v55 }
 0x47a   : > { %v3936_v12 = vmul.f32 %v14957_v32, %v3905_v9  ;;  %v3937_v45 = vmul.f32 %v14957_v32, %v3906_v18  ;;  %v3938_v42 = vmul.f32 %v14957_v32, %v3907_v14  ;;  %v3939_v58 = vmul.f32 %v14957_v32, %v3908_v60 }
 0x47b   : > { %v3940_v34 = vmul.f32 %v14957_v32, %v3909_v36  ;;  %v3941_v47 = vmul.f32 %v14957_v32, %v3910_v62  ;;  %v3942_v7 = vmul.f32 %v14957_v32, %v3911_v29  ;;  %v3930_v61 = vmul.f32 %v14957_v32, %v3899_v20 }
 0x47c   : > { %v3943_v26 = vmul.f32 %v14957_v32, %v3912_v53  ;;  %v15004_v16 = vadd.f32 %v14987_v41, %v3929_v52  ;;  %v15007_v33 = vadd.f32 %v14987_v41, %v3931_v38  ;;  %v15010_v23 = vadd.f32 %v14987_v41, %v3932_v40 }
 0x47d   : > { %v3964_v11 = vadd.f32 %v14987_v41, %v3933_v4  ;;  %v3965_v44 = vadd.f32 %v14987_v41, %v3934_v28  ;;  %v3966_v55 = vadd.f32 %v14987_v41, %v3935_v2  ;;  %v3967_v9 = vadd.f32 %v14987_v41, %v3936_v12 }
 0x47e   : > { %18465 = vst [vmem:[#allocation34_spill] sm:$0xff] %v15004_v16  ;;  %18466 = vst [vmem:[#allocation35_spill] sm:$0xff] %v15007_v33  ;;  %v3968_v18 = vadd.f32 %v14987_v41, %v3937_v45  ;;  %v3969_v14 = vadd.f32 %v14987_v41, %v3938_v42  ;;  %v3970_v60 = vadd.f32 %v14987_v41, %v3939_v58 }
 0x47f   : > { %v3971_v36 = vadd.f32 %v14987_v41, %v3940_v34  ;;  %v3972_v62 = vadd.f32 %v14987_v41, %v3941_v47  ;;  %v3973_v29 = vadd.f32 %v14987_v41, %v3942_v7  ;;  %v3974_v53 = vadd.f32 %v14987_v41, %v3943_v26 }
 0x480   : > { %v15024_v20 = vadd.f32 %v14987_v41, %v3930_v61  ;;  %vm3989_vm13 = vcmp.ge.f32.partialorder %v3964_v11, 0.0  ;;  %vm3990_vm14 = vcmp.ge.f32.partialorder %v3965_v44, 0.0  ;;  %vm3991_vm15 = vcmp.ge.f32.partialorder %v3966_v55, 0.0 }
 0x481   : > { %vm3992_vm1 = vcmp.ge.f32.partialorder %v3967_v9, 0.0  ;;  %vm3993_vm2 = vcmp.ge.f32.partialorder %v3968_v18, 0.0  ;;  %vm3994_vm3 = vcmp.ge.f32.partialorder %v3969_v14, 0.0  ;;  %vm3995_vm4 = vcmp.ge.f32.partialorder %v3970_v60, 0.0 }
 0x482   : > { %18467 = vst [vmem:[#allocation36_spill] sm:$0xff] %v15024_v20  ;;  %vm3996_vm5 = vcmp.ge.f32.partialorder %v3971_v36, 0.0  ;;  %vm3997_vm6 = vcmp.ge.f32.partialorder %v3972_v62, 0.0  ;;  %vm3998_vm7 = vcmp.ge.f32.partialorder %v3973_v29, 0.0  ;;  %vm3999_vm8 = vcmp.ge.f32.partialorder %v3974_v53, 0.0 }
 0x483   : > { %v15028_v52 = vmul.f32 %v14946_v27, %v15007_v33  ;;  %v15032_v38 = vmul.f32 %v14946_v27, %v15010_v23  ;;  %v4015_v40 = vmul.f32 %v14946_v27, %v3964_v11  ;;  %v4016_v4 = vmul.f32 %v14946_v27, %v3965_v44 }
 0x484   : > { %v4017_v28 = vmul.f32 %v14946_v27, %v3966_v55  ;;  %v4018_v2 = vmul.f32 %v14946_v27, %v3967_v9  ;;  %v4019_v12 = vmul.f32 %v14946_v27, %v3968_v18  ;;  %v4020_v45 = vmul.f32 %v14946_v27, %v3969_v14 }
 0x485   : > { %18468 = vst [vmem:[#allocation37_spill] sm:$0xff] %v15028_v52  ;;  %18469 = vst [vmem:[#allocation38_spill] sm:$0xff] %v15032_v38  ;;  %v4021_v42 = vmul.f32 %v14946_v27, %v3970_v60  ;;  %v4022_v58 = vmul.f32 %v14946_v27, %v3971_v36  ;;  %v4023_v34 = vmul.f32 %v14946_v27, %v3972_v62 }
 0x486   : > { %v4024_v47 = vmul.f32 %v14946_v27, %v3973_v29  ;;  %v4025_v7 = vmul.f32 %v14946_v27, %v3974_v53  ;;  %v15046_v61 = vsel %vm3989_vm13, %v3964_v11, %v4015_v40  ;;  %v4041_v26 = vsel %vm3990_vm14, %v3965_v44, %v4016_v4 }
 0x487   : > { %v4042_v38 = vsel %vm3991_vm15, %v3966_v55, %v4017_v28  ;;  %v4043_v52 = vsel %vm3992_vm1, %v3967_v9, %v4018_v2  ;;  %v4044_v13 = vsel %vm3993_vm2, %v3968_v18, %v4019_v12  ;;  %v4045_v10 = vsel %vm3994_vm3, %v3969_v14, %v4020_v45 }
 0x488   : > { %v4046_v0 = vsel %vm3995_vm4, %v3970_v60, %v4021_v42  ;;  %v4047_v33 = vsel %vm3996_vm5, %v3971_v36, %v4022_v58  ;;  %v4048_v20 = vsel %vm3997_vm6, %v3972_v62, %v4023_v34  ;;  %v4049_v16 = vsel %vm3998_vm7, %v3973_v29, %v4024_v47 }
 0x489   : > { %v4050_v11 = vsel %vm3999_vm8, %v3974_v53, %v4025_v7  ;;  %v4066_v44 = vmul.f32 %v4041_v26, %v14618_v19  ;;  %v4067_v55 = vmul.f32 %v4042_v38, %v14627_v21  ;;  %v4068_v9 = vmul.f32 %v4043_v52, %v14636_v15 }
 0x48a   : > { %v4069_v18 = vmul.f32 %v4044_v13, %v14645_v51  ;;  %v4070_v14 = vmul.f32 %v4045_v10, %v14654_v59  ;;  %v4071_v60 = vmul.f32 %v4046_v0, %v14663_v6  ;;  %v4072_v36 = vmul.f32 %v4047_v33, %v14672_v1 }
 0x48b   : > { %v4073_v62 = vmul.f32 %v4048_v20, %v14681_v49  ;;  %v4074_v29 = vmul.f32 %v4049_v16, %v18461_v30  ;;  %v4075_v53 = vmul.f32 %v4050_v11, %v14699_v37  ;;  %4093 = vst.msk [vmem:[#allocation3 + $0x98] sm:$0xff] %vm18365_vm0, %v4068_v9  ;;  %4091 = vst.msk [vmem:[#allocation3 + $0x88] sm:$0xff] %vm18365_vm0, %v4066_v44  ;;  %vm3988_vm15 = vcmp.ge.f32.partialorder %v15010_v23, 0.0  ;;  %v12910_v49 = vld [vmem:[%s13220_s13 + $0x218] sm:$0xff]  }
 0x48c   : > { %4094 = vst.msk [vmem:[#allocation3 + $0xa0] sm:$0xff] %vm18365_vm0, %v4069_v18  ;;  %4092 = vst.msk [vmem:[#allocation3 + $0x90] sm:$0xff] %vm18365_vm0, %v4067_v55  ;;  %v3919_v10 = vmul.f32 %v14957_v32, %v14936_v35  ;;  %v3889_v0 = vmul.f32 %v14932_v24, %v14756_v3  ;;  %v3890_v13 = vmul.f32 %v14932_v24, %v14761_v43 }
 0x48d   : > { %4095 = vst.msk [vmem:[#allocation3 + $0xa8] sm:$0xff] %vm18365_vm0, %v4070_v14  ;;  %4096 = vst.msk [vmem:[#allocation3 + $0xb0] sm:$0xff] %vm18365_vm0, %v4071_v60  ;;  %v3891_v16 = vmul.f32 %v14932_v24, %v14768_v63  ;;  %v3892_v35 = vmul.f32 %v14932_v24, %v14775_v48  ;;  %v3893_v3 = vmul.f32 %v14932_v24, %v14783_v39 }
 0x48e   : > { %4097 = vst.msk [vmem:[#allocation3 + $0xb8] sm:$0xff] %vm18365_vm0, %v4072_v36  ;;  %4098 = vst.msk [vmem:[#allocation3 + $0xc0] sm:$0xff] %vm18365_vm0, %v4073_v62  ;;  %v3950_v33 = vadd.f32 %v14987_v41, %v3919_v10  ;;  %v3920_v20 = vmul.f32 %v14957_v32, %v3889_v0  ;;  %v3925_v43 = vmul.f32 %v14957_v32, %v14940_v17 }
 0x48f   : > { %4099 = vst.msk [vmem:[#allocation3 + $0xc8] sm:$0xff] %vm18365_vm0, %v4074_v29  ;;  %4100 = vst.msk [vmem:[#allocation3 + $0xd0] sm:$0xff] %vm18365_vm0, %v4075_v53  ;;  %v3926_v63 = vmul.f32 %v14957_v32, %v14944_v56  ;;  %v3921_v52 = vmul.f32 %v14957_v32, %v3890_v13  ;;  %v3922_v48 = vmul.f32 %v14957_v32, %v3891_v16 }
 0x490   : > { %v3923_v39 = vmul.f32 %v14957_v32, %v3892_v35  ;;  %v3924_v24 = vmul.f32 %v14957_v32, %v3893_v3  ;;  %vm3975_vm9 = vcmp.ge.f32.partialorder %v3950_v33, 0.0  ;;  %v4001_v38 = vmul.f32 %v14946_v27, %v3950_v33  ;;  %v18470_v35 = vld [vmem:[#allocation34_spill] sm:$0xff] }
 0x491   : > { %v3951_v40 = vadd.f32 %v14987_v41, %v3920_v20  ;;  %v3956_v4 = vadd.f32 %v14987_v41, %v3925_v43  ;;  %v3952_v17 = vadd.f32 %v14987_v41, %v3921_v52  ;;  %v3953_v28 = vadd.f32 %v14987_v41, %v3922_v48  ;;  %v4148_v3 = vld [vmem:[#allocation3 + $0x6] sm:$0xff]  ;;  %v18471_v43 = vld [vmem:[#allocation36_spill] sm:$0xff] }
 0x492   : > { %v3954_v56 = vadd.f32 %v14987_v41, %v3923_v39  ;;  %v3955_v2 = vadd.f32 %v14987_v41, %v3924_v24  ;;  %v4026_v12 = vsel %vm3975_vm9, %v3950_v33, %v4001_v38  ;;  %v3957_v62 = vadd.f32 %v14987_v41, %v3926_v63  ;;  %v4101_v33 = vld [vmem:[#allocation3 + $0x5] sm:$0xff]  ;;  %v12890_v39 = vld [vmem:[%s13220_s13 + $0x178] sm:$0xff]  }
 0x493   : > { %vm3976_vm10 = vcmp.ge.f32.partialorder %v3951_v40, 0.0  ;;  %v4002_v45 = vmul.f32 %v14946_v27, %v3951_v40  ;;  %vm3981_vm11 = vcmp.ge.f32.partialorder %v3956_v4, 0.0  ;;  %v4051_v32 = vmul.f32 %v4026_v12, %v14481_v22  ;;  %v18472_v63 = vld [vmem:[#allocation35_spill] sm:$0xff] }
 0x494   : > { %vm3977_vm13 = vcmp.ge.f32.partialorder %v3952_v17, 0.0  ;;  %v4003_v42 = vmul.f32 %v14946_v27, %v3952_v17  ;;  %vm3978_vm14 = vcmp.ge.f32.partialorder %v3953_v28, 0.0  ;;  %vm3979_vm1 = vcmp.ge.f32.partialorder %v3954_v56, 0.0  ;;  %v18473_v38 = vld [vmem:[#allocation11_spill] sm:$0xff] }
 0x495   : > { %v4027_v58 = vsel %vm3976_vm10, %v3951_v40, %v4002_v45  ;;  %v4004_v34 = vmul.f32 %v14946_v27, %v3953_v28  ;;  %v4005_v47 = vmul.f32 %v14946_v27, %v3954_v56  ;;  %4076 = vst.msk [vmem:[#allocation3 + $0x10] sm:$0xff] %vm18365_vm0, %v4051_v32  ;;  %vm3980_vm2 = vcmp.ge.f32.partialorder %v3955_v2, 0.0  ;;  %v18475_v32 = vld [vmem:[#allocation12_spill] sm:$0xff] }
 0x496   : > { %v4028_v7 = vsel %vm3977_vm13, %v3952_v17, %v4003_v42  ;;  %v4052_v26 = vmul.f32 %v4027_v58, %v14486_v8  ;;  %v4006_v11 = vmul.f32 %v14946_v27, %v3955_v2  ;;  %v4007_v18 = vmul.f32 %v14946_v27, %v3956_v4  ;;  %v18476_v58 = vld [vmem:[#allocation29_spill] sm:$0xff] }
 0x497   : > { %v4053_v44 = vmul.f32 %v4028_v7, %v14483_v31  ;;  %v4029_v55 = vsel %vm3978_vm14, %v3953_v28, %v4004_v34  ;;  %v4030_v9 = vsel %vm3979_vm1, %v3954_v56, %v4005_v47  ;;  %v3958_v10 = vadd.f32 %v14987_v41, %v14980_v25  ;;  %v18477_v7 = vld [vmem:[#allocation37_spill] sm:$0xff] }
 0x498   : > { %4077 = vst.msk [vmem:[#allocation3 + $0x18] sm:$0xff] %vm18365_vm0, %v4052_v26  ;;  %v4054_v14 = vmul.f32 %v4029_v55, %v14488_v5  ;;  %v4055_v60 = vmul.f32 %v4030_v9, %v14499_v46  ;;  %v4031_v36 = vsel %vm3980_vm2, %v3955_v2, %v4006_v11  ;;  %v4032_v29 = vsel %vm3981_vm11, %v3956_v4, %v4007_v18  ;;  %v18474_v2 = vld [vmem:[#allocation27_spill] sm:$0xff]  ;;  %v12894_v11 = vld [vmem:[%s13220_s13 + $0x198] sm:$0xff]   ;;  %v18479_v9 = vld [vmem:[#allocation30_spill] sm:$0xff] }
 0x499   : > { %4078 = vst.msk [vmem:[#allocation3 + $0x20] sm:$0xff] %vm18365_vm0, %v4053_v44  ;;  %v4056_v53 = vmul.f32 %v4031_v36, %v14504_v54  ;;  %v3959_v0 = vadd.f32 %v14987_v41, %v14983_v50  ;;  %v4057_v13 = vmul.f32 %v4032_v29, %v14519_v57  ;;  %vm3982_vm3 = vcmp.ge.f32.partialorder %v3957_v62, 0.0  ;;  %v18478_v44 = vld [vmem:[#allocation13_spill] sm:$0xff]  ;;  %v18482_v29 = vld [vmem:[#allocation14_spill] sm:$0xff] }
 0x49a   : > { %4079 = vst.msk [vmem:[#allocation3 + $0x28] sm:$0xff] %vm18365_vm0, %v4054_v14  ;;  %4080 = vst.msk [vmem:[#allocation3 + $0x30] sm:$0xff] %vm18365_vm0, %v4055_v60  ;;  %v4008_v16 = vmul.f32 %v14946_v27, %v3957_v62  ;;  %vm3985_vm4 = vcmp.ge.f32.partialorder %v18470_v35, 0.0  ;;  %vm3983_vm5 = vcmp.ge.f32.partialorder %v3958_v10, 0.0  ;;  %v4009_v25 = vmul.f32 %v14946_v27, %v3958_v10  ;;  %v18480_v14 = vld [vmem:[#allocation38_spill] sm:$0xff] }
 0x49b   : > { %4081 = vst.msk [vmem:[#allocation3 + $0x38] sm:$0xff] %vm18365_vm0, %v4056_v53  ;;  %vm3984_vm6 = vcmp.ge.f32.partialorder %v3959_v0, 0.0  ;;  %v4010_v50 = vmul.f32 %v14946_v27, %v3959_v0  ;;  %4082 = vst.msk [vmem:[#allocation3 + $0x40] sm:$0xff] %vm18365_vm0, %v4057_v13  ;;  %v4011_v20 = vmul.f32 %v14946_v27, %v18470_v35  ;;  %vm3986_vm7 = vcmp.ge.f32.partialorder %v18471_v43, 0.0  ;;  %v12895_v13 = vld [vmem:[%s13220_s13 + $0x190] sm:$0xff]  }
 0x49c   : > { %v4033_v41 = vsel %vm3982_vm3, %v3957_v62, %v4008_v16  ;;  %vm3987_vm8 = vcmp.ge.f32.partialorder %v18472_v63, 0.0  ;;  %v4149_v52 = vld [vmem:[#allocation3 + $0xe] sm:$0xff]  ;;  %v4034_v24 = vsel %vm3983_vm5, %v3958_v10, %v4009_v25  ;;  %v4012_v17 = vmul.f32 %v14946_v27, %v18471_v43 }
 0x49d   : > { %v4102_v48 = vld [vmem:[#allocation3 + $0xd] sm:$0xff]  ;;  %v4058_v40 = vmul.f32 %v4033_v41, %v18473_v38  ;;  %v4035_v4 = vsel %vm3984_vm6, %v3959_v0, %v4010_v50  ;;  %v4173_v28 = vpack.c.bf16 %v4149_v52, %v4148_v3  ;;  %v4059_v12 = vmul.f32 %v4034_v24, %v18474_v2  ;;  %v12892_v50 = vld [vmem:[%s13220_s13 + $0x168] sm:$0xff]  }
 0x49e   : > { %v4126_v56 = vpack.c.bf16 %v4102_v48, %v4101_v33  ;;  %v4036_v45 = vsel %vm3985_vm4, %v18470_v35, %v4011_v20  ;;  %v4060_v42 = vmul.f32 %v4035_v4, %v18475_v32  ;;  %v4037_v47 = vsel %vm3986_vm7, %v18471_v43, %v4012_v17  ;;  %v12891_v62 = vld [vmem:[%s13220_s13 + $0x170] sm:$0xff]   ;;  %v12893_v20 = vld [vmem:[%s13220_s13 + $0x160] sm:$0xff]  }
 0x49f   : > { %4083 = vst.msk [vmem:[#allocation3 + $0x48] sm:$0xff] %vm18365_vm0, %v4058_v40  ;;  %v4061_v34 = vmul.f32 %v4036_v45, %v18476_v58  ;;  %v4038_v26 = vsel %vm3987_vm8, %v18472_v63, %v18477_v7  ;;  %11710 = vmatmul.mubr.msk.bf16.vlgmr.msra.gmra.mxu1 %vm18365_vm0, %v4173_v28  ;;  %4084 = vst.msk [vmem:[#allocation3 + $0x50] sm:$0xff] %vm18365_vm0, %v4059_v12  ;;  %v4062_v55 = vmul.f32 %v4037_v47, %v18478_v44  ;;  %v18481_v36 = vmov 0.0   ;;  %v4150_v10 = vld [vmem:[#allocation3 + $0x16] sm:$0xff] }
 0x4a0   : > { %11770 = vmatmul.mubr.msk.bf16.vlgmr.msra.gmra.mxu0 %vm18365_vm0, %v4126_v56  ;;  %v4063_v18 = vmul.f32 %v4038_v26, %v18479_v9  ;;  %v4039_v60 = vsel %vm3988_vm15, %v15010_v23, %v18480_v14  ;;  %11822 = vmatpush3.bf16.msra.mxu1 %v12890_v39  ;;  %4085 = vst.msk [vmem:[#allocation3 + $0x58] sm:$0xff] %vm18365_vm0, %v4060_v42  ;;  %v18483_v23 = vld [vmem:[#allocation15_spill] sm:$0xff]  ;;  %v4151_v16 = vld [vmem:[#allocation3 + $0x1e] sm:$0xff]  ;;  %v4103_v35 = vld [vmem:[#allocation3 + $0x15] sm:$0xff] }
 0x4a1   : > { %11713 = vmatprep.mubr.msk.bf16.mxu1 %vm13017_vm12, %v18481_v36  ;;  %4086 = vst.msk [vmem:[#allocation3 + $0x60] sm:$0xff] %vm18365_vm0, %v4061_v34  ;;  %v4064_v53 = vmul.f32 %v4039_v60, %v18482_v29  ;;  %11773 = vmatprep.mubr.msk.bf16.mxu0 %vm13017_vm12, %v18481_v36  ;;  %4087 = vst.msk [vmem:[#allocation3 + $0x68] sm:$0xff] %vm18365_vm0, %v4062_v55  ;;  %v4065_v0 = vmul.f32 %v15046_v61, %v18483_v23  ;;  %v4104_v3 = vld [vmem:[#allocation3 + $0x1d] sm:$0xff]  ;;  %v4152_v41 = vld [vmem:[#allocation3 + $0x26] sm:$0xff] }
 0x4a2   : > { %11823 = vmatprep.subr.bf16.mxu1 %v18481_v36  ;;  %4088 = vst.msk [vmem:[#allocation3 + $0x70] sm:$0xff] %vm18365_vm0, %v4063_v18  ;;  %11882 = vmatpush3.bf16.msra.mxu0 %v12894_v11  ;;  %v4174_v33 = vpack.c.bf16 %v4151_v16, %v4150_v10  ;;  %v4127_v25 = vpack.c.bf16 %v4104_v3, %v4103_v35  ;;  %v12896_v61 = vld [vmem:[%s13220_s13 + $0x188] sm:$0xff]   ;;  %v12897_v43 = vld [vmem:[%s13220_s13 + $0x180] sm:$0xff]   ;;  %v4153_v63 = vld [vmem:[#allocation3 + $0x2e] sm:$0xff] }
 0x4a3   : > { %4089 = vst.msk [vmem:[#allocation3 + $0x78] sm:$0xff] %vm18365_vm0, %v4064_v53  ;;  %4090 = vst.msk [vmem:[#allocation3 + $0x80] sm:$0xff] %vm18365_vm0, %v4065_v0  ;;  %11883 = vmatprep.subr.bf16.mxu0 %v18481_v36  ;;  %v4105_v52 = vld [vmem:[#allocation3 + $0x25] sm:$0xff]  ;;  %v4106_v48 = vld [vmem:[#allocation3 + $0x2d] sm:$0xff]  ;;  %v4175_v39 = vpack.c.bf16 %v4153_v63, %v4152_v41 }
 0x4a4   : > { %11824 = vmatpush3.bf16.msra.mxu1 %v12891_v62  ;;  %v4128_v24 = vpack.c.bf16 %v4106_v48, %v4105_v52  ;;  %v15202_v40 = vld [vmem:[#allocation3 + $0x19] sm:$0xff]  ;;  %v15206_v4 = vld [vmem:[#allocation3 + $0x21] sm:$0xff]  ;;  %v15208_v17 = vld [vmem:[#allocation3 + $0x29] sm:$0xff] }
 0x4a5   : > { %11825 = vmatprep.subr.bf16.mxu1 %v18481_v36  ;;  %v15214_v28 = vld [vmem:[#allocation3 + $0x31] sm:$0xff]  ;;  %v15216_v56 = vld [vmem:[#allocation3 + $0x39] sm:$0xff]  ;;  %v15241_v16 = vld [vmem:[#allocation3 + $0x89] sm:$0xff] }
 0x4a6   : > { %11884 = vmatpush3.bf16.msra.mxu0 %v12895_v13  ;;  %v4154_v45 = vld [vmem:[#allocation3 + $0x36] sm:$0xff]  ;;  %v15221_v34 = vld [vmem:[#allocation3 + $0x41] sm:$0xff]  ;;  %v15225_v11 = vld [vmem:[#allocation3 + $0x49] sm:$0xff] }
 0x4a7   : > { %11714 = vmatmul.mubr.msk.bf16.gmra.mxu1 %vm18365_vm0, %v4174_v33  ;;  %11885 = vmatprep.subr.bf16.mxu0 %v18481_v36  ;;  %v4107_v42 = vld [vmem:[#allocation3 + $0x35] sm:$0xff]  ;;  %v4155_v7 = vld [vmem:[#allocation3 + $0x3e] sm:$0xff]  ;;  %v4156_v41 = vld [vmem:[#allocation3 + $0x46] sm:$0xff] }
 0x4a8   : > { %11774 = vmatmul.mubr.msk.bf16.gmra.mxu0 %vm18365_vm0, %v4127_v25  ;;  %11717 = vmatprep.mubr.msk.bf16.mxu1 %vm13017_vm12, %v18481_v36  ;;  %v4108_v26 = vld [vmem:[#allocation3 + $0x3d] sm:$0xff]  ;;  %v15229_v18 = vld [vmem:[#allocation3 + $0x51] sm:$0xff]  ;;  %v4176_v10 = vpack.c.bf16 %v4155_v7, %v4154_v45  ;;  %v4109_v48 = vld [vmem:[#allocation3 + $0x45] sm:$0xff] }
 0x4a9   : > { %11777 = vmatprep.mubr.msk.bf16.mxu0 %vm13017_vm12, %v18481_v36  ;;  %11826 = vmatpush3.bf16.msra.mxu1 %v12892_v50  ;;  %v15231_v14 = vld [vmem:[#allocation3 + $0x59] sm:$0xff]  ;;  %v15233_v60 = vld [vmem:[#allocation3 + $0x61] sm:$0xff]  ;;  %v15235_v62 = vld [vmem:[#allocation3 + $0x69] sm:$0xff]  ;;  %v4129_v0 = vpack.c.bf16 %v4108_v26, %v4107_v42 }
 0x4aa   : > { %11827 = vmatprep.subr.bf16.mxu1 %v18481_v36  ;;  %11886 = vmatpush3.bf16.msra.mxu0 %v12896_v61  ;;  %v15239_v13 = vld [vmem:[#allocation3 + $0x71] sm:$0xff]  ;;  %v15245_v3 = vld [vmem:[#allocation3 + $0x79] sm:$0xff]  ;;  %v15247_v33 = vld [vmem:[#allocation3 + $0x81] sm:$0xff] }
 0x4ab   : > { %11887 = vmatprep.subr.bf16.mxu0 %v18481_v36  ;;  %v15253_v50 = vld [vmem:[#allocation3 + $0x91] sm:$0xff]  ;;  %v15255_v61 = vld [vmem:[#allocation3 + $0x99] sm:$0xff]  ;;  %v15275_v26 = vld [vmem:[#allocation3 + $0xc1] sm:$0xff] }
 0x4ac   : > { %v4157_v52 = vld [vmem:[#allocation3 + $0x4e] sm:$0xff]  ;;  %v15273_v7 = vld [vmem:[#allocation3 + $0xb9] sm:$0xff] }
 0x4ad   : > { %11828 = vmatpush3.bf16.msra.mxu1 %v12893_v20  ;;  %v15261_v20 = vld [vmem:[#allocation3 + $0xa1] sm:$0xff]  ;;  %v4110_v45 = vld [vmem:[#allocation3 + $0x4d] sm:$0xff]  ;;  %v4177_v25 = vpack.c.bf16 %v4157_v52, %v4156_v41  ;;  %v4111_v55 = vld [vmem:[#allocation3 + $0x55] sm:$0xff] }
 0x4ae   : > { %11888 = vmatpush3.bf16.msra.mxu0 %v12897_v43  ;;  %11941 = vmatprep.subr.bf16.mxu1 %v18481_v36  ;;  %v15271_v42 = vld [vmem:[#allocation3 + $0xb1] sm:$0xff]  ;;  %v4130_v35 = vpack.c.bf16 %v4110_v45, %v4109_v48  ;;  %v4159_v53 = vld [vmem:[#allocation3 + $0x5e] sm:$0xff] }
 0x4af   : > { %11718 = vmatmul.mubr.msk.bf16.gmra.mxu1 %vm18365_vm0, %v4175_v39  ;;  %12001 = vmatprep.subr.bf16.mxu0 %v18481_v36  ;;  %v15267_v39 = vld [vmem:[#allocation3 + $0xa9] sm:$0xff]  ;;  %v15281_v63 = vld [vmem:[#allocation3 + $0xd1] sm:$0xff]  ;;  %v4112_v47 = vld [vmem:[#allocation3 + $0x5d] sm:$0xff] }
 0x4b0   : > { %11778 = vmatmul.mubr.msk.bf16.gmra.mxu0 %vm18365_vm0, %v4128_v24  ;;  %11721 = vmatprep.mubr.msk.bf16.mxu1 %vm13017_vm12, %v18481_v36  ;;  %v4131_v41 = vpack.c.bf16 %v4112_v47, %v4111_v55  ;;  %v4113_v52 = vld [vmem:[#allocation3 + $0x65] sm:$0xff]  ;;  %v4114_v48 = vld [vmem:[#allocation3 + $0x6d] sm:$0xff]  ;;  %v4162_v47 = vld [vmem:[#allocation3 + $0x76] sm:$0xff] }
 0x4b1   : > { %11781 = vmatprep.mubr.msk.bf16.mxu0 %vm13017_vm12, %v18481_v36  ;;  %v4132_v24 = vpack.c.bf16 %v4114_v48, %v4113_v52  ;;  %v4163_v55 = vld [vmem:[#allocation3 + $0x7e] sm:$0xff]  ;;  %v4118_v52 = vld [vmem:[#allocation3 + $0x8d] sm:$0xff] }
 0x4b7   : > { %11722 = vmatmul.mubr.msk.bf16.gmra.mxu1 %vm18365_vm0, %v4176_v10  ;;  %v15277_v10 = vld [vmem:[#allocation3 + $0xc9] sm:$0xff] }
 0x4b8   : > { %11782 = vmatmul.mubr.msk.bf16.gmra.mxu0 %vm18365_vm0, %v4129_v0  ;;  %11725 = vmatprep.mubr.msk.bf16.mxu1 %vm13017_vm12, %v18481_v36  ;;  %18484 = vst [vmem:[#allocation34_spill] sm:$0xff] %v15277_v10  ;;  %v4158_v0 = vld [vmem:[#allocation3 + $0x56] sm:$0xff] }
 0x4b9   : > { %11785 = vmatprep.mubr.msk.bf16.mxu0 %vm13017_vm12, %v18481_v36  ;;  %v4178_v43 = vpack.c.bf16 %v4159_v53, %v4158_v0  ;;  %v4115_v53 = vld [vmem:[#allocation3 + $0x75] sm:$0xff]  ;;  %v4180_v0 = vpack.c.bf16 %v4163_v55, %v4162_v47  ;;  %v4167_v55 = vld [vmem:[#allocation3 + $0x9e] sm:$0xff] }
 0x4ba   : > { %v4166_v47 = vld [vmem:[#allocation3 + $0x96] sm:$0xff] }
 0x4bf   : > { %11726 = vmatmul.mubr.msk.bf16.gmra.mxu1 %vm18365_vm0, %v4177_v25  ;;  %v4161_v25 = vld [vmem:[#allocation3 + $0x6e] sm:$0xff] }
 0x4c0   : > { %11786 = vmatmul.mubr.msk.bf16.gmra.mxu0 %vm18365_vm0, %v4130_v35  ;;  %11729 = vmatprep.mubr.msk.bf16.mxu1 %vm13017_vm12, %v18481_v36  ;;  %v4160_v35 = vld [vmem:[#allocation3 + $0x66] sm:$0xff] }
 0x4c1   : > { %11789 = vmatprep.mubr.msk.bf16.mxu0 %vm13017_vm12, %v18481_v36  ;;  %v4179_v45 = vpack.c.bf16 %v4161_v25, %v4160_v35  ;;  %v4164_v35 = vld [vmem:[#allocation3 + $0x86] sm:$0xff] }
 0x4c2   : > { %v4117_v25 = vld [vmem:[#allocation3 + $0x85] sm:$0xff] }
 0x4c7   : > { %11730 = vmatmul.mubr.msk.bf16.gmra.mxu1 %vm18365_vm0, %v4178_v43  ;;  %v4116_v43 = vld [vmem:[#allocation3 + $0x7d] sm:$0xff] }
 0x4c8   : > { %11790 = vmatmul.mubr.msk.bf16.gmra.mxu0 %vm18365_vm0, %v4131_v41  ;;  %11733 = vmatprep.mubr.msk.bf16.mxu1 %vm13017_vm12, %v18481_v36  ;;  %v4133_v41 = vpack.c.bf16 %v4116_v43, %v4115_v53  ;;  %v4119_v53 = vld [vmem:[#allocation3 + $0x95] sm:$0xff]  ;;  %v4120_v43 = vld [vmem:[#allocation3 + $0x9d] sm:$0xff] }
 0x4c9   : > { %11793 = vmatprep.mubr.msk.bf16.mxu0 %vm13017_vm12, %v18481_v36 }
 0x4cf   : > { %11734 = vmatmul.mubr.msk.bf16.gmra.mxu1 %vm18365_vm0, %v4179_v45  ;;  %v4134_v45 = vpack.c.bf16 %v4118_v52, %v4117_v25  ;;  %v4121_v25 = vld [vmem:[#allocation3 + $0xa5] sm:$0xff]  ;;  %v4122_v52 = vld [vmem:[#allocation3 + $0xad] sm:$0xff] }
 0x4d0   : > { %11794 = vmatmul.mubr.msk.bf16.gmra.mxu0 %vm18365_vm0, %v4132_v24  ;;  %11737 = vmatprep.mubr.msk.bf16.mxu1 %vm13017_vm12, %v18481_v36  ;;  %v4165_v24 = vld [vmem:[#allocation3 + $0x8e] sm:$0xff] }
 0x4d1   : > { %11797 = vmatprep.mubr.msk.bf16.mxu0 %vm13017_vm12, %v18481_v36  ;;  %v4181_v48 = vpack.c.bf16 %v4165_v24, %v4164_v35  ;;  %v4168_v24 = vld [vmem:[#allocation3 + $0xa6] sm:$0xff]  ;;  %v4169_v35 = vld [vmem:[#allocation3 + $0xae] sm:$0xff] }
 0x4d7   : > { %11738 = vmatmul.mubr.msk.bf16.gmra.mxu1 %vm18365_vm0, %v4180_v0  ;;  %v4182_v0 = vpack.c.bf16 %v4167_v55, %v4166_v47  ;;  %v4170_v47 = vld [vmem:[#allocation3 + $0xb6] sm:$0xff]  ;;  %v4171_v55 = vld [vmem:[#allocation3 + $0xbe] sm:$0xff] }
 0x4d8   : > { %11798 = vmatmul.mubr.msk.bf16.gmra.mxu0 %vm18365_vm0, %v4133_v41  ;;  %11741 = vmatprep.mubr.msk.bf16.mxu1 %vm13017_vm12, %v18481_v36  ;;  %v4135_v41 = vpack.c.bf16 %v4120_v43, %v4119_v53  ;;  %v4123_v53 = vld [vmem:[#allocation3 + $0xb5] sm:$0xff]  ;;  %v4124_v43 = vld [vmem:[#allocation3 + $0xbd] sm:$0xff] }
 0x4d9   : > { %11801 = vmatprep.mubr.msk.bf16.mxu0 %vm13017_vm12, %v18481_v36 }
 0x4df   : > { %11742 = vmatmul.mubr.msk.bf16.gmra.mxu1 %vm18365_vm0, %v4181_v48  ;;  %v4183_v48 = vpack.c.bf16 %v4169_v35, %v4168_v24  ;;  %v4172_v24 = vld [vmem:[#allocation3 + $0xc6] sm:$0xff] }
 0x4e0   : > { %11802 = vmatmul.mubr.msk.bf16.gmra.mxu0 %vm18365_vm0, %v4134_v45  ;;  %11745 = vmatprep.mubr.msk.bf16.mxu1 %vm13017_vm12, %v18481_v36  ;;  %v4136_v45 = vpack.c.bf16 %v4122_v52, %v4121_v25  ;;  %v4125_v35 = vld [vmem:[#allocation3 + $0xc5] sm:$0xff]  ;;  %v4185_v25 = vpack.c.bf16 %v4172_v24, %v4172_v24 }
 0x4e1   : > { %11805 = vmatprep.mubr.msk.bf16.mxu0 %vm13017_vm12, %v18481_v36  ;;  %v4138_v52 = vpack.c.bf16 %v4125_v35, %v4125_v35  ;;  %v4595_v24 = vld [vmem:[#allocation3 + $0x1f] sm:$0xff]  ;;  %v4865_v35 = vld [vmem:[#allocation3 + $0x27] sm:$0xff] }
 0x4e7   : > { %11746 = vmatmul.mubr.msk.bf16.gmra.mxu1 %vm18365_vm0, %v4182_v0  ;;  %v4184_v0 = vpack.c.bf16 %v4171_v55, %v4170_v47  ;;  %v4863_v47 = vld [vmem:[#allocation3 + $0x17] sm:$0xff] }
 0x4e8   : > { %11806 = vmatmul.mubr.msk.bf16.gmra.mxu0 %vm18365_vm0, %v4135_v41  ;;  %11749 = vmatprep.mubr.msk.bf16.mxu1 %vm13017_vm12, %v18481_v36  ;;  %v4137_v41 = vpack.c.bf16 %v4124_v43, %v4123_v53  ;;  %v12898_v55 = vld [vmem:[%s13220_s13 + $0x1b8] sm:$0xff]  }
 0x4e9   : > { %11809 = vmatprep.mubr.msk.bf16.mxu0 %vm13017_vm12, %v18481_v36 }
 0x4ef   : > { %11750 = vmatmul.mubr.msk.bf16.gmra.mxu1 %vm18365_vm0, %v4183_v48  ;;  %v4592_v48 = vld [vmem:[#allocation3 + $0x7] sm:$0xff] }
 0x4f0   : > { %11810 = vmatmul.mubr.msk.bf16.gmra.mxu0 %vm18365_vm0, %v4136_v45  ;;  %11753 = vmatprep.mubr.msk.bf16.mxu1 %vm13017_vm12, %v18481_v36  ;;  %v4593_v45 = vld [vmem:[#allocation3 + $0xf] sm:$0xff] }
 0x4f1   : > { %11813 = vmatprep.mubr.msk.bf16.mxu0 %vm13017_vm12, %v18481_v36  ;;  %v4617_v53 = vpack.c.bf16 %v4593_v45, %v4592_v48  ;;  %v4887_v43 = vpack.c.bf16 %v4863_v47, %v4593_v45  ;;  %v4888_v48 = vpack.c.bf16 %v4865_v35, %v4595_v24  ;;  %v12900_v45 = vld [vmem:[%s13220_s13 + $0x1a8] sm:$0xff]  }
 0x4f7   : > { %11754 = vmatmul.mubr.msk.bf16.gmra.mxu1 %vm18365_vm0, %v4184_v0  ;;  %v12902_v0 = vld [vmem:[%s13220_s13 + $0x1d8] sm:$0xff]  }
 0x4f8   : > { %11814 = vmatmul.mubr.msk.bf16.gmra.mxu0 %vm18365_vm0, %v4137_v41  ;;  %11757 = vmatprep.mubr.msk.bf16.mxu1 %vm13017_vm12, %v18481_v36  ;;  %v12899_v41 = vld [vmem:[%s13220_s13 + $0x1b0] sm:$0xff]  }
 0x4f9   : > { %11817 = vmatprep.mubr.msk.bf16.mxu0 %vm13017_vm12, %v18481_v36 }
 0x4ff   : > { %11758 = vmatmul.mubr.msk.bf16.gmra.mxu1 %vm18365_vm0, %v4185_v25  ;;  %v12903_v25 = vld [vmem:[%s13220_s13 + $0x1d0] sm:$0xff]  }
 0x500   : > { %11818 = vmatmul.mubr.msk.bf16.gmra.mxu0 %vm18365_vm0, %v4138_v52  ;;  %11829 = vmatprep.mubr.msk.bf16.mxu1 %vm13017_vm12, %v18481_v36  ;;  %v4618_v52 = vpack.c.bf16 %v4595_v24, %v4863_v47  ;;  %v4597_v47 = vld [vmem:[#allocation3 + $0x2f] sm:$0xff] }
 0x501   : > { %11889 = vmatprep.mubr.msk.bf16.mxu0 %vm13017_vm12, %v18481_v36 }
 0x507   : > { %11830 = vmatmul.mubr.msk.bf16.vlgmr.msra.gmra.mxu1 %vm18365_vm0, %v4617_v53  ;;  %v12901_v53 = vld [vmem:[%s13220_s13 + $0x1a0] sm:$0xff]  }
 0x508   : > { %11890 = vmatmul.mubr.msk.bf16.vlgmr.msra.gmra.mxu0 %vm18365_vm0, %v4887_v43  ;;  %11942 = vmatpush3.bf16.msra.mxu1 %v12898_v55  ;;  %v12904_v55 = vld [vmem:[%s13220_s13 + $0x1c8] sm:$0xff]   ;;  %v4867_v43 = vld [vmem:[#allocation3 + $0x37] sm:$0xff] }
 0x509   : > { %11833 = vmatprep.mubr.msk.bf16.mxu1 %vm13017_vm12, %v18481_v36  ;;  %11893 = vmatprep.mubr.msk.bf16.mxu0 %vm13017_vm12, %v18481_v36  ;;  %v4889_v24 = vpack.c.bf16 %v4867_v43, %v4597_v47 }
 0x50a   : > { %11943 = vmatprep.subr.bf16.mxu1 %v18481_v36  ;;  %12002 = vmatpush3.bf16.msra.mxu0 %v12902_v0  ;;  %v12905_v0 = vld [vmem:[%s13220_s13 + $0x1c0] sm:$0xff]  }
 0x50b   : > { %12003 = vmatprep.subr.bf16.mxu0 %v18481_v36 }
 0x50c   : > { %11944 = vmatpush3.bf16.msra.mxu1 %v12899_v41  ;;  %v4619_v41 = vpack.c.bf16 %v4597_v47, %v4865_v35 }
 0x50d   : > { %11945 = vmatprep.subr.bf16.mxu1 %v18481_v36 }
 0x50e   : > { %12004 = vmatpush3.bf16.msra.mxu0 %v12903_v25  ;;  %v4599_v25 = vld [vmem:[#allocation3 + $0x3f] sm:$0xff] }
 0x50f   : > { %11834 = vmatmul.mubr.msk.bf16.gmra.mxu1 %vm18365_vm0, %v4618_v52  ;;  %12005 = vmatprep.subr.bf16.mxu0 %v18481_v36  ;;  %v4869_v52 = vld [vmem:[#allocation3 + $0x47] sm:$0xff]  ;;  %v4620_v35 = vpack.c.bf16 %v4599_v25, %v4867_v43  ;;  %v4603_v43 = vld [vmem:[#allocation3 + $0x5f] sm:$0xff] }
 0x510   : > { %11894 = vmatmul.mubr.msk.bf16.gmra.mxu0 %vm18365_vm0, %v4888_v48  ;;  %11837 = vmatprep.mubr.msk.bf16.mxu1 %vm13017_vm12, %v18481_v36  ;;  %v4890_v48 = vpack.c.bf16 %v4869_v52, %v4599_v25  ;;  %v4605_v25 = vld [vmem:[#allocation3 + $0x6f] sm:$0xff] }
 0x511   : > { %11897 = vmatprep.mubr.msk.bf16.mxu0 %vm13017_vm12, %v18481_v36  ;;  %11946 = vmatpush3.bf16.msra.mxu1 %v12900_v45  ;;  %v4601_v45 = vld [vmem:[#allocation3 + $0x4f] sm:$0xff] }
 0x512   : > { %11947 = vmatprep.subr.bf16.mxu1 %v18481_v36  ;;  %12006 = vmatpush3.bf16.msra.mxu0 %v12904_v55  ;;  %v4871_v55 = vld [vmem:[#allocation3 + $0x57] sm:$0xff] }
 0x513   : > { %12007 = vmatprep.subr.bf16.mxu0 %v18481_v36  ;;  %v4891_v47 = vpack.c.bf16 %v4871_v55, %v4601_v45 }
 0x515   : > { %11948 = vmatpush3.bf16.msra.mxu1 %v12901_v53  ;;  %v4621_v53 = vpack.c.bf16 %v4601_v45, %v4869_v52  ;;  %v4875_v52 = vld [vmem:[#allocation3 + $0x77] sm:$0xff]  ;;  %v4607_v45 = vld [vmem:[#allocation3 + $0x7f] sm:$0xff] }
 0x516   : > { %12008 = vmatpush3.bf16.msra.mxu0 %v12905_v0  ;;  %12061 = vmatprep.subr.bf16.mxu1 %v18481_v36  ;;  %v4873_v0 = vld [vmem:[#allocation3 + $0x67] sm:$0xff] }
 0x517   : > { %11838 = vmatmul.mubr.msk.bf16.gmra.mxu1 %vm18365_vm0, %v4619_v41  ;;  %12121 = vmatprep.subr.bf16.mxu0 %v18481_v36  ;;  %v4622_v41 = vpack.c.bf16 %v4603_v43, %v4871_v55  ;;  %v4877_v55 = vld [vmem:[#allocation3 + $0x87] sm:$0xff] }
 0x518   : > { %11898 = vmatmul.mubr.msk.bf16.gmra.mxu0 %vm18365_vm0, %v4889_v24  ;;  %11841 = vmatprep.mubr.msk.bf16.mxu1 %vm13017_vm12, %v18481_v36  ;;  %v4892_v24 = vpack.c.bf16 %v4873_v0, %v4603_v43  ;;  %v4609_v43 = vld [vmem:[#allocation3 + $0x8f] sm:$0xff] }
 0x519   : > { %11901 = vmatprep.mubr.msk.bf16.mxu0 %vm13017_vm12, %v18481_v36 }
 0x51f   : > { %11842 = vmatmul.mubr.msk.bf16.gmra.mxu1 %vm18365_vm0, %v4620_v35  ;;  %v4623_v35 = vpack.c.bf16 %v4605_v25, %v4873_v0  ;;  %v4879_v0 = vld [vmem:[#allocation3 + $0x97] sm:$0xff] }
 0x520   : > { %11902 = vmatmul.mubr.msk.bf16.gmra.mxu0 %vm18365_vm0, %v4890_v48  ;;  %11845 = vmatprep.mubr.msk.bf16.mxu1 %vm13017_vm12, %v18481_v36  ;;  %v4893_v48 = vpack.c.bf16 %v4875_v52, %v4605_v25  ;;  %v4611_v25 = vld [vmem:[#allocation3 + $0x9f] sm:$0xff] }
 0x521   : > { %11905 = vmatprep.mubr.msk.bf16.mxu0 %vm13017_vm12, %v18481_v36 }
 0x527   : > { %11846 = vmatmul.mubr.msk.bf16.gmra.mxu1 %vm18365_vm0, %v4621_v53  ;;  %v4624_v53 = vpack.c.bf16 %v4607_v45, %v4875_v52  ;;  %v4881_v52 = vld [vmem:[#allocation3 + $0xa7] sm:$0xff] }
 0x528   : > { %11906 = vmatmul.mubr.msk.bf16.gmra.mxu0 %vm18365_vm0, %v4891_v47  ;;  %11849 = vmatprep.mubr.msk.bf16.mxu1 %vm13017_vm12, %v18481_v36  ;;  %v4894_v47 = vpack.c.bf16 %v4877_v55, %v4607_v45  ;;  %v4613_v45 = vld [vmem:[#allocation3 + $0xaf] sm:$0xff] }
 0x529   : > { %11909 = vmatprep.mubr.msk.bf16.mxu0 %vm13017_vm12, %v18481_v36 }
 0x52f   : > { %11850 = vmatmul.mubr.msk.bf16.gmra.mxu1 %vm18365_vm0, %v4622_v41  ;;  %v4625_v41 = vpack.c.bf16 %v4609_v43, %v4877_v55  ;;  %v4883_v55 = vld [vmem:[#allocation3 + $0xb7] sm:$0xff] }
 0x530   : > { %11910 = vmatmul.mubr.msk.bf16.gmra.mxu0 %vm18365_vm0, %v4892_v24  ;;  %11853 = vmatprep.mubr.msk.bf16.mxu1 %vm13017_vm12, %v18481_v36  ;;  %v4895_v24 = vpack.c.bf16 %v4879_v0, %v4609_v43  ;;  %v4615_v43 = vld [vmem:[#allocation3 + $0xbf] sm:$0xff] }
 0x531   : > { %11913 = vmatprep.mubr.msk.bf16.mxu0 %vm13017_vm12, %v18481_v36 }
 0x537   : > { %11854 = vmatmul.mubr.msk.bf16.gmra.mxu1 %vm18365_vm0, %v4623_v35  ;;  %v4626_v35 = vpack.c.bf16 %v4611_v25, %v4879_v0  ;;  %v4885_v0 = vld [vmem:[#allocation3 + $0xc7] sm:$0xff] }
 0x538   : > { %11914 = vmatmul.mubr.msk.bf16.gmra.mxu0 %vm18365_vm0, %v4893_v48  ;;  %11857 = vmatprep.mubr.msk.bf16.mxu1 %vm13017_vm12, %v18481_v36  ;;  %v4896_v48 = vpack.c.bf16 %v4881_v52, %v4611_v25 }
 0x539   : > { %11917 = vmatprep.mubr.msk.bf16.mxu0 %vm13017_vm12, %v18481_v36 }
 0x53f   : > { %11858 = vmatmul.mubr.msk.bf16.gmra.mxu1 %vm18365_vm0, %v4624_v53  ;;  %v4627_v53 = vpack.c.bf16 %v4613_v45, %v4881_v52 }
 0x540   : > { %11918 = vmatmul.mubr.msk.bf16.gmra.mxu0 %vm18365_vm0, %v4894_v47  ;;  %11861 = vmatprep.mubr.msk.bf16.mxu1 %vm13017_vm12, %v18481_v36  ;;  %v4897_v47 = vpack.c.bf16 %v4883_v55, %v4613_v45 }
 0x541   : > { %11921 = vmatprep.mubr.msk.bf16.mxu0 %vm13017_vm12, %v18481_v36 }
 0x547   : > { %11862 = vmatmul.mubr.msk.bf16.gmra.mxu1 %vm18365_vm0, %v4625_v41  ;;  %v4628_v41 = vpack.c.bf16 %v4615_v43, %v4883_v55 }
 0x548   : > { %11922 = vmatmul.mubr.msk.bf16.gmra.mxu0 %vm18365_vm0, %v4895_v24  ;;  %11865 = vmatprep.mubr.msk.bf16.mxu1 %vm13017_vm12, %v18481_v36  ;;  %v4898_v24 = vpack.c.bf16 %v4885_v0, %v4615_v43 }
 0x549   : > { %11925 = vmatprep.mubr.msk.bf16.mxu0 %vm13017_vm12, %v18481_v36 }
 0x54f   : > { %11866 = vmatmul.mubr.msk.bf16.gmra.mxu1 %vm18365_vm0, %v4626_v35 }
 0x550   : > { %11926 = vmatmul.mubr.msk.bf16.gmra.mxu0 %vm18365_vm0, %v4896_v48  ;;  %11869 = vmatprep.mubr.msk.bf16.mxu1 %vm13017_vm12, %v18481_v36 }
 0x551   : > { %11929 = vmatprep.mubr.msk.bf16.mxu0 %vm13017_vm12, %v18481_v36 }
 0x557   : > { %11870 = vmatmul.mubr.msk.bf16.gmra.mxu1 %vm18365_vm0, %v4627_v53  ;;  %v4886_v53 = vld [vmem:[#allocation3 + $0xcf] sm:$0xff] }
 0x558   : > { %11930 = vmatmul.mubr.msk.bf16.gmra.mxu0 %vm18365_vm0, %v4897_v47  ;;  %11873 = vmatprep.mubr.msk.bf16.mxu1 %vm13017_vm12, %v18481_v36  ;;  %v4899_v37 = vpack.c.bf16 %v4886_v53, %v4886_v53 }
 0x559   : > { %11933 = vmatprep.mubr.msk.bf16.mxu0 %vm13017_vm12, %v18481_v36 }
 0x55f   : > { %v4291_v25 = vpop.f32.mrf.mxu1  ;;  %11874 = vmatmul.mubr.msk.bf16.gmra.mxu1 %vm18365_vm0, %v4628_v41  ;;  %v4629_v41 = vpack.c.bf16 %v4885_v0, %v4885_v0  ;;  %v5132_v0 = vld [vmem:[#allocation3 + $0x10] sm:$0xff] }
 0x560   : > { %v4490_v35 = vpop.f32.mrf.mxu0  ;;  %11934 = vmatmul.mubr.msk.bf16.gmra.mxu0 %vm18365_vm0, %v4898_v24  ;;  %11877 = vmatprep.mubr.msk.bf16.mxu1 %vm13017_vm12, %v18481_v36 }
 0x561   : > { %v15425_v52 = vadd.f32 %v4490_v35, %v4291_v25  ;;  %11937 = vmatprep.mubr.msk.bf16.mxu0 %vm13017_vm12, %v18481_v36  ;;  %v11711_v48 = vpop.f32.mrf.mxu1 }
 0x562   : > { %v11771_v45 = vpop.f32.mrf.mxu0  ;;  %v5133_v48 = vld [vmem:[#allocation3 + $0x18] sm:$0xff] }
 0x563   : > { %v4294_v47 = vpop.f32.mrf.mxu1  ;;  %v5402_v45 = vld [vmem:[#allocation3 + $0x11] sm:$0xff] }
 0x564   : > { %v4493_v55 = vpop.f32.mrf.mxu0  ;;  %v5427_v30 = vpack.c.bf16 %v15202_v40, %v5402_v45 }
 0x565   : > { %v15431_v43 = vadd.f32 %v4493_v55, %v4294_v47  ;;  %v11712_v12 = vpop.f32.mrf.mxu1 }
 0x566   : > { %v11772_v27 = vpop.f32.mrf.mxu0 }
 0x567   : > { %v4299_v24 = vpop.f32.mrf.mxu1  ;;  %11878 = vmatmul.mubr.msk.bf16.gmra.mxu1 %vm18365_vm0, %v4629_v41 }
 0x568   : > { %v4498_v25 = vpop.f32.mrf.mxu0  ;;  %11938 = vmatmul.mubr.msk.bf16.gmra.mxu0 %vm18365_vm0, %v4899_v37  ;;  %11949 = vmatprep.mubr.msk.bf16.mxu1 %vm13017_vm12, %v18481_v36  ;;  %v12906_v37 = vld [vmem:[%s13220_s13 + $0x1f8] sm:$0xff]  }
 0x569   : > { %v15435_v35 = vadd.f32 %v4498_v25, %v4299_v24  ;;  %12009 = vmatprep.mubr.msk.bf16.mxu0 %vm13017_vm12, %v18481_v36  ;;  %v11715_v12 = vpop.f32.mrf.mxu1  ;;  %v5157_v25 = vpack.c.bf16 %v5133_v48, %v5132_v0  ;;  %v5134_v0 = vld [vmem:[#allocation3 + $0x20] sm:$0xff]  ;;  %v5135_v48 = vld [vmem:[#allocation3 + $0x28] sm:$0xff] }
 0x56a   : > { %v11775_v27 = vpop.f32.mrf.mxu0 }
 0x56b   : > { %v4302_v53 = vpop.f32.mrf.mxu1  ;;  %v12907_v27 = vld [vmem:[%s13220_s13 + $0x1f0] sm:$0xff]  }
 0x56c   : > { %v4501_v47 = vpop.f32.mrf.mxu0 }
 0x56d   : > { %v15441_v55 = vadd.f32 %v4501_v47, %v4302_v53  ;;  %v11716_v41 = vpop.f32.mrf.mxu1 }
 0x56e   : > { %v11776_v24 = vpop.f32.mrf.mxu0 }
 0x56f   : > { %v4307_v1 = vpop.f32.mrf.mxu1  ;;  %11950 = vmatmul.mubr.msk.bf16.vlgmr.msra.gmra.mxu1 %vm18365_vm0, %v5157_v25  ;;  %v5158_v24 = vpack.c.bf16 %v5135_v48, %v5134_v0  ;;  %v5428_v25 = vpack.c.bf16 %v15208_v17, %v15206_v4 }
 0x570   : > { %v4506_v6 = vpop.f32.mrf.mxu0  ;;  %12010 = vmatmul.mubr.msk.bf16.vlgmr.msra.gmra.mxu0 %vm18365_vm0, %v5427_v30  ;;  %12062 = vmatpush3.bf16.msra.mxu1 %v12906_v37  ;;  %v12911_v30 = vld [vmem:[%s13220_s13 + $0x210] sm:$0xff]  }
 0x571   : > { %v15448_v12 = vadd.f32 %v4506_v6, %v4307_v1  ;;  %11953 = vmatprep.mubr.msk.bf16.mxu1 %vm13017_vm12, %v18481_v36  ;;  %v11719_v53 = vpop.f32.mrf.mxu1  ;;  %12013 = vmatprep.mubr.msk.bf16.mxu0 %vm13017_vm12, %v18481_v36 }
 0x572   : > { %v11779_v47 = vpop.f32.mrf.mxu0  ;;  %12063 = vmatprep.subr.bf16.mxu1 %v18481_v36  ;;  %12122 = vmatpush3.bf16.msra.mxu0 %v12910_v49  ;;  %v12908_v53 = vld [vmem:[%s13220_s13 + $0x1e8] sm:$0xff]  }
 0x573   : > { %v4310_v6 = vpop.f32.mrf.mxu1  ;;  %12123 = vmatprep.subr.bf16.mxu0 %v18481_v36  ;;  %v12912_v49 = vld [vmem:[%s13220_s13 + $0x208] sm:$0xff]  }
 0x574   : > { %v4509_v1 = vpop.f32.mrf.mxu0  ;;  %12064 = vmatpush3.bf16.msra.mxu1 %v12907_v27 }
 0x575   : > { %v15458_v45 = vadd.f32 %v4509_v1, %v4310_v6  ;;  %v11720_v37 = vpop.f32.mrf.mxu1  ;;  %12065 = vmatprep.subr.bf16.mxu1 %v18481_v36  ;;  %v5136_v6 = vld [vmem:[#allocation3 + $0x30] sm:$0xff]  ;;  %v5137_v1 = vld [vmem:[#allocation3 + $0x38] sm:$0xff] }
 0x576   : > { %v11780_v41 = vpop.f32.mrf.mxu0  ;;  %12124 = vmatpush3.bf16.msra.mxu0 %v12911_v30  ;;  %v12909_v30 = vld [vmem:[%s13220_s13 + $0x1e0] sm:$0xff]  }
 0x577   : > { %v4315_v47 = vpop.f32.mrf.mxu1  ;;  %11954 = vmatmul.mubr.msk.bf16.gmra.mxu1 %vm18365_vm0, %v5158_v24  ;;  %12125 = vmatprep.subr.bf16.mxu0 %v18481_v36  ;;  %v12913_v37 = vld [vmem:[%s13220_s13 + $0x200] sm:$0xff]  }
 0x578   : > { %v4514_v59 = vpop.f32.mrf.mxu0  ;;  %12014 = vmatmul.mubr.msk.bf16.gmra.mxu0 %vm18365_vm0, %v5428_v25  ;;  %11957 = vmatprep.mubr.msk.bf16.mxu1 %vm13017_vm12, %v18481_v36 }
 0x579   : > { %v15467_v27 = vadd.f32 %v4514_v59, %v4315_v47  ;;  %12017 = vmatprep.mubr.msk.bf16.mxu0 %vm13017_vm12, %v18481_v36  ;;  %v11723_v0 = vpop.f32.mrf.mxu1  ;;  %12066 = vmatpush3.bf16.msra.mxu1 %v12908_v53  ;;  %v5429_v53 = vpack.c.bf16 %v15216_v56, %v15214_v28 }
 0x57a   : > { %v11783_v48 = vpop.f32.mrf.mxu0  ;;  %12067 = vmatprep.subr.bf16.mxu1 %v18481_v36  ;;  %12126 = vmatpush3.bf16.msra.mxu0 %v12912_v49  ;;  %v5159_v0 = vpack.c.bf16 %v5137_v1, %v5136_v6 }
 0x57b   : > { %v4318_v59 = vpop.f32.mrf.mxu1  ;;  %12127 = vmatprep.subr.bf16.mxu0 %v18481_v36 }
 0x57c   : > { %v4517_v41 = vpop.f32.mrf.mxu0 }
 0x57d   : > { %v15478_v24 = vadd.f32 %v4517_v41, %v4318_v59  ;;  %v11724_v25 = vpop.f32.mrf.mxu1  ;;  %12068 = vmatpush3.bf16.msra.mxu1 %v12909_v30  ;;  %v5138_v30 = vld [vmem:[#allocation3 + $0x40] sm:$0xff] }
 0x57e   : > { %v11784_v47 = vpop.f32.mrf.mxu0  ;;  %12128 = vmatpush3.bf16.msra.mxu0 %v12913_v37  ;;  %12181 = vmatprep.subr.bf16.mxu1 %v18481_v36  ;;  %v5139_v37 = vld [vmem:[#allocation3 + $0x48] sm:$0xff] }
 0x57f   : > { %v4323_v48 = vpop.f32.mrf.mxu1  ;;  %11958 = vmatmul.mubr.msk.bf16.gmra.mxu1 %vm18365_vm0, %v5159_v0  ;;  %v5160_v15 = vpack.c.bf16 %v5139_v37, %v5138_v30  ;;  %v5140_v30 = vld [vmem:[#allocation3 + $0x50] sm:$0xff]  ;;  %v5141_v37 = vld [vmem:[#allocation3 + $0x58] sm:$0xff] }
 0x580   : > { %v4522_v51 = vpop.f32.mrf.mxu0  ;;  %12018 = vmatmul.mubr.msk.bf16.gmra.mxu0 %vm18365_vm0, %v5429_v53  ;;  %11961 = vmatprep.mubr.msk.bf16.mxu1 %vm13017_vm12, %v18481_v36  ;;  %v5161_v19 = vpack.c.bf16 %v5141_v37, %v5140_v30  ;;  %v5142_v30 = vld [vmem:[#allocation3 + $0x60] sm:$0xff]  ;;  %v5143_v37 = vld [vmem:[#allocation3 + $0x68] sm:$0xff] }
 0x581   : > { %v15485_v49 = vadd.f32 %v4522_v51, %v4323_v48  ;;  %12021 = vmatprep.mubr.msk.bf16.mxu0 %vm13017_vm12, %v18481_v36  ;;  %v11727_v6 = vpop.f32.mrf.mxu1  ;;  %v5430_v51 = vpack.c.bf16 %v15225_v11, %v15221_v34  ;;  %v5162_v29 = vpack.c.bf16 %v5143_v37, %v5142_v30  ;;  %v5144_v30 = vld [vmem:[#allocation3 + $0x70] sm:$0xff]  ;;  %v5145_v37 = vld [vmem:[#allocation3 + $0x78] sm:$0xff] }
 0x582   : > { %v11787_v1 = vpop.f32.mrf.mxu0  ;;  %v5163_v44 = vpack.c.bf16 %v5145_v37, %v5144_v30  ;;  %v5146_v30 = vld [vmem:[#allocation3 + $0x80] sm:$0xff]  ;;  %v5147_v37 = vld [vmem:[#allocation3 + $0x88] sm:$0xff] }
 0x583   : > { %v4326_v59 = vpop.f32.mrf.mxu1  ;;  %v5164_v32 = vpack.c.bf16 %v5147_v37, %v5146_v30  ;;  %v5148_v30 = vld [vmem:[#allocation3 + $0x90] sm:$0xff]  ;;  %v5149_v37 = vld [vmem:[#allocation3 + $0x98] sm:$0xff] }
 0x584   : > { %v4525_v41 = vpop.f32.mrf.mxu0  ;;  %v5165_v38 = vpack.c.bf16 %v5149_v37, %v5148_v30  ;;  %v5150_v30 = vld [vmem:[#allocation3 + $0xa0] sm:$0xff]  ;;  %v5151_v37 = vld [vmem:[#allocation3 + $0xa8] sm:$0xff] }
 0x585   : > { %v15491_v25 = vadd.f32 %v4525_v41, %v4326_v59  ;;  %v11728_v47 = vpop.f32.mrf.mxu1  ;;  %v5166_v54 = vpack.c.bf16 %v5151_v37, %v5150_v30  ;;  %v5152_v30 = vld [vmem:[#allocation3 + $0xb0] sm:$0xff]  ;;  %v5153_v37 = vld [vmem:[#allocation3 + $0xb8] sm:$0xff] }
 0x586   : > { %v11788_v0 = vpop.f32.mrf.mxu0  ;;  %v5167_v5 = vpack.c.bf16 %v5153_v37, %v5152_v30  ;;  %v5154_v30 = vld [vmem:[#allocation3 + $0xc0] sm:$0xff]  ;;  %v5155_v37 = vld [vmem:[#allocation3 + $0xc8] sm:$0xff] }
 0x587   : > { %v4331_v53 = vpop.f32.mrf.mxu1  ;;  %11962 = vmatmul.mubr.msk.bf16.gmra.mxu1 %vm18365_vm0, %v5160_v15  ;;  %v5168_v22 = vpack.c.bf16 %v5155_v37, %v5154_v30  ;;  %v5156_v30 = vld [vmem:[#allocation3 + $0xd0] sm:$0xff] }
 0x588   : > { %v4530_v48 = vpop.f32.mrf.mxu0  ;;  %12022 = vmatmul.mubr.msk.bf16.gmra.mxu0 %vm18365_vm0, %v5430_v51  ;;  %11965 = vmatprep.mubr.msk.bf16.mxu1 %vm13017_vm12, %v18481_v36  ;;  %v5431_v51 = vpack.c.bf16 %v15231_v14, %v15229_v18 }
 0x589   : > { %v15497_v6 = vadd.f32 %v4530_v48, %v4331_v53  ;;  %12025 = vmatprep.mubr.msk.bf16.mxu0 %vm13017_vm12, %v18481_v36  ;;  %v11731_v1 = vpop.f32.mrf.mxu1 }
 0x58a   : > { %v11791_v59 = vpop.f32.mrf.mxu0 }
 0x58b   : > { %v4334_v41 = vpop.f32.mrf.mxu1 }
 0x58c   : > { %v4533_v47 = vpop.f32.mrf.mxu0 }
 0x58d   : > { %v15503_v0 = vadd.f32 %v4533_v47, %v4334_v41  ;;  %v11732_v21 = vpop.f32.mrf.mxu1 }
 0x58e   : > { %v11792_v15 = vpop.f32.mrf.mxu0 }
 0x58f   : > { %v4339_v53 = vpop.f32.mrf.mxu1  ;;  %11966 = vmatmul.mubr.msk.bf16.gmra.mxu1 %vm18365_vm0, %v5161_v19 }
 0x590   : > { %v4538_v48 = vpop.f32.mrf.mxu0  ;;  %12026 = vmatmul.mubr.msk.bf16.gmra.mxu0 %vm18365_vm0, %v5431_v51  ;;  %11969 = vmatprep.mubr.msk.bf16.mxu1 %vm13017_vm12, %v18481_v36  ;;  %v5432_v51 = vpack.c.bf16 %v15235_v62, %v15233_v60 }
 0x591   : > { %v15509_v1 = vadd.f32 %v4538_v48, %v4339_v53  ;;  %12029 = vmatprep.mubr.msk.bf16.mxu0 %vm13017_vm12, %v18481_v36  ;;  %v11735_v21 = vpop.f32.mrf.mxu1 }
 0x592   : > { %v11795_v59 = vpop.f32.mrf.mxu0 }
 0x593   : > { %v4342_v41 = vpop.f32.mrf.mxu1 }
 0x594   : > { %v4541_v47 = vpop.f32.mrf.mxu0 }
 0x595   : > { %v15515_v15 = vadd.f32 %v4541_v47, %v4342_v41  ;;  %v11736_v23 = vpop.f32.mrf.mxu1 }
 0x596   : > { %v11796_v19 = vpop.f32.mrf.mxu0 }
 0x597   : > { %v4347_v53 = vpop.f32.mrf.mxu1  ;;  %11970 = vmatmul.mubr.msk.bf16.gmra.mxu1 %vm18365_vm0, %v5162_v29 }
 0x598   : > { %v4546_v48 = vpop.f32.mrf.mxu0  ;;  %12030 = vmatmul.mubr.msk.bf16.gmra.mxu0 %vm18365_vm0, %v5432_v51  ;;  %11973 = vmatprep.mubr.msk.bf16.mxu1 %vm13017_vm12, %v18481_v36  ;;  %v5433_v51 = vpack.c.bf16 %v15245_v3, %v15239_v13 }
 0x599   : > { %v15521_v21 = vadd.f32 %v4546_v48, %v4347_v53  ;;  %12033 = vmatprep.mubr.msk.bf16.mxu0 %vm13017_vm12, %v18481_v36  ;;  %v11739_v23 = vpop.f32.mrf.mxu1 }
 0x59a   : > { %v11799_v59 = vpop.f32.mrf.mxu0 }
 0x59b   : > { %v4350_v41 = vpop.f32.mrf.mxu1 }
 0x59c   : > { %v4549_v47 = vpop.f32.mrf.mxu0 }
 0x59d   : > { %v15527_v19 = vadd.f32 %v4549_v47, %v4350_v41  ;;  %v11740_v9 = vpop.f32.mrf.mxu1 }
 0x59e   : > { %v11800_v29 = vpop.f32.mrf.mxu0 }
 0x59f   : > { %v4355_v53 = vpop.f32.mrf.mxu1  ;;  %11974 = vmatmul.mubr.msk.bf16.gmra.mxu1 %vm18365_vm0, %v5163_v44 }
 0x5a0   : > { %v4554_v48 = vpop.f32.mrf.mxu0  ;;  %12034 = vmatmul.mubr.msk.bf16.gmra.mxu0 %vm18365_vm0, %v5433_v51  ;;  %11977 = vmatprep.mubr.msk.bf16.mxu1 %vm13017_vm12, %v18481_v36  ;;  %v5434_v51 = vpack.c.bf16 %v15241_v16, %v15247_v33 }
 0x5a1   : > { %v15533_v23 = vadd.f32 %v4554_v48, %v4355_v53  ;;  %12037 = vmatprep.mubr.msk.bf16.mxu0 %vm13017_vm12, %v18481_v36  ;;  %v11743_v9 = vpop.f32.mrf.mxu1 }
 0x5a2   : > { %v11803_v59 = vpop.f32.mrf.mxu0 }
 0x5a3   : > { %v4358_v41 = vpop.f32.mrf.mxu1 }
 0x5a4   : > { %v4557_v47 = vpop.f32.mrf.mxu0 }
 0x5a5   : > { %v15539_v29 = vadd.f32 %v4557_v47, %v4358_v41  ;;  %v11744_v58 = vpop.f32.mrf.mxu1 }
 0x5a6   : > { %v11804_v44 = vpop.f32.mrf.mxu0 }
 0x5a7   : > { %v4363_v53 = vpop.f32.mrf.mxu1  ;;  %11978 = vmatmul.mubr.msk.bf16.gmra.mxu1 %vm18365_vm0, %v5164_v32 }
 0x5a8   : > { %v4562_v48 = vpop.f32.mrf.mxu0  ;;  %12038 = vmatmul.mubr.msk.bf16.gmra.mxu0 %vm18365_vm0, %v5434_v51  ;;  %11981 = vmatprep.mubr.msk.bf16.mxu1 %vm13017_vm12, %v18481_v36  ;;  %v5435_v51 = vpack.c.bf16 %v15255_v61, %v15253_v50 }
 0x5a9   : > { %v15545_v9 = vadd.f32 %v4562_v48, %v4363_v53  ;;  %12041 = vmatprep.mubr.msk.bf16.mxu0 %vm13017_vm12, %v18481_v36  ;;  %v11747_v58 = vpop.f32.mrf.mxu1 }
 0x5aa   : > { %v11807_v59 = vpop.f32.mrf.mxu0 }
 0x5ab   : > { %v4366_v41 = vpop.f32.mrf.mxu1 }
 0x5ac   : > { %v4565_v47 = vpop.f32.mrf.mxu0 }
 0x5ad   : > { %v15551_v44 = vadd.f32 %v4565_v47, %v4366_v41  ;;  %v11748_v2 = vpop.f32.mrf.mxu1 }
 0x5ae   : > { %v11808_v32 = vpop.f32.mrf.mxu0 }
 0x5af   : > { %v4371_v53 = vpop.f32.mrf.mxu1  ;;  %11982 = vmatmul.mubr.msk.bf16.gmra.mxu1 %vm18365_vm0, %v5165_v38 }
 0x5b0   : > { %v4570_v48 = vpop.f32.mrf.mxu0  ;;  %12042 = vmatmul.mubr.msk.bf16.gmra.mxu0 %vm18365_vm0, %v5435_v51  ;;  %11985 = vmatprep.mubr.msk.bf16.mxu1 %vm13017_vm12, %v18481_v36  ;;  %v5436_v51 = vpack.c.bf16 %v15267_v39, %v15261_v20 }
 0x5b1   : > { %v15557_v58 = vadd.f32 %v4570_v48, %v4371_v53  ;;  %12045 = vmatprep.mubr.msk.bf16.mxu0 %vm13017_vm12, %v18481_v36  ;;  %v11751_v2 = vpop.f32.mrf.mxu1 }
 0x5b2   : > { %v11811_v59 = vpop.f32.mrf.mxu0 }
 0x5b3   : > { %v4374_v41 = vpop.f32.mrf.mxu1 }
 0x5b4   : > { %v4573_v47 = vpop.f32.mrf.mxu0 }
 0x5b5   : > { %v15563_v32 = vadd.f32 %v4573_v47, %v4374_v41  ;;  %v11752_v57 = vpop.f32.mrf.mxu1 }
 0x5b6   : > { %v11812_v38 = vpop.f32.mrf.mxu0 }
 0x5b7   : > { %v4379_v53 = vpop.f32.mrf.mxu1  ;;  %11986 = vmatmul.mubr.msk.bf16.gmra.mxu1 %vm18365_vm0, %v5166_v54 }
 0x5b8   : > { %v4578_v48 = vpop.f32.mrf.mxu0  ;;  %12046 = vmatmul.mubr.msk.bf16.gmra.mxu0 %vm18365_vm0, %v5436_v51  ;;  %11989 = vmatprep.mubr.msk.bf16.mxu1 %vm13017_vm12, %v18481_v36  ;;  %v5437_v51 = vpack.c.bf16 %v15273_v7, %v15271_v42 }
 0x5b9   : > { %v15569_v2 = vadd.f32 %v4578_v48, %v4379_v53  ;;  %12049 = vmatprep.mubr.msk.bf16.mxu0 %vm13017_vm12, %v18481_v36  ;;  %v11755_v57 = vpop.f32.mrf.mxu1 }
 0x5ba   : > { %v11815_v59 = vpop.f32.mrf.mxu0 }
 0x5bb   : > { %v4382_v41 = vpop.f32.mrf.mxu1 }
 0x5bc   : > { %v4581_v47 = vpop.f32.mrf.mxu0 }
 0x5bd   : > { %v15575_v38 = vadd.f32 %v4581_v47, %v4382_v41  ;;  %v11756_v46 = vpop.f32.mrf.mxu1 }
 0x5be   : > { %v11816_v54 = vpop.f32.mrf.mxu0 }
 0x5bf   : > { %v4387_v53 = vpop.f32.mrf.mxu1  ;;  %11990 = vmatmul.mubr.msk.bf16.gmra.mxu1 %vm18365_vm0, %v5167_v5  ;;  %v5438_v5 = vpack.c.bf16 %v15277_v10, %v15275_v26 }
 0x5c0   : > { %v4586_v48 = vpop.f32.mrf.mxu0  ;;  %12050 = vmatmul.mubr.msk.bf16.gmra.mxu0 %vm18365_vm0, %v5437_v51  ;;  %11993 = vmatprep.mubr.msk.bf16.mxu1 %vm13017_vm12, %v18481_v36 }
 0x5c1   : > { %v15581_v57 = vadd.f32 %v4586_v48, %v4387_v53  ;;  %12053 = vmatprep.mubr.msk.bf16.mxu0 %vm13017_vm12, %v18481_v36  ;;  %v11759_v46 = vpop.f32.mrf.mxu1 }
 0x5c2   : > { %v11819_v59 = vpop.f32.mrf.mxu0 }
 0x5c3   : > { %v4390_v41 = vpop.f32.mrf.mxu1 }
 0x5c4   : > { %v4589_v47 = vpop.f32.mrf.mxu0 }
 0x5c5   : > { %v11760_v54 = vpop.f32.mrf.mxu1 }
 0x5c6   : > { %v11820_v31 = vpop.f32.mrf.mxu0 }
 0x5c7   : > { %v4735_v51 = vpop.f32.mrf.mxu1  ;;  %11994 = vmatmul.mubr.msk.bf16.gmra.mxu1 %vm18365_vm0, %v5168_v22 }
 0x5c8   : > { %v5005_v53 = vpop.f32.mrf.mxu0  ;;  %12054 = vmatmul.mubr.msk.bf16.gmra.mxu0 %vm18365_vm0, %v5438_v5  ;;  %v4837_v48 = vadd.f32 %v4735_v51, %v15425_v52  ;;  %11997 = vmatprep.mubr.msk.bf16.mxu1 %vm13017_vm12, %v18481_v36  ;;  %v5169_v5 = vpack.c.bf16 %v5156_v30, %v5156_v30  ;;  %v5439_v52 = vpack.c.bf16 %v15281_v63, %v15281_v63  ;;  %v5943_v30 = vld [vmem:[#allocation3 + $0x22] sm:$0xff] }
 0x5c9   : > { %12057 = vmatprep.mubr.msk.bf16.mxu0 %vm13017_vm12, %v18481_v36  ;;  %v11831_v46 = vpop.f32.mrf.mxu1 }
 0x5ca   : > { %v11891_v31 = vpop.f32.mrf.mxu0  ;;  %v15596_v59 = vadd.f32 %v5005_v53, %v4837_v48 }
 0x5cb   : > { %v4738_v37 = vpop.f32.mrf.mxu1  ;;  %v5942_v31 = vld [vmem:[#allocation3 + $0x1a] sm:$0xff] }
 0x5cc   : > { %v5008_v41 = vpop.f32.mrf.mxu0  ;;  %v4838_v47 = vadd.f32 %v4738_v37, %v15431_v43 }
 0x5cd   : > { %v11832_v22 = vpop.f32.mrf.mxu1 }
 0x5ce   : > { %v11892_v54 = vpop.f32.mrf.mxu0  ;;  %v15601_v51 = vadd.f32 %v5008_v41, %v4838_v47  ;;  %v12914_v22 = vld [vmem:[%s13220_s13 + $0x238] sm:$0xff]  }
 0x5cf   : > { %v4743_v8 = vpop.f32.mrf.mxu1  ;;  %11998 = vmatmul.mubr.msk.bf16.gmra.mxu1 %vm18365_vm0, %v5169_v5 }
 0x5d0   : > { %18485 = vst [vmem:[#allocation36_spill] sm:$0xff] %v15601_v51  ;;  %v5013_v10 = vpop.f32.mrf.mxu0  ;;  %12058 = vmatmul.mubr.msk.bf16.gmra.mxu0 %vm18365_vm0, %v5439_v52  ;;  %v4839_v53 = vadd.f32 %v4743_v8, %v15435_v35  ;;  %12069 = vmatprep.mubr.msk.bf16.mxu1 %vm13017_vm12, %v18481_v36  ;;  %v5967_v35 = vpack.c.bf16 %v5943_v30, %v5942_v31  ;;  %v5945_v31 = vld [vmem:[#allocation3 + $0x32] sm:$0xff] }
 0x5d1   : > { %12129 = vmatprep.mubr.msk.bf16.mxu0 %vm13017_vm12, %v18481_v36  ;;  %v11835_v43 = vpop.f32.mrf.mxu1 }
 0x5d2   : > { %v11895_v48 = vpop.f32.mrf.mxu0  ;;  %v15610_v46 = vadd.f32 %v5013_v10, %v4839_v53  ;;  %v18486_v43 = vpack.c.bf16 %v15206_v4, %v15202_v40  ;;  %v5944_v4 = vld [vmem:[#allocation3 + $0x2a] sm:$0xff] }
 0x5d3   : > { %v4746_v37 = vpop.f32.mrf.mxu1 }
 0x5d4   : > { %v5016_v41 = vpop.f32.mrf.mxu0  ;;  %v4840_v47 = vadd.f32 %v4746_v37, %v15441_v55  ;;  %v12915_v55 = vld [vmem:[%s13220_s13 + $0x230] sm:$0xff]  }
 0x5d5   : > { %v11836_v54 = vpop.f32.mrf.mxu1 }
 0x5d6   : > { %v11896_v8 = vpop.f32.mrf.mxu0  ;;  %v15614_v5 = vadd.f32 %v5016_v41, %v4840_v47  ;;  %v12916_v54 = vld [vmem:[%s13220_s13 + $0x228] sm:$0xff]  }
 0x5d7   : > { %v4751_v52 = vpop.f32.mrf.mxu1  ;;  %12070 = vmatmul.mubr.msk.bf16.vlgmr.msra.gmra.mxu1 %vm18365_vm0, %v18486_v43 }
 0x5d8   : > { %v5021_v51 = vpop.f32.mrf.mxu0  ;;  %12130 = vmatmul.mubr.msk.bf16.vlgmr.msra.gmra.mxu0 %vm18365_vm0, %v5967_v35  ;;  %v4841_v10 = vadd.f32 %v4751_v52, %v15448_v12  ;;  %12182 = vmatpush3.bf16.msra.mxu1 %v12914_v22  ;;  %v5968_v22 = vpack.c.bf16 %v5945_v31, %v5944_v4 }
 0x5d9   : > { %12073 = vmatprep.mubr.msk.bf16.mxu1 %vm13017_vm12, %v18481_v36  ;;  %v11839_v53 = vpop.f32.mrf.mxu1  ;;  %12133 = vmatprep.mubr.msk.bf16.mxu0 %vm13017_vm12, %v18481_v36 }
 0x5da   : > { %v11899_v48 = vpop.f32.mrf.mxu0  ;;  %12183 = vmatprep.subr.bf16.mxu1 %v18481_v36  ;;  %v15628_v40 = vadd.f32 %v5021_v51, %v4841_v10  ;;  %v18487_v51 = vpack.c.bf16 %v15214_v28, %v15208_v17  ;;  %v5947_v17 = vld [vmem:[#allocation3 + $0x42] sm:$0xff] }
 0x5db   : > { %v4754_v30 = vpop.f32.mrf.mxu1  ;;  %v5946_v48 = vld [vmem:[#allocation3 + $0x3a] sm:$0xff] }
 0x5dc   : > { %v5024_v37 = vpop.f32.mrf.mxu0  ;;  %v4842_v12 = vadd.f32 %v4754_v30, %v15458_v45  ;;  %12184 = vmatpush3.bf16.msra.mxu1 %v12915_v55  ;;  %v12917_v55 = vld [vmem:[%s13220_s13 + $0x220] sm:$0xff]  }
 0x5dd   : > { %v11840_v41 = vpop.f32.mrf.mxu1  ;;  %12185 = vmatprep.subr.bf16.mxu1 %v18481_v36 }
 0x5de   : > { %v11900_v47 = vpop.f32.mrf.mxu0  ;;  %v15633_v8 = vadd.f32 %v5024_v37, %v4842_v12  ;;  %v5969_v37 = vpack.c.bf16 %v5947_v17, %v5946_v48 }
 0x5df   : > { %v4759_v35 = vpop.f32.mrf.mxu1  ;;  %12074 = vmatmul.mubr.msk.bf16.gmra.mxu1 %vm18365_vm0, %v18487_v51  ;;  %v5948_v51 = vld [vmem:[#allocation3 + $0x4a] sm:$0xff] }
 0x5e0   : > { %v5029_v52 = vpop.f32.mrf.mxu0  ;;  %12134 = vmatmul.mubr.msk.bf16.gmra.mxu0 %vm18365_vm0, %v5968_v22  ;;  %v4843_v45 = vadd.f32 %v4759_v35, %v15467_v27  ;;  %12077 = vmatprep.mubr.msk.bf16.mxu1 %vm13017_vm12, %v18481_v36  ;;  %v18488_v22 = vpack.c.bf16 %v15221_v34, %v15216_v56 }
 0x5e1   : > { %12137 = vmatprep.mubr.msk.bf16.mxu0 %vm13017_vm12, %v18481_v36  ;;  %v11843_v43 = vpop.f32.mrf.mxu1  ;;  %12186 = vmatpush3.bf16.msra.mxu1 %v12916_v54 }
 0x5e2   : > { %v11903_v10 = vpop.f32.mrf.mxu0  ;;  %v15646_v53 = vadd.f32 %v5029_v52, %v4843_v45  ;;  %12187 = vmatprep.subr.bf16.mxu1 %v18481_v36  ;;  %v5949_v45 = vld [vmem:[#allocation3 + $0x52] sm:$0xff] }
 0x5e3   : > { %v4762_v28 = vpop.f32.mrf.mxu1  ;;  %v5970_v48 = vpack.c.bf16 %v5949_v45, %v5948_v51  ;;  %v18490_v45 = vpack.c.bf16 %v15233_v60, %v15231_v14 }
 0x5e4   : > { %v5032_v4 = vpop.f32.mrf.mxu0  ;;  %v4844_v27 = vadd.f32 %v4762_v28, %v15478_v24 }
 0x5e5   : > { %v11844_v31 = vpop.f32.mrf.mxu1  ;;  %12188 = vmatpush3.bf16.msra.mxu1 %v12917_v55 }
 0x5e6   : > { %v11904_v30 = vpop.f32.mrf.mxu0  ;;  %v15650_v12 = vadd.f32 %v5032_v4, %v4844_v27  ;;  %v18489_v4 = vpack.c.bf16 %v15229_v18, %v15225_v11 }
 0x5e7   : > { %v4767_v41 = vpop.f32.mrf.mxu1  ;;  %12078 = vmatmul.mubr.msk.bf16.gmra.mxu1 %vm18365_vm0, %v18488_v22 }
 0x5e8   : > { %v5037_v47 = vpop.f32.mrf.mxu0  ;;  %12138 = vmatmul.mubr.msk.bf16.gmra.mxu0 %vm18365_vm0, %v5969_v37  ;;  %v4845_v54 = vadd.f32 %v4767_v41, %v15485_v49  ;;  %12081 = vmatprep.mubr.msk.bf16.mxu1 %vm13017_vm12, %v18481_v36  ;;  %v5950_v37 = vld [vmem:[#allocation3 + $0x5a] sm:$0xff]  ;;  %v5951_v41 = vld [vmem:[#allocation3 + $0x62] sm:$0xff] }
 0x5e9   : > { %12141 = vmatprep.mubr.msk.bf16.mxu0 %vm13017_vm12, %v18481_v36  ;;  %v11847_v24 = vpop.f32.mrf.mxu1 }
 0x5ea   : > { %v11907_v35 = vpop.f32.mrf.mxu0  ;;  %v15662_v52 = vadd.f32 %v5037_v47, %v4845_v54  ;;  %v5971_v24 = vpack.c.bf16 %v5951_v41, %v5950_v37 }
 0x5eb   : > { %v4770_v43 = vpop.f32.mrf.mxu1 }
 0x5ec   : > { %v5040_v56 = vpop.f32.mrf.mxu0  ;;  %v4846_v34 = vadd.f32 %v4770_v43, %v15491_v25 }
 0x5ed   : > { %v11848_v10 = vpop.f32.mrf.mxu1 }
 0x5ee   : > { %v11908_v55 = vpop.f32.mrf.mxu0  ;;  %v15665_v49 = vadd.f32 %v5040_v56, %v4846_v34  ;;  %v5952_v10 = vld [vmem:[#allocation3 + $0x6a] sm:$0xff] }
 0x5ef   : > { %v4775_v17 = vpop.f32.mrf.mxu1  ;;  %12082 = vmatmul.mubr.msk.bf16.gmra.mxu1 %vm18365_vm0, %v18489_v4  ;;  %v5953_v55 = vld [vmem:[#allocation3 + $0x72] sm:$0xff] }
 0x5f0   : > { %v5045_v28 = vpop.f32.mrf.mxu0  ;;  %12142 = vmatmul.mubr.msk.bf16.gmra.mxu0 %vm18365_vm0, %v5970_v48  ;;  %v4847_v27 = vadd.f32 %v4775_v17, %v15497_v6  ;;  %12085 = vmatprep.mubr.msk.bf16.mxu1 %vm13017_vm12, %v18481_v36  ;;  %v5972_v4 = vpack.c.bf16 %v5953_v55, %v5952_v10  ;;  %v5956_v55 = vld [vmem:[#allocation3 + $0x8a] sm:$0xff] }
 0x5f1   : > { %12145 = vmatprep.mubr.msk.bf16.mxu0 %vm13017_vm12, %v18481_v36  ;;  %v11851_v25 = vpop.f32.mrf.mxu1 }
 0x5f2   : > { %v11911_v31 = vpop.f32.mrf.mxu0  ;;  %v15677_v30 = vadd.f32 %v5045_v28, %v4847_v27 }
 0x5f3   : > { %v4778_v47 = vpop.f32.mrf.mxu1  ;;  %v18491_v31 = vpack.c.bf16 %v15239_v13, %v15235_v62 }
 0x5f4   : > { %v5048_v11 = vpop.f32.mrf.mxu0  ;;  %v4848_v18 = vadd.f32 %v4778_v47, %v15503_v0 }
 0x5f5   : > { %v11852_v22 = vpop.f32.mrf.mxu1 }
 0x5f6   : > { %v11912_v54 = vpop.f32.mrf.mxu0  ;;  %v15680_v6 = vadd.f32 %v5048_v11, %v4848_v18  ;;  %v5954_v11 = vld [vmem:[#allocation3 + $0x7a] sm:$0xff]  ;;  %v5955_v18 = vld [vmem:[#allocation3 + $0x82] sm:$0xff] }
 0x5f7   : > { %v4783_v35 = vpop.f32.mrf.mxu1  ;;  %12086 = vmatmul.mubr.msk.bf16.gmra.mxu1 %vm18365_vm0, %v18490_v45 }
 0x5f8   : > { %v5053_v51 = vpop.f32.mrf.mxu0  ;;  %12146 = vmatmul.mubr.msk.bf16.gmra.mxu0 %vm18365_vm0, %v5971_v24  ;;  %v4849_v43 = vadd.f32 %v4783_v35, %v15509_v1  ;;  %12089 = vmatprep.mubr.msk.bf16.mxu1 %vm13017_vm12, %v18481_v36  ;;  %v5973_v35 = vpack.c.bf16 %v5955_v18, %v5954_v11  ;;  %v5959_v11 = vld [vmem:[#allocation3 + $0xa2] sm:$0xff] }
 0x5f9   : > { %12149 = vmatprep.mubr.msk.bf16.mxu0 %vm13017_vm12, %v18481_v36  ;;  %v11855_v0 = vpop.f32.mrf.mxu1 }
 0x5fa   : > { %v11915_v56 = vpop.f32.mrf.mxu0  ;;  %v15692_v34 = vadd.f32 %v5053_v51, %v4849_v43  ;;  %v18492_v43 = vpack.c.bf16 %v15247_v33, %v15245_v3 }
 0x5fb   : > { %v4786_v48 = vpop.f32.mrf.mxu1 }
 0x5fc   : > { %v5056_v14 = vpop.f32.mrf.mxu0  ;;  %v4850_v60 = vadd.f32 %v4786_v48, %v15515_v15  ;;  %v5957_v48 = vld [vmem:[#allocation3 + $0x92] sm:$0xff] }
 0x5fd   : > { %v11856_v17 = vpop.f32.mrf.mxu1 }
 0x5fe   : > { %v11916_v28 = vpop.f32.mrf.mxu0  ;;  %v15695_v1 = vadd.f32 %v5056_v14, %v4850_v60 }
 0x5ff   : > { %v4791_v27 = vpop.f32.mrf.mxu1  ;;  %12090 = vmatmul.mubr.msk.bf16.gmra.mxu1 %vm18365_vm0, %v18491_v31  ;;  %v5974_v28 = vpack.c.bf16 %v5957_v48, %v5956_v55 }
 0x600   : > { %v5061_v25 = vpop.f32.mrf.mxu0  ;;  %12150 = vmatmul.mubr.msk.bf16.gmra.mxu0 %vm18365_vm0, %v5972_v4  ;;  %v4851_v37 = vadd.f32 %v4791_v27, %v15521_v21  ;;  %12093 = vmatprep.mubr.msk.bf16.mxu1 %vm13017_vm12, %v18481_v36 }
 0x601   : > { %12153 = vmatprep.mubr.msk.bf16.mxu0 %vm13017_vm12, %v18481_v36  ;;  %v11859_v15 = vpop.f32.mrf.mxu1 }
 0x602   : > { %v11919_v41 = vpop.f32.mrf.mxu0  ;;  %v15707_v47 = vadd.f32 %v5061_v25, %v4851_v37  ;;  %v18493_v25 = vpack.c.bf16 %v15253_v50, %v15241_v16 }
 0x603   : > { %v4794_v22 = vpop.f32.mrf.mxu1  ;;  %v5958_v41 = vld [vmem:[#allocation3 + $0x9a] sm:$0xff] }
 0x604   : > { %v5064_v62 = vpop.f32.mrf.mxu0  ;;  %v4852_v13 = vadd.f32 %v4794_v22, %v15527_v19 }
 0x605   : > { %v11860_v54 = vpop.f32.mrf.mxu1 }
 0x606   : > { %v11920_v24 = vpop.f32.mrf.mxu0  ;;  %v15710_v21 = vadd.f32 %v5064_v62, %v4852_v13  ;;  %v5975_v13 = vpack.c.bf16 %v5959_v11, %v5958_v41 }
 0x607   : > { %v4799_v51 = vpop.f32.mrf.mxu1  ;;  %12094 = vmatmul.mubr.msk.bf16.gmra.mxu1 %vm18365_vm0, %v18492_v43 }
 0x608   : > { %v5069_v45 = vpop.f32.mrf.mxu0  ;;  %12154 = vmatmul.mubr.msk.bf16.gmra.mxu0 %vm18365_vm0, %v5973_v35  ;;  %v4853_v0 = vadd.f32 %v4799_v51, %v15533_v23  ;;  %12097 = vmatprep.mubr.msk.bf16.mxu1 %vm13017_vm12, %v18481_v36  ;;  %v18494_v35 = vpack.c.bf16 %v15261_v20, %v15255_v61 }
 0x609   : > { %12157 = vmatprep.mubr.msk.bf16.mxu0 %vm13017_vm12, %v18481_v36  ;;  %v11863_v19 = vpop.f32.mrf.mxu1 }
 0x60a   : > { %v11923_v56 = vpop.f32.mrf.mxu0  ;;  %v15722_v10 = vadd.f32 %v5069_v45, %v4853_v0  ;;  %v5960_v0 = vld [vmem:[#allocation3 + $0xaa] sm:$0xff]  ;;  %v5961_v19 = vld [vmem:[#allocation3 + $0xb2] sm:$0xff] }
 0x60b   : > { %v4802_v14 = vpop.f32.mrf.mxu1 }
 0x60c   : > { %v5072_v3 = vpop.f32.mrf.mxu0  ;;  %v4854_v33 = vadd.f32 %v4802_v14, %v15539_v29  ;;  %v5976_v14 = vpack.c.bf16 %v5961_v19, %v5960_v0 }
 0x60d   : > { %v11864_v60 = vpop.f32.mrf.mxu1 }
 0x60e   : > { %v11924_v17 = vpop.f32.mrf.mxu0  ;;  %v15725_v23 = vadd.f32 %v5072_v3, %v4854_v33  ;;  %v18495_v60 = vpack.c.bf16 %v15271_v42, %v15267_v39 }
 0x60f   : > { %v4807_v4 = vpop.f32.mrf.mxu1  ;;  %12098 = vmatmul.mubr.msk.bf16.gmra.mxu1 %vm18365_vm0, %v18493_v25  ;;  %v5963_v25 = vld [vmem:[#allocation3 + $0xc2] sm:$0xff] }
 0x610   : > { %v5077_v27 = vpop.f32.mrf.mxu0  ;;  %12158 = vmatmul.mubr.msk.bf16.gmra.mxu0 %vm18365_vm0, %v5974_v28  ;;  %v4855_v31 = vadd.f32 %v4807_v4, %v15545_v9  ;;  %12101 = vmatprep.mubr.msk.bf16.mxu1 %vm13017_vm12, %v18481_v36 }
 0x611   : > { %12161 = vmatprep.mubr.msk.bf16.mxu0 %vm13017_vm12, %v18481_v36  ;;  %v11867_v29 = vpop.f32.mrf.mxu1 }
 0x612   : > { %v11927_v37 = vpop.f32.mrf.mxu0  ;;  %v15737_v15 = vadd.f32 %v5077_v27, %v4855_v31  ;;  %v5962_v27 = vld [vmem:[#allocation3 + $0xba] sm:$0xff] }
 0x613   : > { %v4810_v18 = vpop.f32.mrf.mxu1  ;;  %v5977_v41 = vpack.c.bf16 %v5963_v25, %v5962_v27 }
 0x614   : > { %v5080_v16 = vpop.f32.mrf.mxu0  ;;  %v4856_v50 = vadd.f32 %v4810_v18, %v15551_v44 }
 0x615   : > { %v11868_v22 = vpop.f32.mrf.mxu1 }
 0x616   : > { %v11928_v62 = vpop.f32.mrf.mxu0  ;;  %v15740_v9 = vadd.f32 %v5080_v16, %v4856_v50  ;;  %v18496_v16 = vpack.c.bf16 %v15275_v26, %v15273_v7 }
 0x617   : > { %v4815_v54 = vpop.f32.mrf.mxu1  ;;  %12102 = vmatmul.mubr.msk.bf16.gmra.mxu1 %vm18365_vm0, %v18494_v35 }
 0x618   : > { %v5085_v24 = vpop.f32.mrf.mxu0  ;;  %12162 = vmatmul.mubr.msk.bf16.gmra.mxu0 %vm18365_vm0, %v5975_v13  ;;  %v4857_v51 = vadd.f32 %v4815_v54, %v15557_v58  ;;  %12105 = vmatprep.mubr.msk.bf16.mxu1 %vm13017_vm12, %v18481_v36  ;;  %v5964_v13 = vld [vmem:[#allocation3 + $0xca] sm:$0xff]  ;;  %v5965_v54 = vld [vmem:[#allocation3 + $0xd2] sm:$0xff] }
 0x619   : > { %12165 = vmatprep.mubr.msk.bf16.mxu0 %vm13017_vm12, %v18481_v36  ;;  %v11871_v44 = vpop.f32.mrf.mxu1 }
 0x61a   : > { %v11931_v45 = vpop.f32.mrf.mxu0  ;;  %v15752_v43 = vadd.f32 %v5085_v24, %v4857_v51  ;;  %v5978_v51 = vpack.c.bf16 %v5965_v54, %v5964_v13 }
 0x61b   : > { %v4818_v56 = vpop.f32.mrf.mxu1 }
 0x61c   : > { %v5088_v61 = vpop.f32.mrf.mxu0  ;;  %v4858_v20 = vadd.f32 %v4818_v56, %v15563_v32  ;;  %v5696_v56 = vld [vmem:[#allocation3 + $0xd9] sm:$0xff] }
 0x61d   : > { %v11872_v55 = vpop.f32.mrf.mxu1 }
 0x61e   : > { %v11932_v48 = vpop.f32.mrf.mxu0  ;;  %v15755_v58 = vadd.f32 %v5088_v61, %v4858_v20  ;;  %v5966_v61 = vld [vmem:[#allocation3 + $0xda] sm:$0xff] }
 0x61f   : > { %v4823_v3 = vpop.f32.mrf.mxu1  ;;  %12106 = vmatmul.mubr.msk.bf16.gmra.mxu1 %vm18365_vm0, %v18495_v60  ;;  %v18499_v60 = vld [vmem:[#allocation36_spill] sm:$0xff] }
 0x620   : > { %v5093_v33 = vpop.f32.mrf.mxu0  ;;  %12166 = vmatmul.mubr.msk.bf16.gmra.mxu0 %vm18365_vm0, %v5976_v14  ;;  %v4859_v17 = vadd.f32 %v4823_v3, %v15569_v2  ;;  %12109 = vmatprep.mubr.msk.bf16.mxu1 %vm13017_vm12, %v18481_v36  ;;  %v5709_v3 = vpack.c.bf16 %v5696_v56, %v5696_v56 }
 0x621   : > { %12169 = vmatprep.mubr.msk.bf16.mxu0 %vm13017_vm12, %v18481_v36  ;;  %v11875_v32 = vpop.f32.mrf.mxu1 }
 0x622   : > { %v11935_v28 = vpop.f32.mrf.mxu0  ;;  %v15767_v4 = vadd.f32 %v5093_v33, %v4859_v17  ;;  %v5979_v33 = vpack.c.bf16 %v5966_v61, %v5966_v61 }
 0x623   : > { %v4826_v31 = vpop.f32.mrf.mxu1 }
 0x624   : > { %v5096_v39 = vpop.f32.mrf.mxu0  ;;  %v4860_v42 = vadd.f32 %v4826_v31, %v15575_v38 }
 0x625   : > { %v11876_v29 = vpop.f32.mrf.mxu1 }
 0x626   : > { %v11936_v37 = vpop.f32.mrf.mxu0  ;;  %v15770_v2 = vadd.f32 %v5096_v39, %v4860_v42 }
 0x627   : > { %v4831_v11 = vpop.f32.mrf.mxu1  ;;  %12110 = vmatmul.mubr.msk.bf16.gmra.mxu1 %vm18365_vm0, %v18496_v16  ;;  %v6212_v37 = vld [vmem:[#allocation3 + $0x1b] sm:$0xff] }
 0x628   : > { %v5101_v18 = vpop.f32.mrf.mxu0  ;;  %12170 = vmatmul.mubr.msk.bf16.gmra.mxu0 %vm18365_vm0, %v5977_v41  ;;  %v4861_v50 = vadd.f32 %v4831_v11, %v15581_v57  ;;  %12113 = vmatprep.mubr.msk.bf16.mxu1 %vm13017_vm12, %v18481_v36  ;;  %v18497_v57 = vld [vmem:[#allocation34_spill] sm:$0xff] }
 0x629   : > { %12173 = vmatprep.mubr.msk.bf16.mxu0 %vm13017_vm12, %v18481_v36  ;;  %v11879_v38 = vpop.f32.mrf.mxu1  ;;  %v18498_v0 = vpack.c.bf16 %v15281_v63, %v18497_v57  ;;  %v6213_v41 = vld [vmem:[#allocation3 + $0x23] sm:$0xff] }
 0x62a   : > { %v11939_v22 = vpop.f32.mrf.mxu0  ;;  %v15782_v62 = vadd.f32 %v5101_v18, %v4861_v50 }
 0x62b   : > { %v4834_v24 = vpop.f32.mrf.mxu1  ;;  %v6237_v22 = vpack.c.bf16 %v6213_v41, %v6212_v37 }
 0x62c   : > { %v5104_v7 = vpop.f32.mrf.mxu0 }
 0x62d   : > { %v11880_v26 = vpop.f32.mrf.mxu1 }
 0x62e   : > { %v11940_v35 = vpop.f32.mrf.mxu0 }
 0x62f   : > { %v5275_v44 = vpop.f32.mrf.mxu1  ;;  %12114 = vmatmul.mubr.msk.bf16.gmra.mxu1 %vm18365_vm0, %v18498_v0 }
 0x630   : > { %v5545_v45 = vpop.f32.mrf.mxu0  ;;  %12174 = vmatmul.mubr.msk.bf16.gmra.mxu0 %vm18365_vm0, %v5978_v51  ;;  %v5377_v19 = vadd.f32 %v5275_v44, %v15596_v59  ;;  %12117 = vmatprep.mubr.msk.bf16.mxu1 %vm13017_vm12, %v18481_v36  ;;  %v6214_v51 = vld [vmem:[#allocation3 + $0x2b] sm:$0xff] }
 0x631   : > { %12177 = vmatprep.mubr.msk.bf16.mxu0 %vm13017_vm12, %v18481_v36  ;;  %v11951_v20 = vpop.f32.mrf.mxu1 }
 0x632   : > { %v12011_v55 = vpop.f32.mrf.mxu0  ;;  %v15794_v48 = vadd.f32 %v5545_v45, %v5377_v19 }
 0x633   : > { %v5278_v14 = vpop.f32.mrf.mxu1 }
 0x634   : > { %v5548_v63 = vpop.f32.mrf.mxu0  ;;  %v5378_v17 = vadd.f32 %v5278_v14, %v18499_v60 }
 0x635   : > { %v11952_v32 = vpop.f32.mrf.mxu1 }
 0x636   : > { %v12012_v59 = vpop.f32.mrf.mxu0  ;;  %v15797_v28 = vadd.f32 %v5548_v63, %v5378_v17 }
 0x637   : > { %v5283_v27 = vpop.f32.mrf.mxu1  ;;  %12118 = vmatmul.mubr.msk.bf16.gmra.mxu1 %vm18365_vm0, %v5709_v3 }
 0x638   : > { %v5553_v25 = vpop.f32.mrf.mxu0  ;;  %12178 = vmatmul.mubr.msk.bf16.gmra.mxu0 %vm18365_vm0, %v5979_v33  ;;  %v5379_v31 = vadd.f32 %v5283_v27, %v15610_v46  ;;  %12189 = vmatprep.mubr.msk.bf16.mxu1 %vm13017_vm12, %v18481_v36  ;;  %v6216_v33 = vld [vmem:[#allocation3 + $0x3b] sm:$0xff] }
 0x639   : > { %v11955_v39 = vpop.f32.mrf.mxu1 }
 0x63a   : > { %v12015_v42 = vpop.f32.mrf.mxu0  ;;  %v15804_v29 = vadd.f32 %v5553_v25, %v5379_v31 }
 0x63b   : > { %v5286_v11 = vpop.f32.mrf.mxu1 }
 0x63c   : > { %v5556_v18 = vpop.f32.mrf.mxu0  ;;  %v5380_v16 = vadd.f32 %v5286_v11, %v15614_v5  ;;  %v6215_v5 = vld [vmem:[#allocation3 + $0x33] sm:$0xff] }
 0x63d   : > { %v11956_v50 = vpop.f32.mrf.mxu1  ;;  %v6238_v56 = vpack.c.bf16 %v6215_v5, %v6214_v51 }
 0x63e   : > { %v12016_v38 = vpop.f32.mrf.mxu0  ;;  %v15807_v13 = vadd.f32 %v5556_v18, %v5380_v16  ;;  %v6218_v18 = vld [vmem:[#allocation3 + $0x4b] sm:$0xff] }
 0x63f   : > { %v5291_v54 = vpop.f32.mrf.mxu1  ;;  %12190 = vmatmul.mubr.msk.bf16.vlgmr.msra.gmra.mxu1 %vm18365_vm0, %v6237_v22 }
 0x640   : > { %v5561_v46 = vpop.f32.mrf.mxu0  ;;  %v5381_v24 = vadd.f32 %v5291_v54, %v15628_v40  ;;  %12193 = vmatprep.mubr.msk.bf16.mxu1 %vm13017_vm12, %v18481_v36 }
 0x641   : > { %v11959_v7 = vpop.f32.mrf.mxu1 }
 0x642   : > { %v12019_v26 = vpop.f32.mrf.mxu0  ;;  %v15813_v35 = vadd.f32 %v5561_v46, %v5381_v24 }
 0x643   : > { %v5294_v44 = vpop.f32.mrf.mxu1 }
 0x644   : > { %v5564_v45 = vpop.f32.mrf.mxu0  ;;  %v5382_v57 = vadd.f32 %v5294_v44, %v15633_v8  ;;  %v6217_v8 = vld [vmem:[#allocation3 + $0x43] sm:$0xff] }
 0x645   : > { %v11960_v0 = vpop.f32.mrf.mxu1  ;;  %v6239_v25 = vpack.c.bf16 %v6217_v8, %v6216_v33 }
 0x646   : > { %v12020_v19 = vpop.f32.mrf.mxu0  ;;  %v15816_v61 = vadd.f32 %v5564_v45, %v5382_v57  ;;  %v6220_v45 = vld [vmem:[#allocation3 + $0x5b] sm:$0xff] }
 0x647   : > { %v5299_v20 = vpop.f32.mrf.mxu1  ;;  %12194 = vmatmul.mubr.msk.bf16.gmra.mxu1 %vm18365_vm0, %v6238_v56 }
 0x648   : > { %v5569_v40 = vpop.f32.mrf.mxu0  ;;  %v5383_v55 = vadd.f32 %v5299_v20, %v15646_v53  ;;  %12197 = vmatprep.mubr.msk.bf16.mxu1 %vm13017_vm12, %v18481_v36 }
 0x649   : > { %v11963_v14 = vpop.f32.mrf.mxu1 }
 0x64a   : > { %v12023_v63 = vpop.f32.mrf.mxu0  ;;  %v15822_v3 = vadd.f32 %v5569_v40, %v5383_v55 }
 0x64b   : > { %v5302_v60 = vpop.f32.mrf.mxu1 }
 0x64c   : > { %v5572_v17 = vpop.f32.mrf.mxu0  ;;  %v5384_v32 = vadd.f32 %v5302_v60, %v15650_v12  ;;  %v6219_v12 = vld [vmem:[#allocation3 + $0x53] sm:$0xff] }
 0x64d   : > { %v11964_v59 = vpop.f32.mrf.mxu1  ;;  %v6240_v46 = vpack.c.bf16 %v6219_v12, %v6218_v18 }
 0x64e   : > { %v12024_v27 = vpop.f32.mrf.mxu0  ;;  %v15825_v31 = vadd.f32 %v5572_v17, %v5384_v32  ;;  %v6222_v17 = vld [vmem:[#allocation3 + $0x6b] sm:$0xff] }
 0x64f   : > { %v5307_v39 = vpop.f32.mrf.mxu1  ;;  %12198 = vmatmul.mubr.msk.bf16.gmra.mxu1 %vm18365_vm0, %v6239_v25 }
 0x650   : > { %v5577_v53 = vpop.f32.mrf.mxu0  ;;  %v5385_v42 = vadd.f32 %v5307_v39, %v15662_v52  ;;  %12201 = vmatprep.mubr.msk.bf16.mxu1 %vm13017_vm12, %v18481_v36 }
 0x651   : > { %v11967_v37 = vpop.f32.mrf.mxu1 }
 0x652   : > { %v12027_v41 = vpop.f32.mrf.mxu0  ;;  %v15831_v11 = vadd.f32 %v5577_v53, %v5385_v42 }
 0x653   : > { %v5310_v16 = vpop.f32.mrf.mxu1 }
 0x654   : > { %v5580_v50 = vpop.f32.mrf.mxu0  ;;  %v5386_v38 = vadd.f32 %v5310_v16, %v15665_v49  ;;  %v6221_v49 = vld [vmem:[#allocation3 + $0x63] sm:$0xff] }
 0x655   : > { %v11968_v22 = vpop.f32.mrf.mxu1  ;;  %v6241_v40 = vpack.c.bf16 %v6221_v49, %v6220_v45 }
 0x656   : > { %v12028_v54 = vpop.f32.mrf.mxu0  ;;  %v15834_v24 = vadd.f32 %v5580_v50, %v5386_v38  ;;  %v6224_v50 = vld [vmem:[#allocation3 + $0x7b] sm:$0xff] }
 0x657   : > { %v5315_v7 = vpop.f32.mrf.mxu1  ;;  %12202 = vmatmul.mubr.msk.bf16.gmra.mxu1 %vm18365_vm0, %v6240_v46 }
 0x658   : > { %v5585_v52 = vpop.f32.mrf.mxu0  ;;  %v5387_v26 = vadd.f32 %v5315_v7, %v15677_v30  ;;  %12205 = vmatprep.mubr.msk.bf16.mxu1 %vm13017_vm12, %v18481_v36 }
 0x659   : > { %v11971_v51 = vpop.f32.mrf.mxu1 }
 0x65a   : > { %v12031_v5 = vpop.f32.mrf.mxu0  ;;  %v15840_v44 = vadd.f32 %v5585_v52, %v5387_v26 }
 0x65b   : > { %v5318_v57 = vpop.f32.mrf.mxu1 }
 0x65c   : > { %v5588_v0 = vpop.f32.mrf.mxu0  ;;  %v5388_v19 = vadd.f32 %v5318_v57, %v15680_v6  ;;  %v6223_v6 = vld [vmem:[#allocation3 + $0x73] sm:$0xff] }
 0x65d   : > { %v11972_v56 = vpop.f32.mrf.mxu1  ;;  %v6242_v53 = vpack.c.bf16 %v6223_v6, %v6222_v17 }
 0x65e   : > { %v12032_v20 = vpop.f32.mrf.mxu0  ;;  %v15843_v55 = vadd.f32 %v5588_v0, %v5388_v19  ;;  %v6226_v0 = vld [vmem:[#allocation3 + $0x8b] sm:$0xff] }
 0x65f   : > { %v5323_v14 = vpop.f32.mrf.mxu1  ;;  %12206 = vmatmul.mubr.msk.bf16.gmra.mxu1 %vm18365_vm0, %v6241_v40 }
 0x660   : > { %v5593_v30 = vpop.f32.mrf.mxu0  ;;  %v5389_v63 = vadd.f32 %v5323_v14, %v15692_v34  ;;  %12209 = vmatprep.mubr.msk.bf16.mxu1 %vm13017_vm12, %v18481_v36 }
 0x661   : > { %v11975_v33 = vpop.f32.mrf.mxu1 }
 0x662   : > { %v12035_v8 = vpop.f32.mrf.mxu0  ;;  %v15849_v60 = vadd.f32 %v5593_v30, %v5389_v63 }
 0x663   : > { %v5326_v32 = vpop.f32.mrf.mxu1 }
 0x664   : > { %v5596_v59 = vpop.f32.mrf.mxu0  ;;  %v5390_v27 = vadd.f32 %v5326_v32, %v15695_v1  ;;  %v6225_v1 = vld [vmem:[#allocation3 + $0x83] sm:$0xff] }
 0x665   : > { %v11976_v25 = vpop.f32.mrf.mxu1  ;;  %v6243_v52 = vpack.c.bf16 %v6225_v1, %v6224_v50 }
 0x666   : > { %v12036_v39 = vpop.f32.mrf.mxu0  ;;  %v15852_v42 = vadd.f32 %v5596_v59, %v5390_v27  ;;  %v6228_v59 = vld [vmem:[#allocation3 + $0x9b] sm:$0xff] }
 0x667   : > { %v5331_v37 = vpop.f32.mrf.mxu1  ;;  %12210 = vmatmul.mubr.msk.bf16.gmra.mxu1 %vm18365_vm0, %v6242_v53 }
 0x668   : > { %v5601_v34 = vpop.f32.mrf.mxu0  ;;  %v5391_v41 = vadd.f32 %v5331_v37, %v15707_v47  ;;  %12213 = vmatprep.mubr.msk.bf16.mxu1 %vm13017_vm12, %v18481_v36 }
 0x669   : > { %v11979_v18 = vpop.f32.mrf.mxu1 }
 0x66a   : > { %v12039_v12 = vpop.f32.mrf.mxu0  ;;  %v15858_v16 = vadd.f32 %v5601_v34, %v5391_v41 }
 0x66b   : > { %v5334_v38 = vpop.f32.mrf.mxu1 }
 0x66c   : > { %v5604_v22 = vpop.f32.mrf.mxu0  ;;  %v5392_v54 = vadd.f32 %v5334_v38, %v15710_v21  ;;  %v6227_v21 = vld [vmem:[#allocation3 + $0x93] sm:$0xff] }
 0x66d   : > { %v11980_v46 = vpop.f32.mrf.mxu1  ;;  %v6244_v30 = vpack.c.bf16 %v6227_v21, %v6226_v0 }
 0x66e   : > { %v12040_v7 = vpop.f32.mrf.mxu0  ;;  %v15861_v26 = vadd.f32 %v5604_v22, %v5392_v54  ;;  %v6230_v22 = vld [vmem:[#allocation3 + $0xab] sm:$0xff] }
 0x66f   : > { %v5339_v51 = vpop.f32.mrf.mxu1  ;;  %12214 = vmatmul.mubr.msk.bf16.gmra.mxu1 %vm18365_vm0, %v6243_v52 }
 0x670   : > { %v5609_v47 = vpop.f32.mrf.mxu0  ;;  %v5393_v5 = vadd.f32 %v5339_v51, %v15722_v10  ;;  %12217 = vmatprep.mubr.msk.bf16.mxu1 %vm13017_vm12, %v18481_v36 }
 0x671   : > { %v11983_v45 = vpop.f32.mrf.mxu1 }
 0x672   : > { %v12043_v49 = vpop.f32.mrf.mxu0  ;;  %v15867_v57 = vadd.f32 %v5609_v47, %v5393_v5 }
 0x673   : > { %v5342_v19 = vpop.f32.mrf.mxu1 }
 0x674   : > { %v5612_v56 = vpop.f32.mrf.mxu0  ;;  %v5394_v20 = vadd.f32 %v5342_v19, %v15725_v23  ;;  %v6229_v23 = vld [vmem:[#allocation3 + $0xa3] sm:$0xff] }
 0x675   : > { %v11984_v40 = vpop.f32.mrf.mxu1  ;;  %v6245_v34 = vpack.c.bf16 %v6229_v23, %v6228_v59 }
 0x676   : > { %v12044_v14 = vpop.f32.mrf.mxu0  ;;  %v15870_v63 = vadd.f32 %v5612_v56, %v5394_v20  ;;  %v6232_v56 = vld [vmem:[#allocation3 + $0xbb] sm:$0xff] }
 0x677   : > { %v5347_v33 = vpop.f32.mrf.mxu1  ;;  %12218 = vmatmul.mubr.msk.bf16.gmra.mxu1 %vm18365_vm0, %v6244_v30 }
 0x678   : > { %v5617_v10 = vpop.f32.mrf.mxu0  ;;  %v5395_v8 = vadd.f32 %v5347_v33, %v15737_v15  ;;  %12221 = vmatprep.mubr.msk.bf16.mxu1 %vm13017_vm12, %v18481_v36 }
 0x679   : > { %v11987_v17 = vpop.f32.mrf.mxu1 }
 0x67a   : > { %v12047_v6 = vpop.f32.mrf.mxu0  ;;  %v15876_v32 = vadd.f32 %v5617_v10, %v5395_v8 }
 0x67b   : > { %v5350_v27 = vpop.f32.mrf.mxu1 }
 0x67c   : > { %v5620_v25 = vpop.f32.mrf.mxu0  ;;  %v5396_v39 = vadd.f32 %v5350_v27, %v15740_v9  ;;  %v6231_v9 = vld [vmem:[#allocation3 + $0xb3] sm:$0xff] }
 0x67d   : > { %v11988_v53 = vpop.f32.mrf.mxu1  ;;  %v6246_v47 = vpack.c.bf16 %v6231_v9, %v6230_v22 }
 0x67e   : > { %v12048_v37 = vpop.f32.mrf.mxu0  ;;  %v15879_v41 = vadd.f32 %v5620_v25, %v5396_v39  ;;  %v6234_v25 = vld [vmem:[#allocation3 + $0xcb] sm:$0xff] }
 0x67f   : > { %v5355_v18 = vpop.f32.mrf.mxu1  ;;  %12222 = vmatmul.mubr.msk.bf16.gmra.mxu1 %vm18365_vm0, %v6245_v34 }
 0x680   : > { %v5625_v15 = vpop.f32.mrf.mxu0  ;;  %v5397_v12 = vadd.f32 %v5355_v18, %v15752_v43  ;;  %12225 = vmatprep.mubr.msk.bf16.mxu1 %vm13017_vm12, %v18481_v36 }
 0x681   : > { %v11991_v50 = vpop.f32.mrf.mxu1 }
 0x682   : > { %v12051_v1 = vpop.f32.mrf.mxu0  ;;  %v15885_v38 = vadd.f32 %v5625_v15, %v5397_v12  ;;  %v6236_v50 = vld [vmem:[#allocation3 + $0xdb] sm:$0xff] }
 0x683   : > { %v5358_v54 = vpop.f32.mrf.mxu1 }
 0x684   : > { %v5628_v46 = vpop.f32.mrf.mxu0  ;;  %v5398_v7 = vadd.f32 %v5358_v54, %v15755_v58  ;;  %v6233_v58 = vld [vmem:[#allocation3 + $0xc3] sm:$0xff] }
 0x685   : > { %v11992_v52 = vpop.f32.mrf.mxu1  ;;  %v6247_v10 = vpack.c.bf16 %v6233_v58, %v6232_v56 }
 0x686   : > { %v12052_v51 = vpop.f32.mrf.mxu0  ;;  %v15888_v5 = vadd.f32 %v5628_v46, %v5398_v7  ;;  %v6249_v7 = vpack.c.bf16 %v6236_v50, %v6236_v50 }
 0x687   : > { %v5363_v45 = vpop.f32.mrf.mxu1  ;;  %12226 = vmatmul.mubr.msk.bf16.gmra.mxu1 %vm18365_vm0, %v6246_v47 }
 0x688   : > { %v5633_v43 = vpop.f32.mrf.mxu0  ;;  %v5399_v49 = vadd.f32 %v5363_v45, %v15767_v4  ;;  %12229 = vmatprep.mubr.msk.bf16.mxu1 %vm13017_vm12, %v18481_v36 }
 0x689   : > { %v11995_v0 = vpop.f32.mrf.mxu1 }
 0x68a   : > { %v12055_v21 = vpop.f32.mrf.mxu0  ;;  %v15894_v19 = vadd.f32 %v5633_v43, %v5399_v49 }
 0x68b   : > { %v5366_v20 = vpop.f32.mrf.mxu1 }
 0x68c   : > { %v5636_v40 = vpop.f32.mrf.mxu0  ;;  %v5400_v14 = vadd.f32 %v5366_v20, %v15770_v2  ;;  %v6235_v2 = vld [vmem:[#allocation3 + $0xd3] sm:$0xff] }
 0x68d   : > { %v11996_v30 = vpop.f32.mrf.mxu1  ;;  %v6248_v18 = vpack.c.bf16 %v6235_v2, %v6234_v25 }
 0x68e   : > { %v12056_v33 = vpop.f32.mrf.mxu0  ;;  %v15897_v8 = vadd.f32 %v5636_v40, %v5400_v14 }
 0x68f   : > { %v5371_v17 = vpop.f32.mrf.mxu1  ;;  %12230 = vmatmul.mubr.msk.bf16.gmra.mxu1 %vm18365_vm0, %v6247_v10 }
 0x690   : > { %v5641_v4 = vpop.f32.mrf.mxu0  ;;  %v5401_v6 = vadd.f32 %v5371_v17, %v15782_v62  ;;  %12233 = vmatprep.mubr.msk.bf16.mxu1 %vm13017_vm12, %v18481_v36 }
 0x691   : > { %v11999_v59 = vpop.f32.mrf.mxu1 }
 0x692   : > { %v12059_v23 = vpop.f32.mrf.mxu0  ;;  %v15903_v27 = vadd.f32 %v5641_v4, %v5401_v6 }
 0x693   : > { %v5374_v39 = vpop.f32.mrf.mxu1 }
 0x694   : > { %v5644_v53 = vpop.f32.mrf.mxu0 }
 0x695   : > { %v12000_v37 = vpop.f32.mrf.mxu1 }
 0x696   : > { %v12060_v34 = vpop.f32.mrf.mxu0 }
 0x697   : > { %v5815_v15 = vpop.f32.mrf.mxu1  ;;  %12234 = vmatmul.mubr.msk.bf16.gmra.mxu1 %vm18365_vm0, %v6248_v18 }
 0x698   : > { %v6085_v12 = vpop.f32.mrf.mxu0  ;;  %v5917_v62 = vadd.f32 %v5815_v15, %v15794_v48  ;;  %12237 = vmatprep.mubr.msk.bf16.mxu1 %vm13017_vm12, %v18481_v36 }
 0x699   : > { %v12071_v1 = vpop.f32.mrf.mxu1 }
 0x69a   : > { %v12131_v22 = vpop.f32.mrf.mxu0  ;;  %v15909_v9 = vadd.f32 %v6085_v12, %v5917_v62 }
 0x69b   : > { %v5818_v54 = vpop.f32.mrf.mxu1 }
 0x69c   : > { %v6088_v46 = vpop.f32.mrf.mxu0  ;;  %v5918_v52 = vadd.f32 %v5818_v54, %v15797_v28 }
 0x69d   : > { %v12072_v51 = vpop.f32.mrf.mxu1 }
 0x69e   : > { %v12132_v47 = vpop.f32.mrf.mxu0  ;;  %v15912_v45 = vadd.f32 %v6088_v46, %v5918_v52 }
 0x69f   : > { %v5823_v43 = vpop.f32.mrf.mxu1  ;;  %12238 = vmatmul.mubr.msk.bf16.gmra.mxu1 %vm18365_vm0, %v6249_v7 }
 0x6a0   : > { %v6093_v49 = vpop.f32.mrf.mxu0  ;;  %v5919_v36 = vadd.f32 %v5823_v43, %v15804_v29 }
 0x6a1   : > { %v12075_v48 = vpop.f32.mrf.mxu1 }
 0x6a2   : > { %v12135_v0 = vpop.f32.mrf.mxu0  ;;  %v15916_v21 = vadd.f32 %v6093_v49, %v5919_v36 }
 0x6a3   : > { %v5826_v56 = vpop.f32.mrf.mxu1 }
 0x6a4   : > { %v6096_v58 = vpop.f32.mrf.mxu0  ;;  %v5920_v20 = vadd.f32 %v5826_v56, %v15807_v13 }
 0x6a5   : > { %v12076_v40 = vpop.f32.mrf.mxu1 }
 0x6a6   : > { %v12136_v28 = vpop.f32.mrf.mxu0  ;;  %v15919_v14 = vadd.f32 %v6096_v58, %v5920_v20 }
 0x6a7   : > { %v5831_v30 = vpop.f32.mrf.mxu1 }
 0x6a8   : > { %v6101_v33 = vpop.f32.mrf.mxu0  ;;  %v5921_v10 = vadd.f32 %v5831_v30, %v15813_v35 }
 0x6a9   : > { %v12079_v17 = vpop.f32.mrf.mxu1 }
 0x6aa   : > { %v12139_v4 = vpop.f32.mrf.mxu0  ;;  %v15922_v6 = vadd.f32 %v6101_v33, %v5921_v10 }
 0x6ab   : > { %v5834_v29 = vpop.f32.mrf.mxu1 }
 0x6ac   : > { %v6104_v59 = vpop.f32.mrf.mxu0  ;;  %v5922_v23 = vadd.f32 %v5834_v29, %v15816_v61 }
 0x6ad   : > { %v12080_v25 = vpop.f32.mrf.mxu1 }
 0x6ae   : > { %v12140_v2 = vpop.f32.mrf.mxu0  ;;  %v15925_v39 = vadd.f32 %v6104_v59, %v5922_v23 }
 0x6af   : > { %v5839_v13 = vpop.f32.mrf.mxu1 }
 0x6b0   : > { %v6109_v53 = vpop.f32.mrf.mxu0  ;;  %v5923_v37 = vadd.f32 %v5839_v13, %v15822_v3 }
 0x6b1   : > { %v12083_v34 = vpop.f32.mrf.mxu1 }
 0x6b2   : > { %v12143_v18 = vpop.f32.mrf.mxu0  ;;  %v15928_v15 = vadd.f32 %v6109_v53, %v5923_v37 }
 0x6b3   : > { %v5842_v35 = vpop.f32.mrf.mxu1 }
 0x6b4   : > { %v6112_v12 = vpop.f32.mrf.mxu0  ;;  %v5924_v62 = vadd.f32 %v5842_v35, %v15825_v31 }
 0x6b5   : > { %v12084_v50 = vpop.f32.mrf.mxu1 }
 0x6b6   : > { %v12144_v1 = vpop.f32.mrf.mxu0  ;;  %v15931_v22 = vadd.f32 %v6112_v12, %v5924_v62 }
 0x6b7   : > { %v5847_v61 = vpop.f32.mrf.mxu1 }
 0x6b8   : > { %v6117_v54 = vpop.f32.mrf.mxu0  ;;  %v5925_v46 = vadd.f32 %v5847_v61, %v15831_v11 }
 0x6b9   : > { %v12087_v7 = vpop.f32.mrf.mxu1 }
 0x6ba   : > { %v12147_v52 = vpop.f32.mrf.mxu0  ;;  %v15934_v51 = vadd.f32 %v6117_v54, %v5925_v46 }
 0x6bb   : > { %v5850_v3 = vpop.f32.mrf.mxu1 }
 0x6bc   : > { %v6120_v47 = vpop.f32.mrf.mxu0  ;;  %v5926_v43 = vadd.f32 %v5850_v3, %v15834_v24 }
 0x6bd   : > { %v12088_v49 = vpop.f32.mrf.mxu1 }
 0x6be   : > { %v12148_v36 = vpop.f32.mrf.mxu0  ;;  %v15937_v48 = vadd.f32 %v6120_v47, %v5926_v43 }
 0x6bf   : > { %v5855_v31 = vpop.f32.mrf.mxu1 }
 0x6c0   : > { %v6125_v0 = vpop.f32.mrf.mxu0  ;;  %v5927_v56 = vadd.f32 %v5855_v31, %v15840_v44 }
 0x6c1   : > { %v12091_v58 = vpop.f32.mrf.mxu1 }
 0x6c2   : > { %v12151_v20 = vpop.f32.mrf.mxu0  ;;  %v15940_v40 = vadd.f32 %v6125_v0, %v5927_v56 }
 0x6c3   : > { %v5858_v11 = vpop.f32.mrf.mxu1 }
 0x6c4   : > { %v6128_v28 = vpop.f32.mrf.mxu0  ;;  %v5928_v30 = vadd.f32 %v5858_v11, %v15843_v55 }
 0x6c5   : > { %v12092_v33 = vpop.f32.mrf.mxu1 }
 0x6c6   : > { %v12152_v10 = vpop.f32.mrf.mxu0  ;;  %v15943_v17 = vadd.f32 %v6128_v28, %v5928_v30 }
 0x6c7   : > { %v5863_v24 = vpop.f32.mrf.mxu1 }
 0x6c8   : > { %v6133_v4 = vpop.f32.mrf.mxu0  ;;  %v5929_v29 = vadd.f32 %v5863_v24, %v15849_v60 }
 0x6c9   : > { %v12095_v59 = vpop.f32.mrf.mxu1 }
 0x6ca   : > { %v12155_v23 = vpop.f32.mrf.mxu0  ;;  %v15946_v25 = vadd.f32 %v6133_v4, %v5929_v29 }
 0x6cb   : > { %v5866_v44 = vpop.f32.mrf.mxu1 }
 0x6cc   : > { %v6136_v2 = vpop.f32.mrf.mxu0  ;;  %v5930_v13 = vadd.f32 %v5866_v44, %v15852_v42 }
 0x6cd   : > { %v12096_v53 = vpop.f32.mrf.mxu1 }
 0x6ce   : > { %v12156_v37 = vpop.f32.mrf.mxu0  ;;  %v15949_v34 = vadd.f32 %v6136_v2, %v5930_v13 }
 0x6cf   : > { %v5871_v55 = vpop.f32.mrf.mxu1 }
 0x6d0   : > { %v6141_v18 = vpop.f32.mrf.mxu0  ;;  %v5931_v35 = vadd.f32 %v5871_v55, %v15858_v16 }
 0x6d1   : > { %v12099_v12 = vpop.f32.mrf.mxu1 }
 0x6d2   : > { %v12159_v62 = vpop.f32.mrf.mxu0  ;;  %v15952_v50 = vadd.f32 %v6141_v18, %v5931_v35 }
 0x6d3   : > { %v5874_v60 = vpop.f32.mrf.mxu1 }
 0x6d4   : > { %v6144_v1 = vpop.f32.mrf.mxu0  ;;  %v5932_v61 = vadd.f32 %v5874_v60, %v15861_v26 }
 0x6d5   : > { %v12100_v54 = vpop.f32.mrf.mxu1 }
 0x6d6   : > { %v12160_v46 = vpop.f32.mrf.mxu0  ;;  %v15955_v7 = vadd.f32 %v6144_v1, %v5932_v61 }
 0x6d7   : > { %v5879_v42 = vpop.f32.mrf.mxu1 }
 0x6d8   : > { %v6149_v52 = vpop.f32.mrf.mxu0  ;;  %v5933_v3 = vadd.f32 %v5879_v42, %v15867_v57 }
 0x6d9   : > { %v12103_v47 = vpop.f32.mrf.mxu1 }
 0x6da   : > { %v12163_v43 = vpop.f32.mrf.mxu0  ;;  %v15958_v49 = vadd.f32 %v6149_v52, %v5933_v3 }
 0x6db   : > { %v5882_v16 = vpop.f32.mrf.mxu1 }
 0x6dc   : > { %v6152_v36 = vpop.f32.mrf.mxu0  ;;  %v5934_v31 = vadd.f32 %v5882_v16, %v15870_v63 }
 0x6dd   : > { %v12104_v0 = vpop.f32.mrf.mxu1 }
 0x6de   : > { %v12164_v56 = vpop.f32.mrf.mxu0  ;;  %v15961_v58 = vadd.f32 %v6152_v36, %v5934_v31 }
 0x6df   : > { %v5887_v26 = vpop.f32.mrf.mxu1 }
 0x6e0   : > { %v6157_v20 = vpop.f32.mrf.mxu0  ;;  %v5935_v11 = vadd.f32 %v5887_v26, %v15876_v32 }
 0x6e1   : > { %v12107_v28 = vpop.f32.mrf.mxu1 }
 0x6e2   : > { %v12167_v30 = vpop.f32.mrf.mxu0  ;;  %v15964_v33 = vadd.f32 %v6157_v20, %v5935_v11 }
 0x6e3   : > { %v5890_v57 = vpop.f32.mrf.mxu1 }
 0x6e4   : > { %v6160_v10 = vpop.f32.mrf.mxu0  ;;  %v5936_v24 = vadd.f32 %v5890_v57, %v15879_v41 }
 0x6e5   : > { %v12108_v4 = vpop.f32.mrf.mxu1 }
 0x6e6   : > { %v12168_v29 = vpop.f32.mrf.mxu0  ;;  %v15967_v59 = vadd.f32 %v6160_v10, %v5936_v24 }
 0x6e7   : > { %v5895_v63 = vpop.f32.mrf.mxu1 }
 0x6e8   : > { %v6165_v23 = vpop.f32.mrf.mxu0  ;;  %v5937_v44 = vadd.f32 %v5895_v63, %v15885_v38 }
 0x6e9   : > { %v12111_v2 = vpop.f32.mrf.mxu1 }
 0x6ea   : > { %v12171_v13 = vpop.f32.mrf.mxu0  ;;  %v15970_v53 = vadd.f32 %v6165_v23, %v5937_v44 }
 0x6eb   : > { %v5898_v32 = vpop.f32.mrf.mxu1 }
 0x6ec   : > { %v6168_v37 = vpop.f32.mrf.mxu0  ;;  %v5938_v55 = vadd.f32 %v5898_v32, %v15888_v5 }
 0x6ed   : > { %v12112_v18 = vpop.f32.mrf.mxu1 }
 0x6ee   : > { %v12172_v35 = vpop.f32.mrf.mxu0  ;;  %v15973_v12 = vadd.f32 %v6168_v37, %v5938_v55 }
 0x6ef   : > { %v5903_v41 = vpop.f32.mrf.mxu1  ;;  %v15992_v35 = vld [vmem:[%s13195_s15 + $0x1] ss:$0 sm:$0xff] }
 0x6f0   : > { %v6173_v62 = vpop.f32.mrf.mxu0  ;;  %v5939_v60 = vadd.f32 %v5903_v41, %v15894_v19 }
 0x6f1   : > { %v12115_v1 = vpop.f32.mrf.mxu1 }
 0x6f2   : > { %v12175_v61 = vpop.f32.mrf.mxu0  ;;  %v15976_v54 = vadd.f32 %v6173_v62, %v5939_v60  ;;  %v18500_v1 = vld [vmem:[#allocation25_spill] sm:$0xff] }
 0x6f3   : > { %v5906_v38 = vpop.f32.mrf.mxu1 }
 0x6f4   : > { %v6176_v46 = vpop.f32.mrf.mxu0  ;;  %v5940_v42 = vadd.f32 %v5906_v38, %v15897_v8 }
 0x6f5   : > { %v12116_v52 = vpop.f32.mrf.mxu1 }
 0x6f6   : > { %v12176_v3 = vpop.f32.mrf.mxu0  ;;  %v15979_v47 = vadd.f32 %v6176_v46, %v5940_v42  ;;  %v18501_v42 = vld [vmem:[#allocation24_spill] sm:$0xff] }
 0x6f7   : > { %v5911_v5 = vpop.f32.mrf.mxu1  ;;  %v18502_v52 = vld [vmem:[#allocation8_spill] sm:$0xff] }
 0x6f8   : > { %v6181_v43 = vpop.f32.mrf.mxu0  ;;  %v5941_v16 = vadd.f32 %v5911_v5, %v15903_v27 }
 0x6f9   : > { %v12119_v36 = vpop.f32.mrf.mxu1 }
 0x6fa   : > { %v12179_v31 = vpop.f32.mrf.mxu0  ;;  %v15982_v0 = vadd.f32 %v6181_v43, %v5941_v16  ;;  %v18503_v36 = vld [vmem:[#allocation28_spill] sm:$0xff] }
 0x6fb   : > { %v5914_v19 = vpop.f32.mrf.mxu1 }
 0x6fc   : > { %v6184_v56 = vpop.f32.mrf.mxu0 }
 0x6fd   : > { %v12120_v26 = vpop.f32.mrf.mxu1 }
 0x6fe   : > { %v12180_v20 = vpop.f32.mrf.mxu0 }
 0x6ff   : > { %v6355_v11 = vpop.f32.mrf.mxu1 }
 0x700   : > { %v6457_v28 = vadd.f32 %v6355_v11, %v15909_v9  ;;  %v18504_v11 = vld [vmem:[#allocation9_spill] sm:$0xff] }
 0x701   : > { %v12191_v8 = vpop.f32.mrf.mxu1 }
 0x703   : > { %v6358_v30 = vpop.f32.mrf.mxu1 }
 0x704   : > { %v6458_v57 = vadd.f32 %v6358_v30, %v15912_v45 }
 0x705   : > { %v12192_v10 = vpop.f32.mrf.mxu1 }
 0x706   : > { %v15995_v41 = vadd.f32 %v15992_v35, %v6458_v57 }
 0x707   : > { %v6363_v24 = vpop.f32.mrf.mxu1 }
 0x708   : > { %v6459_v27 = vadd.f32 %v6363_v24, %v15916_v21  ;;  %v18505_v24 = vld [vmem:[#allocation26_spill] sm:$0xff] }
 0x709   : > { %v12195_v4 = vpop.f32.mrf.mxu1 }
 0x70a   : > { %v16002_v60 = vadd.f32 %v15992_v35, %v6459_v27 }
 0x70b   : > { %v6366_v29 = vpop.f32.mrf.mxu1 }
 0x70c   : > { %v6460_v63 = vadd.f32 %v6366_v29, %v15919_v14  ;;  %v6521_v3 = vmul.f32 %v16002_v60, %v18502_v52 }
 0x70d   : > { %v12196_v23 = vpop.f32.mrf.mxu1 }
 0x70e   : > { %v16007_v61 = vadd.f32 %v15992_v35, %v6460_v63  ;;  %v6547_v20 = vsel %vm18365_vm0, %v6521_v3, 0.0 }
 0x70f   : > { %v6371_v44 = vpop.f32.mrf.mxu1 }
 0x710   : > { %v6461_v2 = vadd.f32 %v6371_v44, %v15922_v6  ;;  %v15999_v6 = vadd.f32 %v15992_v35, %v6457_v28  ;;  %v6522_v31 = vmul.f32 %v16007_v61, %v18503_v36  ;;  %v18506_v44 = vld [vmem:[#allocation10_spill] sm:$0xff] }
 0x711   : > { %v12199_v13 = vpop.f32.mrf.mxu1 }
 0x712   : > { %v16015_v5 = vadd.f32 %v15992_v35, %v6461_v2  ;;  %v6549_v10 = vsel %vm18365_vm0, %v6522_v31, 0.0 }
 0x713   : > { %v6374_v32 = vpop.f32.mrf.mxu1 }
 0x714   : > { %v6462_v9 = vadd.f32 %v6374_v32, %v15925_v39  ;;  %v6523_v28 = vmul.f32 %v16015_v5, %v18504_v11 }
 0x715   : > { %v12200_v37 = vpop.f32.mrf.mxu1 }
 0x716   : > { %v16021_v19 = vadd.f32 %v15992_v35, %v6462_v9  ;;  %v6551_v23 = vsel %vm18365_vm0, %v6523_v28, 0.0 }
 0x717   : > { %v6379_v55 = vpop.f32.mrf.mxu1 }
 0x718   : > { %v6463_v45 = vadd.f32 %v6379_v55, %v15928_v15  ;;  %v6520_v15 = vmul.f32 %v15995_v41, %v18500_v1  ;;  %v6524_v27 = vmul.f32 %v16021_v19, %v18505_v24  ;;  %v18507_v55 = vld [vmem:[#allocation11_spill] sm:$0xff] }
 0x719   : > { %v12203_v18 = vpop.f32.mrf.mxu1 }
 0x71a   : > { %v6545_v16 = vsel %vm18365_vm0, %v6520_v15, 0.0  ;;  %v16029_v8 = vadd.f32 %v15992_v35, %v6463_v45  ;;  %v6553_v37 = vsel %vm18365_vm0, %v6524_v27, 0.0 }
 0x71b   : > { %v6382_v21 = vpop.f32.mrf.mxu1 }
 0x71c   : > { %v6464_v14 = vadd.f32 %v6382_v21, %v15931_v22  ;;  %v6519_v22 = vmul.f32 %v15999_v6, %v18501_v42  ;;  %v6525_v2 = vmul.f32 %v16029_v8, %v18506_v44 }
 0x71d   : > { %v12204_v62 = vpop.f32.mrf.mxu1 }
 0x71e   : > { %v6544_v26 = vsel %vm18365_vm0, %v6519_v22, 0.0  ;;  %v6555_v62 = vsel %vm18365_vm0, %v6525_v2, 0.0 }
 0x71f   : > { %v6387_v39 = vpop.f32.mrf.mxu1  ;;  %v6546_v30 = vadd.f32 %v6545_v16, %v6544_v26 }
 0x720   : > { %v6465_v38 = vadd.f32 %v6387_v39, %v15934_v51  ;;  %v18508_v39 = vld [vmem:[#allocation27_spill] sm:$0xff] }
 0x721   : > { %v12207_v46 = vpop.f32.mrf.mxu1  ;;  %v6548_v29 = vadd.f32 %v6547_v20, %v6546_v30  ;;  %v18510_v20 = vld [vmem:[#allocation29_spill] sm:$0xff] }
 0x722   : > { %v16042_v13 = vadd.f32 %v15992_v35, %v6465_v38 }
 0x723   : > { %v6390_v43 = vpop.f32.mrf.mxu1  ;;  %v6550_v32 = vadd.f32 %v6549_v10, %v6548_v29 }
 0x724   : > { %v6466_v51 = vadd.f32 %v6390_v43, %v15937_v48  ;;  %v16035_v48 = vadd.f32 %v15992_v35, %v6464_v14  ;;  %v6527_v15 = vmul.f32 %v16042_v13, %v18508_v39  ;;  %v18509_v43 = vld [vmem:[#allocation12_spill] sm:$0xff] }
 0x725   : > { %v12208_v56 = vpop.f32.mrf.mxu1  ;;  %v6552_v21 = vadd.f32 %v6551_v23, %v6550_v32  ;;  %v18512_v32 = vld [vmem:[#allocation30_spill] sm:$0xff] }
 0x726   : > { %v6526_v45 = vmul.f32 %v16035_v48, %v18507_v55  ;;  %v16048_v18 = vadd.f32 %v15992_v35, %v6466_v51  ;;  %v6559_v26 = vsel %vm18365_vm0, %v6527_v15, 0.0 }
 0x727   : > { %v6395_v57 = vpop.f32.mrf.mxu1  ;;  %v6554_v46 = vadd.f32 %v6553_v37, %v6552_v21 }
 0x728   : > { %v6467_v4 = vadd.f32 %v6395_v57, %v15940_v40  ;;  %v6557_v3 = vsel %vm18365_vm0, %v6526_v45, 0.0  ;;  %v6528_v16 = vmul.f32 %v16048_v18, %v18509_v43 }
 0x729   : > { %v12211_v63 = vpop.f32.mrf.mxu1  ;;  %v6556_v51 = vadd.f32 %v6555_v62, %v6554_v46 }
 0x72a   : > { %v16055_v38 = vadd.f32 %v15992_v35, %v6467_v4  ;;  %v6561_v27 = vsel %vm18365_vm0, %v6528_v16, 0.0  ;;  %v18511_v4 = vld [vmem:[#allocation13_spill] sm:$0xff] }
 0x72b   : > { %v6398_v9 = vpop.f32.mrf.mxu1  ;;  %v6558_v57 = vadd.f32 %v6557_v3, %v6556_v51 }
 0x72c   : > { %v6468_v40 = vadd.f32 %v6398_v9, %v15943_v17  ;;  %v6529_v28 = vmul.f32 %v16055_v38, %v18510_v20 }
 0x72d   : > { %v12212_v14 = vpop.f32.mrf.mxu1 }
 0x72e   : > { %v16061_v31 = vadd.f32 %v15992_v35, %v6468_v40  ;;  %v6563_v2 = vsel %vm18365_vm0, %v6529_v28, 0.0  ;;  %v18513_v14 = vld [vmem:[#allocation14_spill] sm:$0xff] }
 0x72f   : > { %v6403_v22 = vpop.f32.mrf.mxu1 }
 0x730   : > { %v6469_v17 = vadd.f32 %v6403_v22, %v15946_v25  ;;  %v6530_v29 = vmul.f32 %v16061_v31, %v18511_v4  ;;  %v6560_v25 = vadd.f32 %v6559_v26, %v6558_v57 }
 0x731   : > { %v12215_v56 = vpop.f32.mrf.mxu1 }
 0x732   : > { %v16068_v30 = vadd.f32 %v15992_v35, %v6469_v17  ;;  %v6562_v45 = vadd.f32 %v6561_v27, %v6560_v25  ;;  %v6565_v21 = vsel %vm18365_vm0, %v6530_v29, 0.0  ;;  %v18514_v56 = vld [vmem:[#allocation15_spill] sm:$0xff]  ;;  %v18515_v25 = vld [vmem:[#allocation16_spill] sm:$0xff] }
 0x733   : > { %v6406_v10 = vpop.f32.mrf.mxu1 }
 0x734   : > { %v6470_v63 = vadd.f32 %v6406_v10, %v15949_v34  ;;  %v6531_v9 = vmul.f32 %v16068_v30, %v18512_v32  ;;  %v6564_v34 = vadd.f32 %v6563_v2, %v6562_v45 }
 0x735   : > { %v12216_v23 = vpop.f32.mrf.mxu1 }
 0x736   : > { %v16078_v37 = vadd.f32 %v15992_v35, %v6470_v63  ;;  %v6567_v22 = vsel %vm18365_vm0, %v6531_v9, 0.0  ;;  %v6566_v16 = vadd.f32 %v6565_v21, %v6564_v34 }
 0x737   : > { %v6411_v40 = vpop.f32.mrf.mxu1 }
 0x738   : > { %v6532_v62 = vmul.f32 %v16078_v37, %v18513_v14  ;;  %v6471_v15 = vadd.f32 %v6411_v40, %v15952_v50  ;;  %v6568_v57 = vadd.f32 %v6567_v22, %v6566_v16 }
 0x739   : > { %v12219_v46 = vpop.f32.mrf.mxu1 }
 0x73a   : > { %v16086_v3 = vadd.f32 %v15992_v35, %v6471_v15  ;;  %v6569_v51 = vsel %vm18365_vm0, %v6532_v62, 0.0  ;;  %v18516_v15 = vld [vmem:[#allocation31_spill] sm:$0xff] }
 0x73b   : > { %v6414_v17 = vpop.f32.mrf.mxu1  ;;  %v6570_v29 = vadd.f32 %v6569_v51, %v6568_v57 }
 0x73c   : > { %v6533_v26 = vmul.f32 %v16086_v3, %v18514_v56  ;;  %v6472_v28 = vadd.f32 %v6414_v17, %v15955_v7 }
 0x73d   : > { %v12220_v10 = vpop.f32.mrf.mxu1 }
 0x73e   : > { %v6571_v50 = vsel %vm18365_vm0, %v6533_v26, 0.0  ;;  %v16094_v27 = vadd.f32 %v15992_v35, %v6472_v28  ;;  %v18517_v26 = vld [vmem:[#allocation17_spill] sm:$0xff] }
 0x73f   : > { %v6419_v63 = vpop.f32.mrf.mxu1  ;;  %v6572_v9 = vadd.f32 %v6571_v50, %v6570_v29 }
 0x740   : > { %v6534_v23 = vmul.f32 %v16094_v27, %v18515_v25  ;;  %v6473_v2 = vadd.f32 %v6419_v63, %v15958_v49 }
 0x741   : > { %v12223_v45 = vpop.f32.mrf.mxu1 }
 0x742   : > { %v6573_v40 = vsel %vm18365_vm0, %v6534_v23, 0.0  ;;  %v16101_v7 = vadd.f32 %v15992_v35, %v6473_v2  ;;  %v18518_v23 = vld [vmem:[#allocation18_spill] sm:$0xff] }
 0x743   : > { %v6574_v21 = vadd.f32 %v6573_v40, %v6572_v9  ;;  %v6422_v62 = vpop.f32.mrf.mxu1 }
 0x744   : > { %v6535_v34 = vmul.f32 %v16101_v7, %v18516_v15  ;;  %v6474_v46 = vadd.f32 %v6422_v62, %v15961_v58 }
 0x745   : > { %v12224_v22 = vpop.f32.mrf.mxu1 }
 0x746   : > { %v6575_v16 = vsel %vm18365_vm0, %v6535_v34, 0.0  ;;  %v16108_v17 = vadd.f32 %v15992_v35, %v6474_v46  ;;  %v18519_v34 = vld [vmem:[#allocation19_spill] sm:$0xff] }
 0x747   : > { %v6576_v49 = vadd.f32 %v6575_v16, %v6574_v21  ;;  %v6427_v51 = vpop.f32.mrf.mxu1 }
 0x748   : > { %v6536_v28 = vmul.f32 %v16108_v17, %v18517_v26  ;;  %v6475_v57 = vadd.f32 %v6427_v51, %v15964_v33 }
 0x749   : > { %v12227_v10 = vpop.f32.mrf.mxu1 }
 0x74a   : > { %v6577_v50 = vsel %vm18365_vm0, %v6536_v28, 0.0  ;;  %v16115_v29 = vadd.f32 %v15992_v35, %v6475_v57  ;;  %v18520_v57 = vld [vmem:[#allocation20_spill] sm:$0xff] }
 0x74b   : > { %v6578_v58 = vadd.f32 %v6577_v50, %v6576_v49  ;;  %v6430_v63 = vpop.f32.mrf.mxu1 }
 0x74c   : > { %v6537_v2 = vmul.f32 %v16115_v29, %v18518_v23  ;;  %v6476_v9 = vadd.f32 %v6430_v63, %v15967_v59 }
 0x74d   : > { %v12228_v45 = vpop.f32.mrf.mxu1 }
 0x74e   : > { %v6579_v40 = vsel %vm18365_vm0, %v6537_v2, 0.0  ;;  %v16122_v21 = vadd.f32 %v15992_v35, %v6476_v9  ;;  %v18521_v45 = vld [vmem:[#allocation21_spill] sm:$0xff] }
 0x74f   : > { %v6580_v33 = vadd.f32 %v6579_v40, %v6578_v58  ;;  %v6435_v62 = vpop.f32.mrf.mxu1 }
 0x750   : > { %v6538_v46 = vmul.f32 %v16122_v21, %v18519_v34  ;;  %v6477_v22 = vadd.f32 %v6435_v62, %v15970_v53 }
 0x751   : > { %v12231_v16 = vpop.f32.mrf.mxu1 }
 0x752   : > { %v6581_v49 = vsel %vm18365_vm0, %v6538_v46, 0.0  ;;  %v16129_v51 = vadd.f32 %v15992_v35, %v6477_v22 }
 0x753   : > { %v6582_v59 = vadd.f32 %v6581_v49, %v6580_v33  ;;  %v6438_v28 = vpop.f32.mrf.mxu1  ;;  %v18522_v49 = vld [vmem:[#allocation32_spill] sm:$0xff] }
 0x754   : > { %v6539_v10 = vmul.f32 %v16129_v51, %v18520_v57  ;;  %v6478_v50 = vadd.f32 %v6438_v28, %v15973_v12 }
 0x755   : > { %v12232_v58 = vpop.f32.mrf.mxu1 }
 0x756   : > { %v6583_v63 = vsel %vm18365_vm0, %v6539_v10, 0.0  ;;  %v16136_v2 = vadd.f32 %v15992_v35, %v6478_v50 }
 0x757   : > { %v6584_v53 = vadd.f32 %v6583_v63, %v6582_v59  ;;  %v6443_v9 = vpop.f32.mrf.mxu1 }
 0x758   : > { %v6540_v40 = vmul.f32 %v16136_v2, %v18521_v45  ;;  %v6479_v62 = vadd.f32 %v6443_v9, %v15976_v54  ;;  %v18523_v9 = vld [vmem:[#allocation22_spill] sm:$0xff] }
 0x759   : > { %v12235_v33 = vpop.f32.mrf.mxu1 }
 0x75a   : > { %v6585_v46 = vsel %vm18365_vm0, %v6540_v40, 0.0  ;;  %v16143_v22 = vadd.f32 %v15992_v35, %v6479_v62 }
 0x75b   : > { %v6586_v12 = vadd.f32 %v6585_v46, %v6584_v53  ;;  %v6446_v16 = vpop.f32.mrf.mxu1 }
 0x75c   : > { %v6541_v28 = vmul.f32 %v16143_v22, %v18522_v49  ;;  %v6480_v10 = vadd.f32 %v6446_v16, %v15979_v47 }
 0x75d   : > { %v12236_v59 = vpop.f32.mrf.mxu1 }
 0x75e   : > { %v6587_v50 = vsel %vm18365_vm0, %v6541_v28, 0.0  ;;  %v16150_v58 = vadd.f32 %v15992_v35, %v6480_v10  ;;  %v18524_v59 = vld [vmem:[#allocation23_spill] sm:$0xff] }
 0x75f   : > { %v6588_v54 = vadd.f32 %v6587_v50, %v6586_v12  ;;  %v6451_v63 = vpop.f32.mrf.mxu1 }
 0x760   : > { %v6542_v40 = vmul.f32 %v16150_v58, %v18523_v9  ;;  %v6481_v62 = vadd.f32 %v6451_v63, %v15982_v0 }
 0x761   : > { %v12239_v53 = vpop.f32.mrf.mxu1 }
 0x762   : > { %v6589_v33 = vsel %vm18365_vm0, %v6542_v40, 0.0  ;;  %v16157_v46 = vadd.f32 %v15992_v35, %v6481_v62 }
 0x763   : > { %v6590_v47 = vadd.f32 %v6589_v33, %v6588_v54  ;;  %v6454_v16 = vpop.f32.mrf.mxu1 }
 0x764   : > { %v6543_v28 = vmul.f32 %v16157_v46, %v18524_v59 }
 0x765   : > { %v12240_v10 = vpop.f32.mrf.mxu1 }
 0x766   : > { %v6591_v12 = vsel %vm18365_vm0, %v6543_v28, 0.0 }
 0x767   : > { %v6592_v50 = vadd.f32 %v6591_v12, %v6590_v47 }
 0x769   : > { %v6593_v49 = vrot.slane %v6592_v50, 4 }
 0x76b   : > { %v6594_v45 = vadd.f32 %v6593_v49, %v6592_v50 }
 0x76d   : > { %v6595_v9 = vrot.slane %v6594_v45, 2 }
 0x76f   : > { %v6596_v57 = vadd.f32 %v6595_v9, %v6594_v45 }
 0x771   : > { %v6597_v0 = vrot.slane %v6596_v57, 1 }
 0x773   : > { %v6598_v63 = vadd.f32 %v6597_v0, %v6596_v57 }
 0x775   : > { %v16162_v53 = vmul.f32 0.0078125, %v6598_v63 }
 0x777   : > { %v6614_v35 = vsub.f32 %v16086_v3, %v16162_v53  ;;  %v6615_v54 = vsub.f32 %v16094_v27, %v16162_v53  ;;  %v6616_v40 = vsub.f32 %v16101_v7, %v16162_v53  ;;  %v6600_v16 = vsub.f32 %v15999_v6, %v16162_v53 }
 0x778   : > { %v6601_v10 = vsub.f32 %v15995_v41, %v16162_v53  ;;  %v6602_v12 = vsub.f32 %v16002_v60, %v16162_v53  ;;  %v6603_v0 = vsub.f32 %v16007_v61, %v16162_v53  ;;  %v6604_v6 = vsub.f32 %v16015_v5, %v16162_v53 }
 0x779   : > { %v16193_v50 = vmul.f32 %v6600_v16, %v18501_v42  ;;  %v6605_v60 = vsub.f32 %v16021_v19, %v16162_v53  ;;  %v6607_v19 = vsub.f32 %v16035_v48, %v16162_v53 }
 0x77a   : > { %v16198_v63 = vmul.f32 %v6601_v10, %v18500_v1  ;;  %v16203_v28 = vmul.f32 %v6602_v12, %v18502_v52  ;;  %v16210_v16 = vmul.f32 %v6603_v0, %v18503_v36  ;;  %v6606_v10 = vsub.f32 %v16029_v8, %v16162_v53 }
 0x77b   : > { %v6650_v41 = vmul.f32 %v16193_v50, %v16193_v50  ;;  %v16217_v5 = vmul.f32 %v6604_v6, %v18504_v11  ;;  %v16225_v0 = vmul.f32 %v6605_v60, %v18505_v24  ;;  %v6608_v6 = vsub.f32 %v16042_v13, %v16162_v53 }
 0x77c   : > { %v6651_v61 = vmul.f32 %v16198_v63, %v16198_v63  ;;  %v6652_v12 = vmul.f32 %v16203_v28, %v16203_v28  ;;  %v6653_v33 = vmul.f32 %v16210_v16, %v16210_v16  ;;  %v16233_v45 = vmul.f32 %v6606_v10, %v18506_v44 }
 0x77d   : > { %v6675_v47 = vsel %vm18365_vm0, %v6650_v41, 0.0  ;;  %v6654_v41 = vmul.f32 %v16217_v5, %v16217_v5  ;;  %v6609_v60 = vsub.f32 %v16048_v18, %v16162_v53  ;;  %v16241_v49 = vmul.f32 %v6607_v19, %v18507_v55 }
 0x77e   : > { %v6676_v9 = vsel %vm18365_vm0, %v6651_v61, 0.0  ;;  %v6678_v48 = vsel %vm18365_vm0, %v6652_v12, 0.0  ;;  %v6680_v13 = vsel %vm18365_vm0, %v6653_v33, 0.0  ;;  %v6610_v61 = vsub.f32 %v16055_v38, %v16162_v53 }
 0x77f   : > { %v6677_v8 = vadd.f32 %v6676_v9, %v6675_v47  ;;  %v6655_v9 = vmul.f32 %v16225_v0, %v16225_v0  ;;  %v16249_v10 = vmul.f32 %v6608_v6, %v18508_v39  ;;  %v6656_v12 = vmul.f32 %v16233_v45, %v16233_v45 }
 0x780   : > { %v6682_v18 = vsel %vm18365_vm0, %v6654_v41, 0.0  ;;  %v6611_v19 = vsub.f32 %v16061_v31, %v16162_v53  ;;  %v6612_v6 = vsub.f32 %v16068_v30, %v16162_v53 }
 0x781   : > { %v6679_v57 = vadd.f32 %v6678_v48, %v6677_v8  ;;  %v16257_v48 = vmul.f32 %v6609_v60, %v18509_v43  ;;  %v6684_v38 = vsel %vm18365_vm0, %v6655_v9, 0.0  ;;  %v6658_v41 = vmul.f32 %v16249_v10, %v16249_v10 }
 0x782   : > { %v6686_v31 = vsel %vm18365_vm0, %v6656_v12, 0.0  ;;  %v6613_v60 = vsub.f32 %v16078_v37, %v16162_v53 }
 0x783   : > { %v6681_v47 = vadd.f32 %v6680_v13, %v6679_v57  ;;  %v6657_v57 = vmul.f32 %v16241_v49, %v16241_v49  ;;  %v16265_v13 = vmul.f32 %v6610_v61, %v18510_v20  ;;  %v6659_v9 = vmul.f32 %v16257_v48, %v16257_v48 }
 0x784   : > { %v16279_v61 = vmul.f32 %v6612_v6, %v18512_v32  ;;  %v6690_v12 = vsel %vm18365_vm0, %v6658_v41, 0.0  ;;  %v16285_v37 = vmul.f32 %v6613_v60, %v18513_v14  ;;  %v16303_v60 = vmul.f32 %v6615_v54, %v18515_v25 }
 0x785   : > { %v6683_v8 = vadd.f32 %v6682_v18, %v6681_v47  ;;  %v16273_v18 = vmul.f32 %v6611_v19, %v18511_v4  ;;  %v6688_v30 = vsel %vm18365_vm0, %v6657_v57, 0.0  ;;  %v16294_v57 = vmul.f32 %v6614_v35, %v18514_v56 }
 0x786   : > { %v6662_v6 = vmul.f32 %v16279_v61, %v16279_v61  ;;  %v16312_v35 = vmul.f32 %v6616_v40, %v18516_v15  ;;  %v18525_v54 = vsub.f32 %v16108_v17, %v16162_v53  ;;  %v18526_v40 = vsub.f32 %v16115_v29, %v16162_v53  ;;  %v18528_v29 = vld [vmem:[#allocation20_spill] sm:$0xff] }
 0x787   : > { %v6685_v33 = vadd.f32 %v6684_v38, %v6683_v8  ;;  %v6660_v38 = vmul.f32 %v16265_v13, %v16265_v13  ;;  %v6661_v19 = vmul.f32 %v16273_v18, %v16273_v18 }
 0x789   : > { %v6687_v47 = vadd.f32 %v6686_v31, %v6685_v33  ;;  %v6692_v31 = vsel %vm18365_vm0, %v6659_v9, 0.0  ;;  %v6694_v41 = vsel %vm18365_vm0, %v6660_v38, 0.0  ;;  %v6663_v9 = vmul.f32 %v16285_v37, %v16285_v37 }
 0x78a   : > { %v16321_v38 = vmul.f32 %v18525_v54, %v18517_v26 }
 0x78b   : > { %v6689_v8 = vadd.f32 %v6688_v30, %v6687_v47  ;;  %v6696_v30 = vsel %vm18365_vm0, %v6661_v19, 0.0  ;;  %v16330_v19 = vmul.f32 %v18526_v40, %v18518_v23 }
 0x78d   : > { %v6691_v33 = vadd.f32 %v6690_v12, %v6689_v8  ;;  %v6698_v8 = vsel %vm18365_vm0, %v6662_v6, 0.0  ;;  %v6665_v12 = vmul.f32 %v16303_v60, %v16303_v60 }
 0x78f   : > { %v6693_v62 = vadd.f32 %v6692_v31, %v6691_v33  ;;  %v6700_v33 = vsel %vm18365_vm0, %v6663_v9, 0.0  ;;  %v6666_v31 = vmul.f32 %v16312_v35, %v16312_v35  ;;  %v6667_v9 = vmul.f32 %v16321_v38, %v16321_v38 }
 0x791   : > { %v6695_v47 = vadd.f32 %v6694_v41, %v6693_v62  ;;  %v6664_v62 = vmul.f32 %v16294_v57, %v16294_v57  ;;  %v18527_v41 = vsub.f32 %v16122_v21, %v16162_v53  ;;  %v6706_v54 = vsel %vm18365_vm0, %v6666_v31, 0.0  ;;  %v18534_v31 = vld [vmem:[#allocation22_spill] sm:$0xff] }
 0x792   : > { %v18531_v21 = vsub.f32 %v16136_v2, %v16162_v53 }
 0x793   : > { %v6697_v3 = vadd.f32 %v6696_v30, %v6695_v47  ;;  %v6702_v6 = vsel %vm18365_vm0, %v6664_v62, 0.0  ;;  %v6644_v47 = vmul.f32 %v18527_v41, %v18519_v34  ;;  %v6704_v30 = vsel %vm18365_vm0, %v6665_v12, 0.0  ;;  %v18532_v41 = vld [vmem:[#allocation32_spill] sm:$0xff] }
 0x794   : > { %v6668_v62 = vmul.f32 %v16330_v19, %v16330_v19  ;;  %v6708_v12 = vsel %vm18365_vm0, %v6667_v9, 0.0  ;;  %v18536_v9 = vsub.f32 %v16157_v46, %v16162_v53 }
 0x795   : > { %v6699_v27 = vadd.f32 %v6698_v8, %v6697_v3  ;;  %v18529_v8 = vsub.f32 %v16129_v51, %v16162_v53  ;;  %v18533_v51 = vsub.f32 %v16143_v22, %v16162_v53 }
 0x797   : > { %v6701_v7 = vadd.f32 %v6700_v33, %v6699_v27  ;;  %v6645_v27 = vmul.f32 %v18529_v8, %v18528_v29  ;;  %v6710_v29 = vsel %vm18365_vm0, %v6668_v62, 0.0 }
 0x799   : > { %v6703_v17 = vadd.f32 %v6702_v6, %v6701_v7  ;;  %v18530_v7 = vld [vmem:[#allocation21_spill] sm:$0xff]  ;;  %v6669_v6 = vmul.f32 %v6644_v47, %v6644_v47  ;;  %v6670_v8 = vmul.f32 %v6645_v27, %v6645_v27 }
 0x79a   : > { %v6646_v40 = vmul.f32 %v18531_v21, %v18530_v7 }
 0x79b   : > { %v6705_v3 = vadd.f32 %v6704_v30, %v6703_v17  ;;  %v6647_v30 = vmul.f32 %v18533_v51, %v18532_v41  ;;  %v6712_v21 = vsel %vm18365_vm0, %v6669_v6, 0.0 }
 0x79c   : > { %v6671_v2 = vmul.f32 %v6646_v40, %v6646_v40 }
 0x79d   : > { %v6707_v33 = vadd.f32 %v6706_v54, %v6705_v3  ;;  %v18535_v3 = vsub.f32 %v16150_v58, %v16162_v53  ;;  %v6672_v22 = vmul.f32 %v6647_v30, %v6647_v30 }
 0x79f   : > { %v6709_v17 = vadd.f32 %v6708_v12, %v6707_v33  ;;  %v6648_v54 = vmul.f32 %v18535_v3, %v18534_v31  ;;  %v6649_v33 = vmul.f32 %v18536_v9, %v18524_v59  ;;  %v6714_v12 = vsel %vm18365_vm0, %v6670_v8, 0.0 }
 0x7a0   : > { %v6718_v58 = vsel %vm18365_vm0, %v6672_v22, 0.0 }
 0x7a1   : > { %v6711_v34 = vadd.f32 %v6710_v29, %v6709_v17  ;;  %v6673_v62 = vmul.f32 %v6648_v54, %v6648_v54  ;;  %v6716_v29 = vsel %vm18365_vm0, %v6671_v2, 0.0  ;;  %v6674_v41 = vmul.f32 %v6649_v33, %v6649_v33 }
 0x7a3   : > { %v6713_v7 = vadd.f32 %v6712_v21, %v6711_v34  ;;  %v6720_v6 = vsel %vm18365_vm0, %v6673_v62, 0.0  ;;  %v6722_v21 = vsel %vm18365_vm0, %v6674_v41, 0.0 }
 0x7a5   : > { %v6715_v51 = vadd.f32 %v6714_v12, %v6713_v7 }
 0x7a7   : > { %v6717_v17 = vadd.f32 %v6716_v29, %v6715_v51 }
 0x7a9   : > { %v6719_v3 = vadd.f32 %v6718_v58, %v6717_v17 }
 0x7ab   : > { %v6721_v34 = vadd.f32 %v6720_v6, %v6719_v3  ;;  %v10414_v3 = vld [vmem:[%s13200_s17 + $0x1] ss:$0 sm:$0xff] }
 0x7ad   : > { %v6723_v31 = vadd.f32 %v6722_v21, %v6721_v34 }
 0x7af   : > { %v6724_v46 = vrot.slane %v6723_v31, 4 }
 0x7b1   : > { %v6725_v53 = vadd.f32 %v6724_v46, %v6723_v31 }
 0x7b3   : > { %v6726_v9 = vrot.slane %v6725_v53, 2 }
 0x7b5   : > { %v6727_v59 = vadd.f32 %v6726_v9, %v6725_v53 }
 0x7b7   : > { %v6728_v8 = vrot.slane %v6727_v59, 1 }
 0x7b9   : > { %v6729_v7 = vadd.f32 %v6728_v8, %v6727_v59 }
 0x7bb   : > { %v6730_v12 = vmul.f32 0.0078125, %v6729_v7 }
 0x7bd   : > { %v6731_v23 = vadd.f32 1e-05, %v6730_v12 }
 0x7bf   : > { %12920 = vrsqrt.f32 %v6731_v23 }
 0x7cc   : > { %v12921_v2 = vpop.eup %12920 }
 0x7cd   : > { %v6733_v22 = vmul.f32 %v12921_v2, %v16193_v50  ;;  %v6734_v51 = vmul.f32 %v12921_v2, %v16198_v63  ;;  %v6735_v62 = vmul.f32 %v12921_v2, %v16203_v28  ;;  %v6736_v41 = vmul.f32 %v12921_v2, %v16210_v16 }
 0x7ce   : > { %v6737_v29 = vmul.f32 %v12921_v2, %v16217_v5  ;;  %v6738_v31 = vmul.f32 %v12921_v2, %v16225_v0  ;;  %v6739_v17 = vmul.f32 %v12921_v2, %v16233_v45  ;;  %v6740_v59 = vmul.f32 %v12921_v2, %v16241_v49 }
 0x7cf   : > { %v6741_v23 = vmul.f32 %v12921_v2, %v16249_v10  ;;  %v6744_v58 = vmul.f32 %v12921_v2, %v16273_v18  ;;  %v6745_v50 = vmul.f32 %v12921_v2, %v16279_v61  ;;  %v6746_v63 = vmul.f32 %v12921_v2, %v16285_v37 }
 0x7d0   : > { %v6747_v28 = vmul.f32 %v12921_v2, %v16294_v57  ;;  %v6748_v16 = vmul.f32 %v12921_v2, %v16303_v60  ;;  %v6749_v5 = vmul.f32 %v12921_v2, %v16312_v35  ;;  %v6750_v0 = vmul.f32 %v12921_v2, %v16321_v38 }
 0x7d1   : > { %v6751_v45 = vmul.f32 %v12921_v2, %v16330_v19  ;;  %v6752_v49 = vmul.f32 %v12921_v2, %v6644_v47  ;;  %v6753_v6 = vmul.f32 %v12921_v2, %v6645_v27  ;;  %v6754_v10 = vmul.f32 %v12921_v2, %v6646_v40 }
 0x7d2   : > { %v6755_v34 = vmul.f32 %v12921_v2, %v6647_v30  ;;  %v6756_v18 = vmul.f32 %v12921_v2, %v6648_v54  ;;  %v6742_v61 = vmul.f32 %v12921_v2, %v16257_v48  ;;  %v6743_v37 = vmul.f32 %v12921_v2, %v16265_v13  ;;  %v10415_v54 = vld [vmem:[%s13225_s16 + $0x1] ss:$0 sm:$0xff] }
 0x7d3   : > { %v6757_v57 = vmul.f32 %v12921_v2, %v6649_v33  ;;  %v6764_v21 = vmul.f32 %v10414_v3, %v6733_v22  ;;  %v6765_v60 = vmul.f32 %v10414_v3, %v6734_v51  ;;  %v6766_v46 = vmul.f32 %v10414_v3, %v6735_v62 }
 0x7d4   : > { %v6767_v53 = vmul.f32 %v10414_v3, %v6736_v41  ;;  %v6768_v35 = vmul.f32 %v10414_v3, %v6737_v29  ;;  %v6769_v9 = vmul.f32 %v10414_v3, %v6738_v31  ;;  %v6770_v38 = vmul.f32 %v10414_v3, %v6739_v17 }
 0x7d5   : > { %v6771_v8 = vmul.f32 %v10414_v3, %v6740_v59  ;;  %v6772_v19 = vmul.f32 %v10414_v3, %v6741_v23  ;;  %v6773_v47 = vmul.f32 %v10414_v3, %v6742_v61  ;;  %v6774_v27 = vmul.f32 %v10414_v3, %v6743_v37 }
 0x7d6   : > { %v6775_v40 = vmul.f32 %v10414_v3, %v6744_v58  ;;  %v6776_v30 = vmul.f32 %v10414_v3, %v6745_v50  ;;  %v6777_v7 = vmul.f32 %v10414_v3, %v6746_v63  ;;  %v6778_v48 = vmul.f32 %v10414_v3, %v6747_v28 }
 0x7d7   : > { %v6779_v12 = vmul.f32 %v10414_v3, %v6748_v16  ;;  %v6780_v26 = vmul.f32 %v10414_v3, %v6749_v5  ;;  %v6781_v13 = vmul.f32 %v10414_v3, %v6750_v0  ;;  %v6782_v33 = vmul.f32 %v10414_v3, %v6751_v45 }
 0x7d8   : > { %v6783_v2 = vmul.f32 %v10414_v3, %v6752_v49  ;;  %v6784_v22 = vmul.f32 %v10414_v3, %v6753_v6  ;;  %v6785_v51 = vmul.f32 %v10414_v3, %v6754_v10  ;;  %v6786_v62 = vmul.f32 %v10414_v3, %v6755_v34 }
 0x7d9   : > { %v6787_v41 = vmul.f32 %v10414_v3, %v6756_v18  ;;  %v6788_v29 = vmul.f32 %v10414_v3, %v6757_v57  ;;  %v16394_v31 = vadd.f32 %v10415_v54, %v6764_v21  ;;  %v16396_v17 = vadd.f32 %v10415_v54, %v6765_v60 }
 0x7da   : > { %v16398_v59 = vadd.f32 %v10415_v54, %v6766_v46  ;;  %v16400_v23 = vadd.f32 %v10415_v54, %v6767_v53  ;;  %v16402_v58 = vadd.f32 %v10415_v54, %v6768_v35  ;;  %v16404_v50 = vadd.f32 %v10415_v54, %v6769_v9 }
 0x7db   : > { %v16406_v63 = vadd.f32 %v10415_v54, %v6770_v38  ;;  %v16408_v28 = vadd.f32 %v10415_v54, %v6771_v8  ;;  %v16410_v16 = vadd.f32 %v10415_v54, %v6772_v19  ;;  %v16412_v5 = vadd.f32 %v10415_v54, %v6773_v47 }
 0x7dc   : > { %v16414_v3 = vadd.f32 %v10415_v54, %v6774_v27  ;;  %v16416_v0 = vadd.f32 %v10415_v54, %v6775_v40  ;;  %v16418_v45 = vadd.f32 %v10415_v54, %v6776_v30  ;;  %v16420_v49 = vadd.f32 %v10415_v54, %v6777_v7 }
 0x7dd   : > { %v16422_v6 = vadd.f32 %v10415_v54, %v6778_v48  ;;  %v16424_v10 = vadd.f32 %v10415_v54, %v6779_v12  ;;  %v16426_v34 = vadd.f32 %v10415_v54, %v6780_v26  ;;  %v16428_v18 = vadd.f32 %v10415_v54, %v6781_v13  ;;  %v18537_v26 = vld [vmem:[#allocation33_spill] sm:$0xff] }
 0x7de   : > { %v16430_v61 = vadd.f32 %v10415_v54, %v6782_v33  ;;  %v16432_v37 = vadd.f32 %v10415_v54, %v6783_v2  ;;  %v16434_v57 = vadd.f32 %v10415_v54, %v6784_v22  ;;  %v16436_v21 = vadd.f32 %v10415_v54, %v6785_v51 }
 0x7df   : > { %v16438_v60 = vadd.f32 %v10415_v54, %v6786_v62  ;;  %v16440_v46 = vadd.f32 %v10415_v54, %v6787_v41  ;;  %v16442_v53 = vadd.f32 %v10415_v54, %v6788_v29  ;;  %vm6820_vm12 = vcmp.ge.f32.partialorder %v16394_v31, 0.0 }
 0x7e0   : > { %vm6821_vm9 = vcmp.ge.f32.partialorder %v16396_v17, 0.0  ;;  %vm6822_vm10 = vcmp.ge.f32.partialorder %v16398_v59, 0.0  ;;  %vm6823_vm11 = vcmp.ge.f32.partialorder %v16400_v23, 0.0  ;;  %vm6824_vm13 = vcmp.ge.f32.partialorder %v16402_v58, 0.0 }
 0x7e1   : > { %vm6825_vm14 = vcmp.ge.f32.partialorder %v16404_v50, 0.0  ;;  %vm6833_vm7 = vcmp.ge.f32.partialorder %v16420_v49, 0.0  ;;  %vm6834_vm8 = vcmp.ge.f32.partialorder %v16422_v6, 0.0  ;;  %vm6835_vm0 = vcmp.ge.f32.partialorder %v16424_v10, 0.0 }
 0x7e2   : > { %vm6836_vm15 = vcmp.ge.f32.partialorder %v16426_v34, 0.0  ;;  %vm6837_vm1 = vcmp.ge.f32.partialorder %v16428_v18, 0.0  ;;  %vm6838_vm2 = vcmp.ge.f32.partialorder %v16430_v61, 0.0  ;;  %vm6841_vm5 = vcmp.ge.f32.partialorder %v16436_v21, 0.0 }
 0x7e3   : > { %vm6842_vm6 = vcmp.ge.f32.partialorder %v16438_v60, 0.0  ;;  %v6845_v35 = vmul.f32 %v16394_v31, %v18537_v26  ;;  %v6846_v9 = vmul.f32 %v16396_v17, %v18537_v26  ;;  %v6847_v38 = vmul.f32 %v16398_v59, %v18537_v26 }
 0x7e4   : > { %v6848_v8 = vmul.f32 %v16400_v23, %v18537_v26  ;;  %vm6843_vm3 = vcmp.ge.f32.partialorder %v16440_v46, 0.0  ;;  %vm6844_vm4 = vcmp.ge.f32.partialorder %v16442_v53, 0.0  ;;  %v6849_v19 = vmul.f32 %v16402_v58, %v18537_v26 }
 0x7e5   : > { %v6850_v47 = vmul.f32 %v16404_v50, %v18537_v26  ;;  %v6851_v27 = vmul.f32 %v16406_v63, %v18537_v26  ;;  %v6852_v40 = vmul.f32 %v16408_v28, %v18537_v26  ;;  %v6853_v30 = vmul.f32 %v16410_v16, %v18537_v26 }
 0x7e6   : > { %v6854_v54 = vmul.f32 %v16412_v5, %v18537_v26  ;;  %v6855_v7 = vmul.f32 %v16414_v3, %v18537_v26  ;;  %v6856_v48 = vmul.f32 %v16416_v0, %v18537_v26  ;;  %v6857_v12 = vmul.f32 %v16418_v45, %v18537_v26 }
 0x7e7   : > { %v6858_v13 = vmul.f32 %v16420_v49, %v18537_v26  ;;  %v6859_v33 = vmul.f32 %v16422_v6, %v18537_v26  ;;  %v6860_v2 = vmul.f32 %v16424_v10, %v18537_v26  ;;  %v6861_v22 = vmul.f32 %v16426_v34, %v18537_v26 }
 0x7e8   : > { %v6862_v51 = vmul.f32 %v16428_v18, %v18537_v26  ;;  %v6863_v62 = vmul.f32 %v16430_v61, %v18537_v26  ;;  %v6864_v41 = vmul.f32 %v16432_v37, %v18537_v26  ;;  %v6865_v29 = vmul.f32 %v16434_v57, %v18537_v26 }
 0x7e9   : > { %v6866_v15 = vmul.f32 %v16436_v21, %v18537_v26  ;;  %v6867_v25 = vmul.f32 %v16438_v60, %v18537_v26  ;;  %v6868_v56 = vmul.f32 %v16440_v46, %v18537_v26  ;;  %v6869_v14 = vmul.f32 %v16442_v53, %v18537_v26 }
 0x7ea   : > { %v6870_v32 = vsel %vm6820_vm12, %v16394_v31, %v6845_v35  ;;  %v6871_v4 = vsel %vm6821_vm9, %v16396_v17, %v6846_v9  ;;  %v6872_v20 = vsel %vm6822_vm10, %v16398_v59, %v6847_v38  ;;  %v6873_v43 = vsel %vm6823_vm11, %v16400_v23, %v6848_v8  ;;  %v18547_v38 = vld [vmem:[#allocation12_spill] sm:$0xff] }
 0x7eb   : > { %v6874_v26 = vsel %vm6824_vm13, %v16402_v58, %v6849_v19  ;;  %v6875_v31 = vsel %vm6825_vm14, %v16404_v50, %v6850_v47  ;;  %vm18538_vm12 = vcmp.ge.f32.partialorder %v16406_v63, 0.0  ;;  %vm18539_vm9 = vcmp.ge.f32.partialorder %v16408_v28, 0.0  ;;  %v18553_v8 = vld [vmem:[#allocation16_spill] sm:$0xff]  ;;  %v18554_v19 = vld [vmem:[#allocation31_spill] sm:$0xff]  ;;  %v18555_v47 = vld [vmem:[#allocation17_spill] sm:$0xff] }
 0x7ec   : > { %v6876_v17 = vsel %vm18538_vm12, %v16406_v63, %v6851_v27  ;;  %v6877_v59 = vsel %vm18539_vm9, %v16408_v28, %v6852_v40  ;;  %vm18540_vm10 = vcmp.ge.f32.partialorder %v16410_v16, 0.0  ;;  %vm18541_vm11 = vcmp.ge.f32.partialorder %v16412_v5, 0.0  ;;  %v18556_v27 = vld [vmem:[#allocation18_spill] sm:$0xff]  ;;  %v18557_v40 = vld [vmem:[#allocation19_spill] sm:$0xff] }
 0x7ed   : > { %v6878_v23 = vsel %vm18540_vm10, %v16410_v16, %v6853_v30  ;;  %v6879_v58 = vsel %vm18541_vm11, %v16412_v5, %v6854_v54  ;;  %vm18542_vm13 = vcmp.ge.f32.partialorder %v16414_v3, 0.0  ;;  %vm18543_vm14 = vcmp.ge.f32.partialorder %v16416_v0, 0.0  ;;  %v18558_v54 = vld [vmem:[#allocation20_spill] sm:$0xff] }
 0x7ee   : > { %v6880_v50 = vsel %vm18542_vm13, %v16414_v3, %v6855_v7  ;;  %v6881_v63 = vsel %vm18543_vm14, %v16416_v0, %v6856_v48  ;;  %vm18544_vm12 = vcmp.ge.f32.partialorder %v16418_v45, 0.0  ;;  %v6883_v16 = vsel %vm6833_vm7, %v16420_v49, %v6858_v13  ;;  %v18559_v48 = vld [vmem:[#allocation21_spill] sm:$0xff]  ;;  %v18560_v13 = vld [vmem:[#allocation32_spill] sm:$0xff] }
 0x7ef   : > { %v6882_v28 = vsel %vm18544_vm12, %v16418_v45, %v6857_v12  ;;  %v6884_v5 = vsel %vm6834_vm8, %v16422_v6, %v6859_v33  ;;  %v6885_v3 = vsel %vm6835_vm0, %v16424_v10, %v6860_v2  ;;  %v6886_v0 = vsel %vm6836_vm15, %v16426_v34, %v6861_v22  ;;  %v18561_v2 = vld [vmem:[#allocation22_spill] sm:$0xff] }
 0x7f0   : > { %v6887_v45 = vsel %vm6837_vm1, %v16428_v18, %v6862_v51  ;;  %v6888_v49 = vsel %vm6838_vm2, %v16430_v61, %v6863_v62  ;;  %vm18545_vm7 = vcmp.ge.f32.partialorder %v16432_v37, 0.0  ;;  %vm18546_vm8 = vcmp.ge.f32.partialorder %v16434_v57, 0.0  ;;  %v18562_v51 = vld [vmem:[#allocation23_spill] sm:$0xff] }
 0x7f1   : > { %v6889_v6 = vsel %vm18545_vm7, %v16432_v37, %v6864_v41  ;;  %v6890_v10 = vsel %vm18546_vm8, %v16434_v57, %v6865_v29  ;;  %v6891_v34 = vsel %vm6841_vm5, %v16436_v21, %v6866_v15  ;;  %v6892_v18 = vsel %vm6842_vm6, %v16438_v60, %v6867_v25  ;;  %v12922_v41 = vld [vmem:[#allocation2 + $0x10] sm:$0xff] }
 0x7f2   : > { %v6893_v61 = vsel %vm6843_vm3, %v16440_v46, %v6868_v56  ;;  %v6894_v37 = vsel %vm6844_vm4, %v16442_v53, %v6869_v14  ;;  %v6895_v35 = vmul.f32 %v6870_v32, %v18501_v42  ;;  %v6896_v57 = vmul.f32 %v6871_v4, %v18500_v1  ;;  %v18548_v53 = vld [vmem:[#allocation29_spill] sm:$0xff]  ;;  %v18550_v4 = vld [vmem:[#allocation30_spill] sm:$0xff] }
 0x7f3   : > { %v6897_v9 = vmul.f32 %v6872_v20, %v18502_v52  ;;  %v6898_v15 = vmul.f32 %v6873_v43, %v18503_v36  ;;  %v6899_v21 = vmul.f32 %v6874_v26, %v18504_v11  ;;  %v6900_v25 = vmul.f32 %v6875_v31, %v18505_v24  ;;  %v18549_v32 = vld [vmem:[#allocation13_spill] sm:$0xff]  ;;  %v18551_v20 = vld [vmem:[#allocation14_spill] sm:$0xff]  ;;  %v18552_v43 = vld [vmem:[#allocation15_spill] sm:$0xff] }
 0x7f4   : > { %v6901_v60 = vmul.f32 %v6876_v17, %v18506_v44  ;;  %v6902_v56 = vmul.f32 %v6877_v59, %v18507_v55  ;;  %v6903_v46 = vmul.f32 %v6878_v23, %v18508_v39  ;;  %v6904_v14 = vmul.f32 %v6879_v58, %v18547_v38  ;;  %v12923_v26 = vld [vmem:[#allocation2 + $0x18] sm:$0xff]  ;;  %v12924_v17 = vld [vmem:[#allocation2 + $0x20] sm:$0xff]  ;;  %v12925_v23 = vld [vmem:[#allocation2 + $0x28] sm:$0xff] }
 0x7f5   : > { %v6905_v42 = vmul.f32 %v6880_v50, %v18548_v53  ;;  %v6906_v1 = vmul.f32 %v6881_v63, %v18549_v32  ;;  %v6907_v52 = vmul.f32 %v6882_v28, %v18550_v4  ;;  %v6908_v36 = vmul.f32 %v6883_v16, %v18551_v20  ;;  %v12926_v50 = vld [vmem:[#allocation2 + $0x30] sm:$0xff]  ;;  %v12927_v28 = vld [vmem:[#allocation2 + $0x38] sm:$0xff]  ;;  %v12940_v32 = vld [vmem:[#allocation2 + $0xa0] sm:$0xff] }
 0x7f6   : > { %v6909_v11 = vmul.f32 %v6884_v5, %v18552_v43  ;;  %v6910_v24 = vmul.f32 %v6885_v3, %v18553_v8  ;;  %v6911_v44 = vmul.f32 %v6886_v0, %v18554_v19  ;;  %v6912_v55 = vmul.f32 %v6887_v45, %v18555_v47  ;;  %v12928_v5 = vld [vmem:[#allocation2 + $0x40] sm:$0xff]  ;;  %v12929_v0 = vld [vmem:[#allocation2 + $0x48] sm:$0xff]  ;;  %v12938_v38 = vld [vmem:[#allocation2 + $0x90] sm:$0xff] }
 0x7f7   : > { %v6913_v39 = vmul.f32 %v6888_v49, %v18556_v27  ;;  %v6914_v30 = vmul.f32 %v6889_v6, %v18557_v40  ;;  %v6915_v7 = vmul.f32 %v6890_v10, %v18558_v54  ;;  %v6916_v12 = vmul.f32 %v6891_v34, %v18559_v48  ;;  %v12930_v49 = vld [vmem:[#allocation2 + $0x50] sm:$0xff]  ;;  %v12931_v10 = vld [vmem:[#allocation2 + $0x58] sm:$0xff]  ;;  %v12941_v4 = vld [vmem:[#allocation2 + $0xa8] sm:$0xff] }
 0x7f8   : > { %v6917_v33 = vmul.f32 %v6892_v18, %v18560_v13  ;;  %v6918_v22 = vmul.f32 %v6893_v61, %v18561_v2  ;;  %v16619_v62 = vmul.f32 %v6894_v37, %v18562_v51  ;;  %v6920_v29 = vadd.f32 %v12922_v41, %v6895_v35  ;;  %v12932_v18 = vld [vmem:[#allocation2 + $0x60] sm:$0xff]  ;;  %v12933_v37 = vld [vmem:[#allocation2 + $0x68] sm:$0xff]  ;;  %v12939_v53 = vld [vmem:[#allocation2 + $0x98] sm:$0xff] }
 0x7f9   : > { %v6921_v31 = vadd.f32 %v12923_v26, %v6896_v57  ;;  %v6922_v59 = vadd.f32 %v12924_v17, %v6897_v9  ;;  %v6923_v58 = vadd.f32 %v12925_v23, %v6898_v15  ;;  %v6924_v63 = vadd.f32 %v12926_v50, %v6899_v21  ;;  %v12934_v57 = vld [vmem:[#allocation2 + $0x70] sm:$0xff]  ;;  %v12935_v15 = vld [vmem:[#allocation2 + $0x78] sm:$0xff]  ;;  %v12944_v8 = vld [vmem:[#allocation2 + $0xc0] sm:$0xff] }
 0x7fa   : > { %v6925_v16 = vadd.f32 %v12927_v28, %v6900_v25  ;;  %v6926_v3 = vadd.f32 %v12928_v5, %v6901_v60  ;;  %v6927_v45 = vadd.f32 %v12929_v0, %v6902_v56  ;;  %v6928_v6 = vadd.f32 %v12930_v49, %v6903_v46  ;;  %v12936_v25 = vld [vmem:[#allocation2 + $0x80] sm:$0xff]  ;;  %v12937_v56 = vld [vmem:[#allocation2 + $0x88] sm:$0xff]  ;;  %v12942_v20 = vld [vmem:[#allocation2 + $0xb0] sm:$0xff] }
 0x7fb   : > { %vm18563_vm0 = vcmask 523264   ;;  %v6929_v34 = vadd.f32 %v12931_v10, %v6904_v14  ;;  %v6930_v61 = vadd.f32 %v12932_v18, %v6905_v42  ;;  %v6931_v35 = vadd.f32 %v12933_v37, %v6906_v1  ;;  %v12943_v43 = vld [vmem:[#allocation2 + $0xb8] sm:$0xff]  ;;  %v12945_v19 = vld [vmem:[#allocation2 + $0xc8] sm:$0xff]  ;;  %v12946_v47 = vld [vmem:[#allocation2 + $0xd0] sm:$0xff] }
 0x7fc   : > { %6945 = vst.msk [vmem:[#allocation2 + $0x10] sm:$0xff] %vm18563_vm0, %v6920_v29  ;;  %v6932_v9 = vadd.f32 %v12934_v57, %v6907_v52  ;;  %vm18564_vm15 = vmmov %vm18563_vm0  ;;  %v6933_v21 = vadd.f32 %v12935_v15, %v6908_v36  ;;  %v6934_v60 = vadd.f32 %v12936_v25, %v6909_v11  ;;  %v6935_v46 = vadd.f32 %v12937_v56, %v6910_v24 }
 0x7fd   : > { %6946 = vst.msk [vmem:[#allocation2 + $0x18] sm:$0xff] %vm18564_vm15, %v6921_v31  ;;  %vm18565_vm1 = vmmov %vm18563_vm0  ;;  %v6936_v14 = vadd.f32 %v12938_v38, %v6911_v44  ;;  %v6937_v42 = vadd.f32 %v12939_v53, %v6912_v55  ;;  %v6938_v1 = vadd.f32 %v12940_v32, %v6913_v39  ;;  %v6939_v52 = vadd.f32 %v12941_v4, %v6914_v30 }
 0x7fe   : > { %6947 = vst.msk [vmem:[#allocation2 + $0x20] sm:$0xff] %vm18565_vm1, %v6922_v59  ;;  %vm18566_vm2 = vmmov %vm18563_vm0  ;;  %v6940_v36 = vadd.f32 %v12942_v20, %v6915_v7  ;;  %v6941_v11 = vadd.f32 %v12943_v43, %v6916_v12  ;;  %v6942_v24 = vadd.f32 %v12944_v8, %v6917_v33  ;;  %v6943_v44 = vadd.f32 %v12945_v19, %v6918_v22 }
 0x7ff   : > { %6948 = vst.msk [vmem:[#allocation2 + $0x28] sm:$0xff] %vm18566_vm2, %v6923_v58  ;;  %vm18567_vm3 = vmmov %vm18563_vm0  ;;  %v6944_v55 = vadd.f32 %v12946_v47, %v16619_v62 }
 0x800   : > { %6949 = vst.msk [vmem:[#allocation2 + $0x30] sm:$0xff] %vm18567_vm3, %v6924_v63  ;;  %vm18568_vm4 = vmmov %vm18563_vm0 }
 0x801   : > { %6950 = vst.msk [vmem:[#allocation2 + $0x38] sm:$0xff] %vm18568_vm4, %v6925_v16  ;;  %vm18569_vm5 = vmmov %vm18563_vm0 }
 0x802   : > { %6951 = vst.msk [vmem:[#allocation2 + $0x40] sm:$0xff] %vm18569_vm5, %v6926_v3  ;;  %vm18570_vm6 = vmmov %vm18563_vm0 }
 0x803   : > { %6952 = vst.msk [vmem:[#allocation2 + $0x48] sm:$0xff] %vm18570_vm6, %v6927_v45  ;;  %vm18571_vm9 = vmmov %vm18563_vm0 }
 0x804   : > { %6953 = vst.msk [vmem:[#allocation2 + $0x50] sm:$0xff] %vm18571_vm9, %v6928_v6  ;;  %vm18572_vm10 = vmmov %vm18563_vm0 }
 0x805   : > { %6954 = vst.msk [vmem:[#allocation2 + $0x58] sm:$0xff] %vm18572_vm10, %v6929_v34  ;;  %vm18573_vm11 = vmmov %vm18563_vm0 }
 0x806   : > { %6955 = vst.msk [vmem:[#allocation2 + $0x60] sm:$0xff] %vm18573_vm11, %v6930_v61  ;;  %vm18574_vm13 = vmmov %vm18563_vm0 }
 0x807   : > { %6956 = vst.msk [vmem:[#allocation2 + $0x68] sm:$0xff] %vm18574_vm13, %v6931_v35  ;;  %vm18575_vm14 = vmmov %vm18563_vm0 }
 0x808   : > { %6957 = vst.msk [vmem:[#allocation2 + $0x70] sm:$0xff] %vm18575_vm14, %v6932_v9  ;;  %vm18576_vm12 = vmmov %vm18563_vm0 }
 0x809   : > { %6958 = vst.msk [vmem:[#allocation2 + $0x78] sm:$0xff] %vm18576_vm12, %v6933_v21  ;;  %vm18577_vm7 = vmmov %vm18563_vm0 }
 0x80a   : > { %6959 = vst.msk [vmem:[#allocation2 + $0x80] sm:$0xff] %vm18577_vm7, %v6934_v60  ;;  %vm18578_vm8 = vmmov %vm18563_vm0 }
 0x80b   : > { %6960 = vst.msk [vmem:[#allocation2 + $0x88] sm:$0xff] %vm18578_vm8, %v6935_v46  ;;  %vm18579_vm15 = vmmov %vm18563_vm0 }
 0x80c   : > { %6961 = vst.msk [vmem:[#allocation2 + $0x90] sm:$0xff] %vm18563_vm0, %v6936_v14  ;;  %vm18580_vm1 = vmmov %vm18563_vm0 }
 0x80d   : > { %6962 = vst.msk [vmem:[#allocation2 + $0x98] sm:$0xff] %vm18579_vm15, %v6937_v42  ;;  %vm18581_vm2 = vmmov %vm18563_vm0 }
 0x80e   : > { %6963 = vst.msk [vmem:[#allocation2 + $0xa0] sm:$0xff] %vm18580_vm1, %v6938_v1  ;;  %vm18582_vm3 = vmmov %vm18563_vm0 }
 0x80f   : > { %6964 = vst.msk [vmem:[#allocation2 + $0xa8] sm:$0xff] %vm18581_vm2, %v6939_v52  ;;  %vm18583_vm4 = vmmov %vm18563_vm0 }
 0x810   : > { %6965 = vst.msk [vmem:[#allocation2 + $0xb0] sm:$0xff] %vm18582_vm3, %v6940_v36  ;;  %vm18584_vm5 = vmmov %vm18563_vm0  ;;  %6973 = sbr.rel (%p10416_p2) target bundleno = 2911 (0xb5f), region = 80 }
 0x811   : > { %6966 = vst.msk [vmem:[#allocation2 + $0xb8] sm:$0xff] %vm18583_vm4, %v6941_v11  ;;  %vm18585_vm6 = vmmov %vm18563_vm0 }
 0x812   : > { %6967 = vst.msk [vmem:[#allocation2 + $0xc0] sm:$0xff] %vm18584_vm5, %v6942_v24  ;;  %vm18586_vm9 = vmmov %vm18563_vm0 }
 0x813   : > { %6968 = vst.msk [vmem:[#allocation2 + $0xc8] sm:$0xff] %vm18585_vm6, %v6943_v44 }
 0x814   : > { %6969 = vst.msk [vmem:[#allocation2 + $0xd0] sm:$0xff] %vm18586_vm9, %v6944_v55 }
 0x815   : > { %v12947_v27 = vld [vmem:[%s18251_s9 + $0x38] sm:$0xff]   ;;  %v13019_v39 = vmov 0.0   ;;  %v12948_v40 = vld [vmem:[%s18251_s9 + $0x30] sm:$0xff]   ;;  %vm13020_vm10 = vmmov 0   ;;  %v12949_v30 = vld [vmem:[%s18251_s9 + $0x28] sm:$0xff]   ;;  %vm18587_vm11 = vcmask 523264  }
 0x816   : > { %12241 = vmatprep.subr.bf16.mxu0 %v13019_v39  ;;  %12789 = vmatprep.subr.bf16.mxu1 %v13019_v39  ;;  %v12950_v54 = vld [vmem:[%s18251_s9 + $0x20] sm:$0xff]   ;;  %v7021_v48 = vld [vmem:[#allocation2 + $0xe] sm:$0xff]  ;;  %v7034_v12 = vld [vmem:[#allocation2 + $0x76] sm:$0xff] }
 0x817   : > { %12242 = vmatpush3.bf16.msra.mxu0 %v12947_v27  ;;  %12793 = vmatpush3.bf16.msra.mxu1 %v12947_v27  ;;  %v7020_v7 = vld [vmem:[#allocation2 + $0x6] sm:$0xff]  ;;  %v7035_v13 = vld [vmem:[#allocation2 + $0x7e] sm:$0xff]  ;;  %v7022_v62 = vld [vmem:[#allocation2 + $0x16] sm:$0xff] }
 0x818   : > { %12243 = vmatprep.subr.bf16.mxu0 %v13019_v39  ;;  %12790 = vmatprep.subr.bf16.mxu1 %v13019_v39  ;;  %v7045_v33 = vpack.c.bf16 %v7021_v48, %v7020_v7  ;;  %v7052_v2 = vpack.c.bf16 %v7035_v13, %v7034_v12  ;;  %v12951_v22 = vld [vmem:[%s18251_s9 + $0x58] sm:$0xff]   ;;  %vm18588_vm13 = vmmov %vm18587_vm11  ;;  %v7036_v29 = vld [vmem:[#allocation2 + $0x86] sm:$0xff] }
 0x819   : > { %12249 = vmatprep.mubr.msk.bf16.mxu0 %vm13020_vm10, %v13019_v39  ;;  %12277 = vmatprep.mubr.msk.bf16.mxu1 %vm13020_vm10, %v13019_v39  ;;  %v12952_v51 = vld [vmem:[%s18251_s9 + $0x18] sm:$0xff]   ;;  %v7037_v26 = vld [vmem:[#allocation2 + $0x8e] sm:$0xff]  ;;  %vm18589_vm14 = vmmov %vm18587_vm11 }
 0x81a   : > { %v7023_v41 = vld [vmem:[#allocation2 + $0x1e] sm:$0xff]  ;;  %v12953_v31 = vld [vmem:[%s18251_s9 + $0x50] sm:$0xff]   ;;  %v7053_v23 = vpack.c.bf16 %v7037_v26, %v7036_v29  ;;  %v12955_v58 = vld [vmem:[%s18251_s9 + $0x48] sm:$0xff]  }
 0x81b   : > { %12244 = vmatpush3.bf16.msra.mxu0 %v12948_v40  ;;  %12794 = vmatpush3.bf16.msra.mxu1 %v12948_v40  ;;  %v12954_v17 = vld [vmem:[%s18251_s9 + $0x10] sm:$0xff]   ;;  %v7046_v59 = vpack.c.bf16 %v7023_v41, %v7022_v62  ;;  %v12956_v50 = vld [vmem:[%s18251_s9 + $0x8] sm:$0xff]   ;;  %vm18590_vm12 = vmmov %vm18587_vm11 }
 0x81c   : > { %12245 = vmatprep.subr.bf16.mxu0 %v13019_v39  ;;  %12791 = vmatprep.subr.bf16.mxu1 %v13019_v39  ;;  %v7024_v63 = vld [vmem:[#allocation2 + $0x26] sm:$0xff]  ;;  %v7025_v28 = vld [vmem:[#allocation2 + $0x2e] sm:$0xff]  ;;  %v7038_v16 = vld [vmem:[#allocation2 + $0x96] sm:$0xff] }
 0x81d   : > { %v7039_v5 = vld [vmem:[#allocation2 + $0x9e] sm:$0xff]  ;;  %v7047_v45 = vpack.c.bf16 %v7025_v28, %v7024_v63  ;;  %vm18591_vm7 = vmmov %vm18587_vm11  ;;  %v7026_v6 = vld [vmem:[#allocation2 + $0x36] sm:$0xff] }
 0x81e   : > { %v12957_v3 = vld [vmem:[%s18251_s9] sm:$0xff]   ;;  %v7054_v49 = vpack.c.bf16 %v7039_v5, %v7038_v16  ;;  %vm18592_vm8 = vmmov %vm18591_vm7  ;;  %v7041_v18 = vld [vmem:[#allocation2 + $0xae] sm:$0xff] }
 0x81f   : > { %12246 = vmatpush3.bf16.msra.mxu0 %v12949_v30  ;;  %12795 = vmatpush3.bf16.msra.mxu1 %v12949_v30  ;;  %v12958_v0 = vld [vmem:[%s18251_s9 + $0x40] sm:$0xff]   ;;  %v16724_v35 = vld [vmem:[#allocation2 + $0xf] sm:$0xff]  ;;  %v16726_v57 = vld [vmem:[#allocation2 + $0x17] sm:$0xff] }
 0x820   : > { %12247 = vmatprep.subr.bf16.mxu0 %v13019_v39  ;;  %12792 = vmatprep.subr.bf16.mxu1 %v13019_v39  ;;  %v7027_v10 = vld [vmem:[#allocation2 + $0x3e] sm:$0xff]  ;;  %v7040_v34 = vld [vmem:[#allocation2 + $0xa6] sm:$0xff]  ;;  %v7759_v9 = vpack.c.bf16 %v16726_v57, %v16724_v35  ;;  %v7029_v21 = vld [vmem:[#allocation2 + $0x4e] sm:$0xff] }
 0x821   : > { %v7048_v61 = vpack.c.bf16 %v7027_v10, %v7026_v6  ;;  %v7055_v37 = vpack.c.bf16 %v7041_v18, %v7040_v34  ;;  %v7028_v15 = vld [vmem:[#allocation2 + $0x46] sm:$0xff]  ;;  %vm18593_vm0 = vmmov %vm18591_vm7  ;;  %v7042_v25 = vld [vmem:[#allocation2 + $0xb6] sm:$0xff] }
 0x822   : > { %vm18594_vm15 = vmmov %vm18593_vm0  ;;  %v7043_v60 = vld [vmem:[#allocation2 + $0xbe] sm:$0xff]  ;;  %v16738_v46 = vld [vmem:[#allocation2 + $0x27] sm:$0xff]  ;;  %v7049_v14 = vpack.c.bf16 %v7029_v21, %v7028_v15 }
 0x823   : > { %12248 = vmatpush3.bf16.msra.mxu0 %v12950_v54  ;;  %12796 = vmatpush3.bf16.msra.mxu1 %v12950_v54  ;;  %v16736_v56 = vld [vmem:[#allocation2 + $0x1f] sm:$0xff]  ;;  %v7056_v53 = vpack.c.bf16 %v7043_v60, %v7042_v25  ;;  %v7030_v42 = vld [vmem:[#allocation2 + $0x56] sm:$0xff]  ;;  %vm18595_vm1 = vmmov %vm18593_vm0 }
 0x824   : > { %12361 = vmatprep.subr.bf16.mxu0 %v13019_v39  ;;  %12301 = vmatprep.subr.bf16.mxu1 %v13019_v39  ;;  %v7760_v38 = vpack.c.bf16 %v16738_v46, %v16736_v56  ;;  %v7031_v32 = vld [vmem:[#allocation2 + $0x5e] sm:$0xff]  ;;  %v7044_v1 = vld [vmem:[#allocation2 + $0xc6] sm:$0xff]  ;;  %v16742_v4 = vld [vmem:[#allocation2 + $0x2f] sm:$0xff] }
 0x825   : > { %vm18596_vm2 = vmmov %vm18593_vm0  ;;  %v16746_v52 = vld [vmem:[#allocation2 + $0x37] sm:$0xff]  ;;  %v7050_v36 = vpack.c.bf16 %v7031_v32, %v7030_v42  ;;  %v7057_v43 = vpack.c.bf16 %v7044_v1, %v7044_v1  ;;  %v16754_v11 = vld [vmem:[#allocation2 + $0x3f] sm:$0xff] }
 0x826   : > { %12250 = vmatmul.mubr.msk.bf16.vlgmr.msra.gmra.mxu0 %vm18587_vm11, %v7045_v33  ;;  %12278 = vmatmul.mubr.msk.bf16.vlgmr.msra.gmra.mxu1 %vm18588_vm13, %v7052_v2  ;;  %v7761_v20 = vpack.c.bf16 %v16746_v52, %v16742_v4  ;;  %v7032_v8 = vld [vmem:[#allocation2 + $0x66] sm:$0xff]  ;;  %vm18597_vm3 = vmmov %vm18593_vm0  ;;  %v7033_v19 = vld [vmem:[#allocation2 + $0x6e] sm:$0xff] }
 0x827   : > { %12362 = vmatpush3.bf16.msra.mxu0 %v12951_v22  ;;  %12253 = vmatprep.mubr.msk.bf16.mxu0 %vm13020_vm10, %v13019_v39  ;;  %vm18598_vm4 = vmmov %vm18593_vm0  ;;  %v16758_v24 = vld [vmem:[#allocation2 + $0x47] sm:$0xff]  ;;  %v7051_v27 = vpack.c.bf16 %v7033_v19, %v7032_v8  ;;  %v12959_v30 = vld [vmem:[%s18251_s9 + $0x78] sm:$0xff]  }
 0x828   : > { %12281 = vmatprep.mubr.msk.bf16.mxu1 %vm13020_vm10, %v13019_v39  ;;  %12302 = vmatpush3.bf16.msra.mxu1 %v12952_v51  ;;  %v6974_v44 = vld [vmem:[#allocation2 + $0x5] sm:$0xff]  ;;  %v6975_v47 = vld [vmem:[#allocation2 + $0xd] sm:$0xff]  ;;  %v7762_v55 = vpack.c.bf16 %v16758_v24, %v16754_v11  ;;  %vm18599_vm5 = vmmov %vm18593_vm0 }
 0x829   : > { %12363 = vmatprep.subr.bf16.mxu0 %v13019_v39  ;;  %12303 = vmatprep.subr.bf16.mxu1 %v13019_v39  ;;  %v6999_v40 = vpack.c.bf16 %v6975_v47, %v6974_v44  ;;  %vm18600_vm6 = vmmov %vm18593_vm0  ;;  %v16771_v54 = vld [vmem:[#allocation2 + $0x4f] sm:$0xff]  ;;  %v16773_v7 = vld [vmem:[#allocation2 + $0x57] sm:$0xff] }
 0x82a   : > { %v6976_v48 = vld [vmem:[#allocation2 + $0x15] sm:$0xff]  ;;  %v6977_v12 = vld [vmem:[#allocation2 + $0x1d] sm:$0xff]  ;;  %v7464_v13 = vld [vmem:[#allocation2 + $0x7] sm:$0xff]  ;;  %v7763_v33 = vpack.c.bf16 %v16773_v7, %v16771_v54  ;;  %v7493_v42 = vpack.c.bf16 %v16771_v54, %v16758_v24 }
 0x82b   : > { %12364 = vmatpush3.bf16.msra.mxu0 %v12953_v31  ;;  %v12961_v2 = vld [vmem:[%s18251_s9 + $0x70] sm:$0xff]   ;;  %v7000_v22 = vpack.c.bf16 %v6977_v12, %v6976_v48  ;;  %v7489_v51 = vpack.c.bf16 %v16724_v35, %v7464_v13  ;;  %v12960_v62 = vld [vmem:[%s18251_s9 + $0x98] sm:$0xff]   ;;  %v12963_v41 = vld [vmem:[%s18251_s9 + $0x68] sm:$0xff]  }
 0x82c   : > { %12304 = vmatpush3.bf16.msra.mxu1 %v12954_v17  ;;  %12365 = vmatprep.subr.bf16.mxu0 %v13019_v39  ;;  %vm18601_vm9 = vmmov %vm18593_vm0  ;;  %v6978_v29 = vld [vmem:[#allocation2 + $0x25] sm:$0xff]  ;;  %v6979_v26 = vld [vmem:[#allocation2 + $0x2d] sm:$0xff] }
 0x82d   : > { %12305 = vmatprep.subr.bf16.mxu1 %v13019_v39  ;;  %vm18602_vm11 = vmmov %vm18593_vm0  ;;  %v12962_v31 = vld [vmem:[%s18251_s9 + $0x90] sm:$0xff]   ;;  %v12965_v17 = vld [vmem:[%s18251_s9 + $0x60] sm:$0xff]  }
 0x82e   : > { %12254 = vmatmul.mubr.msk.bf16.gmra.mxu0 %vm18589_vm14, %v7046_v59  ;;  %12282 = vmatmul.mubr.msk.bf16.gmra.mxu1 %vm18590_vm12, %v7053_v23  ;;  %v7001_v59 = vpack.c.bf16 %v6979_v26, %v6978_v29  ;;  %v7490_v23 = vpack.c.bf16 %v16736_v56, %v16726_v57  ;;  %v12964_v63 = vld [vmem:[%s18251_s9 + $0x88] sm:$0xff]   ;;  %vm18603_vm13 = vmmov %vm18593_vm0  ;;  %v6980_v16 = vld [vmem:[#allocation2 + $0x35] sm:$0xff] }
 0x82f   : > { %12257 = vmatprep.mubr.msk.bf16.mxu0 %vm13020_vm10, %v13019_v39  ;;  %12285 = vmatprep.mubr.msk.bf16.mxu1 %vm13020_vm10, %v13019_v39  ;;  %vm18604_vm14 = vmmov %vm18593_vm0  ;;  %v6981_v5 = vld [vmem:[#allocation2 + $0x3d] sm:$0xff]  ;;  %v6982_v34 = vld [vmem:[#allocation2 + $0x45] sm:$0xff] }
 0x830   : > { %12366 = vmatpush3.bf16.msra.mxu0 %v12955_v58  ;;  %12306 = vmatpush3.bf16.msra.mxu1 %v12956_v50  ;;  %v16809_v58 = vld [vmem:[#allocation2 + $0x5f] sm:$0xff]  ;;  %v16811_v50 = vld [vmem:[#allocation2 + $0x67] sm:$0xff]  ;;  %v16834_v6 = vld [vmem:[#allocation2 + $0x77] sm:$0xff] }
 0x831   : > { %12307 = vmatprep.subr.bf16.mxu1 %v13019_v39  ;;  %12367 = vmatprep.subr.bf16.mxu0 %v13019_v39  ;;  %v7764_v28 = vpack.c.bf16 %v16811_v50, %v16809_v58  ;;  %vm18605_vm12 = vmmov %vm18593_vm0  ;;  %v6983_v18 = vld [vmem:[#allocation2 + $0x4d] sm:$0xff]  ;;  %v16847_v15 = vld [vmem:[#allocation2 + $0x7f] sm:$0xff]  ;;  %v7494_v44 = vpack.c.bf16 %v16809_v58, %v16773_v7 }
 0x832   : > { %v16849_v21 = vld [vmem:[#allocation2 + $0x87] sm:$0xff]  ;;  %v6984_v60 = vld [vmem:[#allocation2 + $0x55] sm:$0xff] }
 0x833   : > { %v7766_v25 = vpack.c.bf16 %v16849_v21, %v16847_v15  ;;  %v16861_v32 = vld [vmem:[#allocation2 + $0x8f] sm:$0xff]  ;;  %v16863_v1 = vld [vmem:[#allocation2 + $0x97] sm:$0xff]  ;;  %v6990_v48 = vld [vmem:[#allocation2 + $0x85] sm:$0xff] }
 0x834   : > { %12308 = vmatpush3.bf16.msra.mxu1 %v12957_v3  ;;  %12368 = vmatpush3.bf16.msra.mxu0 %v12958_v0  ;;  %v12966_v3 = vld [vmem:[%s18251_s9 + $0x80] sm:$0xff]   ;;  %v7002_v0 = vpack.c.bf16 %v6981_v5, %v6980_v16  ;;  %v6987_v8 = vld [vmem:[#allocation2 + $0x6d] sm:$0xff]  ;;  %v6988_v47 = vld [vmem:[#allocation2 + $0x75] sm:$0xff] }
 0x835   : > { %12421 = vmatprep.subr.bf16.mxu1 %v13019_v39  ;;  %12481 = vmatprep.subr.bf16.mxu0 %v13019_v39  ;;  %v6991_v12 = vld [vmem:[#allocation2 + $0x8d] sm:$0xff]  ;;  %v6994_v29 = vld [vmem:[#allocation2 + $0xa5] sm:$0xff]  ;;  %v12968_v35 = vld [vmem:[%s18251_s9 + $0xd8] sm:$0xff]  }
 0x836   : > { %12258 = vmatmul.mubr.msk.bf16.gmra.mxu0 %vm18591_vm7, %v7047_v45  ;;  %12286 = vmatmul.mubr.msk.bf16.gmra.mxu1 %vm18592_vm8, %v7054_v49  ;;  %v7491_v45 = vpack.c.bf16 %v16742_v4, %v16738_v46  ;;  %v16832_v49 = vld [vmem:[#allocation2 + $0x6f] sm:$0xff]  ;;  %vm18606_vm7 = vmmov %vm18593_vm0  ;;  %v7007_v13 = vpack.c.bf16 %v6991_v12, %v6990_v48  ;;  %v16915_v16 = vld [vmem:[#allocation2 + $0xa7] sm:$0xff] }
 0x837   : > { %12261 = vmatprep.mubr.msk.bf16.mxu0 %vm13020_vm10, %v13019_v39  ;;  %12289 = vmatprep.mubr.msk.bf16.mxu1 %vm13020_vm10, %v13019_v39  ;;  %v7765_v10 = vpack.c.bf16 %v16834_v6, %v16832_v49  ;;  %vm18607_vm8 = vmmov %vm18593_vm0  ;;  %v6995_v26 = vld [vmem:[#allocation2 + $0xad] sm:$0xff]  ;;  %v12973_v56 = vld [vmem:[%s18251_s9 + $0xa0] sm:$0xff]  }
 0x838   : > { %v16917_v5 = vld [vmem:[#allocation2 + $0xaf] sm:$0xff]  ;;  %v8013_v24 = vld [vmem:[#allocation2 + $0x58] sm:$0xff]  ;;  %v8014_v54 = vld [vmem:[#allocation2 + $0x60] sm:$0xff] }
 0x839   : > { %v12971_v57 = vld [vmem:[%s18251_s9 + $0xa8] sm:$0xff]  }
 0x83a   : > { %v8015_v7 = vld [vmem:[#allocation2 + $0x68] sm:$0xff] }
 0x83e   : > { %12262 = vmatmul.mubr.msk.bf16.gmra.mxu0 %vm18593_vm0, %v7048_v61  ;;  %12290 = vmatmul.mubr.msk.bf16.gmra.mxu1 %vm18594_vm15, %v7055_v37  ;;  %v7003_v61 = vpack.c.bf16 %v6983_v18, %v6982_v34  ;;  %v7492_v37 = vpack.c.bf16 %v16754_v11, %v16746_v52  ;;  %vm18608_vm15 = vmmov %vm18593_vm0  ;;  %v16927_v34 = vld [vmem:[#allocation2 + $0xb7] sm:$0xff]  ;;  %v16929_v18 = vld [vmem:[#allocation2 + $0xbf] sm:$0xff] }
 0x83f   : > { %12265 = vmatprep.mubr.msk.bf16.mxu0 %vm13020_vm10, %v13019_v39  ;;  %12293 = vmatprep.mubr.msk.bf16.mxu1 %vm13020_vm10, %v13019_v39  ;;  %v8010_v52 = vld [vmem:[#allocation2 + $0x40] sm:$0xff]  ;;  %v8012_v11 = vld [vmem:[#allocation2 + $0x50] sm:$0xff] }
 0x846   : > { %12266 = vmatmul.mubr.msk.bf16.gmra.mxu0 %vm18595_vm1, %v7049_v14  ;;  %12294 = vmatmul.mubr.msk.bf16.gmra.mxu1 %vm18596_vm2, %v7056_v53  ;;  %v6985_v14 = vld [vmem:[#allocation2 + $0x5d] sm:$0xff]  ;;  %vm18609_vm1 = vmmov %vm18593_vm0 }
 0x847   : > { %12269 = vmatprep.mubr.msk.bf16.mxu0 %vm13020_vm10, %v13019_v39  ;;  %12297 = vmatprep.mubr.msk.bf16.mxu1 %vm13020_vm10, %v13019_v39  ;;  %v7004_v53 = vpack.c.bf16 %v6985_v14, %v6984_v60  ;;  %vm18610_vm2 = vmmov %vm18593_vm0  ;;  %v16939_v60 = vld [vmem:[#allocation2 + $0xc7] sm:$0xff] }
 0x848   : > { %v7501_v14 = vpack.c.bf16 %v16939_v60, %v16939_v60 }
 0x84e   : > { %12270 = vmatmul.mubr.msk.bf16.gmra.mxu0 %vm18597_vm3, %v7050_v36  ;;  %12298 = vmatmul.mubr.msk.bf16.gmra.mxu1 %vm18598_vm4, %v7057_v43  ;;  %v7767_v36 = vpack.c.bf16 %v16863_v1, %v16861_v32  ;;  %v6986_v43 = vld [vmem:[#allocation2 + $0x65] sm:$0xff]  ;;  %vm18611_vm3 = vmmov %vm18593_vm0 }
 0x84f   : > { %12273 = vmatprep.mubr.msk.bf16.mxu0 %vm13020_vm10, %v13019_v39  ;;  %12309 = vmatprep.mubr.msk.bf16.mxu1 %vm13020_vm10, %v13019_v39  ;;  %v7005_v19 = vpack.c.bf16 %v6987_v8, %v6986_v43  ;;  %vm18612_vm4 = vmmov %vm18593_vm0  ;;  %v8005_v43 = vld [vmem:[#allocation2 + $0x18] sm:$0xff]  ;;  %v12969_v8 = vld [vmem:[%s18251_s9 + $0xb0] sm:$0xff]  }
 0x856   : > { %12274 = vmatmul.mubr.msk.bf16.gmra.mxu0 %vm18599_vm5, %v7051_v27  ;;  %12310 = vmatmul.mubr.msk.bf16.vlgmr.msra.gmra.mxu1 %vm18600_vm6, %v6999_v40  ;;  %v6989_v27 = vld [vmem:[#allocation2 + $0x7d] sm:$0xff]  ;;  %vm18613_vm5 = vmmov %vm18593_vm0 }
 0x857   : > { %12313 = vmatprep.mubr.msk.bf16.mxu1 %vm13020_vm10, %v13019_v39  ;;  %12369 = vmatprep.mubr.msk.bf16.mxu0 %vm13020_vm10, %v13019_v39  ;;  %v7006_v40 = vpack.c.bf16 %v6989_v27, %v6988_v47  ;;  %vm18614_vm6 = vmmov %vm18593_vm0  ;;  %v12970_v47 = vld [vmem:[%s18251_s9 + $0xd0] sm:$0xff]  }
 0x858   : > { %12422 = vmatpush3.bf16.msra.mxu1 %v12959_v30  ;;  %v7495_v30 = vpack.c.bf16 %v16832_v49, %v16811_v50  ;;  %v8008_v27 = vld [vmem:[#allocation2 + $0x30] sm:$0xff] }
 0x859   : > { %12423 = vmatprep.subr.bf16.mxu1 %v13019_v39 }
 0x85c   : > { %12424 = vmatpush3.bf16.msra.mxu1 %v12961_v2  ;;  %v7496_v2 = vpack.c.bf16 %v16847_v15, %v16834_v6 }
 0x85d   : > { %12425 = vmatprep.subr.bf16.mxu1 %v13019_v39 }
 0x85e   : > { %12314 = vmatmul.mubr.msk.bf16.gmra.mxu1 %vm18601_vm9, %v7000_v22  ;;  %12370 = vmatmul.mubr.msk.bf16.vlgmr.msra.gmra.mxu0 %vm18602_vm11, %v7489_v51  ;;  %vm18615_vm9 = vmmov %vm18593_vm0  ;;  %v6992_v22 = vld [vmem:[#allocation2 + $0x95] sm:$0xff]  ;;  %v6993_v51 = vld [vmem:[#allocation2 + $0x9d] sm:$0xff] }
 0x85f   : > { %12482 = vmatpush3.bf16.msra.mxu0 %v12960_v62  ;;  %12317 = vmatprep.mubr.msk.bf16.mxu1 %vm13020_vm10, %v13019_v39  ;;  %v7008_v62 = vpack.c.bf16 %v6993_v51, %v6992_v22  ;;  %vm18616_vm11 = vmmov %vm18593_vm0 }
 0x860   : > { %12373 = vmatprep.mubr.msk.bf16.mxu0 %vm13020_vm10, %v13019_v39  ;;  %12483 = vmatprep.subr.bf16.mxu0 %v13019_v39 }
 0x861   : > { %12426 = vmatpush3.bf16.msra.mxu1 %v12963_v41  ;;  %v7497_v41 = vpack.c.bf16 %v16861_v32, %v16849_v21 }
 0x862   : > { %12427 = vmatprep.subr.bf16.mxu1 %v13019_v39 }
 0x863   : > { %12484 = vmatpush3.bf16.msra.mxu0 %v12962_v31  ;;  %v16905_v31 = vld [vmem:[#allocation2 + $0x9f] sm:$0xff] }
 0x864   : > { %12485 = vmatprep.subr.bf16.mxu0 %v13019_v39  ;;  %v7768_v32 = vpack.c.bf16 %v16915_v16, %v16905_v31 }
 0x865   : > { %12428 = vmatpush3.bf16.msra.mxu1 %v12965_v17  ;;  %v7009_v17 = vpack.c.bf16 %v6995_v26, %v6994_v29  ;;  %v8016_v29 = vld [vmem:[#allocation2 + $0x70] sm:$0xff]  ;;  %v8017_v26 = vld [vmem:[#allocation2 + $0x78] sm:$0xff] }
 0x866   : > { %12318 = vmatmul.mubr.msk.bf16.gmra.mxu1 %vm18603_vm13, %v7001_v59  ;;  %12374 = vmatmul.mubr.msk.bf16.gmra.mxu0 %vm18604_vm14, %v7490_v23  ;;  %vm18617_vm13 = vmmov %vm18593_vm0  ;;  %v7498_v59 = vpack.c.bf16 %v16905_v31, %v16863_v1  ;;  %v6996_v23 = vld [vmem:[#allocation2 + $0xb5] sm:$0xff] }
 0x867   : > { %12321 = vmatprep.mubr.msk.bf16.mxu1 %vm13020_vm10, %v13019_v39  ;;  %12377 = vmatprep.mubr.msk.bf16.mxu0 %vm13020_vm10, %v13019_v39  ;;  %vm18618_vm14 = vmmov %vm18593_vm0 }
 0x868   : > { %12486 = vmatpush3.bf16.msra.mxu0 %v12964_v63  ;;  %12541 = vmatprep.subr.bf16.mxu1 %v13019_v39  ;;  %v6997_v63 = vld [vmem:[#allocation2 + $0xbd] sm:$0xff] }
 0x869   : > { %12487 = vmatprep.subr.bf16.mxu0 %v13019_v39 }
 0x86c   : > { %12488 = vmatpush3.bf16.msra.mxu0 %v12966_v3  ;;  %v7010_v3 = vpack.c.bf16 %v6997_v63, %v6996_v23 }
 0x86d   : > { %12601 = vmatprep.subr.bf16.mxu0 %v13019_v39 }
 0x86e   : > { %12322 = vmatmul.mubr.msk.bf16.gmra.mxu1 %vm18605_vm12, %v7002_v0  ;;  %12378 = vmatmul.mubr.msk.bf16.gmra.mxu0 %vm18606_vm7, %v7491_v45  ;;  %vm18619_vm12 = vmmov %vm18593_vm0  ;;  %v7499_v0 = vpack.c.bf16 %v16917_v5, %v16915_v16  ;;  %v6998_v45 = vld [vmem:[#allocation2 + $0xc5] sm:$0xff] }
 0x86f   : > { %12325 = vmatprep.mubr.msk.bf16.mxu1 %vm13020_vm10, %v13019_v39  ;;  %12381 = vmatprep.mubr.msk.bf16.mxu0 %vm13020_vm10, %v13019_v39  ;;  %vm18620_vm7 = vmmov %vm18593_vm0 }
 0x876   : > { %12326 = vmatmul.mubr.msk.bf16.gmra.mxu1 %vm18607_vm8, %v7003_v61  ;;  %12382 = vmatmul.mubr.msk.bf16.gmra.mxu0 %vm18593_vm0, %v7492_v37  ;;  %vm18621_vm8 = vmmov %vm18593_vm0  ;;  %v7011_v61 = vpack.c.bf16 %v6998_v45, %v6998_v45  ;;  %v7500_v37 = vpack.c.bf16 %v16929_v18, %v16927_v34  ;;  %v8018_v45 = vld [vmem:[#allocation2 + $0x80] sm:$0xff] }
 0x877   : > { %12329 = vmatprep.mubr.msk.bf16.mxu1 %vm13020_vm10, %v13019_v39  ;;  %12385 = vmatprep.mubr.msk.bf16.mxu0 %vm13020_vm10, %v13019_v39 }
 0x87e   : > { %12330 = vmatmul.mubr.msk.bf16.gmra.mxu1 %vm18608_vm15, %v7004_v53  ;;  %12386 = vmatmul.mubr.msk.bf16.gmra.mxu0 %vm18609_vm1, %v7493_v42  ;;  %vm18622_vm15 = vmmov %vm18593_vm0  ;;  %v12967_v53 = vld [vmem:[%s18251_s9 + $0xb8] sm:$0xff]   ;;  %v8004_v42 = vld [vmem:[#allocation2 + $0x10] sm:$0xff] }
 0x87f   : > { %12333 = vmatprep.mubr.msk.bf16.mxu1 %vm13020_vm10, %v13019_v39  ;;  %12389 = vmatprep.mubr.msk.bf16.mxu0 %vm13020_vm10, %v13019_v39  ;;  %vm18623_vm1 = vmmov %vm18593_vm0 }
 0x886   : > { %12334 = vmatmul.mubr.msk.bf16.gmra.mxu1 %vm18610_vm2, %v7005_v19  ;;  %12390 = vmatmul.mubr.msk.bf16.gmra.mxu0 %vm18611_vm3, %v7494_v44  ;;  %vm18624_vm2 = vmmov %vm18593_vm0  ;;  %v8029_v19 = vpack.c.bf16 %v8005_v43, %v8004_v42  ;;  %v8007_v44 = vld [vmem:[#allocation2 + $0x28] sm:$0xff] }
 0x887   : > { %12337 = vmatprep.mubr.msk.bf16.mxu1 %vm13020_vm10, %v13019_v39  ;;  %12393 = vmatprep.mubr.msk.bf16.mxu0 %vm13020_vm10, %v13019_v39  ;;  %vm18625_vm3 = vmmov %vm18593_vm0 }
 0x88e   : > { %12338 = vmatmul.mubr.msk.bf16.gmra.mxu1 %vm18612_vm4, %v7006_v40  ;;  %12394 = vmatmul.mubr.msk.bf16.gmra.mxu0 %vm18613_vm5, %v7495_v30  ;;  %vm18626_vm4 = vmmov %vm18593_vm0  ;;  %v8009_v40 = vld [vmem:[#allocation2 + $0x38] sm:$0xff]  ;;  %v12974_v30 = vld [vmem:[%s18251_s9 + $0xc0] sm:$0xff]  }
 0x88f   : > { %12341 = vmatprep.mubr.msk.bf16.mxu1 %vm13020_vm10, %v13019_v39  ;;  %12397 = vmatprep.mubr.msk.bf16.mxu0 %vm13020_vm10, %v13019_v39  ;;  %vm18627_vm5 = vmmov %vm18593_vm0  ;;  %v8031_v4 = vpack.c.bf16 %v8009_v40, %v8008_v27  ;;  %v8022_v27 = vld [vmem:[#allocation2 + $0xa0] sm:$0xff]  ;;  %v8023_v40 = vld [vmem:[#allocation2 + $0xa8] sm:$0xff] }
 0x896   : > { %12342 = vmatmul.mubr.msk.bf16.gmra.mxu1 %vm18614_vm6, %v7007_v13  ;;  %12398 = vmatmul.mubr.msk.bf16.gmra.mxu0 %vm18615_vm9, %v7496_v2  ;;  %vm18628_vm6 = vmmov %vm18593_vm0 }
 0x897   : > { %12345 = vmatprep.mubr.msk.bf16.mxu1 %vm13020_vm10, %v13019_v39  ;;  %12401 = vmatprep.mubr.msk.bf16.mxu0 %vm13020_vm10, %v13019_v39  ;;  %vm18629_vm9 = vmmov %vm18593_vm0 }
 0x89e   : > { %12346 = vmatmul.mubr.msk.bf16.gmra.mxu1 %vm18616_vm11, %v7008_v62  ;;  %12402 = vmatmul.mubr.msk.bf16.gmra.mxu0 %vm18617_vm13, %v7497_v41  ;;  %vm18630_vm11 = vmmov %vm18593_vm0  ;;  %v8034_v62 = vpack.c.bf16 %v8015_v7, %v8014_v54  ;;  %v8024_v54 = vld [vmem:[#allocation2 + $0xb0] sm:$0xff]  ;;  %v8025_v7 = vld [vmem:[#allocation2 + $0xb8] sm:$0xff] }
 0x89f   : > { %12349 = vmatprep.mubr.msk.bf16.mxu1 %vm13020_vm10, %v13019_v39  ;;  %12405 = vmatprep.mubr.msk.bf16.mxu0 %vm13020_vm10, %v13019_v39  ;;  %vm18631_vm13 = vmmov %vm18593_vm0 }
 0x8a6   : > { %12350 = vmatmul.mubr.msk.bf16.gmra.mxu1 %vm18618_vm14, %v7009_v17  ;;  %12406 = vmatmul.mubr.msk.bf16.gmra.mxu0 %vm18619_vm12, %v7498_v59  ;;  %vm18632_vm14 = vmmov %vm18593_vm0 }
 0x8a7   : > { %12353 = vmatprep.mubr.msk.bf16.mxu1 %vm13020_vm10, %v13019_v39  ;;  %12409 = vmatprep.mubr.msk.bf16.mxu0 %vm13020_vm10, %v13019_v39  ;;  %vm18633_vm12 = vmmov %vm18593_vm0 }
 0x8ae   : > { %12354 = vmatmul.mubr.msk.bf16.gmra.mxu1 %vm18620_vm7, %v7010_v3  ;;  %12410 = vmatmul.mubr.msk.bf16.gmra.mxu0 %vm18621_vm8, %v7499_v0  ;;  %vm18634_vm7 = vmmov %vm18593_vm0  ;;  %v8035_v3 = vpack.c.bf16 %v8017_v26, %v8016_v29 }
 0x8af   : > { %12357 = vmatprep.mubr.msk.bf16.mxu1 %vm13020_vm10, %v13019_v39  ;;  %12413 = vmatprep.mubr.msk.bf16.mxu0 %vm13020_vm10, %v13019_v39  ;;  %vm18635_vm8 = vmmov %vm18593_vm0 }
 0x8b6   : > { %12358 = vmatmul.mubr.msk.bf16.gmra.mxu1 %vm18593_vm0, %v7011_v61  ;;  %12414 = vmatmul.mubr.msk.bf16.gmra.mxu0 %vm18622_vm15, %v7500_v37  ;;  %vm18636_vm15 = vmmov %vm18593_vm0  ;;  %v8019_v61 = vld [vmem:[#allocation2 + $0x88] sm:$0xff] }
 0x8b7   : > { %12417 = vmatprep.mubr.msk.bf16.mxu0 %vm13020_vm10, %v13019_v39  ;;  %12429 = vmatprep.mubr.msk.bf16.mxu1 %vm13020_vm10, %v13019_v39  ;;  %v8036_v43 = vpack.c.bf16 %v8019_v61, %v8018_v45 }
 0x8be   : > { %12418 = vmatmul.mubr.msk.bf16.gmra.mxu0 %vm18623_vm1, %v7501_v14  ;;  %12430 = vmatmul.mubr.msk.bf16.vlgmr.msra.gmra.mxu1 %vm18624_vm2, %v7759_v9  ;;  %v8006_v9 = vld [vmem:[#allocation2 + $0x20] sm:$0xff]  ;;  %vm18637_vm1 = vmmov %vm18593_vm0 }
 0x8bf   : > { %12433 = vmatprep.mubr.msk.bf16.mxu1 %vm13020_vm10, %v13019_v39  ;;  %12489 = vmatprep.mubr.msk.bf16.mxu0 %vm13020_vm10, %v13019_v39  ;;  %v8030_v46 = vpack.c.bf16 %v8007_v44, %v8006_v9  ;;  %vm18638_vm2 = vmmov %vm18593_vm0 }
 0x8c0   : > { %12542 = vmatpush3.bf16.msra.mxu1 %v12967_v53 }
 0x8c1   : > { %12543 = vmatprep.subr.bf16.mxu1 %v13019_v39 }
 0x8c4   : > { %12544 = vmatpush3.bf16.msra.mxu1 %v12969_v8 }
 0x8c5   : > { %12545 = vmatprep.subr.bf16.mxu1 %v13019_v39 }
 0x8c6   : > { %12434 = vmatmul.mubr.msk.bf16.gmra.mxu1 %vm18625_vm3, %v7760_v38  ;;  %12490 = vmatmul.mubr.msk.bf16.vlgmr.msra.gmra.mxu0 %vm18626_vm4, %v8029_v19  ;;  %v12972_v38 = vld [vmem:[%s18251_s9 + $0xc8] sm:$0xff]   ;;  %vm18639_vm3 = vmmov %vm18593_vm0  ;;  %v8020_v19 = vld [vmem:[#allocation2 + $0x90] sm:$0xff] }
 0x8c7   : > { %12602 = vmatpush3.bf16.msra.mxu0 %v12968_v35  ;;  %12437 = vmatprep.mubr.msk.bf16.mxu1 %vm13020_vm10, %v13019_v39  ;;  %v8021_v35 = vld [vmem:[#allocation2 + $0x98] sm:$0xff]  ;;  %vm18640_vm4 = vmmov %vm18593_vm0 }
 0x8c8   : > { %12493 = vmatprep.mubr.msk.bf16.mxu0 %vm13020_vm10, %v13019_v39  ;;  %12603 = vmatprep.subr.bf16.mxu0 %v13019_v39  ;;  %v8037_v1 = vpack.c.bf16 %v8021_v35, %v8020_v19 }
 0x8c9   : > { %12546 = vmatpush3.bf16.msra.mxu1 %v12971_v57 }
 0x8ca   : > { %12547 = vmatprep.subr.bf16.mxu1 %v13019_v39 }
 0x8cb   : > { %12604 = vmatpush3.bf16.msra.mxu0 %v12970_v47 }
 0x8cc   : > { %12605 = vmatprep.subr.bf16.mxu0 %v13019_v39 }
 0x8cd   : > { %12548 = vmatpush3.bf16.msra.mxu1 %v12973_v56 }
 0x8ce   : > { %12438 = vmatmul.mubr.msk.bf16.gmra.mxu1 %vm18627_vm5, %v7761_v20  ;;  %12494 = vmatmul.mubr.msk.bf16.gmra.mxu0 %vm18628_vm6, %v8030_v46  ;;  %v8011_v20 = vld [vmem:[#allocation2 + $0x48] sm:$0xff]  ;;  %vm18641_vm5 = vmmov %vm18593_vm0 }
 0x8cf   : > { %12441 = vmatprep.mubr.msk.bf16.mxu1 %vm13020_vm10, %v13019_v39  ;;  %12497 = vmatprep.mubr.msk.bf16.mxu0 %vm13020_vm10, %v13019_v39  ;;  %v8032_v48 = vpack.c.bf16 %v8011_v20, %v8010_v52  ;;  %v7769_v52 = vpack.c.bf16 %v16927_v34, %v16917_v5  ;;  %v8038_v20 = vpack.c.bf16 %v8023_v40, %v8022_v27  ;;  %vm18642_vm6 = vmmov %vm18593_vm0 }
 0x8d0   : > { %12606 = vmatpush3.bf16.msra.mxu0 %v12972_v38  ;;  %12661 = vmatprep.subr.bf16.mxu1 %v13019_v39 }
 0x8d1   : > { %12607 = vmatprep.subr.bf16.mxu0 %v13019_v39 }
 0x8d4   : > { %12608 = vmatpush3.bf16.msra.mxu0 %v12974_v30 }
 0x8d5   : > { %12721 = vmatprep.subr.bf16.mxu0 %v13019_v39 }
 0x8d6   : > { %12442 = vmatmul.mubr.msk.bf16.gmra.mxu1 %vm18629_vm9, %v7762_v55  ;;  %12498 = vmatmul.mubr.msk.bf16.gmra.mxu0 %vm18630_vm11, %v8031_v4  ;;  %v8033_v55 = vpack.c.bf16 %v8013_v24, %v8012_v11  ;;  %vm18643_vm9 = vmmov %vm18593_vm0 }
 0x8d7   : > { %12445 = vmatprep.mubr.msk.bf16.mxu1 %vm13020_vm10, %v13019_v39  ;;  %12501 = vmatprep.mubr.msk.bf16.mxu0 %vm13020_vm10, %v13019_v39  ;;  %vm18644_vm11 = vmmov %vm18593_vm0 }
 0x8de   : > { %12446 = vmatmul.mubr.msk.bf16.gmra.mxu1 %vm18631_vm13, %v7763_v33  ;;  %12502 = vmatmul.mubr.msk.bf16.gmra.mxu0 %vm18632_vm14, %v8032_v48  ;;  %vm18645_vm13 = vmmov %vm18593_vm0 }
 0x8df   : > { %12449 = vmatprep.mubr.msk.bf16.mxu1 %vm13020_vm10, %v13019_v39  ;;  %12505 = vmatprep.mubr.msk.bf16.mxu0 %vm13020_vm10, %v13019_v39  ;;  %vm18646_vm14 = vmmov %vm18593_vm0 }
 0x8e6   : > { %v17020_v12 = vpop.f32.mrf.mxu0  ;;  %v17022_v13 = vpop.f32.mrf.mxu1  ;;  %12450 = vmatmul.mubr.msk.bf16.gmra.mxu1 %vm18633_vm12, %v7764_v28  ;;  %12506 = vmatmul.mubr.msk.bf16.gmra.mxu0 %vm18634_vm7, %v8033_v55  ;;  %vm18647_vm12 = vmmov %vm18593_vm0 }
 0x8e7   : > { %12453 = vmatprep.mubr.msk.bf16.mxu1 %vm13020_vm10, %v13019_v39  ;;  %12509 = vmatprep.mubr.msk.bf16.mxu0 %vm13020_vm10, %v13019_v39  ;;  %vm18648_vm7 = vmmov %vm18593_vm0 }
 0x8e8   : > { %v12251_v33 = vpop.f32.mrf.mxu0  ;;  %v12279_v2 = vpop.f32.mrf.mxu1 }
 0x8ea   : > { %v17033_v22 = vpop.f32.mrf.mxu0  ;;  %v17035_v51 = vpop.f32.mrf.mxu1 }
 0x8ec   : > { %v12252_v58 = vpop.f32.mrf.mxu0  ;;  %v12280_v50 = vpop.f32.mrf.mxu1 }
 0x8ed   : > { %v8039_v58 = vpack.c.bf16 %v8025_v7, %v8024_v54 }
 0x8ee   : > { %v17037_v28 = vpop.f32.mrf.mxu0  ;;  %v17039_v41 = vpop.f32.mrf.mxu1  ;;  %12454 = vmatmul.mubr.msk.bf16.gmra.mxu1 %vm18635_vm8, %v7765_v10  ;;  %12510 = vmatmul.mubr.msk.bf16.gmra.mxu0 %vm18593_vm0, %v8034_v62  ;;  %v7770_v62 = vpack.c.bf16 %v16939_v60, %v16929_v18  ;;  %v8026_v18 = vld [vmem:[#allocation2 + $0xc0] sm:$0xff]  ;;  %v8027_v60 = vld [vmem:[#allocation2 + $0xc8] sm:$0xff]  ;;  %vm18649_vm8 = vmmov %vm18593_vm0 }
 0x8ef   : > { %12457 = vmatprep.mubr.msk.bf16.mxu1 %vm13020_vm10, %v13019_v39  ;;  %12513 = vmatprep.mubr.msk.bf16.mxu0 %vm13020_vm10, %v13019_v39 }
 0x8f0   : > { %v12255_v17 = vpop.f32.mrf.mxu0  ;;  %v12283_v59 = vpop.f32.mrf.mxu1 }
 0x8f2   : > { %v17050_v23 = vpop.f32.mrf.mxu0  ;;  %v17052_v63 = vpop.f32.mrf.mxu1 }
 0x8f4   : > { %v12256_v49 = vpop.f32.mrf.mxu0  ;;  %v12284_v6 = vpop.f32.mrf.mxu1 }
 0x8f6   : > { %v17054_v10 = vpop.f32.mrf.mxu0  ;;  %v17056_v0 = vpop.f32.mrf.mxu1  ;;  %12458 = vmatmul.mubr.msk.bf16.gmra.mxu1 %vm18636_vm15, %v7766_v25  ;;  %12514 = vmatmul.mubr.msk.bf16.gmra.mxu0 %vm18637_vm1, %v8035_v3  ;;  %v7758_v3 = vld [vmem:[#allocation2 + $0xcf] sm:$0xff]  ;;  %vm18650_vm15 = vmmov %vm18593_vm0 }
 0x8f7   : > { %12461 = vmatprep.mubr.msk.bf16.mxu1 %vm13020_vm10, %v13019_v39  ;;  %12517 = vmatprep.mubr.msk.bf16.mxu0 %vm13020_vm10, %v13019_v39  ;;  %vm18651_vm1 = vmmov %vm18593_vm0 }
 0x8f8   : > { %v12259_v37 = vpop.f32.mrf.mxu0  ;;  %v12287_v14 = vpop.f32.mrf.mxu1 }
 0x8f9   : > { %v7771_v37 = vpack.c.bf16 %v7758_v3, %v7758_v3  ;;  %v8040_v14 = vpack.c.bf16 %v8027_v60, %v8026_v18  ;;  %v12976_v18 = vld [vmem:[%s18251_s9 + $0x118] sm:$0xff]  }
 0x8fa   : > { %v17067_v53 = vpop.f32.mrf.mxu0  ;;  %v17069_v42 = vpop.f32.mrf.mxu1 }
 0x8fc   : > { %v12260_v15 = vpop.f32.mrf.mxu0  ;;  %v12288_v21 = vpop.f32.mrf.mxu1 }
 0x8fe   : > { %v17071_v25 = vpop.f32.mrf.mxu0  ;;  %v17073_v8 = vpop.f32.mrf.mxu1  ;;  %12462 = vmatmul.mubr.msk.bf16.gmra.mxu1 %vm18638_vm2, %v7767_v36  ;;  %12518 = vmatmul.mubr.msk.bf16.gmra.mxu0 %vm18639_vm3, %v8036_v43  ;;  %vm18652_vm2 = vmmov %vm18593_vm0 }
 0x8ff   : > { %12465 = vmatprep.mubr.msk.bf16.mxu1 %vm13020_vm10, %v13019_v39  ;;  %12521 = vmatprep.mubr.msk.bf16.mxu0 %vm13020_vm10, %v13019_v39  ;;  %vm18653_vm3 = vmmov %vm18593_vm0 }
 0x900   : > { %v12263_v57 = vpop.f32.mrf.mxu0  ;;  %v12291_v9 = vpop.f32.mrf.mxu1 }
 0x901   : > { %v8028_v9 = vld [vmem:[#allocation2 + $0xd0] sm:$0xff] }
 0x902   : > { %v17084_v44 = vpop.f32.mrf.mxu0  ;;  %v17086_v47 = vpop.f32.mrf.mxu1  ;;  %v8041_v40 = vpack.c.bf16 %v8028_v9, %v8028_v9 }
 0x904   : > { %v12264_v36 = vpop.f32.mrf.mxu0  ;;  %v12292_v56 = vpop.f32.mrf.mxu1 }
 0x906   : > { %v17090_v46 = vpop.f32.mrf.mxu0  ;;  %v17092_v38 = vpop.f32.mrf.mxu1  ;;  %12466 = vmatmul.mubr.msk.bf16.gmra.mxu1 %vm18640_vm4, %v7768_v32  ;;  %12522 = vmatmul.mubr.msk.bf16.gmra.mxu0 %vm18641_vm5, %v8037_v1  ;;  %v8275_v32 = vld [vmem:[#allocation2 + $0x19] sm:$0xff]  ;;  %vm18654_vm4 = vmmov %vm18593_vm0 }
 0x907   : > { %12469 = vmatprep.mubr.msk.bf16.mxu1 %vm13020_vm10, %v13019_v39  ;;  %12525 = vmatprep.mubr.msk.bf16.mxu0 %vm13020_vm10, %v13019_v39  ;;  %vm18655_vm5 = vmmov %vm18593_vm0 }
 0x908   : > { %v12267_v31 = vpop.f32.mrf.mxu0  ;;  %v12295_v16 = vpop.f32.mrf.mxu1 }
 0x90a   : > { %v17100_v30 = vpop.f32.mrf.mxu0  ;;  %v17102_v4 = vpop.f32.mrf.mxu1 }
 0x90c   : > { %v12268_v48 = vpop.f32.mrf.mxu0  ;;  %v12296_v11 = vpop.f32.mrf.mxu1 }
 0x90d   : > { %v12975_v48 = vld [vmem:[%s18251_s9 + $0xf8] sm:$0xff]  }
 0x90e   : > { %v17106_v24 = vpop.f32.mrf.mxu0  ;;  %v17108_v55 = vpop.f32.mrf.mxu1  ;;  %12470 = vmatmul.mubr.msk.bf16.gmra.mxu1 %vm18642_vm6, %v7769_v52  ;;  %12526 = vmatmul.mubr.msk.bf16.gmra.mxu0 %vm18643_vm9, %v8038_v20  ;;  %vm18656_vm6 = vmmov %vm18593_vm0 }
 0x90f   : > { %12473 = vmatprep.mubr.msk.bf16.mxu1 %vm13020_vm10, %v13019_v39  ;;  %12529 = vmatprep.mubr.msk.bf16.mxu0 %vm13020_vm10, %v13019_v39  ;;  %vm18657_vm9 = vmmov %vm18593_vm0 }
 0x910   : > { %v12271_v5 = vpop.f32.mrf.mxu0  ;;  %v12299_v34 = vpop.f32.mrf.mxu1 }
 0x911   : > { %v8277_v34 = vld [vmem:[#allocation2 + $0x29] sm:$0xff] }
 0x912   : > { %v17116_v33 = vpop.f32.mrf.mxu0  ;;  %v7262_v2 = vpop.f32.mrf.mxu1 }
 0x914   : > { %v12272_v50 = vpop.f32.mrf.mxu0  ;;  %v12300_v29 = vpop.f32.mrf.mxu1 }
 0x916   : > { %v17120_v26 = vpop.f32.mrf.mxu0  ;;  %v7362_v17 = vpop.f32.mrf.mxu1  ;;  %12474 = vmatmul.mubr.msk.bf16.gmra.mxu1 %vm18644_vm11, %v7770_v62  ;;  %12530 = vmatmul.mubr.msk.bf16.gmra.mxu0 %vm18645_vm13, %v8039_v58  ;;  %v12977_v58 = vld [vmem:[%s18251_s9 + $0xf0] sm:$0xff]   ;;  %vm18658_vm11 = vmmov %vm18593_vm0 }
 0x917   : > { %v7363_v59 = vadd.f32 %v7362_v17, %v17020_v12  ;;  %12477 = vmatprep.mubr.msk.bf16.mxu1 %vm13020_vm10, %v13019_v39  ;;  %12533 = vmatprep.mubr.msk.bf16.mxu0 %vm13020_vm10, %v13019_v39  ;;  %vm18659_vm13 = vmmov %vm18593_vm0 }
 0x918   : > { %v12275_v49 = vpop.f32.mrf.mxu0  ;;  %v12311_v6 = vpop.f32.mrf.mxu1 }
 0x919   : > { %v12979_v6 = vld [vmem:[%s18251_s9 + $0xe8] sm:$0xff]  }
 0x91a   : > { %v17129_v45 = vpop.f32.mrf.mxu0  ;;  %v7365_v61 = vpop.f32.mrf.mxu1 }
 0x91b   : > { %v7366_v43 = vadd.f32 %v7365_v61, %v17033_v22  ;;  %v8274_v22 = vld [vmem:[#allocation2 + $0x11] sm:$0xff] }
 0x91c   : > { %v12276_v15 = vpop.f32.mrf.mxu0  ;;  %v12312_v12 = vpop.f32.mrf.mxu1  ;;  %v8299_v31 = vpack.c.bf16 %v8275_v32, %v8274_v22 }
 0x91d   : > { %v8279_v15 = vld [vmem:[#allocation2 + $0x39] sm:$0xff]  ;;  %v12978_v12 = vld [vmem:[%s18251_s9 + $0x110] sm:$0xff]  }
 0x91e   : > { %v7370_v21 = vpop.f32.mrf.mxu1  ;;  %v7607_v19 = vpop.f32.mrf.mxu0  ;;  %12478 = vmatmul.mubr.msk.bf16.gmra.mxu1 %vm18646_vm14, %v7771_v37  ;;  %12534 = vmatmul.mubr.msk.bf16.gmra.mxu0 %vm18647_vm12, %v8040_v14  ;;  %vm18660_vm14 = vmmov %vm18593_vm0 }
 0x91f   : > { %v7371_v35 = vadd.f32 %v7370_v21, %v17037_v28  ;;  %v17135_v57 = vadd.f32 %v7607_v19, %v7363_v59  ;;  %12537 = vmatprep.mubr.msk.bf16.mxu0 %vm13020_vm10, %v13019_v39  ;;  %12549 = vmatprep.mubr.msk.bf16.mxu1 %vm13020_vm10, %v13019_v39  ;;  %vm18661_vm12 = vmmov %vm18593_vm0 }
 0x920   : > { %v12315_v1 = vpop.f32.mrf.mxu1  ;;  %v12371_v36 = vpop.f32.mrf.mxu0 }
 0x922   : > { %v7373_v56 = vpop.f32.mrf.mxu1  ;;  %v7610_v27 = vpop.f32.mrf.mxu0 }
 0x923   : > { %v7374_v16 = vadd.f32 %v7373_v56, %v17050_v23  ;;  %v17142_v28 = vadd.f32 %v7610_v27, %v7366_v43  ;;  %v8276_v23 = vld [vmem:[#allocation2 + $0x21] sm:$0xff]  ;;  %v8278_v43 = vld [vmem:[#allocation2 + $0x31] sm:$0xff] }
 0x924   : > { %v12316_v52 = vpop.f32.mrf.mxu1  ;;  %v12372_v20 = vpop.f32.mrf.mxu0  ;;  %v8300_v29 = vpack.c.bf16 %v8277_v34, %v8276_v23  ;;  %v8569_v17 = vpack.c.bf16 %v8276_v23, %v8275_v32  ;;  %v8301_v22 = vpack.c.bf16 %v8279_v15, %v8278_v43  ;;  %v8570_v32 = vpack.c.bf16 %v8278_v43, %v8277_v34 }
 0x925   : > { %v8280_v20 = vld [vmem:[#allocation2 + $0x41] sm:$0xff] }
 0x926   : > { %v7378_v11 = vpop.f32.mrf.mxu1  ;;  %v7615_v54 = vpop.f32.mrf.mxu0  ;;  %12538 = vmatmul.mubr.msk.bf16.gmra.mxu0 %vm18648_vm7, %v8041_v40  ;;  %12550 = vmatmul.mubr.msk.bf16.vlgmr.msra.gmra.mxu1 %vm18649_vm8, %v8299_v31  ;;  %v12980_v40 = vld [vmem:[%s18251_s9 + $0x108] sm:$0xff]   ;;  %vm18662_vm7 = vmmov %vm18593_vm0 }
 0x927   : > { %v7379_v7 = vadd.f32 %v7378_v11, %v17054_v10  ;;  %v17150_v5 = vadd.f32 %v7615_v54, %v7371_v35  ;;  %12553 = vmatprep.mubr.msk.bf16.mxu1 %vm13020_vm10, %v13019_v39  ;;  %12609 = vmatprep.mubr.msk.bf16.mxu0 %vm13020_vm10, %v13019_v39  ;;  %vm18663_vm8 = vmmov %vm18593_vm0 }
 0x928   : > { %v12319_v2 = vpop.f32.mrf.mxu1  ;;  %v12375_v62 = vpop.f32.mrf.mxu0  ;;  %12662 = vmatpush3.bf16.msra.mxu1 %v12975_v48  ;;  %v8281_v48 = vld [vmem:[#allocation2 + $0x49] sm:$0xff] }
 0x929   : > { %12663 = vmatprep.subr.bf16.mxu1 %v13019_v39  ;;  %v8302_v34 = vpack.c.bf16 %v8281_v48, %v8280_v20  ;;  %v8571_v2 = vpack.c.bf16 %v8280_v20, %v8279_v15 }
 0x92a   : > { %v7381_v10 = vpop.f32.mrf.mxu1  ;;  %v7618_v50 = vpop.f32.mrf.mxu0 }
 0x92b   : > { %v7382_v59 = vadd.f32 %v7381_v10, %v17067_v53  ;;  %v17161_v3 = vadd.f32 %v7618_v50, %v7374_v16 }
 0x92c   : > { %v12320_v60 = vpop.f32.mrf.mxu1  ;;  %v12376_v49 = vpop.f32.mrf.mxu0  ;;  %12664 = vmatpush3.bf16.msra.mxu1 %v12977_v58 }
 0x92d   : > { %12665 = vmatprep.subr.bf16.mxu1 %v13019_v39  ;;  %v8283_v60 = vld [vmem:[#allocation2 + $0x59] sm:$0xff] }
 0x92e   : > { %v7386_v61 = vpop.f32.mrf.mxu1  ;;  %v7623_v37 = vpop.f32.mrf.mxu0  ;;  %12554 = vmatmul.mubr.msk.bf16.gmra.mxu1 %vm18593_vm0, %v8300_v29  ;;  %12610 = vmatmul.mubr.msk.bf16.vlgmr.msra.gmra.mxu0 %vm18650_vm15, %v8569_v17  ;;  %vm18664_vm15 = vmmov %vm18593_vm0 }
 0x92f   : > { %v7387_v53 = vadd.f32 %v7386_v61, %v17071_v25  ;;  %v17173_v14 = vadd.f32 %v7623_v37, %v7379_v7  ;;  %12722 = vmatpush3.bf16.msra.mxu0 %v12976_v18  ;;  %12557 = vmatprep.mubr.msk.bf16.mxu1 %vm13020_vm10, %v13019_v39  ;;  %v12981_v25 = vld [vmem:[%s18251_s9 + $0xe0] sm:$0xff]  }
 0x930   : > { %v12323_v21 = vpop.f32.mrf.mxu1  ;;  %v12379_v19 = vpop.f32.mrf.mxu0  ;;  %12613 = vmatprep.mubr.msk.bf16.mxu0 %vm13020_vm10, %v13019_v39  ;;  %12723 = vmatprep.subr.bf16.mxu0 %v13019_v39  ;;  %v12982_v7 = vld [vmem:[%s18251_s9 + $0x100] sm:$0xff]  }
 0x931   : > { %12666 = vmatpush3.bf16.msra.mxu1 %v12979_v6 }
 0x932   : > { %v7389_v35 = vpop.f32.mrf.mxu1  ;;  %v7626_v9 = vpop.f32.mrf.mxu0  ;;  %12667 = vmatprep.subr.bf16.mxu1 %v13019_v39 }
 0x933   : > { %v7390_v1 = vadd.f32 %v7389_v35, %v17084_v44  ;;  %v17188_v36 = vadd.f32 %v7626_v9, %v7382_v59  ;;  %12724 = vmatpush3.bf16.msra.mxu0 %v12978_v12 }
 0x934   : > { %v12324_v56 = vpop.f32.mrf.mxu1  ;;  %v12380_v27 = vpop.f32.mrf.mxu0  ;;  %12725 = vmatprep.subr.bf16.mxu0 %v13019_v39 }
 0x935   : > { %12668 = vmatpush3.bf16.msra.mxu1 %v12981_v25 }
 0x936   : > { %v7394_v31 = vpop.f32.mrf.mxu1  ;;  %v7631_v16 = vpop.f32.mrf.mxu0  ;;  %12558 = vmatmul.mubr.msk.bf16.gmra.mxu1 %vm18651_vm1, %v8301_v22  ;;  %12614 = vmatmul.mubr.msk.bf16.gmra.mxu0 %vm18652_vm2, %v8570_v32  ;;  %v8285_v22 = vld [vmem:[#allocation2 + $0x69] sm:$0xff]  ;;  %vm18665_vm1 = vmmov %vm18593_vm0 }
 0x937   : > { %v7395_v44 = vadd.f32 %v7394_v31, %v17090_v46  ;;  %v17197_v52 = vadd.f32 %v7631_v16, %v7387_v53  ;;  %12561 = vmatprep.mubr.msk.bf16.mxu1 %vm13020_vm10, %v13019_v39  ;;  %12617 = vmatprep.mubr.msk.bf16.mxu0 %vm13020_vm10, %v13019_v39  ;;  %vm18666_vm2 = vmmov %vm18593_vm0 }
 0x938   : > { %v12327_v11 = vpop.f32.mrf.mxu1  ;;  %v12383_v54 = vpop.f32.mrf.mxu0  ;;  %12726 = vmatpush3.bf16.msra.mxu0 %v12980_v40 }
 0x939   : > { %12727 = vmatprep.subr.bf16.mxu0 %v13019_v39 }
 0x93a   : > { %v7397_v46 = vpop.f32.mrf.mxu1  ;;  %v7634_v23 = vpop.f32.mrf.mxu0 }
 0x93b   : > { %v7398_v62 = vadd.f32 %v7397_v46, %v17100_v30  ;;  %v17208_v58 = vadd.f32 %v7634_v23, %v7390_v1  ;;  %v8282_v30 = vld [vmem:[#allocation2 + $0x51] sm:$0xff] }
 0x93c   : > { %v12328_v10 = vpop.f32.mrf.mxu1  ;;  %v12384_v50 = vpop.f32.mrf.mxu0  ;;  %12728 = vmatpush3.bf16.msra.mxu0 %v12982_v7  ;;  %v8303_v53 = vpack.c.bf16 %v8283_v60, %v8282_v30  ;;  %v8572_v43 = vpack.c.bf16 %v8282_v30, %v8281_v48  ;;  %v8286_v7 = vld [vmem:[#allocation2 + $0x71] sm:$0xff] }
 0x93d   : > { %v8574_v10 = vpack.c.bf16 %v8286_v7, %v8285_v22 }
 0x93e   : > { %v7402_v29 = vpop.f32.mrf.mxu1  ;;  %v7639_v17 = vpop.f32.mrf.mxu0  ;;  %12562 = vmatmul.mubr.msk.bf16.gmra.mxu1 %vm18653_vm3, %v8302_v34  ;;  %12618 = vmatmul.mubr.msk.bf16.gmra.mxu0 %vm18654_vm4, %v8571_v2  ;;  %vm18667_vm3 = vmmov %vm18593_vm0 }
 0x93f   : > { %v7403_v59 = vadd.f32 %v7402_v29, %v17106_v24  ;;  %v17213_v18 = vadd.f32 %v7639_v17, %v7395_v44  ;;  %12565 = vmatprep.mubr.msk.bf16.mxu1 %vm13020_vm10, %v13019_v39  ;;  %12621 = vmatprep.mubr.msk.bf16.mxu0 %vm13020_vm10, %v13019_v39  ;;  %vm18668_vm4 = vmmov %vm18593_vm0 }
 0x940   : > { %v12331_v49 = vpop.f32.mrf.mxu1  ;;  %v12387_v6 = vpop.f32.mrf.mxu0 }
 0x941   : > { %v8288_v6 = vld [vmem:[#allocation2 + $0x81] sm:$0xff] }
 0x942   : > { %v7405_v61 = vpop.f32.mrf.mxu1  ;;  %v7642_v37 = vpop.f32.mrf.mxu0 }
 0x943   : > { %v7406_v15 = vadd.f32 %v7405_v61, %v17116_v33  ;;  %v17220_v12 = vadd.f32 %v7642_v37, %v7398_v62  ;;  %v8284_v33 = vld [vmem:[#allocation2 + $0x61] sm:$0xff]  ;;  %v8289_v61 = vld [vmem:[#allocation2 + $0x89] sm:$0xff] }
 0x944   : > { %v12332_v24 = vpop.f32.mrf.mxu1  ;;  %v12388_v21 = vpop.f32.mrf.mxu0  ;;  %v8304_v40 = vpack.c.bf16 %v8285_v22, %v8284_v33  ;;  %v8573_v31 = vpack.c.bf16 %v8284_v33, %v8283_v60 }
 0x945   : > { %v8306_v24 = vpack.c.bf16 %v8289_v61, %v8288_v6 }
 0x946   : > { %v7410_v19 = vpop.f32.mrf.mxu1  ;;  %v7647_v25 = vpop.f32.mrf.mxu0  ;;  %12566 = vmatmul.mubr.msk.bf16.gmra.mxu1 %vm18655_vm5, %v8303_v53  ;;  %12622 = vmatmul.mubr.msk.bf16.gmra.mxu0 %vm18656_vm6, %v8572_v43  ;;  %vm18669_vm5 = vmmov %vm18593_vm0 }
 0x947   : > { %v7411_v35 = vadd.f32 %v7410_v19, %v17120_v26  ;;  %v17225_v9 = vadd.f32 %v7647_v25, %v7403_v59  ;;  %12569 = vmatprep.mubr.msk.bf16.mxu1 %vm13020_vm10, %v13019_v39  ;;  %12625 = vmatprep.mubr.msk.bf16.mxu0 %vm13020_vm10, %v13019_v39  ;;  %vm18670_vm6 = vmmov %vm18593_vm0 }
 0x948   : > { %v12335_v32 = vpop.f32.mrf.mxu1  ;;  %v12391_v1 = vpop.f32.mrf.mxu0 }
 0x94a   : > { %v7413_v56 = vpop.f32.mrf.mxu1  ;;  %v7650_v27 = vpop.f32.mrf.mxu0 }
 0x94b   : > { %v7414_v16 = vadd.f32 %v7413_v56, %v17129_v45  ;;  %v17232_v44 = vadd.f32 %v7650_v27, %v7406_v15  ;;  %v8287_v45 = vld [vmem:[#allocation2 + $0x79] sm:$0xff] }
 0x94c   : > { %v12336_v26 = vpop.f32.mrf.mxu1  ;;  %v12392_v20 = vpop.f32.mrf.mxu0  ;;  %v8305_v62 = vpack.c.bf16 %v8287_v45, %v8286_v7  ;;  %v8575_v21 = vpack.c.bf16 %v8288_v6, %v8287_v45  ;;  %v8291_v56 = vld [vmem:[#allocation2 + $0x99] sm:$0xff] }
 0x94e   : > { %v7418_v48 = vpop.f32.mrf.mxu1  ;;  %v7655_v11 = vpop.f32.mrf.mxu0  ;;  %12570 = vmatmul.mubr.msk.bf16.gmra.mxu1 %vm18657_vm9, %v8304_v40  ;;  %12626 = vmatmul.mubr.msk.bf16.gmra.mxu0 %vm18658_vm11, %v8573_v31  ;;  %vm18671_vm9 = vmmov %vm18593_vm0 }
 0x94f   : > { %v17236_v54 = vadd.f32 %v7655_v11, %v7411_v35  ;;  %12573 = vmatprep.mubr.msk.bf16.mxu1 %vm13020_vm10, %v13019_v39  ;;  %12629 = vmatprep.mubr.msk.bf16.mxu0 %vm13020_vm10, %v13019_v39  ;;  %v7419_v59 = vadd.f32 %v7418_v48, %v17022_v13  ;;  %vm18672_vm11 = vmmov %vm18593_vm0 }
 0x950   : > { %v12339_v46 = vpop.f32.mrf.mxu1  ;;  %v12395_v23 = vpop.f32.mrf.mxu0 }
 0x952   : > { %v7421_v34 = vpop.f32.mrf.mxu1  ;;  %v7658_v2 = vpop.f32.mrf.mxu0 }
 0x953   : > { %v17242_v50 = vadd.f32 %v7658_v2, %v7414_v16  ;;  %v7422_v13 = vadd.f32 %v7421_v34, %v17035_v51  ;;  %v8290_v51 = vld [vmem:[#allocation2 + $0x91] sm:$0xff]  ;;  %v8293_v2 = vld [vmem:[#allocation2 + $0xa9] sm:$0xff] }
 0x954   : > { %v12340_v29 = vpop.f32.mrf.mxu1  ;;  %v12396_v17 = vpop.f32.mrf.mxu0  ;;  %v8307_v26 = vpack.c.bf16 %v8291_v56, %v8290_v51  ;;  %v8576_v20 = vpack.c.bf16 %v8290_v51, %v8289_v61 }
 0x956   : > { %v7426_v30 = vpop.f32.mrf.mxu1  ;;  %v7663_v60 = vpop.f32.mrf.mxu0  ;;  %12574 = vmatmul.mubr.msk.bf16.gmra.mxu1 %vm18659_vm13, %v8305_v62  ;;  %12630 = vmatmul.mubr.msk.bf16.gmra.mxu0 %vm18660_vm14, %v8574_v10  ;;  %vm18673_vm13 = vmmov %vm18593_vm0 }
 0x957   : > { %v17247_v49 = vadd.f32 %v7663_v60, %v7419_v59  ;;  %12577 = vmatprep.mubr.msk.bf16.mxu1 %vm13020_vm10, %v13019_v39  ;;  %12633 = vmatprep.mubr.msk.bf16.mxu0 %vm13020_vm10, %v13019_v39  ;;  %v7427_v33 = vadd.f32 %v7426_v30, %v17039_v41  ;;  %vm18674_vm14 = vmmov %vm18593_vm0 }
 0x958   : > { %v12343_v37 = vpop.f32.mrf.mxu1  ;;  %v12399_v53 = vpop.f32.mrf.mxu0 }
 0x95a   : > { %v7429_v43 = vpop.f32.mrf.mxu1  ;;  %v7666_v15 = vpop.f32.mrf.mxu0 }
 0x95b   : > { %v17254_v19 = vadd.f32 %v7666_v15, %v7422_v13  ;;  %v7430_v41 = vadd.f32 %v7429_v43, %v17052_v63  ;;  %v8292_v63 = vld [vmem:[#allocation2 + $0xa1] sm:$0xff]  ;;  %v8295_v15 = vld [vmem:[#allocation2 + $0xb9] sm:$0xff] }
 0x95c   : > { %v12344_v25 = vpop.f32.mrf.mxu1  ;;  %v12400_v35 = vpop.f32.mrf.mxu0  ;;  %v8308_v59 = vpack.c.bf16 %v8293_v2, %v8292_v63  ;;  %v8577_v30 = vpack.c.bf16 %v8292_v63, %v8291_v56 }
 0x95e   : > { %v7434_v22 = vpop.f32.mrf.mxu1  ;;  %v7671_v32 = vpop.f32.mrf.mxu0  ;;  %12578 = vmatmul.mubr.msk.bf16.gmra.mxu1 %vm18661_vm12, %v8306_v24  ;;  %12634 = vmatmul.mubr.msk.bf16.gmra.mxu0 %vm18662_vm7, %v8575_v21  ;;  %vm18675_vm12 = vmmov %vm18593_vm0 }
 0x95f   : > { %v17259_v1 = vadd.f32 %v7671_v32, %v7427_v33  ;;  %12581 = vmatprep.mubr.msk.bf16.mxu1 %vm13020_vm10, %v13019_v39  ;;  %12637 = vmatprep.mubr.msk.bf16.mxu0 %vm13020_vm10, %v13019_v39  ;;  %v7435_v45 = vadd.f32 %v7434_v22, %v17056_v0  ;;  %vm18676_vm7 = vmmov %vm18593_vm0 }
 0x960   : > { %v12347_v27 = vpop.f32.mrf.mxu1  ;;  %v12403_v40 = vpop.f32.mrf.mxu0 }
 0x962   : > { %v7437_v31 = vpop.f32.mrf.mxu1  ;;  %v7674_v16 = vpop.f32.mrf.mxu0 }
 0x963   : > { %v17266_v48 = vadd.f32 %v7674_v16, %v7430_v41  ;;  %v7438_v0 = vadd.f32 %v7437_v31, %v17069_v42  ;;  %v8294_v42 = vld [vmem:[#allocation2 + $0xb1] sm:$0xff]  ;;  %v8297_v16 = vld [vmem:[#allocation2 + $0xc9] sm:$0xff] }
 0x964   : > { %v12348_v11 = vpop.f32.mrf.mxu1  ;;  %v12404_v7 = vpop.f32.mrf.mxu0  ;;  %v8309_v33 = vpack.c.bf16 %v8295_v15, %v8294_v42  ;;  %v8578_v22 = vpack.c.bf16 %v8294_v42, %v8293_v2 }
 0x966   : > { %v7442_v46 = vpop.f32.mrf.mxu1  ;;  %v7679_v23 = vpop.f32.mrf.mxu0  ;;  %12582 = vmatmul.mubr.msk.bf16.gmra.mxu1 %vm18663_vm8, %v8307_v26  ;;  %12638 = vmatmul.mubr.msk.bf16.gmra.mxu0 %vm18593_vm0, %v8576_v20  ;;  %vm18677_vm8 = vmmov %vm18593_vm0 }
 0x967   : > { %v17271_v34 = vadd.f32 %v7679_v23, %v7435_v45  ;;  %12585 = vmatprep.mubr.msk.bf16.mxu1 %vm13020_vm10, %v13019_v39  ;;  %12641 = vmatprep.mubr.msk.bf16.mxu0 %vm13020_vm10, %v13019_v39  ;;  %v7443_v37 = vadd.f32 %v7442_v46, %v17073_v8 }
 0x968   : > { %v12351_v62 = vpop.f32.mrf.mxu1  ;;  %v12407_v10 = vpop.f32.mrf.mxu0 }
 0x96a   : > { %v7445_v29 = vpop.f32.mrf.mxu1  ;;  %v7682_v17 = vpop.f32.mrf.mxu0 }
 0x96b   : > { %v17278_v60 = vadd.f32 %v7682_v17, %v7438_v0  ;;  %v7446_v8 = vadd.f32 %v7445_v29, %v17086_v47  ;;  %v8296_v47 = vld [vmem:[#allocation2 + $0xc1] sm:$0xff]  ;;  %v8298_v17 = vld [vmem:[#allocation2 + $0xd1] sm:$0xff] }
 0x96c   : > { %v12352_v6 = vpop.f32.mrf.mxu1  ;;  %v12408_v61 = vpop.f32.mrf.mxu0  ;;  %v8310_v45 = vpack.c.bf16 %v8297_v16, %v8296_v47  ;;  %v8579_v46 = vpack.c.bf16 %v8296_v47, %v8295_v15 }
 0x96d   : > { %v8311_v61 = vpack.c.bf16 %v8298_v17, %v8298_v17 }
 0x96e   : > { %v7450_v53 = vpop.f32.mrf.mxu1  ;;  %v7687_v13 = vpop.f32.mrf.mxu0  ;;  %12586 = vmatmul.mubr.msk.bf16.gmra.mxu1 %vm18664_vm15, %v8308_v59  ;;  %12642 = vmatmul.mubr.msk.bf16.gmra.mxu0 %vm18665_vm1, %v8577_v30  ;;  %vm18678_vm15 = vmmov %vm18593_vm0 }
 0x96f   : > { %v17283_v43 = vadd.f32 %v7687_v13, %v7443_v37  ;;  %12589 = vmatprep.mubr.msk.bf16.mxu1 %vm13020_vm10, %v13019_v39  ;;  %12645 = vmatprep.mubr.msk.bf16.mxu0 %vm13020_vm10, %v13019_v39  ;;  %v7451_v27 = vadd.f32 %v7450_v53, %v17092_v38  ;;  %v8580_v37 = vpack.c.bf16 %v8298_v17, %v8297_v16  ;;  %vm18679_vm1 = vmmov %vm18593_vm0 }
 0x970   : > { %v12355_v24 = vpop.f32.mrf.mxu1  ;;  %v12411_v21 = vpop.f32.mrf.mxu0 }
 0x972   : > { %v7453_v25 = vpop.f32.mrf.mxu1  ;;  %v7690_v35 = vpop.f32.mrf.mxu0 }
 0x973   : > { %v17290_v32 = vadd.f32 %v7690_v35, %v7446_v8  ;;  %v7454_v38 = vadd.f32 %v7453_v25, %v17102_v4  ;;  %v8568_v8 = vld [vmem:[#allocation2 + $0xd9] sm:$0xff]  ;;  %v8815_v25 = vld [vmem:[#allocation2 + $0x22] sm:$0xff] }
 0x974   : > { %v12356_v51 = vpop.f32.mrf.mxu1  ;;  %v12412_v56 = vpop.f32.mrf.mxu0 }
 0x975   : > { %v8581_v56 = vpack.c.bf16 %v8568_v8, %v8568_v8 }
 0x976   : > { %v7458_v40 = vpop.f32.mrf.mxu1  ;;  %v7695_v41 = vpop.f32.mrf.mxu0  ;;  %12590 = vmatmul.mubr.msk.bf16.gmra.mxu1 %vm18666_vm2, %v8309_v33  ;;  %12646 = vmatmul.mubr.msk.bf16.gmra.mxu0 %vm18667_vm3, %v8578_v22  ;;  %vm18680_vm2 = vmmov %vm18593_vm0 }
 0x977   : > { %v17295_v31 = vadd.f32 %v7695_v41, %v7451_v27  ;;  %12593 = vmatprep.mubr.msk.bf16.mxu1 %vm13020_vm10, %v13019_v39  ;;  %12649 = vmatprep.mubr.msk.bf16.mxu0 %vm13020_vm10, %v13019_v39  ;;  %v7459_v62 = vadd.f32 %v7458_v40, %v17108_v55  ;;  %vm18681_vm3 = vmmov %vm18593_vm0 }
 0x978   : > { %v12359_v26 = vpop.f32.mrf.mxu1  ;;  %v12415_v20 = vpop.f32.mrf.mxu0 }
 0x979   : > { %v8816_v20 = vld [vmem:[#allocation2 + $0x2a] sm:$0xff] }
 0x97a   : > { %v7461_v11 = vpop.f32.mrf.mxu1  ;;  %v7698_v7 = vpop.f32.mrf.mxu0 }
 0x97b   : > { %v17302_v23 = vadd.f32 %v7698_v7, %v7454_v38  ;;  %v9084_v7 = vld [vmem:[#allocation2 + $0x1b] sm:$0xff] }
 0x97c   : > { %v12360_v63 = vpop.f32.mrf.mxu1  ;;  %v12416_v2 = vpop.f32.mrf.mxu0 }
 0x97e   : > { %v7703_v10 = vpop.f32.mrf.mxu0  ;;  %v7877_v0 = vpop.f32.mrf.mxu1  ;;  %12594 = vmatmul.mubr.msk.bf16.gmra.mxu1 %vm18668_vm4, %v8310_v45  ;;  %12650 = vmatmul.mubr.msk.bf16.gmra.mxu0 %vm18669_vm5, %v8579_v46  ;;  %v9085_v45 = vld [vmem:[#allocation2 + $0x23] sm:$0xff]  ;;  %vm18682_vm4 = vmmov %vm18593_vm0 }
 0x97f   : > { %v17307_v29 = vadd.f32 %v7703_v10, %v7459_v62  ;;  %v7979_v4 = vadd.f32 %v7877_v0, %v17135_v57  ;;  %12597 = vmatprep.mubr.msk.bf16.mxu1 %vm13020_vm10, %v13019_v39  ;;  %12653 = vmatprep.mubr.msk.bf16.mxu0 %vm13020_vm10, %v13019_v39  ;;  %v9109_v0 = vpack.c.bf16 %v9085_v45, %v9084_v7  ;;  %vm18683_vm5 = vmmov %vm18593_vm0 }
 0x980   : > { %v12419_v59 = vpop.f32.mrf.mxu0  ;;  %v12431_v30 = vpop.f32.mrf.mxu1 }
 0x982   : > { %v7706_v55 = vpop.f32.mrf.mxu0  ;;  %v7880_v6 = vpop.f32.mrf.mxu1 }
 0x983   : > { %v7980_v53 = vadd.f32 %v7880_v6, %v17142_v28  ;;  %v8814_v28 = vld [vmem:[#allocation2 + $0x1a] sm:$0xff] }
 0x984   : > { %v12420_v13 = vpop.f32.mrf.mxu0  ;;  %v12432_v42 = vpop.f32.mrf.mxu1  ;;  %v8839_v27 = vpack.c.bf16 %v8815_v25, %v8814_v28  ;;  %v8818_v6 = vld [vmem:[#allocation2 + $0x3a] sm:$0xff] }
 0x985   : > { %v9087_v13 = vld [vmem:[#allocation2 + $0x33] sm:$0xff] }
 0x986   : > { %v7885_v15 = vpop.f32.mrf.mxu1  ;;  %v8147_v24 = vpop.f32.mrf.mxu0  ;;  %12598 = vmatmul.mubr.msk.bf16.gmra.mxu1 %vm18670_vm6, %v8311_v61  ;;  %12654 = vmatmul.mubr.msk.bf16.gmra.mxu0 %vm18671_vm9, %v8580_v37  ;;  %vm18684_vm6 = vmmov %vm18593_vm0 }
 0x987   : > { %v7981_v57 = vadd.f32 %v7885_v15, %v17150_v5  ;;  %v17318_v21 = vadd.f32 %v8147_v24, %v7979_v4  ;;  %12657 = vmatprep.mubr.msk.bf16.mxu0 %vm13020_vm10, %v13019_v39  ;;  %12669 = vmatprep.mubr.msk.bf16.mxu1 %vm13020_vm10, %v13019_v39  ;;  %vm18685_vm9 = vmmov %vm18593_vm0 }
 0x988   : > { %v12435_v35 = vpop.f32.mrf.mxu1  ;;  %v12491_v33 = vpop.f32.mrf.mxu0 }
 0x98a   : > { %v7888_v22 = vpop.f32.mrf.mxu1  ;;  %v8150_v51 = vpop.f32.mrf.mxu0 }
 0x98b   : > { %v7982_v40 = vadd.f32 %v7888_v22, %v17161_v3  ;;  %v17325_v5 = vadd.f32 %v8150_v51, %v7980_v53  ;;  %v8817_v3 = vld [vmem:[#allocation2 + $0x32] sm:$0xff] }
 0x98c   : > { %v12436_v41 = vpop.f32.mrf.mxu1  ;;  %v12492_v47 = vpop.f32.mrf.mxu0  ;;  %v8840_v10 = vpack.c.bf16 %v8817_v3, %v8816_v20  ;;  %v9086_v53 = vld [vmem:[#allocation2 + $0x2b] sm:$0xff] }
 0x98d   : > { %v9110_v28 = vpack.c.bf16 %v9087_v13, %v9086_v53  ;;  %v9088_v41 = vld [vmem:[#allocation2 + $0x3b] sm:$0xff]  ;;  %v9089_v47 = vld [vmem:[#allocation2 + $0x43] sm:$0xff] }
 0x98e   : > { %v7893_v16 = vpop.f32.mrf.mxu1  ;;  %v8155_v26 = vpop.f32.mrf.mxu0  ;;  %12658 = vmatmul.mubr.msk.bf16.gmra.mxu0 %vm18672_vm11, %v8581_v56  ;;  %12670 = vmatmul.mubr.msk.bf16.vlgmr.msra.gmra.mxu1 %vm18673_vm13, %v8839_v27  ;;  %v8820_v56 = vld [vmem:[#allocation2 + $0x4a] sm:$0xff]  ;;  %v9111_v7 = vpack.c.bf16 %v9089_v47, %v9088_v41  ;;  %vm18686_vm11 = vmmov %vm18593_vm0 }
 0x98f   : > { %v7983_v38 = vadd.f32 %v7893_v16, %v17173_v14  ;;  %v17330_v11 = vadd.f32 %v8155_v26, %v7981_v57  ;;  %12673 = vmatprep.mubr.msk.bf16.mxu1 %vm13020_vm10, %v13019_v39  ;;  %12729 = vmatprep.mubr.msk.bf16.mxu0 %vm13020_vm10, %v13019_v39  ;;  %vm18687_vm13 = vmmov %vm18593_vm0 }
 0x990   : > { %v12439_v46 = vpop.f32.mrf.mxu1  ;;  %v12495_v63 = vpop.f32.mrf.mxu0 }
 0x992   : > { %v7896_v2 = vpop.f32.mrf.mxu1  ;;  %v8158_v62 = vpop.f32.mrf.mxu0 }
 0x993   : > { %v7984_v4 = vadd.f32 %v7896_v2, %v17188_v36  ;;  %v17337_v14 = vadd.f32 %v8158_v62, %v7982_v40  ;;  %v8819_v36 = vld [vmem:[#allocation2 + $0x42] sm:$0xff] }
 0x994   : > { %v12440_v17 = vpop.f32.mrf.mxu1  ;;  %v12496_v59 = vpop.f32.mrf.mxu0  ;;  %v8841_v8 = vpack.c.bf16 %v8819_v36, %v8818_v6 }
 0x995   : > { %v9090_v17 = vld [vmem:[#allocation2 + $0x4b] sm:$0xff]  ;;  %v9091_v59 = vld [vmem:[#allocation2 + $0x53] sm:$0xff] }
 0x996   : > { %v7901_v30 = vpop.f32.mrf.mxu1  ;;  %v8163_v55 = vpop.f32.mrf.mxu0  ;;  %12674 = vmatmul.mubr.msk.bf16.gmra.mxu1 %vm18674_vm14, %v8840_v10  ;;  %12730 = vmatmul.mubr.msk.bf16.vlgmr.msra.gmra.mxu0 %vm18675_vm12, %v9109_v0  ;;  %v8822_v10 = vld [vmem:[#allocation2 + $0x5a] sm:$0xff]  ;;  %v9112_v53 = vpack.c.bf16 %v9091_v59, %v9090_v17  ;;  %vm18688_vm14 = vmmov %vm18593_vm0 }
 0x997   : > { %v7985_v61 = vadd.f32 %v7901_v30, %v17197_v52  ;;  %v17342_v37 = vadd.f32 %v8163_v55, %v7983_v38  ;;  %12677 = vmatprep.mubr.msk.bf16.mxu1 %vm13020_vm10, %v13019_v39  ;;  %12733 = vmatprep.mubr.msk.bf16.mxu0 %vm13020_vm10, %v13019_v39  ;;  %vm18689_vm12 = vmmov %vm18593_vm0 }
 0x998   : > { %v12443_v42 = vpop.f32.mrf.mxu1  ;;  %v12499_v15 = vpop.f32.mrf.mxu0 }
 0x99a   : > { %v7904_v24 = vpop.f32.mrf.mxu1  ;;  %v8166_v57 = vpop.f32.mrf.mxu0 }
 0x99b   : > { %v7986_v25 = vadd.f32 %v7904_v24, %v17208_v58  ;;  %v17349_v52 = vadd.f32 %v8166_v57, %v7984_v4  ;;  %v8821_v58 = vld [vmem:[#allocation2 + $0x52] sm:$0xff] }
 0x99c   : > { %v12444_v35 = vpop.f32.mrf.mxu1  ;;  %v12500_v33 = vpop.f32.mrf.mxu0  ;;  %v8842_v3 = vpack.c.bf16 %v8821_v58, %v8820_v56 }
 0x99d   : > { %v9092_v35 = vld [vmem:[#allocation2 + $0x5b] sm:$0xff]  ;;  %v9093_v33 = vld [vmem:[#allocation2 + $0x63] sm:$0xff] }
 0x99e   : > { %v7909_v22 = vpop.f32.mrf.mxu1  ;;  %v8171_v51 = vpop.f32.mrf.mxu0  ;;  %12678 = vmatmul.mubr.msk.bf16.gmra.mxu1 %vm18676_vm7, %v8841_v8  ;;  %12734 = vmatmul.mubr.msk.bf16.gmra.mxu0 %vm18677_vm8, %v9110_v28  ;;  %v8824_v8 = vld [vmem:[#allocation2 + $0x6a] sm:$0xff]  ;;  %v9113_v41 = vpack.c.bf16 %v9093_v33, %v9092_v35  ;;  %vm18690_vm7 = vmmov %vm18593_vm0 }
 0x99f   : > { %v7987_v27 = vadd.f32 %v7909_v22, %v17213_v18  ;;  %v17354_v40 = vadd.f32 %v8171_v51, %v7985_v61  ;;  %12681 = vmatprep.mubr.msk.bf16.mxu1 %vm13020_vm10, %v13019_v39  ;;  %12737 = vmatprep.mubr.msk.bf16.mxu0 %vm13020_vm10, %v13019_v39  ;;  %vm18691_vm8 = vmmov %vm18593_vm0 }
 0x9a0   : > { %v12447_v16 = vpop.f32.mrf.mxu1  ;;  %v12503_v26 = vpop.f32.mrf.mxu0 }
 0x9a2   : > { %v7912_v20 = vpop.f32.mrf.mxu1  ;;  %v8174_v38 = vpop.f32.mrf.mxu0 }
 0x9a3   : > { %v7988_v45 = vadd.f32 %v7912_v20, %v17220_v12  ;;  %v17361_v18 = vadd.f32 %v8174_v38, %v7986_v25  ;;  %v8823_v12 = vld [vmem:[#allocation2 + $0x62] sm:$0xff] }
 0x9a4   : > { %v12448_v46 = vpop.f32.mrf.mxu1  ;;  %v12504_v63 = vpop.f32.mrf.mxu0  ;;  %v8843_v36 = vpack.c.bf16 %v8823_v12, %v8822_v10 }
 0x9a5   : > { %v9094_v46 = vld [vmem:[#allocation2 + $0x6b] sm:$0xff]  ;;  %v9095_v63 = vld [vmem:[#allocation2 + $0x73] sm:$0xff] }
 0x9a6   : > { %v7917_v2 = vpop.f32.mrf.mxu1  ;;  %v8179_v62 = vpop.f32.mrf.mxu0  ;;  %12682 = vmatmul.mubr.msk.bf16.gmra.mxu1 %vm18593_vm0, %v8842_v3  ;;  %12738 = vmatmul.mubr.msk.bf16.gmra.mxu0 %vm18678_vm15, %v9111_v7  ;;  %v8826_v3 = vld [vmem:[#allocation2 + $0x7a] sm:$0xff]  ;;  %v9114_v17 = vpack.c.bf16 %v9095_v63, %v9094_v46  ;;  %vm18692_vm15 = vmmov %vm18593_vm0 }
 0x9a7   : > { %v7989_v0 = vadd.f32 %v7917_v2, %v17225_v9  ;;  %v17366_v4 = vadd.f32 %v8179_v62, %v7987_v27  ;;  %12685 = vmatprep.mubr.msk.bf16.mxu1 %vm13020_vm10, %v13019_v39  ;;  %12741 = vmatprep.mubr.msk.bf16.mxu0 %vm13020_vm10, %v13019_v39 }
 0x9a8   : > { %v12451_v30 = vpop.f32.mrf.mxu1  ;;  %v12507_v55 = vpop.f32.mrf.mxu0 }
 0x9aa   : > { %v7920_v6 = vpop.f32.mrf.mxu1  ;;  %v8182_v61 = vpop.f32.mrf.mxu0 }
 0x9ab   : > { %v7990_v13 = vadd.f32 %v7920_v6, %v17232_v44  ;;  %v17373_v9 = vadd.f32 %v8182_v61, %v7988_v45  ;;  %v8825_v44 = vld [vmem:[#allocation2 + $0x72] sm:$0xff] }
 0x9ac   : > { %v12452_v42 = vpop.f32.mrf.mxu1  ;;  %v12508_v15 = vpop.f32.mrf.mxu0  ;;  %v8844_v58 = vpack.c.bf16 %v8825_v44, %v8824_v8 }
 0x9ad   : > { %v9096_v42 = vld [vmem:[#allocation2 + $0x7b] sm:$0xff]  ;;  %v9097_v15 = vld [vmem:[#allocation2 + $0x83] sm:$0xff] }
 0x9ae   : > { %v7925_v24 = vpop.f32.mrf.mxu1  ;;  %v8187_v57 = vpop.f32.mrf.mxu0  ;;  %12686 = vmatmul.mubr.msk.bf16.gmra.mxu1 %vm18679_vm1, %v8843_v36  ;;  %12742 = vmatmul.mubr.msk.bf16.gmra.mxu0 %vm18680_vm2, %v9112_v53  ;;  %v8828_v36 = vld [vmem:[#allocation2 + $0x8a] sm:$0xff]  ;;  %v9115_v35 = vpack.c.bf16 %v9097_v15, %v9096_v42  ;;  %vm18693_vm1 = vmmov %vm18593_vm0 }
 0x9af   : > { %v7991_v28 = vadd.f32 %v7925_v24, %v17236_v54  ;;  %v17378_v25 = vadd.f32 %v8187_v57, %v7989_v0  ;;  %12689 = vmatprep.mubr.msk.bf16.mxu1 %vm13020_vm10, %v13019_v39  ;;  %12745 = vmatprep.mubr.msk.bf16.mxu0 %vm13020_vm10, %v13019_v39  ;;  %vm18694_vm2 = vmmov %vm18593_vm0 }
 0x9b0   : > { %v12455_v22 = vpop.f32.mrf.mxu1  ;;  %v12511_v51 = vpop.f32.mrf.mxu0 }
 0x9b2   : > { %v7928_v56 = vpop.f32.mrf.mxu1  ;;  %v8190_v27 = vpop.f32.mrf.mxu0 }
 0x9b3   : > { %v7992_v47 = vadd.f32 %v7928_v56, %v17242_v50  ;;  %v17385_v54 = vadd.f32 %v8190_v27, %v7990_v13  ;;  %v8827_v50 = vld [vmem:[#allocation2 + $0x82] sm:$0xff] }
 0x9b4   : > { %v12456_v16 = vpop.f32.mrf.mxu1  ;;  %v12512_v26 = vpop.f32.mrf.mxu0  ;;  %v8845_v12 = vpack.c.bf16 %v8827_v50, %v8826_v3 }
 0x9b5   : > { %v9098_v16 = vld [vmem:[#allocation2 + $0x8b] sm:$0xff]  ;;  %v9099_v26 = vld [vmem:[#allocation2 + $0x93] sm:$0xff] }
 0x9b6   : > { %v7933_v20 = vpop.f32.mrf.mxu1  ;;  %v8195_v38 = vpop.f32.mrf.mxu0  ;;  %12690 = vmatmul.mubr.msk.bf16.gmra.mxu1 %vm18681_vm3, %v8844_v58  ;;  %12746 = vmatmul.mubr.msk.bf16.gmra.mxu0 %vm18682_vm4, %v9113_v41  ;;  %v8830_v58 = vld [vmem:[#allocation2 + $0x9a] sm:$0xff]  ;;  %v9116_v46 = vpack.c.bf16 %v9099_v26, %v9098_v16  ;;  %vm18695_vm3 = vmmov %vm18593_vm0 }
 0x9b7   : > { %v7993_v7 = vadd.f32 %v7933_v20, %v17247_v49  ;;  %v17390_v45 = vadd.f32 %v8195_v38, %v7991_v28  ;;  %12693 = vmatprep.mubr.msk.bf16.mxu1 %vm13020_vm10, %v13019_v39  ;;  %12749 = vmatprep.mubr.msk.bf16.mxu0 %vm13020_vm10, %v13019_v39  ;;  %vm18696_vm4 = vmmov %vm18593_vm0 }
 0x9b8   : > { %v12459_v2 = vpop.f32.mrf.mxu1  ;;  %v12515_v62 = vpop.f32.mrf.mxu0 }
 0x9ba   : > { %v7936_v10 = vpop.f32.mrf.mxu1  ;;  %v8198_v0 = vpop.f32.mrf.mxu0 }
 0x9bb   : > { %v7994_v59 = vadd.f32 %v7936_v10, %v17254_v19  ;;  %v17397_v49 = vadd.f32 %v8198_v0, %v7992_v47  ;;  %v8829_v19 = vld [vmem:[#allocation2 + $0x92] sm:$0xff] }
 0x9bc   : > { %v12460_v30 = vpop.f32.mrf.mxu1  ;;  %v12516_v55 = vpop.f32.mrf.mxu0  ;;  %v8846_v44 = vpack.c.bf16 %v8829_v19, %v8828_v36 }
 0x9bd   : > { %v9100_v30 = vld [vmem:[#allocation2 + $0x9b] sm:$0xff]  ;;  %v9101_v55 = vld [vmem:[#allocation2 + $0xa3] sm:$0xff] }
 0x9be   : > { %v7941_v6 = vpop.f32.mrf.mxu1  ;;  %v8203_v61 = vpop.f32.mrf.mxu0  ;;  %12694 = vmatmul.mubr.msk.bf16.gmra.mxu1 %vm18683_vm5, %v8845_v12  ;;  %12750 = vmatmul.mubr.msk.bf16.gmra.mxu0 %vm18684_vm6, %v9114_v17  ;;  %v8832_v12 = vld [vmem:[#allocation2 + $0xaa] sm:$0xff]  ;;  %v9117_v42 = vpack.c.bf16 %v9101_v55, %v9100_v30  ;;  %vm18702_vm5 = vmmov %vm18593_vm0 }
 0x9bf   : > { %v7995_v53 = vadd.f32 %v7941_v6, %v17259_v1  ;;  %v17402_v13 = vadd.f32 %v8203_v61, %v7993_v7  ;;  %12697 = vmatprep.mubr.msk.bf16.mxu1 %vm13020_vm10, %v13019_v39  ;;  %12753 = vmatprep.mubr.msk.bf16.mxu0 %vm13020_vm10, %v13019_v39  ;;  %vm18703_vm6 = vmmov %vm18593_vm0 }
 0x9c0   : > { %v12463_v24 = vpop.f32.mrf.mxu1  ;;  %v12519_v57 = vpop.f32.mrf.mxu0 }
 0x9c2   : > { %v7944_v8 = vpop.f32.mrf.mxu1  ;;  %v8206_v28 = vpop.f32.mrf.mxu0 }
 0x9c3   : > { %v7996_v33 = vadd.f32 %v7944_v8, %v17266_v48  ;;  %v17409_v1 = vadd.f32 %v8206_v28, %v7994_v59  ;;  %v8831_v48 = vld [vmem:[#allocation2 + $0xa2] sm:$0xff] }
 0x9c4   : > { %v12464_v22 = vpop.f32.mrf.mxu1  ;;  %v12520_v51 = vpop.f32.mrf.mxu0  ;;  %v8847_v50 = vpack.c.bf16 %v8831_v48, %v8830_v58 }
 0x9c5   : > { %v9102_v22 = vld [vmem:[#allocation2 + $0xab] sm:$0xff]  ;;  %v9103_v51 = vld [vmem:[#allocation2 + $0xb3] sm:$0xff] }
 0x9c6   : > { %v7949_v56 = vpop.f32.mrf.mxu1  ;;  %v8211_v27 = vpop.f32.mrf.mxu0  ;;  %12698 = vmatmul.mubr.msk.bf16.gmra.mxu1 %vm18685_vm9, %v8846_v44  ;;  %12754 = vmatmul.mubr.msk.bf16.gmra.mxu0 %vm18686_vm11, %v9115_v35  ;;  %v8834_v44 = vld [vmem:[#allocation2 + $0xba] sm:$0xff]  ;;  %v9118_v16 = vpack.c.bf16 %v9103_v51, %v9102_v22  ;;  %vm18705_vm9 = vmmov %vm18593_vm0 }
 0x9c7   : > { %v7997_v41 = vadd.f32 %v7949_v56, %v17271_v34  ;;  %v17414_v47 = vadd.f32 %v8211_v27, %v7995_v53  ;;  %12701 = vmatprep.mubr.msk.bf16.mxu1 %vm13020_vm10, %v13019_v39  ;;  %12757 = vmatprep.mubr.msk.bf16.mxu0 %vm13020_vm10, %v13019_v39  ;;  %vm18707_vm11 = vmmov %vm18593_vm0 }
 0x9c8   : > { %v12467_v20 = vpop.f32.mrf.mxu1  ;;  %v12523_v38 = vpop.f32.mrf.mxu0 }
 0x9ca   : > { %v7952_v3 = vpop.f32.mrf.mxu1  ;;  %v8214_v7 = vpop.f32.mrf.mxu0 }
 0x9cb   : > { %v7998_v63 = vadd.f32 %v7952_v3, %v17278_v60  ;;  %v17421_v34 = vadd.f32 %v8214_v7, %v7996_v33  ;;  %v8833_v60 = vld [vmem:[#allocation2 + $0xb2] sm:$0xff] }
 0x9cc   : > { %v12468_v2 = vpop.f32.mrf.mxu1  ;;  %v12524_v62 = vpop.f32.mrf.mxu0  ;;  %v8848_v19 = vpack.c.bf16 %v8833_v60, %v8832_v12 }
 0x9cd   : > { %v9104_v2 = vld [vmem:[#allocation2 + $0xbb] sm:$0xff]  ;;  %v9105_v62 = vld [vmem:[#allocation2 + $0xc3] sm:$0xff] }
 0x9ce   : > { %v7957_v10 = vpop.f32.mrf.mxu1  ;;  %v8219_v0 = vpop.f32.mrf.mxu0  ;;  %12702 = vmatmul.mubr.msk.bf16.gmra.mxu1 %vm18687_vm13, %v8847_v50  ;;  %12758 = vmatmul.mubr.msk.bf16.gmra.mxu0 %vm18688_vm14, %v9116_v46  ;;  %v8836_v50 = vld [vmem:[#allocation2 + $0xca] sm:$0xff]  ;;  %v9119_v30 = vpack.c.bf16 %v9105_v62, %v9104_v2  ;;  %vm18709_vm13 = vmmov %vm18593_vm0 }
 0x9cf   : > { %v7999_v17 = vadd.f32 %v7957_v10, %v17283_v43  ;;  %v17426_v59 = vadd.f32 %v8219_v0, %v7997_v41  ;;  %12705 = vmatprep.mubr.msk.bf16.mxu1 %vm13020_vm10, %v13019_v39  ;;  %12761 = vmatprep.mubr.msk.bf16.mxu0 %vm13020_vm10, %v13019_v39  ;;  %vm18711_vm14 = vmmov %vm18593_vm0 }
 0x9d0   : > { %v12471_v6 = vpop.f32.mrf.mxu1  ;;  %v12527_v61 = vpop.f32.mrf.mxu0 }
 0x9d2   : > { %v7960_v36 = vpop.f32.mrf.mxu1  ;;  %v8222_v53 = vpop.f32.mrf.mxu0 }
 0x9d3   : > { %v8000_v15 = vadd.f32 %v7960_v36, %v17290_v32  ;;  %v17433_v43 = vadd.f32 %v8222_v53, %v7998_v63  ;;  %v8835_v32 = vld [vmem:[#allocation2 + $0xc2] sm:$0xff] }
 0x9d4   : > { %v12472_v24 = vpop.f32.mrf.mxu1  ;;  %v12528_v57 = vpop.f32.mrf.mxu0  ;;  %v8849_v48 = vpack.c.bf16 %v8835_v32, %v8834_v44 }
 0x9d5   : > { %v9107_v24 = vld [vmem:[#allocation2 + $0xd3] sm:$0xff] }
 0x9d6   : > { %v7965_v8 = vpop.f32.mrf.mxu1  ;;  %v8227_v28 = vpop.f32.mrf.mxu0  ;;  %12706 = vmatmul.mubr.msk.bf16.gmra.mxu1 %vm18689_vm12, %v8848_v19  ;;  %12762 = vmatmul.mubr.msk.bf16.gmra.mxu0 %vm18690_vm7, %v9117_v42  ;;  %v8838_v42 = vld [vmem:[#allocation2 + $0xda] sm:$0xff]  ;;  %vm18713_vm12 = vmmov %vm18593_vm0 }
 0x9d7   : > { %v8001_v35 = vadd.f32 %v7965_v8, %v17295_v31  ;;  %v17438_v33 = vadd.f32 %v8227_v28, %v7999_v17  ;;  %12709 = vmatprep.mubr.msk.bf16.mxu1 %vm13020_vm10, %v13019_v39  ;;  %12765 = vmatprep.mubr.msk.bf16.mxu0 %vm13020_vm10, %v13019_v39  ;;  %vm18715_vm7 = vmmov %vm18593_vm0 }
 0x9d8   : > { %v12475_v56 = vpop.f32.mrf.mxu1  ;;  %v12531_v27 = vpop.f32.mrf.mxu0 }
 0x9da   : > { %v7968_v58 = vpop.f32.mrf.mxu1  ;;  %v8230_v41 = vpop.f32.mrf.mxu0 }
 0x9db   : > { %v8002_v26 = vadd.f32 %v7968_v58, %v17302_v23  ;;  %v17445_v31 = vadd.f32 %v8230_v41, %v8000_v15  ;;  %v8837_v23 = vld [vmem:[#allocation2 + $0xd2] sm:$0xff] }
 0x9dc   : > { %v12476_v20 = vpop.f32.mrf.mxu1  ;;  %v12532_v38 = vpop.f32.mrf.mxu0  ;;  %v8850_v60 = vpack.c.bf16 %v8837_v23, %v8836_v50  ;;  %v9106_v15 = vld [vmem:[#allocation2 + $0xcb] sm:$0xff] }
 0x9dd   : > { %v9120_v32 = vpack.c.bf16 %v9107_v24, %v9106_v15 }
 0x9de   : > { %v7973_v3 = vpop.f32.mrf.mxu1  ;;  %v8235_v7 = vpop.f32.mrf.mxu0  ;;  %12710 = vmatmul.mubr.msk.bf16.gmra.mxu1 %vm18691_vm8, %v8849_v48  ;;  %12766 = vmatmul.mubr.msk.bf16.gmra.mxu0 %vm18593_vm0, %v9118_v16  ;;  %v9108_v48 = vld [vmem:[#allocation2 + $0xdb] sm:$0xff]  ;;  %vm18717_vm8 = vmmov %vm18593_vm0 }
 0x9df   : > { %v8003_v46 = vadd.f32 %v7973_v3, %v17307_v29  ;;  %v17450_v63 = vadd.f32 %v8235_v7, %v8001_v35  ;;  %12713 = vmatprep.mubr.msk.bf16.mxu1 %vm13020_vm10, %v13019_v39  ;;  %12769 = vmatprep.mubr.msk.bf16.mxu0 %vm13020_vm10, %v13019_v39  ;;  %v8851_v35 = vpack.c.bf16 %v8838_v42, %v8838_v42 }
 0x9e0   : > { %v12479_v10 = vpop.f32.mrf.mxu1  ;;  %v12535_v0 = vpop.f32.mrf.mxu0  ;;  %v9121_v38 = vpack.c.bf16 %v9108_v48, %v9108_v48 }
 0x9e2   : > { %v7976_v12 = vpop.f32.mrf.mxu1  ;;  %v8238_v17 = vpop.f32.mrf.mxu0 }
 0x9e3   : > { %v17456_v55 = vadd.f32 %v8238_v17, %v8002_v26 }
 0x9e4   : > { %v12480_v29 = vpop.f32.mrf.mxu1  ;;  %v12536_v6 = vpop.f32.mrf.mxu0 }
 0x9e6   : > { %v8243_v61 = vpop.f32.mrf.mxu0  ;;  %v8417_v36 = vpop.f32.mrf.mxu1  ;;  %12714 = vmatmul.mubr.msk.bf16.gmra.mxu1 %vm18692_vm15, %v8850_v60  ;;  %12770 = vmatmul.mubr.msk.bf16.gmra.mxu0 %vm18693_vm1, %v9119_v30  ;;  %vm18720_vm15 = vmmov %vm18593_vm0 }
 0x9e7   : > { %v17460_v53 = vadd.f32 %v8243_v61, %v8003_v46  ;;  %v8519_v19 = vadd.f32 %v8417_v36, %v17318_v21  ;;  %12717 = vmatprep.mubr.msk.bf16.mxu1 %vm13020_vm10, %v13019_v39  ;;  %12773 = vmatprep.mubr.msk.bf16.mxu0 %vm13020_vm10, %v13019_v39  ;;  %vm18722_vm1 = vmmov %vm18593_vm0 }
 0x9e8   : > { %v12539_v57 = vpop.f32.mrf.mxu0  ;;  %v12551_v8 = vpop.f32.mrf.mxu1 }
 0x9ea   : > { %v8246_v28 = vpop.f32.mrf.mxu0  ;;  %v8420_v44 = vpop.f32.mrf.mxu1 }
 0x9eb   : > { %v8520_v22 = vadd.f32 %v8420_v44, %v17325_v5 }
 0x9ec   : > { %v12540_v51 = vpop.f32.mrf.mxu0  ;;  %v12552_v56 = vpop.f32.mrf.mxu1 }
 0x9ee   : > { %v8425_v21 = vpop.f32.mrf.mxu1  ;;  %v8687_v27 = vpop.f32.mrf.mxu0  ;;  %12718 = vmatmul.mubr.msk.bf16.gmra.mxu1 %vm18694_vm2, %v8851_v35  ;;  %12774 = vmatmul.mubr.msk.bf16.gmra.mxu0 %vm18695_vm3, %v9120_v32  ;;  %vm18723_vm2 = vmmov %vm18593_vm0 }
 0x9ef   : > { %v8521_v58 = vadd.f32 %v8425_v21, %v17330_v11  ;;  %v17471_v41 = vadd.f32 %v8687_v27, %v8519_v19  ;;  %12777 = vmatprep.mubr.msk.bf16.mxu0 %vm13020_vm10, %v13019_v39  ;;  %vm18700_vm10 = vmmov %vm18593_vm0 }
 0x9f0   : > { %v12555_v16 = vpop.f32.mrf.mxu1  ;;  %v12611_v26 = vpop.f32.mrf.mxu0  ;;  %vm18725_vm3 = vmmov %vm18593_vm0 }
 0x9f2   : > { %v8428_v20 = vpop.f32.mrf.mxu1  ;;  %v8690_v5 = vpop.f32.mrf.mxu0 }
 0x9f3   : > { %v8522_v3 = vadd.f32 %v8428_v20, %v17337_v14  ;;  %v17476_v7 = vadd.f32 %v8690_v5, %v8520_v22 }
 0x9f4   : > { %v12556_v50 = vpop.f32.mrf.mxu1  ;;  %v12612_v46 = vpop.f32.mrf.mxu0 }
 0x9f6   : > { %v8433_v23 = vpop.f32.mrf.mxu1  ;;  %v8695_v2 = vpop.f32.mrf.mxu0  ;;  %12778 = vmatmul.mubr.msk.bf16.gmra.mxu0 %vm18696_vm4, %v9121_v38  ;;  %vm18727_vm4 = vmmov %vm18593_vm0 }
 0x9f7   : > { %v8523_v11 = vadd.f32 %v8433_v23, %v17342_v37  ;;  %v17480_v62 = vadd.f32 %v8695_v2, %v8521_v58 }
 0x9f8   : > { %v12559_v39 = vpop.f32.mrf.mxu1  ;;  %v12615_v10 = vpop.f32.mrf.mxu0 }
 0x9fa   : > { %v8436_v0 = vpop.f32.mrf.mxu1  ;;  %v8698_v12 = vpop.f32.mrf.mxu0 }
 0x9fb   : > { %v8524_v17 = vadd.f32 %v8436_v0, %v17349_v52  ;;  %v17483_v60 = vadd.f32 %v8698_v12, %v8522_v3 }
 0x9fc   : > { %v12560_v14 = vpop.f32.mrf.mxu1  ;;  %v12616_v30 = vpop.f32.mrf.mxu0 }
 0x9fe   : > { %v8441_v29 = vpop.f32.mrf.mxu1  ;;  %v8703_v6 = vpop.f32.mrf.mxu0 }
 0x9ff   : > { %v8525_v61 = vadd.f32 %v8441_v29, %v17354_v40  ;;  %v17486_v36 = vadd.f32 %v8703_v6, %v8523_v11 }
 0xa00   : > { %v12563_v19 = vpop.f32.mrf.mxu1  ;;  %v12619_v37 = vpop.f32.mrf.mxu0 }
 0xa02   : > { %v8444_v42 = vpop.f32.mrf.mxu1  ;;  %v8706_v15 = vpop.f32.mrf.mxu0 }
 0xa03   : > { %v8526_v24 = vadd.f32 %v8444_v42, %v17361_v18  ;;  %v17489_v57 = vadd.f32 %v8706_v15, %v8524_v17 }
 0xa04   : > { %v12564_v8 = vpop.f32.mrf.mxu1  ;;  %v12620_v52 = vpop.f32.mrf.mxu0 }
 0xa06   : > { %v8449_v28 = vpop.f32.mrf.mxu1  ;;  %v8711_v44 = vpop.f32.mrf.mxu0 }
 0xa07   : > { %v8527_v35 = vadd.f32 %v8449_v28, %v17366_v4  ;;  %v17492_v32 = vadd.f32 %v8711_v44, %v8525_v61 }
 0xa08   : > { %v12567_v22 = vpop.f32.mrf.mxu1  ;;  %v12623_v40 = vpop.f32.mrf.mxu0 }
 0xa0a   : > { %v8452_v51 = vpop.f32.mrf.mxu1  ;;  %v8714_v56 = vpop.f32.mrf.mxu0 }
 0xa0b   : > { %v8528_v21 = vadd.f32 %v8452_v51, %v17373_v9  ;;  %v17495_v27 = vadd.f32 %v8714_v56, %v8526_v24 }
 0xa0c   : > { %v12568_v58 = vpop.f32.mrf.mxu1  ;;  %v12624_v18 = vpop.f32.mrf.mxu0 }
 0xa0e   : > { %v8457_v48 = vpop.f32.mrf.mxu1  ;;  %v8719_v16 = vpop.f32.mrf.mxu0 }
 0xa0f   : > { %v8529_v26 = vadd.f32 %v8457_v48, %v17378_v25  ;;  %v17498_v20 = vadd.f32 %v8719_v16, %v8527_v35 }
 0xa10   : > { %v12571_v5 = vpop.f32.mrf.mxu1  ;;  %v12627_v4 = vpop.f32.mrf.mxu0 }
 0xa12   : > { %v8460_v38 = vpop.f32.mrf.mxu1  ;;  %v8722_v3 = vpop.f32.mrf.mxu0 }
 0xa13   : > { %v8530_v50 = vadd.f32 %v8460_v38, %v17385_v54  ;;  %v17501_v46 = vadd.f32 %v8722_v3, %v8528_v21 }
 0xa14   : > { %v12572_v23 = vpop.f32.mrf.mxu1  ;;  %v12628_v9 = vpop.f32.mrf.mxu0 }
 0xa16   : > { %v8465_v2 = vpop.f32.mrf.mxu1  ;;  %v8727_v11 = vpop.f32.mrf.mxu0 }
 0xa17   : > { %v8531_v39 = vadd.f32 %v8465_v2, %v17390_v45  ;;  %v17504_v10 = vadd.f32 %v8727_v11, %v8529_v26 }
 0xa18   : > { %v12575_v0 = vpop.f32.mrf.mxu1  ;;  %v12631_v25 = vpop.f32.mrf.mxu0 }
 0xa1a   : > { %v8468_v12 = vpop.f32.mrf.mxu1  ;;  %v8730_v17 = vpop.f32.mrf.mxu0 }
 0xa1b   : > { %v8532_v14 = vadd.f32 %v8468_v12, %v17397_v49  ;;  %v17507_v30 = vadd.f32 %v8730_v17, %v8530_v50 }
 0xa1c   : > { %v12576_v29 = vpop.f32.mrf.mxu1  ;;  %v12632_v54 = vpop.f32.mrf.mxu0 }
 0xa1e   : > { %v8473_v6 = vpop.f32.mrf.mxu1  ;;  %v8735_v61 = vpop.f32.mrf.mxu0 }
 0xa1f   : > { %v8533_v19 = vadd.f32 %v8473_v6, %v17402_v13  ;;  %v17510_v37 = vadd.f32 %v8735_v61, %v8531_v39 }
 0xa20   : > { %v12579_v42 = vpop.f32.mrf.mxu1  ;;  %v12635_v45 = vpop.f32.mrf.mxu0 }
 0xa22   : > { %v8476_v15 = vpop.f32.mrf.mxu1  ;;  %v8738_v24 = vpop.f32.mrf.mxu0 }
 0xa23   : > { %v8534_v8 = vadd.f32 %v8476_v15, %v17409_v1  ;;  %v17513_v52 = vadd.f32 %v8738_v24, %v8532_v14 }
 0xa24   : > { %v12580_v28 = vpop.f32.mrf.mxu1  ;;  %v12636_v49 = vpop.f32.mrf.mxu0 }
 0xa26   : > { %v8481_v44 = vpop.f32.mrf.mxu1  ;;  %v8743_v35 = vpop.f32.mrf.mxu0 }
 0xa27   : > { %v8535_v22 = vadd.f32 %v8481_v44, %v17414_v47  ;;  %v17516_v40 = vadd.f32 %v8743_v35, %v8533_v19 }
 0xa28   : > { %v12583_v51 = vpop.f32.mrf.mxu1  ;;  %v12639_v13 = vpop.f32.mrf.mxu0 }
 0xa2a   : > { %v8484_v56 = vpop.f32.mrf.mxu1  ;;  %v8746_v21 = vpop.f32.mrf.mxu0 }
 0xa2b   : > { %v8536_v58 = vadd.f32 %v8484_v56, %v17421_v34  ;;  %v17519_v18 = vadd.f32 %v8746_v21, %v8534_v8 }
 0xa2c   : > { %v12584_v48 = vpop.f32.mrf.mxu1  ;;  %v12640_v1 = vpop.f32.mrf.mxu0 }
 0xa2e   : > { %v8489_v16 = vpop.f32.mrf.mxu1  ;;  %v8751_v26 = vpop.f32.mrf.mxu0 }
 0xa2f   : > { %v8537_v5 = vadd.f32 %v8489_v16, %v17426_v59  ;;  %v17522_v4 = vadd.f32 %v8751_v26, %v8535_v22 }
 0xa30   : > { %v12587_v38 = vpop.f32.mrf.mxu1  ;;  %v12643_v47 = vpop.f32.mrf.mxu0 }
 0xa32   : > { %v8492_v3 = vpop.f32.mrf.mxu1  ;;  %v8754_v50 = vpop.f32.mrf.mxu0 }
 0xa33   : > { %v8538_v23 = vadd.f32 %v8492_v3, %v17433_v43  ;;  %v17525_v9 = vadd.f32 %v8754_v50, %v8536_v58 }
 0xa34   : > { %v12588_v2 = vpop.f32.mrf.mxu1  ;;  %v12644_v34 = vpop.f32.mrf.mxu0 }
 0xa36   : > { %v8497_v11 = vpop.f32.mrf.mxu1  ;;  %v8759_v39 = vpop.f32.mrf.mxu0 }
 0xa37   : > { %v8539_v0 = vadd.f32 %v8497_v11, %v17438_v33  ;;  %v17528_v25 = vadd.f32 %v8759_v39, %v8537_v5 }
 0xa38   : > { %v12591_v12 = vpop.f32.mrf.mxu1  ;;  %v12647_v59 = vpop.f32.mrf.mxu0 }
 0xa3a   : > { %v8500_v17 = vpop.f32.mrf.mxu1  ;;  %v8762_v14 = vpop.f32.mrf.mxu0 }
 0xa3b   : > { %v8540_v29 = vadd.f32 %v8500_v17, %v17445_v31  ;;  %v17531_v54 = vadd.f32 %v8762_v14, %v8538_v23 }
 0xa3c   : > { %v12592_v6 = vpop.f32.mrf.mxu1  ;;  %v12648_v43 = vpop.f32.mrf.mxu0 }
 0xa3e   : > { %v8505_v61 = vpop.f32.mrf.mxu1  ;;  %v8767_v19 = vpop.f32.mrf.mxu0 }
 0xa3f   : > { %v8541_v42 = vadd.f32 %v8505_v61, %v17450_v63  ;;  %v17534_v45 = vadd.f32 %v8767_v19, %v8539_v0 }
 0xa40   : > { %v12595_v15 = vpop.f32.mrf.mxu1  ;;  %v12651_v33 = vpop.f32.mrf.mxu0 }
 0xa42   : > { %v8508_v24 = vpop.f32.mrf.mxu1  ;;  %v8770_v8 = vpop.f32.mrf.mxu0 }
 0xa43   : > { %v8542_v28 = vadd.f32 %v8508_v24, %v17456_v55  ;;  %v17537_v49 = vadd.f32 %v8770_v8, %v8540_v29 }
 0xa44   : > { %v12596_v44 = vpop.f32.mrf.mxu1  ;;  %v12652_v31 = vpop.f32.mrf.mxu0 }
 0xa46   : > { %v8513_v35 = vpop.f32.mrf.mxu1  ;;  %v8775_v22 = vpop.f32.mrf.mxu0 }
 0xa47   : > { %v8543_v51 = vadd.f32 %v8513_v35, %v17460_v53  ;;  %v17540_v13 = vadd.f32 %v8775_v22, %v8541_v42 }
 0xa48   : > { %v12599_v56 = vpop.f32.mrf.mxu1  ;;  %v12655_v63 = vpop.f32.mrf.mxu0 }
 0xa4a   : > { %v8516_v21 = vpop.f32.mrf.mxu1  ;;  %v8778_v58 = vpop.f32.mrf.mxu0 }
 0xa4b   : > { %v17542_v48 = vadd.f32 %v8778_v58, %v8542_v28 }
 0xa4c   : > { %v12600_v1 = vpop.f32.mrf.mxu1  ;;  %v12656_v16 = vpop.f32.mrf.mxu0 }
 0xa4e   : > { %v8783_v26 = vpop.f32.mrf.mxu0  ;;  %v8957_v55 = vpop.f32.mrf.mxu1 }
 0xa4f   : > { %v17544_v5 = vadd.f32 %v8783_v26, %v8543_v51  ;;  %v9059_v38 = vadd.f32 %v8957_v55, %v17471_v41 }
 0xa50   : > { %v12659_v47 = vpop.f32.mrf.mxu0  ;;  %v12671_v3 = vpop.f32.mrf.mxu1 }
 0xa52   : > { %v8786_v50 = vpop.f32.mrf.mxu0  ;;  %v8960_v53 = vpop.f32.mrf.mxu1 }
 0xa53   : > { %v9060_v23 = vadd.f32 %v8960_v53, %v17476_v7 }
 0xa54   : > { %v12660_v2 = vpop.f32.mrf.mxu0  ;;  %v12672_v34 = vpop.f32.mrf.mxu1 }
 0xa56   : > { %v8965_v11 = vpop.f32.mrf.mxu1  ;;  %v9227_v39 = vpop.f32.mrf.mxu0 }
 0xa57   : > { %v9061_v0 = vadd.f32 %v8965_v11, %v17480_v62  ;;  %v17549_v12 = vadd.f32 %v9227_v39, %v9059_v38  ;;  %v18697_v39 = vld [vmem:[#allocation25_spill] sm:$0xff] }
 0xa58   : > { %v12675_v59 = vpop.f32.mrf.mxu1  ;;  %v12731_v17 = vpop.f32.mrf.mxu0 }
 0xa59   : > { %v18698_v59 = vld [vmem:[#allocation24_spill] sm:$0xff] }
 0xa5a   : > { %v8968_v14 = vpop.f32.mrf.mxu1  ;;  %v9230_v29 = vpop.f32.mrf.mxu0  ;;  %v9356_v17 = vmul.f32 %v17549_v12, %v18698_v59 }
 0xa5b   : > { %v9062_v41 = vadd.f32 %v8968_v14, %v17483_v60  ;;  %v17552_v6 = vadd.f32 %v9230_v29, %v9060_v23  ;;  %v18699_v29 = vld [vmem:[#allocation8_spill] sm:$0xff] }
 0xa5c   : > { %v12676_v43 = vpop.f32.mrf.mxu1  ;;  %v12732_v61 = vpop.f32.mrf.mxu0 }
 0xa5e   : > { %v8973_v19 = vpop.f32.mrf.mxu1  ;;  %v9235_v7 = vpop.f32.mrf.mxu0 }
 0xa5f   : > { %v9063_v42 = vadd.f32 %v8973_v19, %v17486_v36  ;;  %v17555_v15 = vadd.f32 %v9235_v7, %v9061_v0  ;;  %v9357_v0 = vmul.f32 %v17552_v6, %v18697_v39 }
 0xa60   : > { %v12679_v33 = vpop.f32.mrf.mxu1  ;;  %v12735_v62 = vpop.f32.mrf.mxu0 }
 0xa61   : > { %v9382_v7 = vsel %vm18700_vm10, %v9357_v0, 0.0  ;;  %v9381_v62 = vsel %vm18702_vm5, %v9356_v17, 0.0  ;;  %vm18729_vm10 = vmmov %vm18593_vm0 }
 0xa62   : > { %v8976_v24 = vpop.f32.mrf.mxu1  ;;  %v9238_v8 = vpop.f32.mrf.mxu0  ;;  %vm18731_vm5 = vmmov %vm18593_vm0 }
 0xa63   : > { %v9064_v28 = vadd.f32 %v8976_v24, %v17489_v57  ;;  %v17558_v44 = vadd.f32 %v9238_v8, %v9062_v41  ;;  %v9358_v41 = vmul.f32 %v17555_v15, %v18699_v29 }
 0xa64   : > { %v12680_v31 = vpop.f32.mrf.mxu1  ;;  %v12736_v60 = vpop.f32.mrf.mxu0 }
 0xa65   : > { %v18704_v31 = vld [vmem:[#allocation9_spill] sm:$0xff] }
 0xa66   : > { %v8981_v35 = vpop.f32.mrf.mxu1  ;;  %v9243_v22 = vpop.f32.mrf.mxu0 }
 0xa67   : > { %v9065_v51 = vadd.f32 %v8981_v35, %v17492_v32  ;;  %v17561_v56 = vadd.f32 %v9243_v22, %v9063_v42  ;;  %v18701_v42 = vld [vmem:[#allocation28_spill] sm:$0xff]  ;;  %v9383_v22 = vadd.f32 %v9382_v7, %v9381_v62 }
 0xa68   : > { %v12683_v63 = vpop.f32.mrf.mxu1  ;;  %v12739_v36 = vpop.f32.mrf.mxu0  ;;  %v9359_v33 = vmul.f32 %v17558_v44, %v18701_v42 }
 0xa69   : > { %v9360_v60 = vmul.f32 %v17561_v56, %v18704_v31 }
 0xa6a   : > { %v8984_v21 = vpop.f32.mrf.mxu1  ;;  %v9246_v58 = vpop.f32.mrf.mxu0  ;;  %v9386_v36 = vsel %vm18705_vm9, %v9359_v33, 0.0  ;;  %vm18735_vm9 = vmmov %vm18593_vm0 }
 0xa6b   : > { %v9066_v1 = vadd.f32 %v8984_v21, %v17495_v27  ;;  %v17564_v16 = vadd.f32 %v9246_v58, %v9064_v28  ;;  %v9384_v28 = vsel %vm18703_vm6, %v9358_v41, 0.0  ;;  %v18706_v21 = vld [vmem:[#allocation26_spill] sm:$0xff]  ;;  %v18712_v41 = vld [vmem:[#allocation27_spill] sm:$0xff]  ;;  %vm18733_vm6 = vmmov %vm18593_vm0 }
 0xa6c   : > { %v12684_v26 = vpop.f32.mrf.mxu1  ;;  %v12740_v57 = vpop.f32.mrf.mxu0 }
 0xa6d   : > { %v9361_v58 = vmul.f32 %v17564_v16, %v18706_v21 }
 0xa6e   : > { %v8989_v55 = vpop.f32.mrf.mxu1  ;;  %v9251_v38 = vpop.f32.mrf.mxu0 }
 0xa6f   : > { %v9067_v47 = vadd.f32 %v8989_v55, %v17498_v20  ;;  %v17567_v3 = vadd.f32 %v9251_v38, %v9065_v51  ;;  %v9388_v55 = vsel %vm18707_vm11, %v9360_v60, 0.0  ;;  %v18708_v38 = vld [vmem:[#allocation10_spill] sm:$0xff]  ;;  %vm18737_vm11 = vmmov %vm18593_vm0 }
 0xa70   : > { %v12687_v50 = vpop.f32.mrf.mxu1  ;;  %v12743_v32 = vpop.f32.mrf.mxu0 }
 0xa72   : > { %v8992_v53 = vpop.f32.mrf.mxu1  ;;  %v9254_v23 = vpop.f32.mrf.mxu0 }
 0xa73   : > { %v9068_v2 = vadd.f32 %v8992_v53, %v17501_v46  ;;  %v17570_v34 = vadd.f32 %v9254_v23, %v9066_v1  ;;  %v9385_v1 = vadd.f32 %v9384_v28, %v9383_v22 }
 0xa74   : > { %v12688_v11 = vpop.f32.mrf.mxu1  ;;  %v12744_v27 = vpop.f32.mrf.mxu0 }
 0xa75   : > { %v9387_v32 = vadd.f32 %v9386_v36, %v9385_v1  ;;  %v18710_v11 = vld [vmem:[#allocation11_spill] sm:$0xff] }
 0xa76   : > { %v8997_v14 = vpop.f32.mrf.mxu1  ;;  %v9259_v20 = vpop.f32.mrf.mxu0  ;;  %v9363_v27 = vmul.f32 %v17570_v34, %v18710_v11 }
 0xa77   : > { %v9069_v43 = vadd.f32 %v8997_v14, %v17504_v10  ;;  %v17579_v61 = vadd.f32 %v9259_v20, %v9067_v47  ;;  %v9362_v47 = vmul.f32 %v17567_v3, %v18708_v38  ;;  %v9389_v0 = vadd.f32 %v9388_v55, %v9387_v32  ;;  %v18718_v55 = vld [vmem:[#allocation13_spill] sm:$0xff] }
 0xa78   : > { %v12691_v46 = vpop.f32.mrf.mxu1  ;;  %v12747_v19 = vpop.f32.mrf.mxu0  ;;  %v9394_v62 = vsel %vm18713_vm12, %v9363_v27, 0.0  ;;  %v18719_v27 = vld [vmem:[#allocation30_spill] sm:$0xff]  ;;  %vm18743_vm12 = vmmov %vm18593_vm0 }
 0xa79   : > { %v9392_v20 = vsel %vm18711_vm14, %v9362_v47, 0.0  ;;  %v9364_v46 = vmul.f32 %v17579_v61, %v18712_v41  ;;  %vm18741_vm14 = vmmov %vm18593_vm0 }
 0xa7a   : > { %v9000_v24 = vpop.f32.mrf.mxu1  ;;  %v9262_v8 = vpop.f32.mrf.mxu0 }
 0xa7b   : > { %v9070_v10 = vadd.f32 %v9000_v24, %v17507_v30  ;;  %v17589_v35 = vadd.f32 %v9262_v8, %v9068_v2  ;;  %v9390_v2 = vsel %vm18709_vm13, %v9361_v58, 0.0  ;;  %v18714_v24 = vld [vmem:[#allocation12_spill] sm:$0xff]  ;;  %vm18739_vm13 = vmmov %vm18593_vm0 }
 0xa7c   : > { %v12692_v51 = vpop.f32.mrf.mxu1  ;;  %v12748_v63 = vpop.f32.mrf.mxu0  ;;  %v9391_v19 = vadd.f32 %v9390_v2, %v9389_v0 }
 0xa7d   : > { %v9365_v8 = vmul.f32 %v17589_v35, %v18714_v24  ;;  %v9396_v51 = vsel %vm18715_vm7, %v9364_v46, 0.0  ;;  %v18716_v63 = vld [vmem:[#allocation29_spill] sm:$0xff]  ;;  %vm18745_vm7 = vmmov %vm18593_vm0 }
 0xa7e   : > { %v9005_v26 = vpop.f32.mrf.mxu1  ;;  %v9267_v57 = vpop.f32.mrf.mxu0  ;;  %v9393_v28 = vadd.f32 %v9392_v20, %v9391_v19  ;;  %v18721_v19 = vld [vmem:[#allocation14_spill] sm:$0xff] }
 0xa7f   : > { %v9071_v30 = vadd.f32 %v9005_v26, %v17510_v37  ;;  %v17598_v50 = vadd.f32 %v9267_v57, %v9069_v43  ;;  %v9398_v57 = vsel %vm18717_vm8, %v9365_v8, 0.0  ;;  %vm18746_vm8 = vmmov %vm18593_vm0 }
 0xa80   : > { %v12695_v53 = vpop.f32.mrf.mxu1  ;;  %v12751_v23 = vpop.f32.mrf.mxu0  ;;  %v9395_v58 = vadd.f32 %v9394_v62, %v9393_v28 }
 0xa81   : > { %v9366_v36 = vmul.f32 %v17598_v50, %v18716_v63 }
 0xa82   : > { %v9008_v17 = vpop.f32.mrf.mxu1  ;;  %v9270_v14 = vpop.f32.mrf.mxu0  ;;  %v9397_v32 = vadd.f32 %v9396_v51, %v9395_v58  ;;  %v18724_v58 = vld [vmem:[#allocation15_spill] sm:$0xff] }
 0xa83   : > { %v9072_v37 = vadd.f32 %v9008_v17, %v17513_v52  ;;  %v17607_v43 = vadd.f32 %v9270_v14, %v9070_v10  ;;  %v9400_v2 = vsel %vm18593_vm0, %v9366_v36, 0.0 }
 0xa84   : > { %v12696_v7 = vpop.f32.mrf.mxu1  ;;  %v12752_v33 = vpop.f32.mrf.mxu0  ;;  %v9399_v17 = vadd.f32 %v9398_v57, %v9397_v32 }
 0xa85   : > { %v9367_v47 = vmul.f32 %v17607_v43, %v18718_v55 }
 0xa86   : > { %v9013_v60 = vpop.f32.mrf.mxu1  ;;  %v9275_v22 = vpop.f32.mrf.mxu0  ;;  %v9401_v33 = vadd.f32 %v9400_v2, %v9399_v17 }
 0xa87   : > { %v9073_v52 = vadd.f32 %v9013_v60, %v17516_v40  ;;  %v17616_v10 = vadd.f32 %v9275_v22, %v9071_v30  ;;  %v9402_v46 = vsel %vm18720_vm15, %v9367_v47, 0.0  ;;  %vm18747_vm15 = vmmov %vm18593_vm0 }
 0xa88   : > { %v12699_v1 = vpop.f32.mrf.mxu1  ;;  %v12755_v26 = vpop.f32.mrf.mxu0 }
 0xa89   : > { %v9368_v0 = vmul.f32 %v17616_v10, %v18719_v27 }
 0xa8a   : > { %v9016_v53 = vpop.f32.mrf.mxu1  ;;  %v9278_v23 = vpop.f32.mrf.mxu0 }
 0xa8b   : > { %v9074_v40 = vadd.f32 %v9016_v53, %v17519_v18  ;;  %v17625_v30 = vadd.f32 %v9278_v23, %v9072_v37  ;;  %v9404_v28 = vsel %vm18722_vm1, %v9368_v0, 0.0  ;;  %v9403_v18 = vadd.f32 %v9402_v46, %v9401_v33  ;;  %v18726_v0 = vld [vmem:[#allocation16_spill] sm:$0xff]  ;;  %vm18748_vm1 = vmmov %vm18593_vm0 }
 0xa8c   : > { %v12700_v14 = vpop.f32.mrf.mxu1  ;;  %v12756_v20 = vpop.f32.mrf.mxu0 }
 0xa8d   : > { %v9369_v7 = vmul.f32 %v17625_v30, %v18721_v19  ;;  %v9405_v26 = vadd.f32 %v9404_v28, %v9403_v18  ;;  %v18728_v18 = vld [vmem:[#allocation31_spill] sm:$0xff] }
 0xa8e   : > { %v9021_v62 = vpop.f32.mrf.mxu1  ;;  %v9283_v8 = vpop.f32.mrf.mxu0 }
 0xa8f   : > { %v9075_v60 = vadd.f32 %v9021_v62, %v17522_v4  ;;  %v17632_v22 = vadd.f32 %v9283_v8, %v9073_v52  ;;  %v9406_v36 = vsel %vm18723_vm2, %v9369_v7, 0.0  ;;  %vm18749_vm2 = vmmov %vm18593_vm0 }
 0xa90   : > { %v12703_v37 = vpop.f32.mrf.mxu1  ;;  %v12759_v51 = vpop.f32.mrf.mxu0  ;;  %v9407_v4 = vadd.f32 %v9406_v36, %v9405_v26 }
 0xa91   : > { %v9370_v1 = vmul.f32 %v17632_v22, %v18724_v58 }
 0xa92   : > { %v9024_v57 = vpop.f32.mrf.mxu1  ;;  %v9286_v47 = vpop.f32.mrf.mxu0 }
 0xa93   : > { %v9408_v32 = vsel %vm18725_vm3, %v9370_v1, 0.0  ;;  %v9076_v53 = vadd.f32 %v9024_v57, %v17525_v9  ;;  %v17639_v23 = vadd.f32 %v9286_v47, %v9074_v40  ;;  %vm18750_vm3 = vmmov %vm18593_vm0 }
 0xa94   : > { %v12704_v52 = vpop.f32.mrf.mxu1  ;;  %v12760_v2 = vpop.f32.mrf.mxu0  ;;  %v9409_v14 = vadd.f32 %v9408_v32, %v9407_v4  ;;  %v18730_v32 = vld [vmem:[#allocation17_spill] sm:$0xff] }
 0xa95   : > { %v9371_v17 = vmul.f32 %v17639_v23, %v18726_v0 }
 0xa96   : > { %v9029_v20 = vpop.f32.mrf.mxu1  ;;  %v9291_v46 = vpop.f32.mrf.mxu0 }
 0xa97   : > { %v9410_v7 = vsel %vm18727_vm4, %v9371_v17, 0.0  ;;  %v17644_v33 = vadd.f32 %v9291_v46, %v9075_v60  ;;  %v9077_v47 = vadd.f32 %v9029_v20, %v17528_v25  ;;  %vm18751_vm4 = vmmov %vm18593_vm0 }
 0xa98   : > { %v9411_v62 = vadd.f32 %v9410_v7, %v9409_v14  ;;  %v12707_v8 = vpop.f32.mrf.mxu1  ;;  %v12763_v28 = vpop.f32.mrf.mxu0 }
 0xa99   : > { %v9372_v9 = vmul.f32 %v17644_v33, %v18728_v18  ;;  %v18732_v8 = vld [vmem:[#allocation18_spill] sm:$0xff] }
 0xa9a   : > { %v9032_v40 = vpop.f32.mrf.mxu1  ;;  %v9294_v37 = vpop.f32.mrf.mxu0 }
 0xa9b   : > { %v9412_v51 = vsel %vm18729_vm10, %v9372_v9, 0.0  ;;  %v17649_v36 = vadd.f32 %v9294_v37, %v9076_v53  ;;  %v9078_v53 = vadd.f32 %v9032_v40, %v17531_v54  ;;  %vm18752_vm10 = vmmov %vm18593_vm0 }
 0xa9c   : > { %v9413_v1 = vadd.f32 %v9412_v51, %v9411_v62  ;;  %v12708_v26 = vpop.f32.mrf.mxu1  ;;  %v12764_v57 = vpop.f32.mrf.mxu0 }
 0xa9d   : > { %v9373_v60 = vmul.f32 %v17649_v36, %v18730_v32 }
 0xa9e   : > { %v9037_v4 = vpop.f32.mrf.mxu1  ;;  %v9299_v52 = vpop.f32.mrf.mxu0 }
 0xa9f   : > { %v9414_v2 = vsel %vm18731_vm5, %v9373_v60, 0.0  ;;  %v17655_v17 = vadd.f32 %v9299_v52, %v9077_v47  ;;  %v9079_v57 = vadd.f32 %v9037_v4, %v17534_v45  ;;  %v18734_v47 = vld [vmem:[#allocation19_spill] sm:$0xff]  ;;  %vm18753_vm5 = vmmov %vm18593_vm0 }
 0xaa0   : > { %v9415_v14 = vadd.f32 %v9414_v2, %v9413_v1  ;;  %v12711_v46 = vpop.f32.mrf.mxu1  ;;  %v12767_v7 = vpop.f32.mrf.mxu0 }
 0xaa1   : > { %v9374_v62 = vmul.f32 %v17655_v17, %v18732_v8 }
 0xaa2   : > { %v9040_v28 = vpop.f32.mrf.mxu1  ;;  %v9302_v9 = vpop.f32.mrf.mxu0 }
 0xaa3   : > { %v9416_v25 = vsel %vm18733_vm6, %v9374_v62, 0.0  ;;  %v17661_v20 = vadd.f32 %v9302_v9, %v9078_v53  ;;  %v9080_v53 = vadd.f32 %v9040_v28, %v17537_v49  ;;  %v18736_v62 = vld [vmem:[#allocation20_spill] sm:$0xff]  ;;  %vm18754_vm6 = vmmov %vm18593_vm0 }
 0xaa4   : > { %v9417_v37 = vadd.f32 %v9416_v25, %v9415_v14  ;;  %v12712_v51 = vpop.f32.mrf.mxu1  ;;  %v12768_v26 = vpop.f32.mrf.mxu0 }
 0xaa5   : > { %v9375_v1 = vmul.f32 %v17661_v20, %v18734_v47 }
 0xaa6   : > { %v9045_v60 = vpop.f32.mrf.mxu1  ;;  %v9307_v52 = vpop.f32.mrf.mxu0 }
 0xaa7   : > { %v9418_v54 = vsel %vm18735_vm9, %v9375_v1, 0.0  ;;  %v17667_v40 = vadd.f32 %v9307_v52, %v9079_v57  ;;  %v9081_v57 = vadd.f32 %v9045_v60, %v17540_v13  ;;  %v18738_v1 = vld [vmem:[#allocation21_spill] sm:$0xff]  ;;  %vm18755_vm9 = vmmov %vm18593_vm0 }
 0xaa8   : > { %v9419_v2 = vadd.f32 %v9418_v54, %v9417_v37  ;;  %v12715_v46 = vpop.f32.mrf.mxu1  ;;  %v12771_v7 = vpop.f32.mrf.mxu0 }
 0xaa9   : > { %v9376_v14 = vmul.f32 %v17667_v40, %v18736_v62 }
 0xaaa   : > { %v9048_v9 = vpop.f32.mrf.mxu1  ;;  %v9310_v25 = vpop.f32.mrf.mxu0 }
 0xaab   : > { %v9420_v45 = vsel %vm18737_vm11, %v9376_v14, 0.0  ;;  %v17673_v4 = vadd.f32 %v9310_v25, %v9080_v53  ;;  %v9082_v53 = vadd.f32 %v9048_v9, %v17542_v48  ;;  %v18740_v14 = vld [vmem:[#allocation32_spill] sm:$0xff]  ;;  %vm18756_vm11 = vmmov %vm18593_vm0 }
 0xaac   : > { %v9421_v51 = vadd.f32 %v9420_v45, %v9419_v2  ;;  %v12716_v26 = vpop.f32.mrf.mxu1  ;;  %v12772_v47 = vpop.f32.mrf.mxu0 }
 0xaad   : > { %v9377_v37 = vmul.f32 %v17673_v4, %v18738_v1 }
 0xaae   : > { %v9053_v52 = vpop.f32.mrf.mxu1  ;;  %v9315_v54 = vpop.f32.mrf.mxu0 }
 0xaaf   : > { %v9422_v49 = vsel %vm18739_vm13, %v9377_v37, 0.0  ;;  %v17679_v28 = vadd.f32 %v9315_v54, %v9081_v57  ;;  %v9083_v57 = vadd.f32 %v9053_v52, %v17544_v5  ;;  %v18742_v37 = vld [vmem:[#allocation22_spill] sm:$0xff]  ;;  %vm18757_vm13 = vmmov %vm18593_vm0 }
 0xab0   : > { %v9423_v46 = vadd.f32 %v9422_v49, %v9421_v51  ;;  %v12775_v7 = vpop.f32.mrf.mxu0  ;;  %v12719_v62 = vpop.f32.mrf.mxu1 }
 0xab1   : > { %v9378_v2 = vmul.f32 %v17679_v28, %v18740_v14  ;;  %v18744_v7 = vld [vmem:[#allocation23_spill] sm:$0xff] }
 0xab2   : > { %v9318_v47 = vpop.f32.mrf.mxu0  ;;  %v9056_v25 = vpop.f32.mrf.mxu1 }
 0xab3   : > { %v9424_v13 = vsel %vm18741_vm14, %v9378_v2, 0.0  ;;  %v17685_v60 = vadd.f32 %v9318_v47, %v9082_v53  ;;  %vm18758_vm14 = vmmov %vm18593_vm0 }
 0xab4   : > { %v9425_v45 = vadd.f32 %v9424_v13, %v9423_v46  ;;  %v12776_v26 = vpop.f32.mrf.mxu0  ;;  %v12720_v1 = vpop.f32.mrf.mxu1 }
 0xab5   : > { %v9379_v51 = vmul.f32 %v17685_v60, %v18742_v37 }
 0xab6   : > { %v9323_v62 = vpop.f32.mrf.mxu0 }
 0xab7   : > { %v9426_v48 = vsel %vm18743_vm12, %v9379_v51, 0.0  ;;  %v17691_v9 = vadd.f32 %v9323_v62, %v9083_v57  ;;  %vm18759_vm12 = vmmov %vm18593_vm0 }
 0xab8   : > { %v9427_v54 = vadd.f32 %v9426_v48, %v9425_v45  ;;  %v12779_v49 = vpop.f32.mrf.mxu0 }
 0xab9   : > { %v9380_v2 = vmul.f32 %v17691_v9, %v18744_v7 }
 0xaba   : > { %v9326_v53 = vpop.f32.mrf.mxu0 }
 0xabb   : > { %v9428_v46 = vsel %vm18745_vm7, %v9380_v2, 0.0  ;;  %vm18761_vm7 = vmmov %vm18593_vm0 }
 0xabc   : > { %v9429_v47 = vadd.f32 %v9428_v46, %v9427_v54  ;;  %v12780_v1 = vpop.f32.mrf.mxu0 }
 0xabe   : > { %v9430_v25 = vrot.slane %v9429_v47, 4 }
 0xac0   : > { %v9431_v5 = vadd.f32 %v9430_v25, %v9429_v47 }
 0xac2   : > { %v9432_v52 = vrot.slane %v9431_v5, 2 }
 0xac4   : > { %v9433_v13 = vadd.f32 %v9432_v52, %v9431_v5 }
 0xac6   : > { %v9434_v26 = vrot.slane %v9433_v13, 1 }
 0xac8   : > { %v9435_v37 = vadd.f32 %v9434_v26, %v9433_v13 }
 0xaca   : > { %v17696_v14 = vmul.f32 0.0078125, %v9435_v37 }
 0xacc   : > { %v9451_v45 = vsub.f32 %v17632_v22, %v17696_v14  ;;  %v9452_v57 = vsub.f32 %v17639_v23, %v17696_v14  ;;  %v9453_v51 = vsub.f32 %v17644_v33, %v17696_v14  ;;  %v9454_v62 = vsub.f32 %v17649_v36, %v17696_v14 }
 0xacd   : > { %v9455_v48 = vsub.f32 %v17655_v17, %v17696_v14  ;;  %v9456_v54 = vsub.f32 %v17661_v20, %v17696_v14  ;;  %v9457_v37 = vsub.f32 %v17667_v40, %v17696_v14  ;;  %v9458_v49 = vsub.f32 %v17673_v4, %v17696_v14  ;;  %v18764_v20 = vld [vmem:[#allocation21_spill] sm:$0xff] }
 0xace   : > { %v9459_v2 = vsub.f32 %v17679_v28, %v17696_v14  ;;  %v9460_v53 = vsub.f32 %v17685_v60, %v17696_v14  ;;  %v9437_v46 = vsub.f32 %v17549_v12, %v17696_v14  ;;  %v9461_v47 = vsub.f32 %v17691_v9, %v17696_v14 }
 0xacf   : > { %v9438_v1 = vsub.f32 %v17552_v6, %v17696_v14  ;;  %v9439_v25 = vsub.f32 %v17555_v15, %v17696_v14  ;;  %v9440_v52 = vsub.f32 %v17558_v44, %v17696_v14  ;;  %v9441_v12 = vsub.f32 %v17561_v56, %v17696_v14 }
 0xad0   : > { %v17727_v5 = vmul.f32 %v9437_v46, %v18698_v59  ;;  %v9442_v15 = vsub.f32 %v17564_v16, %v17696_v14  ;;  %v9444_v16 = vsub.f32 %v17570_v34, %v17696_v14 }
 0xad1   : > { %v17732_v13 = vmul.f32 %v9438_v1, %v18697_v39  ;;  %v17737_v26 = vmul.f32 %v9439_v25, %v18699_v29  ;;  %v17744_v59 = vmul.f32 %v9440_v52, %v18701_v42  ;;  %v9443_v39 = vsub.f32 %v17567_v3, %v17696_v14 }
 0xad2   : > { %v9487_v6 = vmul.f32 %v17727_v5, %v17727_v5  ;;  %v17751_v56 = vmul.f32 %v9441_v12, %v18704_v31  ;;  %v17759_v42 = vmul.f32 %v9442_v15, %v18706_v21  ;;  %v9445_v31 = vsub.f32 %v17579_v61, %v17696_v14 }
 0xad3   : > { %v9488_v44 = vmul.f32 %v17732_v13, %v17732_v13  ;;  %v9489_v29 = vmul.f32 %v17737_v26, %v17737_v26  ;;  %v9490_v1 = vmul.f32 %v17744_v59, %v17744_v59  ;;  %v17767_v52 = vmul.f32 %v9443_v39, %v18708_v38 }
 0xad4   : > { %v9512_v46 = vsel %vm18746_vm8, %v9487_v6, 0.0  ;;  %v9491_v12 = vmul.f32 %v17751_v56, %v17751_v56  ;;  %v9446_v21 = vsub.f32 %v17589_v35, %v17696_v14  ;;  %v17775_v15 = vmul.f32 %v9444_v16, %v18710_v11  ;;  %vm18763_vm8 = vmmov %vm18593_vm0 }
 0xad5   : > { %v9513_v25 = vsel %vm18593_vm0, %v9488_v44, 0.0  ;;  %v9515_v34 = vsel %vm18747_vm15, %v9489_v29, 0.0  ;;  %v9492_v44 = vmul.f32 %v17759_v42, %v17759_v42  ;;  %v9517_v61 = vsel %vm18748_vm1, %v9490_v1, 0.0  ;;  %vm18766_vm15 = vmmov %vm18593_vm0 }
 0xad6   : > { %v9514_v3 = vadd.f32 %v9513_v25, %v9512_v46  ;;  %v9447_v38 = vsub.f32 %v17598_v50, %v17696_v14  ;;  %v17783_v39 = vmul.f32 %v9445_v31, %v18712_v41  ;;  %v9493_v29 = vmul.f32 %v17767_v52, %v17767_v52  ;;  %vm18768_vm1 = vmmov %vm18593_vm0 }
 0xad7   : > { %v9519_v35 = vsel %vm18749_vm2, %v9491_v12, 0.0  ;;  %v9448_v11 = vsub.f32 %v17607_v43, %v17696_v14  ;;  %v17791_v16 = vmul.f32 %v9446_v21, %v18714_v24  ;;  %v9494_v1 = vmul.f32 %v17775_v15, %v17775_v15  ;;  %vm18769_vm2 = vmmov %vm18593_vm0 }
 0xad8   : > { %v9516_v6 = vadd.f32 %v9515_v34, %v9514_v3  ;;  %v9521_v50 = vsel %vm18750_vm3, %v9492_v44, 0.0  ;;  %v9449_v41 = vsub.f32 %v17616_v10, %v17696_v14  ;;  %v17799_v31 = vmul.f32 %v9447_v38, %v18716_v63  ;;  %vm18770_vm3 = vmmov %vm18593_vm0 }
 0xad9   : > { %v9495_v12 = vmul.f32 %v17783_v39, %v17783_v39  ;;  %v9523_v43 = vsel %vm18751_vm4, %v9493_v29, 0.0  ;;  %v9450_v24 = vsub.f32 %v17625_v30, %v17696_v14  ;;  %v9496_v21 = vmul.f32 %v17791_v16, %v17791_v16  ;;  %vm18771_vm4 = vmmov %vm18593_vm0 }
 0xada   : > { %v9518_v46 = vadd.f32 %v9517_v61, %v9516_v6  ;;  %v17807_v6 = vmul.f32 %v9448_v11, %v18718_v55  ;;  %v9525_v10 = vsel %vm18752_vm10, %v9494_v1, 0.0  ;;  %v17813_v63 = vmul.f32 %v9449_v41, %v18719_v27  ;;  %vm18772_vm10 = vmmov %vm18593_vm0 }
 0xadb   : > { %v9497_v61 = vmul.f32 %v17799_v31, %v17799_v31  ;;  %v17819_v30 = vmul.f32 %v9450_v24, %v18721_v19  ;;  %v9529_v29 = vsel %vm18754_vm6, %v9496_v21, 0.0  ;;  %v17828_v27 = vmul.f32 %v9451_v45, %v18724_v58 }
 0xadc   : > { %v9520_v25 = vadd.f32 %v9519_v35, %v9518_v46  ;;  %v9527_v46 = vsel %vm18753_vm5, %v9495_v12, 0.0  ;;  %v9498_v55 = vmul.f32 %v17807_v6, %v17807_v6  ;;  %v17837_v19 = vmul.f32 %v9452_v57, %v18726_v0  ;;  %vm18773_vm5 = vmmov %vm18593_vm0 }
 0xadd   : > { %v9531_v11 = vsel %vm18755_vm9, %v9497_v61, 0.0  ;;  %v17846_v58 = vmul.f32 %v9453_v51, %v18728_v18  ;;  %v9501_v45 = vmul.f32 %v17828_v27, %v17828_v27  ;;  %v17855_v0 = vmul.f32 %v9454_v62, %v18730_v32  ;;  %v18760_v32 = vld [vmem:[#allocation19_spill] sm:$0xff] }
 0xade   : > { %v9522_v3 = vadd.f32 %v9521_v50, %v9520_v25  ;;  %v9499_v25 = vmul.f32 %v17813_v63, %v17813_v63  ;;  %v9500_v50 = vmul.f32 %v17819_v30, %v17819_v30  ;;  %v9502_v57 = vmul.f32 %v17837_v19, %v17837_v19 }
 0xadf   : > { %v17864_v18 = vmul.f32 %v9455_v48, %v18732_v8  ;;  %v9503_v51 = vmul.f32 %v17846_v58, %v17846_v58  ;;  %v17873_v62 = vmul.f32 %v9456_v54, %v18760_v32  ;;  %v18762_v8 = vld [vmem:[#allocation20_spill] sm:$0xff]  ;;  %v9483_v54 = vmul.f32 %v9458_v49, %v18764_v20 }
 0xae0   : > { %v9524_v34 = vadd.f32 %v9523_v43, %v9522_v3  ;;  %v9533_v3 = vsel %vm18756_vm11, %v9498_v55, 0.0  ;;  %v9535_v41 = vsel %vm18757_vm13, %v9499_v25, 0.0  ;;  %v9537_v12 = vsel %vm18758_vm14, %v9500_v50, 0.0  ;;  %v18765_v55 = vld [vmem:[#allocation32_spill] sm:$0xff]  ;;  %v18767_v25 = vld [vmem:[#allocation22_spill] sm:$0xff] }
 0xae1   : > { %v9539_v43 = vsel %vm18759_vm12, %v9501_v45, 0.0  ;;  %v9541_v24 = vsel %vm18761_vm7, %v9502_v57, 0.0  ;;  %v9482_v48 = vmul.f32 %v9457_v37, %v18762_v8  ;;  %v9505_v21 = vmul.f32 %v17864_v18, %v17864_v18 }
 0xae2   : > { %v9526_v44 = vadd.f32 %v9525_v10, %v9524_v34  ;;  %v9504_v34 = vmul.f32 %v17855_v0, %v17855_v0  ;;  %v9543_v10 = vsel %vm18763_vm8, %v9503_v51, 0.0  ;;  %v9506_v61 = vmul.f32 %v17873_v62, %v17873_v62 }
 0xae3   : > { %v9484_v40 = vmul.f32 %v9459_v2, %v18765_v55  ;;  %v9507_v37 = vmul.f32 %v9482_v48, %v9482_v48  ;;  %v9485_v4 = vmul.f32 %v9460_v53, %v18767_v25  ;;  %v9508_v49 = vmul.f32 %v9483_v54, %v9483_v54 }
 0xae4   : > { %v9528_v38 = vadd.f32 %v9527_v46, %v9526_v44  ;;  %v9545_v46 = vsel %vm18593_vm0, %v9504_v34, 0.0  ;;  %v9486_v50 = vmul.f32 %v9461_v47, %v18744_v7  ;;  %v17934_v25 = vstv %s10572_s22 }
 0xae5   : > { %v9509_v28 = vmul.f32 %v9484_v40, %v9484_v40  ;;  %v9551_v2 = vsel %vm18769_vm2, %v9507_v37, 0.0  ;;  %v9553_v45 = vsel %vm18770_vm3, %v9508_v49, 0.0  ;;  %vm9885_vm0 = vcmask 519168  }
 0xae6   : > { %v9530_v35 = vadd.f32 %v9529_v29, %v9528_v38  ;;  %v9547_v29 = vsel %vm18766_vm15, %v9505_v21, 0.0 }
 0xae7   : > { %v9555_v60 = vsel %vm18771_vm4, %v9509_v28, 0.0 }
 0xae8   : > { %v9532_v1 = vadd.f32 %v9531_v11, %v9530_v35  ;;  %v9549_v11 = vsel %vm18768_vm1, %v9506_v61, 0.0 }
 0xaea   : > { %v9534_v22 = vadd.f32 %v9533_v3, %v9532_v1 }
 0xaec   : > { %v9536_v23 = vadd.f32 %v9535_v41, %v9534_v22  ;;  %v9510_v22 = vmul.f32 %v9485_v4, %v9485_v4 }
 0xaee   : > { %v9538_v33 = vadd.f32 %v9537_v12, %v9536_v23  ;;  %v9511_v23 = vmul.f32 %v9486_v50, %v9486_v50  ;;  %v9557_v57 = vsel %vm18772_vm10, %v9510_v22, 0.0 }
 0xaf0   : > { %v9540_v36 = vadd.f32 %v9539_v43, %v9538_v33  ;;  %v9559_v33 = vsel %vm18773_vm5, %v9511_v23, 0.0 }
 0xaf2   : > { %v9542_v17 = vadd.f32 %v9541_v24, %v9540_v36 }
 0xaf4   : > { %v9544_v44 = vadd.f32 %v9543_v10, %v9542_v17 }
 0xaf6   : > { %v9546_v38 = vadd.f32 %v9545_v46, %v9544_v44 }
 0xaf8   : > { %v9548_v35 = vadd.f32 %v9547_v29, %v9546_v38 }
 0xafa   : > { %v9550_v1 = vadd.f32 %v9549_v11, %v9548_v35 }
 0xafc   : > { %v9552_v3 = vadd.f32 %v9551_v2, %v9550_v1 }
 0xafe   : > { %v9554_v41 = vadd.f32 %v9553_v45, %v9552_v3 }
 0xb00   : > { %v9556_v53 = vadd.f32 %v9555_v60, %v9554_v41 }
 0xb02   : > { %v9558_v12 = vadd.f32 %v9557_v57, %v9556_v53 }
 0xb04   : > { %v9560_v51 = vadd.f32 %v9559_v33, %v9558_v12 }
 0xb06   : > { %v9561_v14 = vrot.slane %v9560_v51, 4 }
 0xb08   : > { %v9562_v9 = vadd.f32 %v9561_v14, %v9560_v51 }
 0xb0a   : > { %v9563_v7 = vrot.slane %v9562_v9, 2 }
 0xb0c   : > { %v9564_v47 = vadd.f32 %v9563_v7, %v9562_v9 }
 0xb0e   : > { %v9565_v43 = vrot.slane %v9564_v47, 1 }
 0xb10   : > { %v9566_v36 = vadd.f32 %v9565_v43, %v9564_v47 }
 0xb12   : > { %v9567_v32 = vmul.f32 0.0078125, %v9566_v36 }
 0xb14   : > { %v9568_v34 = vadd.f32 1e-05, %v9567_v32  ;;  %v9657_v32 = vld [vmem:[#allocation4] sm:$0xff] }
 0xb16   : > { %12983 = vrsqrt.f32 %v9568_v34  ;;  %v9658_v34 = vld [vmem:[#allocation4 + $0x8] sm:$0xff] }
 0xb23   : > { %v12984_v24 = vpop.eup %12983 }
 0xb24   : > { %v9570_v17 = vmul.f32 %v12984_v24, %v17727_v5  ;;  %v9571_v8 = vmul.f32 %v12984_v24, %v17732_v13  ;;  %v9572_v21 = vmul.f32 %v12984_v24, %v17737_v26  ;;  %v9573_v10 = vmul.f32 %v12984_v24, %v17744_v59 }
 0xb25   : > { %v9574_v44 = vmul.f32 %v12984_v24, %v17751_v56  ;;  %v9575_v20 = vmul.f32 %v12984_v24, %v17759_v42  ;;  %v9576_v61 = vmul.f32 %v12984_v24, %v17767_v52  ;;  %v9577_v46 = vmul.f32 %v12984_v24, %v17775_v15  ;;  %v10570_v56 = vld [vmem:[%s18252_s10] ss:$0 sm:$0xff] }
 0xb26   : > { %v9578_v38 = vmul.f32 %v12984_v24, %v17783_v39  ;;  %v9581_v55 = vmul.f32 %v12984_v24, %v17807_v6  ;;  %v9582_v5 = vmul.f32 %v12984_v24, %v17813_v63  ;;  %v9583_v13 = vmul.f32 %v12984_v24, %v17819_v30 }
 0xb27   : > { %v9584_v26 = vmul.f32 %v12984_v24, %v17828_v27  ;;  %v9585_v59 = vmul.f32 %v12984_v24, %v17837_v19  ;;  %v9586_v42 = vmul.f32 %v12984_v24, %v17846_v58  ;;  %v9587_v52 = vmul.f32 %v12984_v24, %v17855_v0 }
 0xb28   : > { %v9588_v15 = vmul.f32 %v12984_v24, %v17864_v18  ;;  %v9589_v39 = vmul.f32 %v12984_v24, %v17873_v62  ;;  %v9590_v6 = vmul.f32 %v12984_v24, %v9482_v48  ;;  %v9591_v63 = vmul.f32 %v12984_v24, %v9483_v54 }
 0xb29   : > { %v9592_v37 = vmul.f32 %v12984_v24, %v9484_v40  ;;  %v9593_v30 = vmul.f32 %v12984_v24, %v9485_v4  ;;  %v9579_v27 = vmul.f32 %v12984_v24, %v17791_v16  ;;  %v9580_v19 = vmul.f32 %v12984_v24, %v17799_v31  ;;  %v10571_v16 = vld [vmem:[%s18253_s11] ss:$0 sm:$0xff] }
 0xb2a   : > { %v9594_v29 = vmul.f32 %v12984_v24, %v9486_v50  ;;  %v9601_v35 = vmul.f32 %v10570_v56, %v9570_v17  ;;  %v9602_v49 = vmul.f32 %v10570_v56, %v9571_v8  ;;  %v9603_v58 = vmul.f32 %v10570_v56, %v9572_v21 }
 0xb2b   : > { %v9604_v11 = vmul.f32 %v10570_v56, %v9573_v10  ;;  %v9605_v0 = vmul.f32 %v10570_v56, %v9574_v44  ;;  %v9606_v1 = vmul.f32 %v10570_v56, %v9575_v20  ;;  %v9607_v18 = vmul.f32 %v10570_v56, %v9576_v61  ;;  %v9659_v10 = vld [vmem:[#allocation4 + $0x10] sm:$0xff]  ;;  %v9660_v44 = vld [vmem:[#allocation4 + $0x18] sm:$0xff]  ;;  %v9661_v20 = vld [vmem:[#allocation4 + $0x20] sm:$0xff] }
 0xb2c   : > { %v9608_v28 = vmul.f32 %v10570_v56, %v9577_v46  ;;  %v9609_v62 = vmul.f32 %v10570_v56, %v9578_v38  ;;  %v9610_v48 = vmul.f32 %v10570_v56, %v9579_v27  ;;  %v9611_v54 = vmul.f32 %v10570_v56, %v9580_v19  ;;  %v9668_v19 = vld [vmem:[#allocation4 + $0x58] sm:$0xff] }
 0xb2d   : > { %v9612_v40 = vmul.f32 %v10570_v56, %v9581_v55  ;;  %v9613_v4 = vmul.f32 %v10570_v56, %v9582_v5  ;;  %v9614_v31 = vmul.f32 %v10570_v56, %v9583_v13  ;;  %v9615_v50 = vmul.f32 %v10570_v56, %v9584_v26  ;;  %v9662_v5 = vld [vmem:[#allocation4 + $0x28] sm:$0xff]  ;;  %v9663_v13 = vld [vmem:[#allocation4 + $0x30] sm:$0xff]  ;;  %v9664_v26 = vld [vmem:[#allocation4 + $0x38] sm:$0xff] }
 0xb2e   : > { %v9616_v2 = vmul.f32 %v10570_v56, %v9585_v59  ;;  %v9617_v3 = vmul.f32 %v10570_v56, %v9586_v42  ;;  %v9618_v22 = vmul.f32 %v10570_v56, %v9587_v52  ;;  %v9619_v45 = vmul.f32 %v10570_v56, %v9588_v15  ;;  %v9665_v15 = vld [vmem:[#allocation4 + $0x40] sm:$0xff] }
 0xb2f   : > { %v9620_v41 = vmul.f32 %v10570_v56, %v9589_v39  ;;  %v9621_v23 = vmul.f32 %v10570_v56, %v9590_v6  ;;  %v9622_v60 = vmul.f32 %v10570_v56, %v9591_v63  ;;  %v9623_v53 = vmul.f32 %v10570_v56, %v9592_v37  ;;  %v9666_v39 = vld [vmem:[#allocation4 + $0x48] sm:$0xff]  ;;  %v9667_v6 = vld [vmem:[#allocation4 + $0x50] sm:$0xff] }
 0xb30   : > { %v9624_v57 = vmul.f32 %v10570_v56, %v9593_v30  ;;  %v9625_v12 = vmul.f32 %v10570_v56, %v9594_v29  ;;  %v9632_v33 = vadd.f32 %v10571_v16, %v9601_v35  ;;  %v9633_v51 = vadd.f32 %v10571_v16, %v9602_v49  ;;  %v9669_v29 = vld [vmem:[#allocation4 + $0x60] sm:$0xff]  ;;  %v9670_v35 = vld [vmem:[#allocation4 + $0x68] sm:$0xff] }
 0xb31   : > { %v9634_v14 = vadd.f32 %v10571_v16, %v9603_v58  ;;  %v9635_v9 = vadd.f32 %v10571_v16, %v9604_v11  ;;  %v9636_v7 = vadd.f32 %v10571_v16, %v9605_v0  ;;  %v9637_v47 = vadd.f32 %v10571_v16, %v9606_v1  ;;  %v9671_v58 = vld [vmem:[#allocation4 + $0x70] sm:$0xff]  ;;  %v9672_v11 = vld [vmem:[#allocation4 + $0x78] sm:$0xff]  ;;  %v9673_v0 = vld [vmem:[#allocation4 + $0x80] sm:$0xff] }
 0xb32   : > { %v9638_v43 = vadd.f32 %v10571_v16, %v9607_v18  ;;  %v9639_v36 = vadd.f32 %v10571_v16, %v9608_v28  ;;  %v9640_v24 = vadd.f32 %v10571_v16, %v9609_v62  ;;  %v9641_v17 = vadd.f32 %v10571_v16, %v9610_v48  ;;  %v9674_v62 = vld [vmem:[#allocation4 + $0x88] sm:$0xff]  ;;  %v9675_v48 = vld [vmem:[#allocation4 + $0x90] sm:$0xff] }
 0xb33   : > { %v9642_v8 = vadd.f32 %v10571_v16, %v9611_v54  ;;  %v9643_v21 = vadd.f32 %v10571_v16, %v9612_v40  ;;  %v9644_v61 = vadd.f32 %v10571_v16, %v9613_v4  ;;  %v9645_v46 = vadd.f32 %v10571_v16, %v9614_v31  ;;  %v9676_v54 = vld [vmem:[#allocation4 + $0x98] sm:$0xff] }
 0xb34   : > { %v9646_v38 = vadd.f32 %v10571_v16, %v9615_v50  ;;  %v9647_v55 = vadd.f32 %v10571_v16, %v9616_v2  ;;  %v9648_v59 = vadd.f32 %v10571_v16, %v9617_v3  ;;  %v9649_v56 = vadd.f32 %v10571_v16, %v9618_v22  ;;  %v9678_v2 = vld [vmem:[#allocation4 + $0xa8] sm:$0xff]  ;;  %v9679_v3 = vld [vmem:[#allocation4 + $0xb0] sm:$0xff] }
 0xb35   : > { %v9650_v42 = vadd.f32 %v10571_v16, %v9619_v45  ;;  %v9651_v52 = vadd.f32 %v10571_v16, %v9620_v41  ;;  %v9652_v63 = vadd.f32 %v10571_v16, %v9621_v23  ;;  %v9653_v37 = vadd.f32 %v10571_v16, %v9622_v60  ;;  %v9680_v60 = vld [vmem:[#allocation4 + $0xb8] sm:$0xff] }
 0xb36   : > { %v9654_v30 = vadd.f32 %v10571_v16, %v9623_v53  ;;  %v9655_v27 = vadd.f32 %v10571_v16, %v9624_v57  ;;  %v9656_v49 = vadd.f32 %v10571_v16, %v9625_v12  ;;  %v17939_v1 = vadd.f32 %v9657_v32, %v9632_v33  ;;  %v9677_v16 = vld [vmem:[#allocation4 + $0xa0] sm:$0xff] }
 0xb37   : > { %v17941_v18 = vadd.f32 %v9658_v34, %v9633_v51  ;;  %v17943_v28 = vadd.f32 %v9659_v10, %v9634_v14  ;;  %v17945_v40 = vadd.f32 %v9660_v44, %v9635_v9  ;;  %v17947_v4 = vadd.f32 %v9661_v20, %v9636_v7  ;;  %v9681_v53 = vld [vmem:[#allocation4 + $0xc0] sm:$0xff] }
 0xb38   : > { %v17949_v31 = vadd.f32 %v9662_v5, %v9637_v47  ;;  %v17951_v50 = vadd.f32 %v9663_v13, %v9638_v43  ;;  %v17953_v22 = vadd.f32 %v9664_v26, %v9639_v36  ;;  %v17955_v45 = vadd.f32 %v9665_v15, %v9640_v24 }
 0xb39   : > { %v17957_v41 = vadd.f32 %v9666_v39, %v9641_v17  ;;  %v17959_v23 = vadd.f32 %v9667_v6, %v9642_v8  ;;  %v17961_v57 = vadd.f32 %v9668_v19, %v9643_v21  ;;  %v17963_v12 = vadd.f32 %v9669_v29, %v9644_v61 }
 0xb3a   : > { %v17965_v33 = vadd.f32 %v9670_v35, %v9645_v46  ;;  %v17967_v51 = vadd.f32 %v9671_v58, %v9646_v38  ;;  %v17969_v14 = vadd.f32 %v9672_v11, %v9647_v55  ;;  %v17971_v9 = vadd.f32 %v9673_v0, %v9648_v59 }
 0xb3b   : > { %v17973_v7 = vadd.f32 %v9674_v62, %v9649_v56  ;;  %v17975_v47 = vadd.f32 %v9675_v48, %v9650_v42  ;;  %v17977_v43 = vadd.f32 %v9676_v54, %v9651_v52  ;;  %v17979_v36 = vadd.f32 %v9677_v16, %v9652_v63 }
 0xb3c   : > { %v17981_v32 = vadd.f32 %v9678_v2, %v9653_v37  ;;  %v17983_v34 = vadd.f32 %v9679_v3, %v9654_v30  ;;  %v17985_v24 = vadd.f32 %v9680_v60, %v9655_v27  ;;  %v17987_v17 = vadd.f32 %v9681_v53, %v9656_v49 }
 0xb3d   : > { %vm9708_vm6 = vcmp.ge.f32.partialorder %v17939_v1, 0.0  ;;  %vm9709_vm9 = vcmp.ge.f32.partialorder %v17941_v18, 0.0  ;;  %vm9710_vm11 = vcmp.ge.f32.partialorder %v17943_v28, 0.0  ;;  %vm9711_vm13 = vcmp.ge.f32.partialorder %v17945_v40, 0.0 }
 0xb3e   : > { %vm9712_vm14 = vcmp.ge.f32.partialorder %v17947_v4, 0.0  ;;  %vm9713_vm12 = vcmp.ge.f32.partialorder %v17949_v31, 0.0  ;;  %vm9720_vm3 = vcmp.ge.f32.partialorder %v17963_v12, 0.0  ;;  %vm9721_vm4 = vcmp.ge.f32.partialorder %v17965_v33, 0.0 }
 0xb3f   : > { %vm9722_vm10 = vcmp.ge.f32.partialorder %v17967_v51, 0.0  ;;  %vm9723_vm5 = vcmp.ge.f32.partialorder %v17969_v14, 0.0  ;;  %vm9727_vm15 = vcmp.ge.f32.partialorder %v17977_v43, 0.0  ;;  %vm9728_vm1 = vcmp.ge.f32.partialorder %v17979_v36, 0.0 }
 0xb40   : > { %vm9729_vm2 = vcmp.ge.f32.partialorder %v17981_v32, 0.0  ;;  %v9734_v8 = vmul.f32 %v17934_v25, %v17939_v1  ;;  %v9735_v21 = vmul.f32 %v17934_v25, %v17941_v18  ;;  %v9736_v10 = vmul.f32 %v17934_v25, %v17943_v28 }
 0xb41   : > { %vm9730_vm7 = vcmp.ge.f32.partialorder %v17983_v34, 0.0  ;;  %vm9731_vm8 = vcmp.ge.f32.partialorder %v17985_v24, 0.0  ;;  %v9737_v44 = vmul.f32 %v17934_v25, %v17945_v40  ;;  %v9738_v20 = vmul.f32 %v17934_v25, %v17947_v4 }
 0xb42   : > { %v9739_v61 = vmul.f32 %v17934_v25, %v17949_v31  ;;  %v9740_v46 = vmul.f32 %v17934_v25, %v17951_v50  ;;  %v9741_v38 = vmul.f32 %v17934_v25, %v17953_v22  ;;  %v9742_v55 = vmul.f32 %v17934_v25, %v17955_v45 }
 0xb43   : > { %v9743_v5 = vmul.f32 %v17934_v25, %v17957_v41  ;;  %v9744_v13 = vmul.f32 %v17934_v25, %v17959_v23  ;;  %v9745_v26 = vmul.f32 %v17934_v25, %v17961_v57  ;;  %v9746_v59 = vmul.f32 %v17934_v25, %v17963_v12 }
 0xb44   : > { %v9747_v56 = vmul.f32 %v17934_v25, %v17965_v33  ;;  %v9748_v42 = vmul.f32 %v17934_v25, %v17967_v51  ;;  %v9749_v52 = vmul.f32 %v17934_v25, %v17969_v14  ;;  %v9750_v15 = vmul.f32 %v17934_v25, %v17971_v9 }
 0xb45   : > { %v9751_v39 = vmul.f32 %v17934_v25, %v17973_v7  ;;  %v9752_v6 = vmul.f32 %v17934_v25, %v17975_v47  ;;  %v9753_v63 = vmul.f32 %v17934_v25, %v17977_v43  ;;  %v9754_v37 = vmul.f32 %v17934_v25, %v17979_v36 }
 0xb46   : > { %v9755_v30 = vmul.f32 %v17934_v25, %v17981_v32  ;;  %v9756_v27 = vmul.f32 %v17934_v25, %v17983_v34  ;;  %v9757_v19 = vmul.f32 %v17934_v25, %v17985_v24  ;;  %v9758_v29 = vmul.f32 %v17934_v25, %v17987_v17 }
 0xb47   : > { %v9759_v35 = vsel %vm9708_vm6, %v17939_v1, %v9734_v8  ;;  %v9760_v49 = vsel %vm9709_vm9, %v17941_v18, %v9735_v21  ;;  %v9761_v58 = vsel %vm9710_vm11, %v17943_v28, %v9736_v10  ;;  %v9762_v11 = vsel %vm9711_vm13, %v17945_v40, %v9737_v44 }
 0xb48   : > { %v9763_v25 = vsel %vm9712_vm14, %v17947_v4, %v9738_v20  ;;  %v9764_v0 = vsel %vm9713_vm12, %v17949_v31, %v9739_v61  ;;  %vm18774_vm6 = vcmp.ge.f32.partialorder %v17951_v50, 0.0  ;;  %vm18775_vm9 = vcmp.ge.f32.partialorder %v17953_v22, 0.0 }
 0xb49   : > { %v9765_v1 = vsel %vm18774_vm6, %v17951_v50, %v9740_v46  ;;  %v9766_v18 = vsel %vm18775_vm9, %v17953_v22, %v9741_v38  ;;  %vm18776_vm11 = vcmp.ge.f32.partialorder %v17955_v45, 0.0  ;;  %vm18777_vm13 = vcmp.ge.f32.partialorder %v17957_v41, 0.0 }
 0xb4a   : > { %v9767_v28 = vsel %vm18776_vm11, %v17955_v45, %v9742_v55  ;;  %v9768_v62 = vsel %vm18777_vm13, %v17957_v41, %v9743_v5  ;;  %vm18778_vm14 = vcmp.ge.f32.partialorder %v17959_v23, 0.0  ;;  %vm18779_vm12 = vcmp.ge.f32.partialorder %v17961_v57, 0.0 }
 0xb4b   : > { %v9769_v48 = vsel %vm18778_vm14, %v17959_v23, %v9744_v13  ;;  %v9770_v54 = vsel %vm18779_vm12, %v17961_v57, %v9745_v26  ;;  %v9771_v40 = vsel %vm9720_vm3, %v17963_v12, %v9746_v59  ;;  %v9772_v4 = vsel %vm9721_vm4, %v17965_v33, %v9747_v56 }
 0xb4c   : > { %v9773_v31 = vsel %vm9722_vm10, %v17967_v51, %v9748_v42  ;;  %v9774_v50 = vsel %vm9723_vm5, %v17969_v14, %v9749_v52  ;;  %vm18780_vm6 = vcmp.ge.f32.partialorder %v17971_v9, 0.0  ;;  %vm18781_vm9 = vcmp.ge.f32.partialorder %v17973_v7, 0.0 }
 0xb4d   : > { %v9775_v16 = vsel %vm18780_vm6, %v17971_v9, %v9750_v15  ;;  %v9776_v2 = vsel %vm18781_vm9, %v17973_v7, %v9751_v39  ;;  %vm18782_vm3 = vcmp.ge.f32.partialorder %v17975_v47, 0.0  ;;  %v9778_v22 = vsel %vm9727_vm15, %v17977_v43, %v9753_v63 }
 0xb4e   : > { %v9777_v3 = vsel %vm18782_vm3, %v17975_v47, %v9752_v6  ;;  %v9779_v45 = vsel %vm9728_vm1, %v17979_v36, %v9754_v37  ;;  %v9780_v41 = vsel %vm9729_vm2, %v17981_v32, %v9755_v30  ;;  %v9781_v23 = vsel %vm9730_vm7, %v17983_v34, %v9756_v27 }
 0xb4f   : > { %v9782_v60 = vsel %vm9731_vm8, %v17985_v24, %v9757_v19  ;;  %vm18783_vm4 = vcmp.ge.f32.partialorder %v17987_v17, 0.0  ;;  %v10600_v57 = vpack.c.bf16 %v9759_v35, %v9759_v35  ;;  %v10601_v12 = vpack.c.bf16 %v9760_v49, %v9760_v49 }
 0xb50   : > { %v9783_v53 = vsel %vm18783_vm4, %v17987_v17, %v9758_v29  ;;  %v10602_v33 = vpack.c.bf16 %v9761_v58, %v9761_v58  ;;  %v10603_v51 = vpack.c.bf16 %v9762_v11, %v9762_v11  ;;  %v10604_v14 = vpack.c.bf16 %v9763_v25, %v9763_v25 }
 0xb51   : > { %v10605_v9 = vpack.c.bf16 %v9764_v0, %v9764_v0  ;;  %v10606_v7 = vpack.c.bf16 %v9765_v1, %v9765_v1  ;;  %v10607_v47 = vpack.c.bf16 %v9766_v18, %v9766_v18  ;;  %v10608_v43 = vpack.c.bf16 %v9767_v28, %v9767_v28  ;;  %9886 = vst.msk [vmem:[%s18254_s12] sm:$0xf] %vm9885_vm0, %v10600_v57 }
 0xb52   : > { %v10609_v36 = vpack.c.bf16 %v9768_v62, %v9768_v62  ;;  %v10610_v32 = vpack.c.bf16 %v9769_v48, %v9769_v48  ;;  %v10611_v34 = vpack.c.bf16 %v9770_v54, %v9770_v54  ;;  %v10612_v24 = vpack.c.bf16 %v9771_v40, %v9771_v40  ;;  %9887 = vst.msk [vmem:[%s18254_s12 + $0x4] sm:$0xf] %vm9885_vm0, %v10601_v12 }
 0xb53   : > { %9888 = vst.msk [vmem:[%s18254_s12 + $0x8] sm:$0xf] %vm9885_vm0, %v10602_v33  ;;  %9889 = vst.msk [vmem:[%s18254_s12 + $0xc] sm:$0xf] %vm9885_vm0, %v10603_v51  ;;  %v10613_v17 = vpack.c.bf16 %v9772_v4, %v9772_v4  ;;  %v10614_v8 = vpack.c.bf16 %v9773_v31, %v9773_v31  ;;  %v10615_v21 = vpack.c.bf16 %v9774_v50, %v9774_v50 }
 0xb54   : > { %9890 = vst.msk [vmem:[%s18254_s12 + $0x10] sm:$0xf] %vm9885_vm0, %v10604_v14  ;;  %v10616_v10 = vpack.c.bf16 %v9775_v16, %v9775_v16  ;;  %9891 = vst.msk [vmem:[%s18254_s12 + $0x14] sm:$0xf] %vm9885_vm0, %v10605_v9  ;;  %v10617_v44 = vpack.c.bf16 %v9776_v2, %v9776_v2  ;;  %v10618_v20 = vpack.c.bf16 %v9777_v3, %v9777_v3 }
 0xb55   : > { %9892 = vst.msk [vmem:[%s18254_s12 + $0x18] sm:$0xf] %vm9885_vm0, %v10606_v7  ;;  %9893 = vst.msk [vmem:[%s18254_s12 + $0x1c] sm:$0xf] %vm9885_vm0, %v10607_v47  ;;  %v10619_v61 = vpack.c.bf16 %v9778_v22, %v9778_v22  ;;  %v10620_v46 = vpack.c.bf16 %v9779_v45, %v9779_v45  ;;  %v10621_v38 = vpack.c.bf16 %v9780_v41, %v9780_v41 }
 0xb56   : > { %9894 = vst.msk [vmem:[%s18254_s12 + $0x20] sm:$0xf] %vm9885_vm0, %v10608_v43  ;;  %9895 = vst.msk [vmem:[%s18254_s12 + $0x24] sm:$0xf] %vm9885_vm0, %v10609_v36  ;;  %v10622_v55 = vpack.c.bf16 %v9781_v23, %v9781_v23  ;;  %v10623_v5 = vpack.c.bf16 %v9782_v60, %v9782_v60  ;;  %v10624_v13 = vpack.c.bf16 %v9783_v53, %v9783_v53 }
 0xb57   : > { %9896 = vst.msk [vmem:[%s18254_s12 + $0x28] sm:$0xf] %vm9885_vm0, %v10610_v32  ;;  %9897 = vst.msk [vmem:[%s18254_s12 + $0x2c] sm:$0xf] %vm9885_vm0, %v10611_v34 }
 0xb58   : > { %9898 = vst.msk [vmem:[%s18254_s12 + $0x30] sm:$0xf] %vm9885_vm0, %v10612_v24  ;;  %9899 = vst.msk [vmem:[%s18254_s12 + $0x34] sm:$0xf] %vm9885_vm0, %v10613_v17 }
 0xb59   : > { %9900 = vst.msk [vmem:[%s18254_s12 + $0x38] sm:$0xf] %vm9885_vm0, %v10614_v8  ;;  %9901 = vst.msk [vmem:[%s18254_s12 + $0x3c] sm:$0xf] %vm9885_vm0, %v10615_v21 }
 0xb5a   : > { %9902 = vst.msk [vmem:[%s18254_s12 + $0x40] sm:$0xf] %vm9885_vm0, %v10616_v10  ;;  %9903 = vst.msk [vmem:[%s18254_s12 + $0x44] sm:$0xf] %vm9885_vm0, %v10617_v44 }
 0xb5b   : > { %9904 = vst.msk [vmem:[%s18254_s12 + $0x48] sm:$0xf] %vm9885_vm0, %v10618_v20  ;;  %9905 = vst.msk [vmem:[%s18254_s12 + $0x4c] sm:$0xf] %vm9885_vm0, %v10619_v61 }
 0xb5c   : > { %9906 = vst.msk [vmem:[%s18254_s12 + $0x50] sm:$0xf] %vm9885_vm0, %v10620_v46  ;;  %9907 = vst.msk [vmem:[%s18254_s12 + $0x54] sm:$0xf] %vm9885_vm0, %v10621_v38 }
 0xb5d   : > { %9908 = vst.msk [vmem:[%s18254_s12 + $0x58] sm:$0xf] %vm9885_vm0, %v10622_v55  ;;  %9909 = vst.msk [vmem:[%s18254_s12 + $0x5c] sm:$0xf] %vm9885_vm0, %v10623_v5 }
 0xb5e   : > { %9910 = vst.msk [vmem:[%s18254_s12 + $0x60] sm:$0xf] %vm9885_vm0, %v10624_v13 }
 0xb5f PF: > { %s23_s21 = sadd.s32 1, %s13010_s21  }
 0xb60   : > { %p20_p3 = scmp.ge.s32.totalorder %s23_s21, 18  }
 0xb62   :  { %22 = sbr.rel (!%p20_p3) target bundleno = 1 (0x1), region = 120 }
 0xb67   :  { %9922 = vsyncpa [#allocation6], 1 }
 0xb68   :  { %9924 = vsyncpa [#allocation6 + $0x1], 1 }

</bundles_post_ra>
